<compile_context>
chip_gen: v6e
topology: v6e:2x2x1
jax: 0.10.0
libtpu: 0.0.40
codegen_flags: <defaults>
</compile_context>

<pallas_src>
import numpy as np
import jax
import jax.numpy as jnp
from jax.experimental import pallas as pl
from jax.experimental.pallas import tpu as pltpu

VMEM_LIMIT = 32 * 1024 * 1024   # explicit VMEM budget; safe on v5e / v6e / v7x


def _round_up(v, m):
    return (v + m - 1) // m * m


# ----------------------------- Pallas kernels ------------------------------

def _make_conv_kernel(res_mode, has_bn, dual):
    """Fused conv-as-matmul kernel:
         acc = W @ P + b                      (bf16 MXU dot, f32 accumulate)
         acc += residual   |   acc += Wsc @ Psc + bsc    (fused shortcut)
         act  = relu(acc * scale + shift)     (next layer's BN+ReLU, f32 math)
       Outputs: raw f32 and/or activated bf16 tiles."""

    def kernel(*refs):
        refs = list(refs)
        p_ref = refs.pop(0)          # (K, bm)    bf16 im2col patches
        w_ref = refs.pop(0)          # (Cout, K)  bf16 weights
        b_ref = refs.pop(0)          # (Cout, 1)  f32 bias
        acc = jnp.dot(w_ref[...], p_ref[...],
                      preferred_element_type=jnp.float32) + b_ref[...]
        if res_mode == "add":
            r_ref = refs.pop(0)      # (Cout, bm) f32 identity shortcut
            acc = acc + r_ref[...]
        elif res_mode == "conv":
            wsc_ref = refs.pop(0)    # (Cout, Cin) bf16 1x1 shortcut weights
            psc_ref = refs.pop(0)    # (Cin, bm)   bf16 strided-subsampled input
            bsc_ref = refs.pop(0)    # (Cout, 1)   f32
            acc = acc + jnp.dot(wsc_ref[...], psc_ref[...],
                                preferred_element_type=jnp.float32) + bsc_ref[...]
        if has_bn:
            scale_ref = refs.pop(0)  # (Cout, 1) f32
            shift_ref = refs.pop(0)  # (Cout, 1) f32
            act = jnp.maximum(acc * scale_ref[...] + shift_ref[...], 0.0)
        if dual:
            raw_ref = refs.pop(0)
            act_ref = refs.pop(0)
            raw_ref[...] = acc
            act_ref[...] = act.astype(act_ref.dtype)
        elif has_bn:
            act_ref = refs.pop(0)
            act_ref[...] = act.astype(act_ref.dtype)
        else:
            raw_ref = refs.pop(0)
            raw_ref[...] = acc

    return kernel


def _pool_fc_kernel(x_ref, s_ref, w_ref, b_ref, o_ref):
    # x: (C, N*HW) activated features; s: (N*HW, N) avg-pool matrix (1/HW per sample)
    # w: (num_classes, C); b: (num_classes, 1); o: (num_classes, N)  (transposed logits)
    x = x_ref[...].astype(jnp.float32)
    pooled = jnp.dot(x, s_ref[...], preferred_element_type=jnp.float32)      # (C, N)
    o_ref[...] = jnp.dot(w_ref[...], pooled,
                         preferred_element_type=jnp.float32) + b_ref[...]


# ----------------------------- Pallas wrappers ------------------------------

def fused_conv(patches, w, b, *, res=None, sc=None, bn=None, dual=False,
               act_dtype=jnp.bfloat16):
    """conv-as-matmul with fused bias / residual / 1x1-shortcut / BN+ReLU epilogue.

    patches: (K, M) bf16     w: (Cout, K) bf16     b: (Cout,) f32
    res:     (Cout, M) f32 identity shortcut (optional)
    sc:      (wsc (Cout,Cin) bf16, psc (Cin,M) bf16, bsc (Cout,) f32) conv shortcut
    bn:      (scale (Cout,), shift (Cout,)) f32 applied with ReLU after the adds
    dual:    emit (raw f32, activated act_dtype); else a single output.
    """
    k, m = patches.shape
    cout = w.shape[0]
    assert w.shape[1] == k
    if dual:
        assert bn is not None
    res_mode = "conv" if sc is not None else ("add" if res is not None else None)
    has_bn = bn is not None

    # Split the lane/M axis into 2 parallel blocks when possible (v7x megacore);
    # blocks stay multiples of 128 lanes so stores remain unmasked.
    gm = 2 if m % 256 == 0 else 1
    bm = m // gm

    in_specs = [pl.BlockSpec((k, bm), lambda i: (0, i)),
                pl.BlockSpec((cout, k), lambda i: (0, 0)),
                pl.BlockSpec((cout, 1), lambda i: (0, 0))]
    args = [patches, w, b.reshape(cout, 1)]
    if res_mode == "add":
        in_specs.append(pl.BlockSpec((cout, bm), lambda i: (0, i)))
        args.append(res)
    elif res_mode == "conv":
        wsc, psc, bsc = sc
        cin = wsc.shape[1]
        in_specs += [pl.BlockSpec((cout, cin), lambda i: (0, 0)),
                     pl.BlockSpec((cin, bm), lambda i: (0, i)),
                     pl.BlockSpec((cout, 1), lambda i: (0, 0))]
        args += [wsc, psc, bsc.reshape(cout, 1)]
    if has_bn:
        scale, shift = bn
        in_specs += [pl.BlockSpec((cout, 1), lambda i: (0, 0)),
                     pl.BlockSpec((cout, 1), lambda i: (0, 0))]
        args += [scale.reshape(cout, 1), shift.reshape(cout, 1)]

    out_block = pl.BlockSpec((cout, bm), lambda i: (0, i))
    if dual:
        out_shape = (jax.ShapeDtypeStruct((cout, m), jnp.float32),
                     jax.ShapeDtypeStruct((cout, m), act_dtype))
        out_specs = (out_block, out_block)
    elif has_bn:
        out_shape = jax.ShapeDtypeStruct((cout, m), act_dtype)
        out_specs = out_block
    else:
        out_shape = jax.ShapeDtypeStruct((cout, m), jnp.float32)
        out_specs = out_block

    return pl.pallas_call(
        _make_conv_kernel(res_mode, has_bn, dual),
        out_shape=out_shape,
        grid_spec=pltpu.PrefetchScalarGridSpec(
            num_scalar_prefetch=0,
            grid=(gm,),
            in_specs=in_specs,
            out_specs=out_specs),
        compiler_params=pltpu.CompilerParams(
            dimension_semantics=("parallel",),
            vmem_limit_bytes=VMEM_LIMIT),
    )(*args)


def pool_fc(act, w_fc, b_fc, n_batch):
    """F.avg_pool2d(out, 8) + view + Linear fused into one kernel.
    act: (C, N*HW) activated features (bf16).  Returns (N, num_classes) f32."""
    c, m = act.shape
    hw = m // n_batch
    ncls = w_fc.shape[0]
    # pooling matrix: row (n*hw + s) selects sample n with weight 1/hw
    s_mat = jnp.repeat(jnp.eye(n_batch, dtype=jnp.float32), hw, axis=0) / float(hw)
    out_t = pl.pallas_call(
        _pool_fc_kernel,
        out_shape=jax.ShapeDtypeStruct((ncls, n_batch), jnp.float32),
        grid_spec=pltpu.PrefetchScalarGridSpec(
            num_scalar_prefetch=0,
            grid=(1,),
            in_specs=[pl.BlockSpec((c, m), lambda i: (0, 0)),
                      pl.BlockSpec((m, n_batch), lambda i: (0, 0)),
                      pl.BlockSpec((ncls, c), lambda i: (0, 0)),
                      pl.BlockSpec((ncls, 1), lambda i: (0, 0))],
            out_specs=pl.BlockSpec((ncls, n_batch), lambda i: (0, 0))),
        compiler_params=pltpu.CompilerParams(
            dimension_semantics=("arbitrary",),
            vmem_limit_bytes=VMEM_LIMIT),
    )(act, s_mat, w_fc.astype(jnp.float32),
      b_fc.reshape(ncls, 1).astype(jnp.float32))
    return out_t.T


# ----------------------------- conv glue ------------------------------------

def im2col_chw(x, ksize, stride, pad):
    """x: (C, N, H, W) -> patches (K_pad, N*Ho*Wo), Ho, Wo.
    K order is (ci, kh, kw) == a PyTorch OIHW weight reshaped to (Cout, Cin*k*k).
    K is zero-padded to a multiple of 16 (matches the weight padding)."""
    c, n, h, w = x.shape
    if pad:
        x = jnp.pad(x, ((0, 0), (0, 0), (pad, pad), (pad, pad)))
    ho = (h + 2 * pad - ksize) // stride + 1
    wo = (w + 2 * pad - ksize) // stride + 1
    cols = []
    for kh in range(ksize):
        for kw in range(ksize):
            cols.append(x[:, :, kh:kh + ho * stride:stride,
                          kw:kw + wo * stride:stride])
    p = jnp.stack(cols, axis=1).reshape(c * ksize * ksize, n * ho * wo)
    k = c * ksize * ksize
    kp = _round_up(k, 16)
    if kp != k:
        p = jnp.pad(p, ((0, kp - k), (0, 0)))
    return p, ho, wo


# ----------------------------- parameter prep -------------------------------

def _bn_fold(bn, eps=1e-5):
    scale = bn['gamma'] / jnp.sqrt(bn['var'] + eps)
    shift = bn['beta'] - bn['mean'] * scale
    return scale.astype(jnp.float32), shift.astype(jnp.float32)


def _wmat(w_oihw):
    # OIHW -> (Cout, Cin*kh*kw) in (ci, kh, kw) order, bf16, K padded to mult of 16.
    cout = w_oihw.shape[0]
    w2 = w_oihw.reshape(cout, -1)
    k = w2.shape[1]
    kp = _round_up(k, 16)
    if kp != k:
        w2 = jnp.pad(w2, ((0, 0), (0, kp - k)))
    return w2.astype(jnp.bfloat16)


def prepare_params(params):
    """Fold BN into scale/shift, reshape/cast conv weights to bf16 matmul form.
    Returns (array-only params pytree, static architecture description)."""
    fp = {'conv1_w': _wmat(params['conv1_w']),
          'conv1_b': params['conv1_b'].astype(jnp.float32),
          'fc_w': params['fc_w'].astype(jnp.float32),
          'fc_b': params['fc_b'].astype(jnp.float32)}
    fp['bnf_scale'], fp['bnf_shift'] = _bn_fold(params['bn_final'])
    fblocks, arch = [], []
    for bp in params['blocks']:
        fb = {'conv1_w': _wmat(bp['conv1_w']),
              'conv1_b': bp['conv1_b'].astype(jnp.float32),
              'conv2_w': _wmat(bp['conv2_w']),
              'conv2_b': bp['conv2_b'].astype(jnp.float32)}
        fb['bn1_scale'], fb['bn1_shift'] = _bn_fold(bp['bn1'])
        fb['bn2_scale'], fb['bn2_shift'] = _bn_fold(bp['bn2'])
        has_sc = 'sc_w' in bp
        if has_sc:
            fb['sc_w'] = _wmat(bp['sc_w'])                 # (Cout, Cin) for 1x1
            fb['sc_b'] = bp['sc_b'].astype(jnp.float32)
        fblocks.append(fb)
        arch.append({'stride': int(bp['stride']), 'has_sc': has_sc})
    fp['blocks'] = fblocks
    return fp, arch


# ----------------------------- model -----------------------------------------

def wide_resnet_fwd(fp, arch, x_nchw):
    n = x_nchw.shape[0]
    x = jnp.transpose(x_nchw, (1, 0, 2, 3)).astype(jnp.float32)   # (C, N, H, W)
    blocks = fp['blocks']

    # Stem conv fused with block0's bn1+ReLU (dual output: raw f32 for block0's
    # shortcut path, activated bf16 feeding block0.conv1).
    p, h, w = im2col_chw(x.astype(jnp.bfloat16), 3, 1, 1)
    b0 = blocks[0]
    raw, act = fused_conv(p, fp['conv1_w'], fp['conv1_b'],
                          bn=(b0['bn1_scale'], b0['bn1_shift']), dual=True)
    cin = raw.shape[0]

    for i, (fb, a) in enumerate(zip(blocks, arch)):
        s = a['stride']
        planes = fb['conv1_w'].shape[0]
        last = i == len(blocks) - 1
        if last:
            nscale, nshift = fp['bnf_scale'], fp['bnf_shift']
        else:
            nscale, nshift = blocks[i + 1]['bn1_scale'], blocks[i + 1]['bn1_shift']

        # conv1 (3x3, stride 1, pad 1) with fused bias + bn2 + ReLU epilogue.
        # TODO(synk): dropout after conv1 is identity (inference semantics).
        p1, h1, w1 = im2col_chw(act.reshape(cin, n, h, w), 3, 1, 1)
        o1 = fused_conv(p1, fb['conv1_w'], fb['conv1_b'],
                        bn=(fb['bn2_scale'], fb['bn2_shift']), dual=False)

        # conv2 (3x3, stride s, pad 1) with fused bias + shortcut + next BN+ReLU.
        p2, h2, w2 = im2col_chw(o1.reshape(planes, n, h1, w1), 3, s, 1)
        res, sc = None, None
        if a['has_sc']:
            psc = raw.reshape(cin, n, h, w)[:, :, ::s, ::s].reshape(cin, n * h2 * w2)
            kp = fb['sc_w'].shape[1]
            if kp != cin:
                psc = jnp.pad(psc, ((0, kp - cin), (0, 0)))
            sc = (fb['sc_w'], psc.astype(jnp.bfloat16), fb['sc_b'])
        else:
            res = raw
        outs = fused_conv(p2, fb['conv2_w'], fb['conv2_b'],
                          res=res, sc=sc, bn=(nscale, nshift), dual=not last)
        if last:
            act = outs            # relu(bn_final(.)) already applied
        else:
            raw, act = outs
        cin, h, w = planes, h2, w2

    return pool_fc(act, fp['fc_w'], fp['fc_b'], n)     # (N, num_classes)


# ----------------------------- deterministic init ---------------------------

def init_conv(key, cout, cin, k):
    fan_in = cin * k * k
    w = jax.random.normal(key, (cout, cin, k, k), jnp.float32) / np.sqrt(fan_in)
    b = jnp.zeros((cout,), jnp.float32)
    return w, b


def init_bn(c):
    return dict(gamma=jnp.ones((c,), jnp.float32),
                beta=jnp.zeros((c,), jnp.float32),
                mean=jnp.zeros((c,), jnp.float32),
                var=jnp.ones((c,), jnp.float32))


def init_wide_resnet(key, depth, widen_factor, num_classes):
    assert (depth - 4) % 6 == 0, 'Wide-resnet depth should be 6n+4'
    nb = (depth - 4) // 6
    k = widen_factor
    stages = [16, 16 * k, 32 * k, 64 * k]
    keys = iter(jax.random.split(key, 64))
    params = {}
    params['conv1_w'], params['conv1_b'] = init_conv(next(keys), stages[0], 3, 3)
    in_planes = stages[0]
    blocks = []
    for planes, stride0 in zip(stages[1:], (1, 2, 2)):
        for s in [stride0] + [1] * (nb - 1):
            bp = {'bn1': init_bn(in_planes), 'bn2': init_bn(planes), 'stride': s}
            bp['conv1_w'], bp['conv1_b'] = init_conv(next(keys), planes, in_planes, 3)
            bp['conv2_w'], bp['conv2_b'] = init_conv(next(keys), planes, planes, 3)
            if s != 1 or in_planes != planes:
                bp['sc_w'], bp['sc_b'] = init_conv(next(keys), planes, in_planes, 1)
            blocks.append(bp)
            in_planes = planes
    params['blocks'] = blocks
    params['bn_final'] = init_bn(stages[3])
    params['fc_w'] = (jax.random.normal(next(keys), (num_classes, stages[3]),
                                        jnp.float32) / np.sqrt(stages[3]))
    params['fc_b'] = jnp.zeros((num_classes,), jnp.float32)
    return params


# ----------------------------- main ------------------------------------------

if __name__ == "__main__":
    key = jax.random.PRNGKey(0)
    pkey, xkey = jax.random.split(key)

    # Wide-ResNet 10x1 (1 block per stage), 10 classes, CIFAR-like 32x32 input.
    params = init_wide_resnet(pkey, depth=10, widen_factor=1, num_classes=10)
    fp, arch = prepare_params(params)

    x = jax.random.normal(xkey, (2, 3, 32, 32), jnp.float32)   # NCHW like PyTorch

    fwd = jax.jit(lambda fp_, x_: wide_resnet_fwd(fp_, arch, x_))
    out = jax.block_until_ready(fwd(fp, x))
    assert out.shape == (2, 10), out.shape
    assert bool(jnp.all(jnp.isfinite(out)))
    print("KERNEL_OK")
</pallas_src>

<mosaic_0001>
module attributes {stable_mosaic.version = 11 : i64} {
  func.func @kernel(%arg0: i32, %arg1: memref<32x1024xbf16, #tpu.memory_space<vmem>>, %arg2: memref<16x32xbf16, #tpu.memory_space<vmem>>, %arg3: memref<16x1xf32, #tpu.memory_space<vmem>>, %arg4: memref<16x1xf32, #tpu.memory_space<vmem>>, %arg5: memref<16x1xf32, #tpu.memory_space<vmem>>, %arg6: memref<16x1024xf32, #tpu.memory_space<vmem>>, %arg7: memref<16x1024xbf16, #tpu.memory_space<vmem>>) attributes {dimension_semantics = [#tpu.dimension_semantics<parallel>], iteration_bounds = array<i64: 2>, scalar_prefetch = 0 : i64, scratch_operands = 0 : i64, tpu.core_type = #tpu.core_type<tc>, window_params = [{transform_indices = @transform_0, window_bounds = array<i64: 32, 1024>}, {pipeline_mode = #tpu.pipeline_mode<synchronous>, transform_indices = @transform_1, window_bounds = array<i64: 16, 32>}, {pipeline_mode = #tpu.pipeline_mode<synchronous>, transform_indices = @transform_2, window_bounds = array<i64: 16, 1>}, {pipeline_mode = #tpu.pipeline_mode<synchronous>, transform_indices = @transform_3, window_bounds = array<i64: 16, 1>}, {pipeline_mode = #tpu.pipeline_mode<synchronous>, transform_indices = @transform_4, window_bounds = array<i64: 16, 1>}, {transform_indices = @transform_5, window_bounds = array<i64: 16, 1024>}, {transform_indices = @transform_6, window_bounds = array<i64: 16, 1024>}]} {
    %c0 = arith.constant 0 : index
    %c0_0 = arith.constant 0 : index
    %0 = vector.load %arg2[%c0, %c0_0] : memref<16x32xbf16, #tpu.memory_space<vmem>>, vector<16x32xbf16>
    %c0_1 = arith.constant 0 : index
    %c0_2 = arith.constant 0 : index
    %1 = vector.load %arg1[%c0_1, %c0_2] : memref<32x1024xbf16, #tpu.memory_space<vmem>>, vector<32x1024xbf16>
    %cst = arith.constant dense<0.000000e+00> : vector<16x1024xf32>
    %2 = tpu.matmul %0, %1, %cst {dimension_numbers = #tpu.dot_dimension_numbers<[1], [0], [0], [1], [0, 0, 1, 1], [], []>} : vector<16x32xbf16>, vector<32x1024xbf16>, vector<16x1024xf32> -> vector<16x1024xf32>
    %c0_3 = arith.constant 0 : index
    %c0_4 = arith.constant 0 : index
    %3 = vector.load %arg3[%c0_3, %c0_4] : memref<16x1xf32, #tpu.memory_space<vmem>>, vector<16x1xf32>
    %4 = vector.broadcast %3 : vector<16x1xf32> to vector<16x1024xf32>
    %5 = arith.addf %2, %4 : vector<16x1024xf32>
    %c0_5 = arith.constant 0 : index
    %c0_6 = arith.constant 0 : index
    %6 = vector.load %arg4[%c0_5, %c0_6] : memref<16x1xf32, #tpu.memory_space<vmem>>, vector<16x1xf32>
    %7 = vector.broadcast %6 : vector<16x1xf32> to vector<16x1024xf32>
    %8 = arith.mulf %5, %7 : vector<16x1024xf32>
    %c0_7 = arith.constant 0 : index
    %c0_8 = arith.constant 0 : index
    %9 = vector.load %arg5[%c0_7, %c0_8] : memref<16x1xf32, #tpu.memory_space<vmem>>, vector<16x1xf32>
    %10 = vector.broadcast %9 : vector<16x1xf32> to vector<16x1024xf32>
    %11 = arith.addf %8, %10 : vector<16x1024xf32>
    %cst_9 = arith.constant 0.000000e+00 : f32
    %12 = vector.broadcast %cst_9 : f32 to vector<16x1024xf32>
    %13 = arith.maximumf %11, %12 : vector<16x1024xf32>
    %c0_10 = arith.constant 0 : index
    %c0_11 = arith.constant 0 : index
    %14 = vector.load %arg6[%c0_10, %c0_11] : memref<16x1024xf32, #tpu.memory_space<vmem>>, vector<16x1024xf32>
    tpu.vector_store %arg6[%c0_10, %c0_11], %5 {strides = array<i32>} : memref<16x1024xf32, #tpu.memory_space<vmem>>, vector<16x1024xf32>,
    %15 = arith.truncf %13 : vector<16x1024xf32> to vector<16x1024xbf16>
    %c0_12 = arith.constant 0 : index
    %c0_13 = arith.constant 0 : index
    %16 = vector.load %arg7[%c0_12, %c0_13] : memref<16x1024xbf16, #tpu.memory_space<vmem>>, vector<16x1024xbf16>
    tpu.vector_store %arg7[%c0_12, %c0_13], %15 {strides = array<i32>} : memref<16x1024xbf16, #tpu.memory_space<vmem>>, vector<16x1024xbf16>,
    return
  }
  func.func @transform_0(%arg0: i32) -> (i32, i32) {
    %c0_i32 = arith.constant 0 : i32
    %c0_i32_0 = arith.constant 0 : i32
    return %c0_i32, %arg0 : i32, i32
  }
  func.func @transform_1(%arg0: i32) -> (i32, i32) {
    %c0_i32 = arith.constant 0 : i32
    %c0_i32_0 = arith.constant 0 : i32
    %c0_i32_1 = arith.constant 0 : i32
    return %c0_i32, %c0_i32_0 : i32, i32
  }
  func.func @transform_2(%arg0: i32) -> (i32, i32) {
    %c0_i32 = arith.constant 0 : i32
    %c0_i32_0 = arith.constant 0 : i32
    %c0_i32_1 = arith.constant 0 : i32
    return %c0_i32, %c0_i32_0 : i32, i32
  }
  func.func @transform_3(%arg0: i32) -> (i32, i32) {
    %c0_i32 = arith.constant 0 : i32
    %c0_i32_0 = arith.constant 0 : i32
    %c0_i32_1 = arith.constant 0 : i32
    return %c0_i32, %c0_i32_0 : i32, i32
  }
  func.func @transform_4(%arg0: i32) -> (i32, i32) {
    %c0_i32 = arith.constant 0 : i32
    %c0_i32_0 = arith.constant 0 : i32
    %c0_i32_1 = arith.constant 0 : i32
    return %c0_i32, %c0_i32_0 : i32, i32
  }
  func.func @transform_5(%arg0: i32) -> (i32, i32) {
    %c0_i32 = arith.constant 0 : i32
    %c0_i32_0 = arith.constant 0 : i32
    return %c0_i32, %arg0 : i32, i32
  }
  func.func @transform_6(%arg0: i32) -> (i32, i32) {
    %c0_i32 = arith.constant 0 : i32
    %c0_i32_0 = arith.constant 0 : i32
    return %c0_i32, %arg0 : i32, i32
  }
}

module attributes {stable_mosaic.version = 11 : i64} {
  func.func @kernel(%arg0: i32, %arg1: memref<144x1024xbf16, #tpu.memory_space<vmem>>, %arg2: memref<16x144xbf16, #tpu.memory_space<vmem>>, %arg3: memref<16x1xf32, #tpu.memory_space<vmem>>, %arg4: memref<16x1xf32, #tpu.memory_space<vmem>>, %arg5: memref<16x1xf32, #tpu.memory_space<vmem>>, %arg6: memref<16x1024xbf16, #tpu.memory_space<vmem>>) attributes {dimension_semantics = [#tpu.dimension_semantics<parallel>], iteration_bounds = array<i64: 2>, scalar_prefetch = 0 : i64, scratch_operands = 0 : i64, tpu.core_type = #tpu.core_type<tc>, window_params = [{transform_indices = @transform_0, window_bounds = array<i64: 144, 1024>}, {pipeline_mode = #tpu.pipeline_mode<synchronous>, transform_indices = @transform_1, window_bounds = array<i64: 16, 144>}, {pipeline_mode = #tpu.pipeline_mode<synchronous>, transform_indices = @transform_2, window_bounds = array<i64: 16, 1>}, {pipeline_mode = #tpu.pipeline_mode<synchronous>, transform_indices = @transform_3, window_bounds = array<i64: 16, 1>}, {pipeline_mode = #tpu.pipeline_mode<synchronous>, transform_indices = @transform_4, window_bounds = array<i64: 16, 1>}, {transform_indices = @transform_5, window_bounds = array<i64: 16, 1024>}]} {
    %c0 = arith.constant 0 : index
    %c0_0 = arith.constant 0 : index
    %0 = vector.load %arg2[%c0, %c0_0] : memref<16x144xbf16, #tpu.memory_space<vmem>>, vector<16x144xbf16>
    %c0_1 = arith.constant 0 : index
    %c0_2 = arith.constant 0 : index
    %1 = vector.load %arg1[%c0_1, %c0_2] : memref<144x1024xbf16, #tpu.memory_space<vmem>>, vector<144x1024xbf16>
    %cst = arith.constant dense<0.000000e+00> : vector<16x1024xf32>
    %2 = tpu.matmul %0, %1, %cst {dimension_numbers = #tpu.dot_dimension_numbers<[1], [0], [0], [1], [0, 0, 1, 1], [], []>} : vector<16x144xbf16>, vector<144x1024xbf16>, vector<16x1024xf32> -> vector<16x1024xf32>
    %c0_3 = arith.constant 0 : index
    %c0_4 = arith.constant 0 : index
    %3 = vector.load %arg3[%c0_3, %c0_4] : memref<16x1xf32, #tpu.memory_space<vmem>>, vector<16x1xf32>
    %4 = vector.broadcast %3 : vector<16x1xf32> to vector<16x1024xf32>
    %5 = arith.addf %2, %4 : vector<16x1024xf32>
    %c0_5 = arith.constant 0 : index
    %c0_6 = arith.constant 0 : index
    %6 = vector.load %arg4[%c0_5, %c0_6] : memref<16x1xf32, #tpu.memory_space<vmem>>, vector<16x1xf32>
    %7 = vector.broadcast %6 : vector<16x1xf32> to vector<16x1024xf32>
    %8 = arith.mulf %5, %7 : vector<16x1024xf32>
    %c0_7 = arith.constant 0 : index
    %c0_8 = arith.constant 0 : index
    %9 = vector.load %arg5[%c0_7, %c0_8] : memref<16x1xf32, #tpu.memory_space<vmem>>, vector<16x1xf32>
    %10 = vector.broadcast %9 : vector<16x1xf32> to vector<16x1024xf32>
    %11 = arith.addf %8, %10 : vector<16x1024xf32>
    %cst_9 = arith.constant 0.000000e+00 : f32
    %12 = vector.broadcast %cst_9 : f32 to vector<16x1024xf32>
    %13 = arith.maximumf %11, %12 : vector<16x1024xf32>
    %14 = arith.truncf %13 : vector<16x1024xf32> to vector<16x1024xbf16>
    %c0_10 = arith.constant 0 : index
    %c0_11 = arith.constant 0 : index
    %15 = vector.load %arg6[%c0_10, %c0_11] : memref<16x1024xbf16, #tpu.memory_space<vmem>>, vector<16x1024xbf16>
    tpu.vector_store %arg6[%c0_10, %c0_11], %14 {strides = array<i32>} : memref<16x1024xbf16, #tpu.memory_space<vmem>>, vector<16x1024xbf16>,
    return
  }
  func.func @transform_0(%arg0: i32) -> (i32, i32) {
    %c0_i32 = arith.constant 0 : i32
    %c0_i32_0 = arith.constant 0 : i32
    return %c0_i32, %arg0 : i32, i32
  }
  func.func @transform_1(%arg0: i32) -> (i32, i32) {
    %c0_i32 = arith.constant 0 : i32
    %c0_i32_0 = arith.constant 0 : i32
    %c0_i32_1 = arith.constant 0 : i32
    return %c0_i32, %c0_i32_0 : i32, i32
  }
  func.func @transform_2(%arg0: i32) -> (i32, i32) {
    %c0_i32 = arith.constant 0 : i32
    %c0_i32_0 = arith.constant 0 : i32
    %c0_i32_1 = arith.constant 0 : i32
    return %c0_i32, %c0_i32_0 : i32, i32
  }
  func.func @transform_3(%arg0: i32) -> (i32, i32) {
    %c0_i32 = arith.constant 0 : i32
    %c0_i32_0 = arith.constant 0 : i32
    %c0_i32_1 = arith.constant 0 : i32
    return %c0_i32, %c0_i32_0 : i32, i32
  }
  func.func @transform_4(%arg0: i32) -> (i32, i32) {
    %c0_i32 = arith.constant 0 : i32
    %c0_i32_0 = arith.constant 0 : i32
    %c0_i32_1 = arith.constant 0 : i32
    return %c0_i32, %c0_i32_0 : i32, i32
  }
  func.func @transform_5(%arg0: i32) -> (i32, i32) {
    %c0_i32 = arith.constant 0 : i32
    %c0_i32_0 = arith.constant 0 : i32
    return %c0_i32, %arg0 : i32, i32
  }
}

module attributes {stable_mosaic.version = 11 : i64} {
  func.func @kernel(%arg0: i32, %arg1: memref<144x1024xbf16, #tpu.memory_space<vmem>>, %arg2: memref<16x144xbf16, #tpu.memory_space<vmem>>, %arg3: memref<16x1xf32, #tpu.memory_space<vmem>>, %arg4: memref<16x1024xf32, #tpu.memory_space<vmem>>, %arg5: memref<16x1xf32, #tpu.memory_space<vmem>>, %arg6: memref<16x1xf32, #tpu.memory_space<vmem>>, %arg7: memref<16x1024xf32, #tpu.memory_space<vmem>>, %arg8: memref<16x1024xbf16, #tpu.memory_space<vmem>>) attributes {dimension_semantics = [#tpu.dimension_semantics<parallel>], iteration_bounds = array<i64: 2>, scalar_prefetch = 0 : i64, scratch_operands = 0 : i64, tpu.core_type = #tpu.core_type<tc>, window_params = [{transform_indices = @transform_0, window_bounds = array<i64: 144, 1024>}, {pipeline_mode = #tpu.pipeline_mode<synchronous>, transform_indices = @transform_1, window_bounds = array<i64: 16, 144>}, {pipeline_mode = #tpu.pipeline_mode<synchronous>, transform_indices = @transform_2, window_bounds = array<i64: 16, 1>}, {transform_indices = @transform_3, window_bounds = array<i64: 16, 1024>}, {pipeline_mode = #tpu.pipeline_mode<synchronous>, transform_indices = @transform_4, window_bounds = array<i64: 16, 1>}, {pipeline_mode = #tpu.pipeline_mode<synchronous>, transform_indices = @transform_5, window_bounds = array<i64: 16, 1>}, {transform_indices = @transform_6, window_bounds = array<i64: 16, 1024>}, {transform_indices = @transform_7, window_bounds = array<i64: 16, 1024>}]} {
    %c0 = arith.constant 0 : index
    %c0_0 = arith.constant 0 : index
    %0 = vector.load %arg2[%c0, %c0_0] : memref<16x144xbf16, #tpu.memory_space<vmem>>, vector<16x144xbf16>
    %c0_1 = arith.constant 0 : index
    %c0_2 = arith.constant 0 : index
    %1 = vector.load %arg1[%c0_1, %c0_2] : memref<144x1024xbf16, #tpu.memory_space<vmem>>, vector<144x1024xbf16>
    %cst = arith.constant dense<0.000000e+00> : vector<16x1024xf32>
    %2 = tpu.matmul %0, %1, %cst {dimension_numbers = #tpu.dot_dimension_numbers<[1], [0], [0], [1], [0, 0, 1, 1], [], []>} : vector<16x144xbf16>, vector<144x1024xbf16>, vector<16x1024xf32> -> vector<16x1024xf32>
    %c0_3 = arith.constant 0 : index
    %c0_4 = arith.constant 0 : index
    %3 = vector.load %arg3[%c0_3, %c0_4] : memref<16x1xf32, #tpu.memory_space<vmem>>, vector<16x1xf32>
    %4 = vector.broadcast %3 : vector<16x1xf32> to vector<16x1024xf32>
    %5 = arith.addf %2, %4 : vector<16x1024xf32>
    %c0_5 = arith.constant 0 : index
    %c0_6 = arith.constant 0 : index
    %6 = vector.load %arg4[%c0_5, %c0_6] : memref<16x1024xf32, #tpu.memory_space<vmem>>, vector<16x1024xf32>
    %7 = arith.addf %5, %6 : vector<16x1024xf32>
    %c0_7 = arith.constant 0 : index
    %c0_8 = arith.constant 0 : index
    %8 = vector.load %arg5[%c0_7, %c0_8] : memref<16x1xf32, #tpu.memory_space<vmem>>, vector<16x1xf32>
    %9 = vector.broadcast %8 : vector<16x1xf32> to vector<16x1024xf32>
    %10 = arith.mulf %7, %9 : vector<16x1024xf32>
    %c0_9 = arith.constant 0 : index
    %c0_10 = arith.constant 0 : index
    %11 = vector.load %arg6[%c0_9, %c0_10] : memref<16x1xf32, #tpu.memory_space<vmem>>, vector<16x1xf32>
    %12 = vector.broadcast %11 : vector<16x1xf32> to vector<16x1024xf32>
    %13 = arith.addf %10, %12 : vector<16x1024xf32>
    %cst_11 = arith.constant 0.000000e+00 : f32
    %14 = vector.broadcast %cst_11 : f32 to vector<16x1024xf32>
    %15 = arith.maximumf %13, %14 : vector<16x1024xf32>
    %c0_12 = arith.constant 0 : index
    %c0_13 = arith.constant 0 : index
    %16 = vector.load %arg7[%c0_12, %c0_13] : memref<16x1024xf32, #tpu.memory_space<vmem>>, vector<16x1024xf32>
    tpu.vector_store %arg7[%c0_12, %c0_13], %7 {strides = array<i32>} : memref<16x1024xf32, #tpu.memory_space<vmem>>, vector<16x1024xf32>,
    %17 = arith.truncf %15 : vector<16x1024xf32> to vector<16x1024xbf16>
    %c0_14 = arith.constant 0 : index
    %c0_15 = arith.constant 0 : index
    %18 = vector.load %arg8[%c0_14, %c0_15] : memref<16x1024xbf16, #tpu.memory_space<vmem>>, vector<16x1024xbf16>
    tpu.vector_store %arg8[%c0_14, %c0_15], %17 {strides = array<i32>} : memref<16x1024xbf16, #tpu.memory_space<vmem>>, vector<16x1024xbf16>,
    return
  }
  func.func @transform_0(%arg0: i32) -> (i32, i32) {
    %c0_i32 = arith.constant 0 : i32
    %c0_i32_0 = arith.constant 0 : i32
    return %c0_i32, %arg0 : i32, i32
  }
  func.func @transform_1(%arg0: i32) -> (i32, i32) {
    %c0_i32 = arith.constant 0 : i32
    %c0_i32_0 = arith.constant 0 : i32
    %c0_i32_1 = arith.constant 0 : i32
    return %c0_i32, %c0_i32_0 : i32, i32
  }
  func.func @transform_2(%arg0: i32) -> (i32, i32) {
    %c0_i32 = arith.constant 0 : i32
    %c0_i32_0 = arith.constant 0 : i32
    %c0_i32_1 = arith.constant 0 : i32
    return %c0_i32, %c0_i32_0 : i32, i32
  }
  func.func @transform_3(%arg0: i32) -> (i32, i32) {
    %c0_i32 = arith.constant 0 : i32
    %c0_i32_0 = arith.constant 0 : i32
    return %c0_i32, %arg0 : i32, i32
  }
  func.func @transform_4(%arg0: i32) -> (i32, i32) {
    %c0_i32 = arith.constant 0 : i32
    %c0_i32_0 = arith.constant 0 : i32
    %c0_i32_1 = arith.constant 0 : i32
    return %c0_i32, %c0_i32_0 : i32, i32
  }
  func.func @transform_5(%arg0: i32) -> (i32, i32) {
    %c0_i32 = arith.constant 0 : i32
    %c0_i32_0 = arith.constant 0 : i32
    %c0_i32_1 = arith.constant 0 : i32
    return %c0_i32, %c0_i32_0 : i32, i32
  }
  func.func @transform_6(%arg0: i32) -> (i32, i32) {
    %c0_i32 = arith.constant 0 : i32
    %c0_i32_0 = arith.constant 0 : i32
    return %c0_i32, %arg0 : i32, i32
  }
  func.func @transform_7(%arg0: i32) -> (i32, i32) {
    %c0_i32 = arith.constant 0 : i32
    %c0_i32_0 = arith.constant 0 : i32
    return %c0_i32, %arg0 : i32, i32
  }
}

module attributes {stable_mosaic.version = 11 : i64} {
  func.func @kernel(%arg0: i32, %arg1: memref<144x1024xbf16, #tpu.memory_space<vmem>>, %arg2: memref<32x144xbf16, #tpu.memory_space<vmem>>, %arg3: memref<32x1xf32, #tpu.memory_space<vmem>>, %arg4: memref<32x1xf32, #tpu.memory_space<vmem>>, %arg5: memref<32x1xf32, #tpu.memory_space<vmem>>, %arg6: memref<32x1024xbf16, #tpu.memory_space<vmem>>) attributes {dimension_semantics = [#tpu.dimension_semantics<parallel>], iteration_bounds = array<i64: 2>, scalar_prefetch = 0 : i64, scratch_operands = 0 : i64, tpu.core_type = #tpu.core_type<tc>, window_params = [{transform_indices = @transform_0, window_bounds = array<i64: 144, 1024>}, {pipeline_mode = #tpu.pipeline_mode<synchronous>, transform_indices = @transform_1, window_bounds = array<i64: 32, 144>}, {pipeline_mode = #tpu.pipeline_mode<synchronous>, transform_indices = @transform_2, window_bounds = array<i64: 32, 1>}, {pipeline_mode = #tpu.pipeline_mode<synchronous>, transform_indices = @transform_3, window_bounds = array<i64: 32, 1>}, {pipeline_mode = #tpu.pipeline_mode<synchronous>, transform_indices = @transform_4, window_bounds = array<i64: 32, 1>}, {transform_indices = @transform_5, window_bounds = array<i64: 32, 1024>}]} {
    %c0 = arith.constant 0 : index
    %c0_0 = arith.constant 0 : index
    %0 = vector.load %arg2[%c0, %c0_0] : memref<32x144xbf16, #tpu.memory_space<vmem>>, vector<32x144xbf16>
    %c0_1 = arith.constant 0 : index
    %c0_2 = arith.constant 0 : index
    %1 = vector.load %arg1[%c0_1, %c0_2] : memref<144x1024xbf16, #tpu.memory_space<vmem>>, vector<144x1024xbf16>
    %cst = arith.constant dense<0.000000e+00> : vector<32x1024xf32>
    %2 = tpu.matmul %0, %1, %cst {dimension_numbers = #tpu.dot_dimension_numbers<[1], [0], [0], [1], [0, 0, 1, 1], [], []>} : vector<32x144xbf16>, vector<144x1024xbf16>, vector<32x1024xf32> -> vector<32x1024xf32>
    %c0_3 = arith.constant 0 : index
    %c0_4 = arith.constant 0 : index
    %3 = vector.load %arg3[%c0_3, %c0_4] : memref<32x1xf32, #tpu.memory_space<vmem>>, vector<32x1xf32>
    %4 = vector.broadcast %3 : vector<32x1xf32> to vector<32x1024xf32>
    %5 = arith.addf %2, %4 : vector<32x1024xf32>
    %c0_5 = arith.constant 0 : index
    %c0_6 = arith.constant 0 : index
    %6 = vector.load %arg4[%c0_5, %c0_6] : memref<32x1xf32, #tpu.memory_space<vmem>>, vector<32x1xf32>
    %7 = vector.broadcast %6 : vector<32x1xf32> to vector<32x1024xf32>
    %8 = arith.mulf %5, %7 : vector<32x1024xf32>
    %c0_7 = arith.constant 0 : index
    %c0_8 = arith.constant 0 : index
    %9 = vector.load %arg5[%c0_7, %c0_8] : memref<32x1xf32, #tpu.memory_space<vmem>>, vector<32x1xf32>
    %10 = vector.broadcast %9 : vector<32x1xf32> to vector<32x1024xf32>
    %11 = arith.addf %8, %10 : vector<32x1024xf32>
    %cst_9 = arith.constant 0.000000e+00 : f32
    %12 = vector.broadcast %cst_9 : f32 to vector<32x1024xf32>
    %13 = arith.maximumf %11, %12 : vector<32x1024xf32>
    %14 = arith.truncf %13 : vector<32x1024xf32> to vector<32x1024xbf16>
    %c0_10 = arith.constant 0 : index
    %c0_11 = arith.constant 0 : index
    %15 = vector.load %arg6[%c0_10, %c0_11] : memref<32x1024xbf16, #tpu.memory_space<vmem>>, vector<32x1024xbf16>
    tpu.vector_store %arg6[%c0_10, %c0_11], %14 {strides = array<i32>} : memref<32x1024xbf16, #tpu.memory_space<vmem>>, vector<32x1024xbf16>,
    return
  }
  func.func @transform_0(%arg0: i32) -> (i32, i32) {
    %c0_i32 = arith.constant 0 : i32
    %c0_i32_0 = arith.constant 0 : i32
    return %c0_i32, %arg0 : i32, i32
  }
  func.func @transform_1(%arg0: i32) -> (i32, i32) {
    %c0_i32 = arith.constant 0 : i32
    %c0_i32_0 = arith.constant 0 : i32
    %c0_i32_1 = arith.constant 0 : i32
    return %c0_i32, %c0_i32_0 : i32, i32
  }
  func.func @transform_2(%arg0: i32) -> (i32, i32) {
    %c0_i32 = arith.constant 0 : i32
    %c0_i32_0 = arith.constant 0 : i32
    %c0_i32_1 = arith.constant 0 : i32
    return %c0_i32, %c0_i32_0 : i32, i32
  }
  func.func @transform_3(%arg0: i32) -> (i32, i32) {
    %c0_i32 = arith.constant 0 : i32
    %c0_i32_0 = arith.constant 0 : i32
    %c0_i32_1 = arith.constant 0 : i32
    return %c0_i32, %c0_i32_0 : i32, i32
  }
  func.func @transform_4(%arg0: i32) -> (i32, i32) {
    %c0_i32 = arith.constant 0 : i32
    %c0_i32_0 = arith.constant 0 : i32
    %c0_i32_1 = arith.constant 0 : i32
    return %c0_i32, %c0_i32_0 : i32, i32
  }
  func.func @transform_5(%arg0: i32) -> (i32, i32) {
    %c0_i32 = arith.constant 0 : i32
    %c0_i32_0 = arith.constant 0 : i32
    return %c0_i32, %arg0 : i32, i32
  }
}

module attributes {stable_mosaic.version = 11 : i64} {
  func.func @kernel(%arg0: i32, %arg1: memref<288x256xbf16, #tpu.memory_space<vmem>>, %arg2: memref<32x288xbf16, #tpu.memory_space<vmem>>, %arg3: memref<32x1xf32, #tpu.memory_space<vmem>>, %arg4: memref<32x16xbf16, #tpu.memory_space<vmem>>, %arg5: memref<16x256xbf16, #tpu.memory_space<vmem>>, %arg6: memref<32x1xf32, #tpu.memory_space<vmem>>, %arg7: memref<32x1xf32, #tpu.memory_space<vmem>>, %arg8: memref<32x1xf32, #tpu.memory_space<vmem>>, %arg9: memref<32x256xf32, #tpu.memory_space<vmem>>, %arg10: memref<32x256xbf16, #tpu.memory_space<vmem>>) attributes {dimension_semantics = [#tpu.dimension_semantics<parallel>], iteration_bounds = array<i64: 2>, scalar_prefetch = 0 : i64, scratch_operands = 0 : i64, tpu.core_type = #tpu.core_type<tc>, window_params = [{transform_indices = @transform_0, window_bounds = array<i64: 288, 256>}, {pipeline_mode = #tpu.pipeline_mode<synchronous>, transform_indices = @transform_1, window_bounds = array<i64: 32, 288>}, {pipeline_mode = #tpu.pipeline_mode<synchronous>, transform_indices = @transform_2, window_bounds = array<i64: 32, 1>}, {pipeline_mode = #tpu.pipeline_mode<synchronous>, transform_indices = @transform_3, window_bounds = array<i64: 32, 16>}, {transform_indices = @transform_4, window_bounds = array<i64: 16, 256>}, {pipeline_mode = #tpu.pipeline_mode<synchronous>, transform_indices = @transform_5, window_bounds = array<i64: 32, 1>}, {pipeline_mode = #tpu.pipeline_mode<synchronous>, transform_indices = @transform_6, window_bounds = array<i64: 32, 1>}, {pipeline_mode = #tpu.pipeline_mode<synchronous>, transform_indices = @transform_7, window_bounds = array<i64: 32, 1>}, {transform_indices = @transform_8, window_bounds = array<i64: 32, 256>}, {transform_indices = @transform_9, window_bounds = array<i64: 32, 256>}]} {
    %c0 = arith.constant 0 : index
    %c0_0 = arith.constant 0 : index
    %0 = vector.load %arg2[%c0, %c0_0] : memref<32x288xbf16, #tpu.memory_space<vmem>>, vector<32x288xbf16>
    %c0_1 = arith.constant 0 : index
    %c0_2 = arith.constant 0 : index
    %1 = vector.load %arg1[%c0_1, %c0_2] : memref<288x256xbf16, #tpu.memory_space<vmem>>, vector<288x256xbf16>
    %cst = arith.constant dense<0.000000e+00> : vector<32x256xf32>
    %2 = tpu.matmul %0, %1, %cst {dimension_numbers = #tpu.dot_dimension_numbers<[1], [0], [0], [1], [0, 0, 1, 1], [], []>} : vector<32x288xbf16>, vector<288x256xbf16>, vector<32x256xf32> -> vector<32x256xf32>
    %c0_3 = arith.constant 0 : index
    %c0_4 = arith.constant 0 : index
    %3 = vector.load %arg3[%c0_3, %c0_4] : memref<32x1xf32, #tpu.memory_space<vmem>>, vector<32x1xf32>
    %4 = vector.broadcast %3 : vector<32x1xf32> to vector<32x256xf32>
    %5 = arith.addf %2, %4 : vector<32x256xf32>
    %c0_5 = arith.constant 0 : index
    %c0_6 = arith.constant 0 : index
    %6 = vector.load %arg4[%c0_5, %c0_6] : memref<32x16xbf16, #tpu.memory_space<vmem>>, vector<32x16xbf16>
    %c0_7 = arith.constant 0 : index
    %c0_8 = arith.constant 0 : index
    %7 = vector.load %arg5[%c0_7, %c0_8] : memref<16x256xbf16, #tpu.memory_space<vmem>>, vector<16x256xbf16>
    %cst_9 = arith.constant dense<0.000000e+00> : vector<32x256xf32>
    %8 = tpu.matmul %6, %7, %cst_9 {dimension_numbers = #tpu.dot_dimension_numbers<[1], [0], [0], [1], [0, 0, 1, 1], [], []>} : vector<32x16xbf16>, vector<16x256xbf16>, vector<32x256xf32> -> vector<32x256xf32>
    %9 = arith.addf %5, %8 : vector<32x256xf32>
    %c0_10 = arith.constant 0 : index
    %c0_11 = arith.constant 0 : index
    %10 = vector.load %arg6[%c0_10, %c0_11] : memref<32x1xf32, #tpu.memory_space<vmem>>, vector<32x1xf32>
    %11 = vector.broadcast %10 : vector<32x1xf32> to vector<32x256xf32>
    %12 = arith.addf %9, %11 : vector<32x256xf32>
    %c0_12 = arith.constant 0 : index
    %c0_13 = arith.constant 0 : index
    %13 = vector.load %arg7[%c0_12, %c0_13] : memref<32x1xf32, #tpu.memory_space<vmem>>, vector<32x1xf32>
    %14 = vector.broadcast %13 : vector<32x1xf32> to vector<32x256xf32>
    %15 = arith.mulf %12, %14 : vector<32x256xf32>
    %c0_14 = arith.constant 0 : index
    %c0_15 = arith.constant 0 : index
    %16 = vector.load %arg8[%c0_14, %c0_15] : memref<32x1xf32, #tpu.memory_space<vmem>>, vector<32x1xf32>
    %17 = vector.broadcast %16 : vector<32x1xf32> to vector<32x256xf32>
    %18 = arith.addf %15, %17 : vector<32x256xf32>
    %cst_16 = arith.constant 0.000000e+00 : f32
    %19 = vector.broadcast %cst_16 : f32 to vector<32x256xf32>
    %20 = arith.maximumf %18, %19 : vector<32x256xf32>
    %c0_17 = arith.constant 0 : index
    %c0_18 = arith.constant 0 : index
    %21 = vector.load %arg9[%c0_17, %c0_18] : memref<32x256xf32, #tpu.memory_space<vmem>>, vector<32x256xf32>
    tpu.vector_store %arg9[%c0_17, %c0_18], %12 {strides = array<i32>} : memref<32x256xf32, #tpu.memory_space<vmem>>, vector<32x256xf32>,
    %22 = arith.truncf %20 : vector<32x256xf32> to vector<32x256xbf16>
    %c0_19 = arith.constant 0 : index
    %c0_20 = arith.constant 0 : index
    %23 = vector.load %arg10[%c0_19, %c0_20] : memref<32x256xbf16, #tpu.memory_space<vmem>>, vector<32x256xbf16>
    tpu.vector_store %arg10[%c0_19, %c0_20], %22 {strides = array<i32>} : memref<32x256xbf16, #tpu.memory_space<vmem>>, vector<32x256xbf16>,
    return
  }
  func.func @transform_0(%arg0: i32) -> (i32, i32) {
    %c0_i32 = arith.constant 0 : i32
    %c0_i32_0 = arith.constant 0 : i32
    return %c0_i32, %arg0 : i32, i32
  }
  func.func @transform_1(%arg0: i32) -> (i32, i32) {
    %c0_i32 = arith.constant 0 : i32
    %c0_i32_0 = arith.constant 0 : i32
    %c0_i32_1 = arith.constant 0 : i32
    return %c0_i32, %c0_i32_0 : i32, i32
  }
  func.func @transform_2(%arg0: i32) -> (i32, i32) {
    %c0_i32 = arith.constant 0 : i32
    %c0_i32_0 = arith.constant 0 : i32
    %c0_i32_1 = arith.constant 0 : i32
    return %c0_i32, %c0_i32_0 : i32, i32
  }
  func.func @transform_3(%arg0: i32) -> (i32, i32) {
    %c0_i32 = arith.constant 0 : i32
    %c0_i32_0 = arith.constant 0 : i32
    %c0_i32_1 = arith.constant 0 : i32
    return %c0_i32, %c0_i32_0 : i32, i32
  }
  func.func @transform_4(%arg0: i32) -> (i32, i32) {
    %c0_i32 = arith.constant 0 : i32
    %c0_i32_0 = arith.constant 0 : i32
    return %c0_i32, %arg0 : i32, i32
  }
  func.func @transform_5(%arg0: i32) -> (i32, i32) {
    %c0_i32 = arith.constant 0 : i32
    %c0_i32_0 = arith.constant 0 : i32
    %c0_i32_1 = arith.constant 0 : i32
    return %c0_i32, %c0_i32_0 : i32, i32
  }
  func.func @transform_6(%arg0: i32) -> (i32, i32) {
    %c0_i32 = arith.constant 0 : i32
    %c0_i32_0 = arith.constant 0 : i32
    %c0_i32_1 = arith.constant 0 : i32
    return %c0_i32, %c0_i32_0 : i32, i32
  }
  func.func @transform_7(%arg0: i32) -> (i32, i32) {
    %c0_i32 = arith.constant 0 : i32
    %c0_i32_0 = arith.constant 0 : i32
    %c0_i32_1 = arith.constant 0 : i32
    return %c0_i32, %c0_i32_0 : i32, i32
  }
  func.func @transform_8(%arg0: i32) -> (i32, i32) {
    %c0_i32 = arith.constant 0 : i32
    %c0_i32_0 = arith.constant 0 : i32
    return %c0_i32, %arg0 : i32, i32
  }
  func.func @transform_9(%arg0: i32) -> (i32, i32) {
    %c0_i32 = arith.constant 0 : i32
    %c0_i32_0 = arith.constant 0 : i32
    return %c0_i32, %arg0 : i32, i32
  }
}

module attributes {stable_mosaic.version = 11 : i64} {
  func.func @kernel(%arg0: i32, %arg1: memref<288x256xbf16, #tpu.memory_space<vmem>>, %arg2: memref<64x288xbf16, #tpu.memory_space<vmem>>, %arg3: memref<64x1xf32, #tpu.memory_space<vmem>>, %arg4: memref<64x1xf32, #tpu.memory_space<vmem>>, %arg5: memref<64x1xf32, #tpu.memory_space<vmem>>, %arg6: memref<64x256xbf16, #tpu.memory_space<vmem>>) attributes {dimension_semantics = [#tpu.dimension_semantics<parallel>], iteration_bounds = array<i64: 2>, scalar_prefetch = 0 : i64, scratch_operands = 0 : i64, tpu.core_type = #tpu.core_type<tc>, window_params = [{transform_indices = @transform_0, window_bounds = array<i64: 288, 256>}, {pipeline_mode = #tpu.pipeline_mode<synchronous>, transform_indices = @transform_1, window_bounds = array<i64: 64, 288>}, {pipeline_mode = #tpu.pipeline_mode<synchronous>, transform_indices = @transform_2, window_bounds = array<i64: 64, 1>}, {pipeline_mode = #tpu.pipeline_mode<synchronous>, transform_indices = @transform_3, window_bounds = array<i64: 64, 1>}, {pipeline_mode = #tpu.pipeline_mode<synchronous>, transform_indices = @transform_4, window_bounds = array<i64: 64, 1>}, {transform_indices = @transform_5, window_bounds = array<i64: 64, 256>}]} {
    %c0 = arith.constant 0 : index
    %c0_0 = arith.constant 0 : index
    %0 = vector.load %arg2[%c0, %c0_0] : memref<64x288xbf16, #tpu.memory_space<vmem>>, vector<64x288xbf16>
    %c0_1 = arith.constant 0 : index
    %c0_2 = arith.constant 0 : index
    %1 = vector.load %arg1[%c0_1, %c0_2] : memref<288x256xbf16, #tpu.memory_space<vmem>>, vector<288x256xbf16>
    %cst = arith.constant dense<0.000000e+00> : vector<64x256xf32>
    %2 = tpu.matmul %0, %1, %cst {dimension_numbers = #tpu.dot_dimension_numbers<[1], [0], [0], [1], [0, 0, 1, 1], [], []>} : vector<64x288xbf16>, vector<288x256xbf16>, vector<64x256xf32> -> vector<64x256xf32>
    %c0_3 = arith.constant 0 : index
    %c0_4 = arith.constant 0 : index
    %3 = vector.load %arg3[%c0_3, %c0_4] : memref<64x1xf32, #tpu.memory_space<vmem>>, vector<64x1xf32>
    %4 = vector.broadcast %3 : vector<64x1xf32> to vector<64x256xf32>
    %5 = arith.addf %2, %4 : vector<64x256xf32>
    %c0_5 = arith.constant 0 : index
    %c0_6 = arith.constant 0 : index
    %6 = vector.load %arg4[%c0_5, %c0_6] : memref<64x1xf32, #tpu.memory_space<vmem>>, vector<64x1xf32>
    %7 = vector.broadcast %6 : vector<64x1xf32> to vector<64x256xf32>
    %8 = arith.mulf %5, %7 : vector<64x256xf32>
    %c0_7 = arith.constant 0 : index
    %c0_8 = arith.constant 0 : index
    %9 = vector.load %arg5[%c0_7, %c0_8] : memref<64x1xf32, #tpu.memory_space<vmem>>, vector<64x1xf32>
    %10 = vector.broadcast %9 : vector<64x1xf32> to vector<64x256xf32>
    %11 = arith.addf %8, %10 : vector<64x256xf32>
    %cst_9 = arith.constant 0.000000e+00 : f32
    %12 = vector.broadcast %cst_9 : f32 to vector<64x256xf32>
    %13 = arith.maximumf %11, %12 : vector<64x256xf32>
    %14 = arith.truncf %13 : vector<64x256xf32> to vector<64x256xbf16>
    %c0_10 = arith.constant 0 : index
    %c0_11 = arith.constant 0 : index
    %15 = vector.load %arg6[%c0_10, %c0_11] : memref<64x256xbf16, #tpu.memory_space<vmem>>, vector<64x256xbf16>
    tpu.vector_store %arg6[%c0_10, %c0_11], %14 {strides = array<i32>} : memref<64x256xbf16, #tpu.memory_space<vmem>>, vector<64x256xbf16>,
    return
  }
  func.func @transform_0(%arg0: i32) -> (i32, i32) {
    %c0_i32 = arith.constant 0 : i32
    %c0_i32_0 = arith.constant 0 : i32
    return %c0_i32, %arg0 : i32, i32
  }
  func.func @transform_1(%arg0: i32) -> (i32, i32) {
    %c0_i32 = arith.constant 0 : i32
    %c0_i32_0 = arith.constant 0 : i32
    %c0_i32_1 = arith.constant 0 : i32
    return %c0_i32, %c0_i32_0 : i32, i32
  }
  func.func @transform_2(%arg0: i32) -> (i32, i32) {
    %c0_i32 = arith.constant 0 : i32
    %c0_i32_0 = arith.constant 0 : i32
    %c0_i32_1 = arith.constant 0 : i32
    return %c0_i32, %c0_i32_0 : i32, i32
  }
  func.func @transform_3(%arg0: i32) -> (i32, i32) {
    %c0_i32 = arith.constant 0 : i32
    %c0_i32_0 = arith.constant 0 : i32
    %c0_i32_1 = arith.constant 0 : i32
    return %c0_i32, %c0_i32_0 : i32, i32
  }
  func.func @transform_4(%arg0: i32) -> (i32, i32) {
    %c0_i32 = arith.constant 0 : i32
    %c0_i32_0 = arith.constant 0 : i32
    %c0_i32_1 = arith.constant 0 : i32
    return %c0_i32, %c0_i32_0 : i32, i32
  }
  func.func @transform_5(%arg0: i32) -> (i32, i32) {
    %c0_i32 = arith.constant 0 : i32
    %c0_i32_0 = arith.constant 0 : i32
    return %c0_i32, %arg0 : i32, i32
  }
}

module attributes {stable_mosaic.version = 11 : i64} {
  func.func @kernel(%arg0: i32, %arg1: memref<576x128xbf16, #tpu.memory_space<vmem>>, %arg2: memref<64x576xbf16, #tpu.memory_space<vmem>>, %arg3: memref<64x1xf32, #tpu.memory_space<vmem>>, %arg4: memref<64x32xbf16, #tpu.memory_space<vmem>>, %arg5: memref<32x128xbf16, #tpu.memory_space<vmem>>, %arg6: memref<64x1xf32, #tpu.memory_space<vmem>>, %arg7: memref<64x1xf32, #tpu.memory_space<vmem>>, %arg8: memref<64x1xf32, #tpu.memory_space<vmem>>, %arg9: memref<64x128xbf16, #tpu.memory_space<vmem>>) attributes {dimension_semantics = [#tpu.dimension_semantics<parallel>], iteration_bounds = array<i64: 1>, scalar_prefetch = 0 : i64, scratch_operands = 0 : i64, tpu.core_type = #tpu.core_type<tc>, window_params = [{transform_indices = @transform_0, window_bounds = array<i64: 576, 128>}, {pipeline_mode = #tpu.pipeline_mode<synchronous>, transform_indices = @transform_1, window_bounds = array<i64: 64, 576>}, {pipeline_mode = #tpu.pipeline_mode<synchronous>, transform_indices = @transform_2, window_bounds = array<i64: 64, 1>}, {pipeline_mode = #tpu.pipeline_mode<synchronous>, transform_indices = @transform_3, window_bounds = array<i64: 64, 32>}, {transform_indices = @transform_4, window_bounds = array<i64: 32, 128>}, {pipeline_mode = #tpu.pipeline_mode<synchronous>, transform_indices = @transform_5, window_bounds = array<i64: 64, 1>}, {pipeline_mode = #tpu.pipeline_mode<synchronous>, transform_indices = @transform_6, window_bounds = array<i64: 64, 1>}, {pipeline_mode = #tpu.pipeline_mode<synchronous>, transform_indices = @transform_7, window_bounds = array<i64: 64, 1>}, {transform_indices = @transform_8, window_bounds = array<i64: 64, 128>}]} {
    %c0 = arith.constant 0 : index
    %c0_0 = arith.constant 0 : index
    %0 = vector.load %arg2[%c0, %c0_0] : memref<64x576xbf16, #tpu.memory_space<vmem>>, vector<64x576xbf16>
    %c0_1 = arith.constant 0 : index
    %c0_2 = arith.constant 0 : index
    %1 = vector.load %arg1[%c0_1, %c0_2] : memref<576x128xbf16, #tpu.memory_space<vmem>>, vector<576x128xbf16>
    %cst = arith.constant dense<0.000000e+00> : vector<64x128xf32>
    %2 = tpu.matmul %0, %1, %cst {dimension_numbers = #tpu.dot_dimension_numbers<[1], [0], [0], [1], [0, 0, 1, 1], [], []>} : vector<64x576xbf16>, vector<576x128xbf16>, vector<64x128xf32> -> vector<64x128xf32>
    %c0_3 = arith.constant 0 : index
    %c0_4 = arith.constant 0 : index
    %3 = vector.load %arg3[%c0_3, %c0_4] : memref<64x1xf32, #tpu.memory_space<vmem>>, vector<64x1xf32>
    %4 = vector.broadcast %3 : vector<64x1xf32> to vector<64x128xf32>
    %5 = arith.addf %2, %4 : vector<64x128xf32>
    %c0_5 = arith.constant 0 : index
    %c0_6 = arith.constant 0 : index
    %6 = vector.load %arg4[%c0_5, %c0_6] : memref<64x32xbf16, #tpu.memory_space<vmem>>, vector<64x32xbf16>
    %c0_7 = arith.constant 0 : index
    %c0_8 = arith.constant 0 : index
    %7 = vector.load %arg5[%c0_7, %c0_8] : memref<32x128xbf16, #tpu.memory_space<vmem>>, vector<32x128xbf16>
    %cst_9 = arith.constant dense<0.000000e+00> : vector<64x128xf32>
    %8 = tpu.matmul %6, %7, %cst_9 {dimension_numbers = #tpu.dot_dimension_numbers<[1], [0], [0], [1], [0, 0, 1, 1], [], []>} : vector<64x32xbf16>, vector<32x128xbf16>, vector<64x128xf32> -> vector<64x128xf32>
    %9 = arith.addf %5, %8 : vector<64x128xf32>
    %c0_10 = arith.constant 0 : index
    %c0_11 = arith.constant 0 : index
    %10 = vector.load %arg6[%c0_10, %c0_11] : memref<64x1xf32, #tpu.memory_space<vmem>>, vector<64x1xf32>
    %11 = vector.broadcast %10 : vector<64x1xf32> to vector<64x128xf32>
    %12 = arith.addf %9, %11 : vector<64x128xf32>
    %c0_12 = arith.constant 0 : index
    %c0_13 = arith.constant 0 : index
    %13 = vector.load %arg7[%c0_12, %c0_13] : memref<64x1xf32, #tpu.memory_space<vmem>>, vector<64x1xf32>
    %14 = vector.broadcast %13 : vector<64x1xf32> to vector<64x128xf32>
    %15 = arith.mulf %12, %14 : vector<64x128xf32>
    %c0_14 = arith.constant 0 : index
    %c0_15 = arith.constant 0 : index
    %16 = vector.load %arg8[%c0_14, %c0_15] : memref<64x1xf32, #tpu.memory_space<vmem>>, vector<64x1xf32>
    %17 = vector.broadcast %16 : vector<64x1xf32> to vector<64x128xf32>
    %18 = arith.addf %15, %17 : vector<64x128xf32>
    %cst_16 = arith.constant 0.000000e+00 : f32
    %19 = vector.broadcast %cst_16 : f32 to vector<64x128xf32>
    %20 = arith.maximumf %18, %19 : vector<64x128xf32>
    %21 = arith.truncf %20 : vector<64x128xf32> to vector<64x128xbf16>
    %c0_17 = arith.constant 0 : index
    %c0_18 = arith.constant 0 : index
    %22 = vector.load %arg9[%c0_17, %c0_18] : memref<64x128xbf16, #tpu.memory_space<vmem>>, vector<64x128xbf16>
    tpu.vector_store %arg9[%c0_17, %c0_18], %21 {strides = array<i32>} : memref<64x128xbf16, #tpu.memory_space<vmem>>, vector<64x128xbf16>,
    return
  }
  func.func @transform_0(%arg0: i32) -> (i32, i32) {
    %c0_i32 = arith.constant 0 : i32
    %c0_i32_0 = arith.constant 0 : i32
    return %c0_i32, %arg0 : i32, i32
  }
  func.func @transform_1(%arg0: i32) -> (i32, i32) {
    %c0_i32 = arith.constant 0 : i32
    %c0_i32_0 = arith.constant 0 : i32
    %c0_i32_1 = arith.constant 0 : i32
    return %c0_i32, %c0_i32_0 : i32, i32
  }
  func.func @transform_2(%arg0: i32) -> (i32, i32) {
    %c0_i32 = arith.constant 0 : i32
    %c0_i32_0 = arith.constant 0 : i32
    %c0_i32_1 = arith.constant 0 : i32
    return %c0_i32, %c0_i32_0 : i32, i32
  }
  func.func @transform_3(%arg0: i32) -> (i32, i32) {
    %c0_i32 = arith.constant 0 : i32
    %c0_i32_0 = arith.constant 0 : i32
    %c0_i32_1 = arith.constant 0 : i32
    return %c0_i32, %c0_i32_0 : i32, i32
  }
  func.func @transform_4(%arg0: i32) -> (i32, i32) {
    %c0_i32 = arith.constant 0 : i32
    %c0_i32_0 = arith.constant 0 : i32
    return %c0_i32, %arg0 : i32, i32
  }
  func.func @transform_5(%arg0: i32) -> (i32, i32) {
    %c0_i32 = arith.constant 0 : i32
    %c0_i32_0 = arith.constant 0 : i32
    %c0_i32_1 = arith.constant 0 : i32
    return %c0_i32, %c0_i32_0 : i32, i32
  }
  func.func @transform_6(%arg0: i32) -> (i32, i32) {
    %c0_i32 = arith.constant 0 : i32
    %c0_i32_0 = arith.constant 0 : i32
    %c0_i32_1 = arith.constant 0 : i32
    return %c0_i32, %c0_i32_0 : i32, i32
  }
  func.func @transform_7(%arg0: i32) -> (i32, i32) {
    %c0_i32 = arith.constant 0 : i32
    %c0_i32_0 = arith.constant 0 : i32
    %c0_i32_1 = arith.constant 0 : i32
    return %c0_i32, %c0_i32_0 : i32, i32
  }
  func.func @transform_8(%arg0: i32) -> (i32, i32) {
    %c0_i32 = arith.constant 0 : i32
    %c0_i32_0 = arith.constant 0 : i32
    return %c0_i32, %arg0 : i32, i32
  }
}

module attributes {stable_mosaic.version = 11 : i64} {
  func.func @_pool_fc_kernel(%arg0: i32, %arg1: memref<64x128xbf16, #tpu.memory_space<vmem>>, %arg2: memref<128x2xf32, #tpu.memory_space<vmem>>, %arg3: memref<10x64xf32, #tpu.memory_space<vmem>>, %arg4: memref<10x1xf32, #tpu.memory_space<vmem>>, %arg5: memref<10x2xf32, #tpu.memory_space<vmem>>) attributes {dimension_semantics = [#tpu.dimension_semantics<arbitrary>], iteration_bounds = array<i64: 1>, scalar_prefetch = 0 : i64, scratch_operands = 0 : i64, tpu.core_type = #tpu.core_type<tc>, window_params = [{pipeline_mode = #tpu.pipeline_mode<synchronous>, transform_indices = @transform_0, window_bounds = array<i64: 64, 128>}, {pipeline_mode = #tpu.pipeline_mode<synchronous>, transform_indices = @transform_1, window_bounds = array<i64: 128, 2>}, {pipeline_mode = #tpu.pipeline_mode<synchronous>, transform_indices = @transform_2, window_bounds = array<i64: 10, 64>}, {pipeline_mode = #tpu.pipeline_mode<synchronous>, transform_indices = @transform_3, window_bounds = array<i64: 10, 1>}, {pipeline_mode = #tpu.pipeline_mode<synchronous>, transform_indices = @transform_4, window_bounds = array<i64: 10, 2>}]} {
    %c0 = arith.constant 0 : index
    %c0_0 = arith.constant 0 : index
    %0 = vector.load %arg1[%c0, %c0_0] : memref<64x128xbf16, #tpu.memory_space<vmem>>, vector<64x128xbf16>
    %1 = arith.extf %0 : vector<64x128xbf16> to vector<64x128xf32>
    %c0_1 = arith.constant 0 : index
    %c0_2 = arith.constant 0 : index
    %2 = vector.load %arg2[%c0_1, %c0_2] : memref<128x2xf32, #tpu.memory_space<vmem>>, vector<128x2xf32>
    %cst = arith.constant dense<0.000000e+00> : vector<64x2xf32>
    %3 = tpu.matmul %1, %2, %cst {dimension_numbers = #tpu.dot_dimension_numbers<[1], [0], [0], [1], [0, 0, 1, 1], [], []>} : vector<64x128xf32>, vector<128x2xf32>, vector<64x2xf32> -> vector<64x2xf32>
    %c0_3 = arith.constant 0 : index
    %c0_4 = arith.constant 0 : index
    %4 = vector.load %arg3[%c0_3, %c0_4] : memref<10x64xf32, #tpu.memory_space<vmem>>, vector<10x64xf32>
    %cst_5 = arith.constant dense<0.000000e+00> : vector<10x2xf32>
    %5 = tpu.matmul %4, %3, %cst_5 {dimension_numbers = #tpu.dot_dimension_numbers<[1], [0], [0], [1], [0, 0, 1, 1], [], []>} : vector<10x64xf32>, vector<64x2xf32>, vector<10x2xf32> -> vector<10x2xf32>
    %c0_6 = arith.constant 0 : index
    %c0_7 = arith.constant 0 : index
    %6 = vector.load %arg4[%c0_6, %c0_7] : memref<10x1xf32, #tpu.memory_space<vmem>>, vector<10x1xf32>
    %7 = vector.broadcast %6 : vector<10x1xf32> to vector<10x2xf32>
    %8 = arith.addf %5, %7 : vector<10x2xf32>
    %c0_8 = arith.constant 0 : index
    %c0_9 = arith.constant 0 : index
    %9 = vector.load %arg5[%c0_8, %c0_9] : memref<10x2xf32, #tpu.memory_space<vmem>>, vector<10x2xf32>
    tpu.vector_store %arg5[%c0_8, %c0_9], %8 {strides = array<i32>} : memref<10x2xf32, #tpu.memory_space<vmem>>, vector<10x2xf32>,
    return
  }
  func.func @transform_0(%arg0: i32) -> (i32, i32) {
    %c0_i32 = arith.constant 0 : i32
    %c0_i32_0 = arith.constant 0 : i32
    %c0_i32_1 = arith.constant 0 : i32
    return %c0_i32, %c0_i32_0 : i32, i32
  }
  func.func @transform_1(%arg0: i32) -> (i32, i32) {
    %c0_i32 = arith.constant 0 : i32
    %c0_i32_0 = arith.constant 0 : i32
    %c0_i32_1 = arith.constant 0 : i32
    return %c0_i32, %c0_i32_0 : i32, i32
  }
  func.func @transform_2(%arg0: i32) -> (i32, i32) {
    %c0_i32 = arith.constant 0 : i32
    %c0_i32_0 = arith.constant 0 : i32
    %c0_i32_1 = arith.constant 0 : i32
    return %c0_i32, %c0_i32_0 : i32, i32
  }
  func.func @transform_3(%arg0: i32) -> (i32, i32) {
    %c0_i32 = arith.constant 0 : i32
    %c0_i32_0 = arith.constant 0 : i32
    %c0_i32_1 = arith.constant 0 : i32
    return %c0_i32, %c0_i32_0 : i32, i32
  }
  func.func @transform_4(%arg0: i32) -> (i32, i32) {
    %c0_i32 = arith.constant 0 : i32
    %c0_i32_0 = arith.constant 0 : i32
    %c0_i32_1 = arith.constant 0 : i32
    return %c0_i32, %c0_i32_0 : i32, i32
  }
}

</mosaic_0001>

<bundles_post_ra>
// kernel: _lambda_.8
= control target key start
LH: loop header
LB: loop body
LE: loop exit
PB: predicated region body
PF: predicated region fallthrough
CT: control target
= control target key end

     0   :  { %s1071_s21 = smov 0   ;;  %s1073_s22 = smov 0   ;;  %s1327_s0 = inlined_call_operand.vmem [shape: bf16[32,2048], index: 0, kind: input, shape index: {}]   ;;  %s1328_s1 = inlined_call_operand.vmem [shape: bf16[16,32], index: 1, kind: input, shape index: {}]   ;;  %s1329_s2 = inlined_call_operand.vmem [shape: f32[16,1], index: 2, kind: input, shape index: {}]   ;;  %s1330_s3 = inlined_call_operand.vmem [shape: f32[16,1], index: 3, kind: input, shape index: {}]   ;;  %s1331_s4 = inlined_call_operand.vmem [shape: f32[16,1], index: 4, kind: input, shape index: {}]   ;;  %s1332_s5 = inlined_call_operand.vmem [shape: f32[16,2048], index: 5, kind: output, shape index: {0}]   ;;  %s1333_s6 = inlined_call_operand.vmem [shape: bf16[16,2048], index: 6, kind: output, shape index: {1}]  }
   0x1   :  { %s1075_s23 = smov 0  }
   0x2 LB: > { %s1087_s24 = sadd.s32 4294967295, %s1033_s23   ;;  %s1090_s25 = sadd.s32 1, %s1033_s23   ;;  %s1033_s23 = sphi %s1075_s23, %s1337_s23   ;;  %s1029_s22 = sphi %s1073_s22, %s1336_s22   ;;  %s1025_s21 = sphi %s1071_s21, %s1335_s21  }
   0x3   : > { %s21_s26 = ssub.s32 %s1033_s23, %s1090_s25  ;;  %s24_s27 = sadd.s32 1, %s1029_s22 }
   0x4   : > { %p22_p0 = scmp.eq.s32.totalorder %s21_s26, 0  ;;  %p31_p1 = scmp.ne.s32.totalorder %s1029_s22, %s1025_s21 }
   0x5   : > { %p32_p2 = scmp.eq.s32.totalorder %s1033_s23, 0  ;;  %p145_p3 = scmp.eq.s32.totalorder %s1087_s24, 1 }
   0x6   : > { %s1100_s28 = scalar_select %p22_p0, %s1029_s22, %s24_s27  }
   0x7   : > { %p33_p4 = por %p32_p2, %p31_p1  ;;  %p1102_p5 = por %p145_p3, %p31_p1 }
   0x8   : > { %p927_p6 = scmp.ge.s32.totalorder %s1033_s23, 2 }
   0xa   : > { %205 = sbr.rel (%p927_p6) target bundleno = 27 (0x1b), region = 32 }
   0xf   : > { %208 = sbr.rel (!%p33_p4) target bundleno = 27 (0x1b), region = 36  ;;  %s210_s30 = sand.u32 (%p33_p4), 1, %s1029_s22  }
  0x10   : > { %s972_s7 = sshll.u32 (%p33_p4), %s1033_s23, 5  ;;  %s928_s8 = sshll.u32 (%p33_p4), %s210_s30, 7 }
  0x11   : > { %s1112_s11 = scalar_lea.vmem (%p33_p4), %s1327_s0, %s972_s7  ;;  %s212_s12 = scalar_lea.vmem (%p33_p4), [#allocation2], %s928_s8 }
  0x12   : > { %v228_v0 = vld [vmem:[%s1112_s11] sm:$0xff] (%p33_p4)  ;;  %v230_v1 = vld [vmem:[%s1112_s11 + $0x8] sm:$0xff] (%p33_p4)  ;;  %v232_v2 = vld [vmem:[%s1112_s11 + $0x10] sm:$0xff] (%p33_p4) }
  0x13   : > { %229 = vst [vmem:[%s212_s12] sm:$0xff] (%p33_p4), %v228_v0  ;;  %231 = vst [vmem:[%s212_s12 + $0x8] sm:$0xff] (%p33_p4), %v230_v1  ;;  %v234_v3 = vld [vmem:[%s1112_s11 + $0x18] sm:$0xff] (%p33_p4)  ;;  %v236_v4 = vld [vmem:[%s1112_s11 + $0x40] sm:$0xff] (%p33_p4) }
  0x14   : > { %233 = vst [vmem:[%s212_s12 + $0x10] sm:$0xff] %v232_v2  ;;  %v238_v5 = vld [vmem:[%s1112_s11 + $0x48] sm:$0xff]  ;;  %235 = vst [vmem:[%s212_s12 + $0x18] sm:$0xff] %v234_v3  ;;  %v240_v6 = vld [vmem:[%s1112_s11 + $0x50] sm:$0xff] }
  0x15   : > { %237 = vst [vmem:[%s212_s12 + $0x20] sm:$0xff] %v236_v4  ;;  %239 = vst [vmem:[%s212_s12 + $0x28] sm:$0xff] %v238_v5  ;;  %v242_v7 = vld [vmem:[%s1112_s11 + $0x58] sm:$0xff]  ;;  %v244_v8 = vld [vmem:[%s1112_s11 + $0x80] sm:$0xff] }
  0x16   : > { %241 = vst [vmem:[%s212_s12 + $0x30] sm:$0xff] %v240_v6  ;;  %243 = vst [vmem:[%s212_s12 + $0x38] sm:$0xff] %v242_v7  ;;  %v246_v9 = vld [vmem:[%s1112_s11 + $0x88] sm:$0xff]  ;;  %v248_v10 = vld [vmem:[%s1112_s11 + $0x90] sm:$0xff] }
  0x17   : > { %245 = vst [vmem:[%s212_s12 + $0x40] sm:$0xff] %v244_v8  ;;  %v250_v11 = vld [vmem:[%s1112_s11 + $0x98] sm:$0xff]  ;;  %247 = vst [vmem:[%s212_s12 + $0x48] sm:$0xff] %v246_v9  ;;  %v252_v12 = vld [vmem:[%s1112_s11 + $0xc0] sm:$0xff] }
  0x18   : > { %249 = vst [vmem:[%s212_s12 + $0x50] sm:$0xff] %v248_v10  ;;  %251 = vst [vmem:[%s212_s12 + $0x58] sm:$0xff] %v250_v11  ;;  %v254_v13 = vld [vmem:[%s1112_s11 + $0xc8] sm:$0xff]  ;;  %v256_v14 = vld [vmem:[%s1112_s11 + $0xd0] sm:$0xff] }
  0x19   : > { %253 = vst [vmem:[%s212_s12 + $0x60] sm:$0xff] %v252_v12  ;;  %255 = vst [vmem:[%s212_s12 + $0x68] sm:$0xff] %v254_v13  ;;  %v258_v15 = vld [vmem:[%s1112_s11 + $0xd8] sm:$0xff] }
  0x1a   : > { %257 = vst [vmem:[%s212_s12 + $0x70] sm:$0xff] %v256_v14  ;;  %259 = vst [vmem:[%s212_s12 + $0x78] sm:$0xff] %v258_v15 }
  0x1b PF: > { %p931_p7 = scmp.ge.s32.totalorder %s1033_s23, 1  ;;  %p264_p8 = scmp.lt.s32.totalorder %s1033_s23, 3 }
  0x1d   : > { %p265_p9 = pnand %p931_p7, %p264_p8 }
  0x1e   : > { %s271_s13 = sand.u32 (!%p265_p9), 1, %s1025_s21  }
  0x1f   : > { %268 = sbr.rel (%p265_p9) target bundleno = 278 (0x116), region = 59  ;;  %s1135_s14 = sshll.u32 (!%p265_p9), %s271_s13, 7 }
  0x20   : > { %s1148_s19 = scalar_lea.vmem (!%p265_p9), [#allocation2], %s1135_s14  ;;  %s1201_s12 = scalar_lea.vmem (!%p265_p9), [#allocation3], %s1135_s14 }
  0x21   : > { %s1222_s14 = sshll.u32 (!%p265_p9), %s271_s13, 6 }
  0x22   : > { %s1245_s21 = scalar_lea.vmem (!%p265_p9), [#allocation4], %s1222_s14 }
  0x24   : > { %v1035_v16 = vmov 0   ;;  %v325_v17 = vld [vmem:[%s1329_s2] sm:$0xff]  ;;  %v318_v21 = vld [vmem:[%s1148_s19 + $0x48] sm:$0xff]  ;;  %v319_v33 = vld [vmem:[%s1148_s19 + $0x50] sm:$0xff]  ;;  %vm422_vm0 = vcmask 261120   ;;  %s981_s13 = sshll.u32 (%p1102_p5), %s1087_s24, 6 }
  0x25   : > { %458 = vmatprep.mubr.bf16.mxu0 %v1035_v16  ;;  %501 = vmatprep.mubr.bf16.mxu1 %v1035_v16  ;;  %v598_v18 = vld [vmem:[%s1330_s3] sm:$0xff]  ;;  %v322_v23 = vld [vmem:[%s1148_s19 + $0x68] sm:$0xff]  ;;  %v323_v35 = vld [vmem:[%s1148_s19 + $0x70] sm:$0xff]  ;;  %s755_s17 = scalar_lea.vmem (%p1102_p5), %s1332_s5, %s981_s13 }
  0x26   : > { %1008 = vset.pattern.permute.xlu0 %v1035_v16  ;;  %1009 = vset.pattern.permute.xlu1 %v1035_v16  ;;  %v317_v19 = vld [vmem:[%s1148_s19 + $0x40] sm:$0xff]  ;;  %v326_v27 = vld [vmem:[%s1329_s2 + $0x8] sm:$0xff]  ;;  %v947_v28 = vcombine.high %v318_v21, %v322_v23  ;;  %v946_v29 = vcombine.low %v318_v21, %v322_v23  ;;  %v320_v36 = vld [vmem:[%s1148_s19 + $0x58] sm:$0xff]  ;;  %v949_v41 = vcombine.high %v319_v33, %v323_v35 }
  0x27   : > { %v321_v20 = vld [vmem:[%s1148_s19 + $0x60] sm:$0xff]  ;;  %329 = vperm.xlu0 %1008, %v325_v17   ;;  %602 = vperm.xlu1 %1009, %v598_v18   ;;  %v310_v31 = vld [vmem:[%s1148_s19 + $0x8] sm:$0xff]  ;;  %v324_v37 = vld [vmem:[%s1148_s19 + $0x78] sm:$0xff]  ;;  %v948_v49 = vcombine.low %v319_v33, %v323_v35 }
  0x28   : > { %v945_v22 = vcombine.high %v317_v19, %v321_v20  ;;  %v944_v24 = vcombine.low %v317_v19, %v321_v20  ;;  %v309_v25 = vld [vmem:[%s1148_s19] sm:$0xff]  ;;  %v314_v32 = vld [vmem:[%s1148_s19 + $0x28] sm:$0xff]  ;;  %481 = vmatprep.subr.bf16.mxu1 %v947_v28  ;;  %v951_v43 = vcombine.high %v320_v36, %v324_v37  ;;  %v311_v44 = vld [vmem:[%s1148_s19 + $0x10] sm:$0xff]  ;;  %v950_v51 = vcombine.low %v320_v36, %v324_v37 }
  0x29   : > { %v313_v26 = vld [vmem:[%s1148_s19 + $0x20] sm:$0xff]  ;;  %v939_v34 = vcombine.high %v310_v31, %v314_v32  ;;  %v599_v39 = vld [vmem:[%s1330_s3 + $0x8] sm:$0xff]  ;;  %482 = vmatpush1.bf16.msra.mxu1 %v946_v29  ;;  %v938_v40 = vcombine.low %v310_v31, %v314_v32  ;;  %v315_v45 = vld [vmem:[%s1148_s19 + $0x30] sm:$0xff] }
  0x2a   : > { %v937_v30 = vcombine.high %v309_v25, %v313_v26  ;;  %438 = vmatprep.subr.bf16.mxu0 %v945_v22  ;;  %v936_v38 = vcombine.low %v309_v25, %v313_v26  ;;  %v1010_v42 = vld [vmem:[%s1328_s1] sm:$0xff]   ;;  %v312_v46 = vld [vmem:[%s1148_s19 + $0x18] sm:$0xff]  ;;  %v627_v50 = vld [vmem:[%s1331_s4 + $0x8] sm:$0xff]  ;;  %v941_v52 = vcombine.high %v311_v44, %v315_v45  ;;  %v940_v54 = vcombine.low %v311_v44, %v315_v45 }
  0x2b   : > { %439 = vmatpush1.bf16.msra.mxu0 %v944_v24  ;;  %483 = vmatprep.subr.bf16.mxu1 %v939_v34  ;;  %v316_v47 = vld [vmem:[%s1148_s19 + $0x38] sm:$0xff]  ;;  %v626_v48 = vld [vmem:[%s1331_s4] sm:$0xff] }
  0x2c   : > { %440 = vmatprep.subr.bf16.mxu0 %v937_v30  ;;  %334 = vperm.xlu0 %1008, %v326_v27   ;;  %v943_v53 = vcombine.high %v312_v46, %v316_v47  ;;  %v942_v55 = vcombine.low %v312_v46, %v316_v47 }
  0x2d   : > { %607 = vperm.xlu1 %1009, %v599_v39   ;;  %484 = vmatpush1.bf16.msra.mxu1 %v938_v40 }
  0x2e   : > { %567 = vmatprep.subr.bf16.mxu1 %v951_v43 }
  0x2f   : > { %441 = vmatpush1.bf16.msra.mxu0 %v936_v38 }
  0x30   : > { %524 = vmatprep.subr.bf16.mxu0 %v949_v41  ;;  %630 = vperm.xlu0 %1008, %v626_v48  }
  0x31   : > { %635 = vperm.xlu1 %1009, %v627_v50   ;;  %953 = vmatmul.mubr.msk.bf16.vlgmr.msra.gmra.mxu1 %vm422_vm0, %v1010_v42 }
  0x32   : > { %952 = vmatmul.mubr.msk.bf16.vlgmr.msra.gmra.mxu0 %vm422_vm0, %v1010_v42  ;;  %568 = vmatpush1.bf16.msra.mxu1 %v950_v51 }
  0x33   : > { %525 = vmatpush1.bf16.msra.mxu0 %v948_v49  ;;  %569 = vmatprep.subr.bf16.mxu1 %v943_v53 }
  0x34   : > { %526 = vmatprep.subr.bf16.mxu0 %v941_v52  ;;  %544 = vmatprep.mubr.bf16.mxu0 %v1035_v16 }
  0x35   : > { %587 = vmatprep.mubr.bf16.mxu1 %v1035_v16 }
  0x36   : > { %570 = vmatpush1.bf16.msra.mxu1 %v942_v55 }
  0x37   : > { %527 = vmatpush1.bf16.msra.mxu0 %v940_v54 }
  0x39   : > { %955 = vmatmul.mubr.msk.bf16.vlgmr.msra.gmra.mxu1 %vm422_vm0, %v1010_v42 }
  0x3a   : > { %954 = vmatmul.mubr.msk.bf16.vlgmr.msra.gmra.mxu0 %vm422_vm0, %v1010_v42 }
  0xa2   : > { %v1187_v56 = vpop.permute.xlu0 %329  ;;  %v1189_v57 = vpop.permute.xlu1 %602 }
  0xa7   : > { %v1191_v58 = vpop.permute.xlu0 %334 }
  0xa8   : > { %v1193_v60 = vpop.permute.xlu1 %607 }
  0xab   : > { %v1197_v1 = vpop.permute.xlu0 %630 }
  0xac   : > { %v1216_v16 = vpop.permute.xlu1 %635 }
  0xf1   : > { %v503_v62 = vpop.f32.mrf.mxu1 }
  0xf2   : > { %v460_v59 = vpop.f32.mrf.mxu0  ;;  %v504_v63 = vadd.f32 %v503_v62, %v1187_v56 }
  0xf3   : > { %v461_v61 = vadd.f32 %v460_v59, %v1187_v56  ;;  %v505_v4 = vpop.f32.mrf.mxu1 }
  0xf4   : > { %v462_v0 = vpop.f32.mrf.mxu0  ;;  %v612_v5 = vmul.f32 %v1189_v57, %v504_v63  ;;  %672 = vst [vmem:[%s1201_s12 + $0x10] sm:$0xff] %v504_v63  ;;  %v506_v6 = vadd.f32 %v505_v4, %v1187_v56 }
  0xf5   : > { %v610_v2 = vmul.f32 %v1189_v57, %v461_v61  ;;  %670 = vst [vmem:[%s1201_s12] sm:$0xff] %v461_v61  ;;  %v463_v3 = vadd.f32 %v462_v0, %v1187_v56  ;;  %v507_v10 = vpop.f32.mrf.mxu1 }
  0xf6   : > { %v464_v7 = vpop.f32.mrf.mxu0  ;;  %v613_v12 = vmul.f32 %v1189_v57, %v506_v6  ;;  %673 = vst [vmem:[%s1201_s12 + $0x18] sm:$0xff] %v506_v6  ;;  %v508_v13 = vadd.f32 %v507_v10, %v1191_v58  ;;  %v640_v14 = vadd.f32 %v1197_v1, %v612_v5 }
  0xf7   : > { %v611_v8 = vmul.f32 %v1189_v57, %v463_v3  ;;  %671 = vst [vmem:[%s1201_s12 + $0x8] sm:$0xff] %v463_v3  ;;  %v465_v9 = vadd.f32 %v464_v7, %v1191_v58  ;;  %v638_v11 = vadd.f32 %v1197_v1, %v610_v2  ;;  %v509_v21 = vpop.f32.mrf.mxu1 }
  0xf8   : > { %v466_v15 = vpop.f32.mrf.mxu0  ;;  %v620_v22 = vmul.f32 %v1193_v60, %v508_v13  ;;  %680 = vst [vmem:[%s1201_s12 + $0x50] sm:$0xff] %v508_v13  ;;  %v641_v23 = vadd.f32 %v1197_v1, %v613_v12  ;;  %v656_v24 = vmax.f32 %v640_v14, 0.0  ;;  %v510_v25 = vadd.f32 %v509_v21, %v1191_v58 }
  0xf9   : > { %v618_v17 = vmul.f32 %v1193_v60, %v465_v9  ;;  %678 = vst [vmem:[%s1201_s12 + $0x40] sm:$0xff] %v465_v9  ;;  %v639_v18 = vadd.f32 %v1197_v1, %v611_v8  ;;  %v654_v19 = vmax.f32 %v638_v11, 0.0  ;;  %v467_v20 = vadd.f32 %v466_v15, %v1191_v58  ;;  %v589_v31 = vpop.f32.mrf.mxu1 }
  0xfa   : > { %v546_v26 = vpop.f32.mrf.mxu0  ;;  %v657_v32 = vmax.f32 %v641_v23, 0.0  ;;  %v621_v33 = vmul.f32 %v1193_v60, %v510_v25  ;;  %681 = vst [vmem:[%s1201_s12 + $0x58] sm:$0xff] %v510_v25  ;;  %v648_v34 = vadd.f32 %v1216_v16, %v620_v22  ;;  %v590_v35 = vadd.f32 %v589_v31, %v1187_v56 }
  0xfb   : > { %v655_v27 = vmax.f32 %v639_v18, 0.0  ;;  %v619_v28 = vmul.f32 %v1193_v60, %v467_v20  ;;  %679 = vst [vmem:[%s1201_s12 + $0x48] sm:$0xff] %v467_v20  ;;  %v646_v29 = vadd.f32 %v1216_v16, %v618_v17  ;;  %v547_v30 = vadd.f32 %v546_v26, %v1187_v56  ;;  %v591_v41 = vpop.f32.mrf.mxu1 }
  0xfc   : > { %v548_v36 = vpop.f32.mrf.mxu0  ;;  %v974_v42 = vpack.c.bf16 %v657_v32, %v656_v24  ;;  %v649_v43 = vadd.f32 %v1216_v16, %v621_v33  ;;  %v664_v44 = vmax.f32 %v648_v34, 0.0  ;;  %v616_v45 = vmul.f32 %v1189_v57, %v590_v35  ;;  %676 = vst [vmem:[%s1201_s12 + $0x30] sm:$0xff] %v590_v35  ;;  %v772_v24 = vld [vmem:[%s1201_s12 + $0x10] sm:$0xff] (%p1102_p5) }
  0xfd   : > { %v973_v37 = vpack.c.bf16 %v655_v27, %v654_v19  ;;  %v647_v38 = vadd.f32 %v1216_v16, %v619_v28  ;;  %v662_v39 = vmax.f32 %v646_v29, 0.0  ;;  %v614_v40 = vmul.f32 %v1189_v57, %v547_v30  ;;  %674 = vst [vmem:[%s1201_s12 + $0x20] sm:$0xff] %v547_v30  ;;  %v593_v51 = vpop.f32.mrf.mxu1  ;;  %v774_v25 = vld [vmem:[%s1201_s12 + $0x18] sm:$0xff] (%p1102_p5)  ;;  %773 = vst [vmem:[%s755_s17 + $0x10] sm:$0xff] (%p1102_p5), %v772_v24 }
  0xfe   : > { %v550_v46 = vpop.f32.mrf.mxu0  ;;  %v549_v49 = vadd.f32 %v548_v36, %v1187_v56  ;;  %v592_v50 = vadd.f32 %v591_v41, %v1187_v56  ;;  %735 = vst [vmem:[%s1245_s21 + $0x8] sm:$0xff] %v974_v42  ;;  %v665_v52 = vmax.f32 %v649_v43, 0.0  ;;  %v644_v53 = vadd.f32 %v1197_v1, %v616_v45  ;;  %775 = vst [vmem:[%s755_s17 + $0x18] sm:$0xff] (%p1102_p5), %v774_v25 }
  0xff   : > { %734 = vst [vmem:[%s1245_s21] sm:$0xff] %v973_v37  ;;  %v663_v47 = vmax.f32 %v647_v38, 0.0  ;;  %v642_v48 = vadd.f32 %v1197_v1, %v614_v40  ;;  %v551_v54 = vadd.f32 %v550_v46, %v1191_v58  ;;  %v594_v55 = vadd.f32 %v593_v51, %v1191_v58  ;;  %v595_v63 = vpop.f32.mrf.mxu1  ;;  %v788_v32 = vld [vmem:[%s1201_s12 + $0x50] sm:$0xff] (%p1102_p5) }
 0x100   : > { %v552_v59 = vpop.f32.mrf.mxu0  ;;  %v615_v62 = vmul.f32 %v1189_v57, %v549_v49  ;;  %675 = vst [vmem:[%s1201_s12 + $0x28] sm:$0xff] %v549_v49  ;;  %v617_v56 = vmul.f32 %v1189_v57, %v592_v50  ;;  %677 = vst [vmem:[%s1201_s12 + $0x38] sm:$0xff] %v592_v50  ;;  %v978_v0 = vpack.c.bf16 %v665_v52, %v664_v44  ;;  %v660_v8 = vmax.f32 %v644_v53, 0.0  ;;  %v784_v30 = vld [vmem:[%s1201_s12 + $0x40] sm:$0xff] (%p1102_p5) }
 0x101   : > { %v977_v61 = vpack.c.bf16 %v663_v47, %v662_v39  ;;  %v622_v2 = vmul.f32 %v1193_v60, %v551_v54  ;;  %682 = vst [vmem:[%s1201_s12 + $0x60] sm:$0xff] %v551_v54  ;;  %v624_v3 = vmul.f32 %v1193_v60, %v594_v55  ;;  %684 = vst [vmem:[%s1201_s12 + $0x70] sm:$0xff] %v594_v55  ;;  %v658_v7 = vmax.f32 %v642_v48, 0.0  ;;  %v790_v33 = vld [vmem:[%s1201_s12 + $0x58] sm:$0xff] (%p1102_p5) }
 0x102   : > { %v643_v4 = vadd.f32 %v1197_v1, %v615_v62  ;;  %v645_v5 = vadd.f32 %v1197_v1, %v617_v56  ;;  %v553_v6 = vadd.f32 %v552_v59, %v1191_v58  ;;  %v596_v57 = vadd.f32 %v595_v63, %v1191_v58  ;;  %739 = vst [vmem:[%s1245_s21 + $0x28] sm:$0xff] %v978_v0  ;;  %v786_v31 = vld [vmem:[%s1201_s12 + $0x48] sm:$0xff] (%p1102_p5) }
 0x103   : > { %738 = vst [vmem:[%s1245_s21 + $0x20] sm:$0xff] %v977_v61  ;;  %v650_v9 = vadd.f32 %v1216_v16, %v622_v2  ;;  %v652_v10 = vadd.f32 %v1216_v16, %v624_v3  ;;  %v780_v28 = vld [vmem:[%s1201_s12 + $0x30] sm:$0xff] (%p1102_p5)  ;;  %785 = vst [vmem:[%s755_s17 + $0x80] sm:$0xff] (%p1102_p5), %v784_v30 }
 0x104   : > { %v659_v11 = vmax.f32 %v643_v4, 0.0  ;;  %v661_v12 = vmax.f32 %v645_v5, 0.0  ;;  %v623_v13 = vmul.f32 %v1193_v60, %v553_v6  ;;  %683 = vst [vmem:[%s1201_s12 + $0x68] sm:$0xff] %v553_v6  ;;  %v625_v1 = vmul.f32 %v1193_v60, %v596_v57  ;;  %685 = vst [vmem:[%s1201_s12 + $0x78] sm:$0xff] %v596_v57  ;;  %v768_v60 = vld [vmem:[%s1201_s12] sm:$0xff] (%p1102_p5) }
 0x105   : > { %v666_v18 = vmax.f32 %v650_v9, 0.0  ;;  %v668_v19 = vmax.f32 %v652_v10, 0.0  ;;  %v776_v26 = vld [vmem:[%s1201_s12 + $0x20] sm:$0xff] (%p1102_p5)  ;;  %769 = vst [vmem:[%s755_s17] sm:$0xff] (%p1102_p5), %v768_v60  ;;  %781 = vst [vmem:[%s755_s17 + $0x30] sm:$0xff] (%p1102_p5), %v780_v28 }
 0x106   : > { %v975_v58 = vpack.c.bf16 %v659_v11, %v658_v7  ;;  %v976_v14 = vpack.c.bf16 %v661_v12, %v660_v8  ;;  %v651_v15 = vadd.f32 %v1216_v16, %v623_v13  ;;  %v653_v17 = vadd.f32 %v1216_v16, %v625_v1  ;;  %v770_v16 = vld [vmem:[%s1201_s12 + $0x8] sm:$0xff] (%p1102_p5)  ;;  %777 = vst [vmem:[%s755_s17 + $0x20] sm:$0xff] (%p1102_p5), %v776_v26 }
 0x107   : > { %v778_v27 = vld [vmem:[%s1201_s12 + $0x28] sm:$0xff] (%p1102_p5)  ;;  %771 = vst [vmem:[%s755_s17 + $0x8] sm:$0xff] (%p1102_p5), %v770_v16  ;;  %v782_v29 = vld [vmem:[%s1201_s12 + $0x38] sm:$0xff] (%p1102_p5)  ;;  %787 = vst [vmem:[%s755_s17 + $0x88] sm:$0xff] (%p1102_p5), %v786_v31 }
 0x108   : > { %736 = vst [vmem:[%s1245_s21 + $0x10] sm:$0xff] %v975_v58  ;;  %737 = vst [vmem:[%s1245_s21 + $0x18] sm:$0xff] %v976_v14  ;;  %v667_v20 = vmax.f32 %v651_v15, 0.0  ;;  %v669_v21 = vmax.f32 %v653_v17, 0.0  ;;  %752 = sbr.rel (!%p1102_p5) target bundleno = 270 (0x10e), region = 67  ;;  %v792_v34 = vld [vmem:[%s1201_s12 + $0x60] sm:$0xff] (%p1102_p5) }
 0x109   : > { %779 = vst [vmem:[%s755_s17 + $0x28] sm:$0xff] (%p1102_p5), %v778_v27  ;;  %783 = vst [vmem:[%s755_s17 + $0x38] sm:$0xff] (%p1102_p5), %v782_v29  ;;  %v796_v36 = vld [vmem:[%s1201_s12 + $0x70] sm:$0xff] (%p1102_p5) }
 0x10a   : > { %v979_v22 = vpack.c.bf16 %v667_v20, %v666_v18  ;;  %v980_v23 = vpack.c.bf16 %v669_v21, %v668_v19  ;;  %789 = vst [vmem:[%s755_s17 + $0x90] sm:$0xff] (%p1102_p5), %v788_v32  ;;  %791 = vst [vmem:[%s755_s17 + $0x98] sm:$0xff] (%p1102_p5), %v790_v33 }
 0x10b   : > { %v794_v35 = vld [vmem:[%s1201_s12 + $0x68] sm:$0xff] (%p1102_p5)  ;;  %793 = vst [vmem:[%s755_s17 + $0xa0] sm:$0xff] (%p1102_p5), %v792_v34  ;;  %797 = vst [vmem:[%s755_s17 + $0xb0] sm:$0xff] (%p1102_p5), %v796_v36  ;;  %v798_v37 = vld [vmem:[%s1201_s12 + $0x78] sm:$0xff] (%p1102_p5) }
 0x10c   : > { %740 = vst [vmem:[%s1245_s21 + $0x30] sm:$0xff] %v979_v22  ;;  %741 = vst [vmem:[%s1245_s21 + $0x38] sm:$0xff] %v980_v23 }
 0x10d   : > { %795 = vst [vmem:[%s755_s17 + $0xa8] sm:$0xff] %v794_v35  ;;  %799 = vst [vmem:[%s755_s17 + $0xb8] sm:$0xff] %v798_v37 }
 0x10e PF: > { %805 = sbr.rel (!%p1102_p5) target bundleno = 278 (0x116), region = 90  ;;  %s982_s18 = sshll.u32 (%p1102_p5), %s1087_s24, 5  ;;  %v821_v38 = vld [vmem:[%s1245_s21] sm:$0xff] (%p1102_p5)  ;;  %v823_v39 = vld [vmem:[%s1245_s21 + $0x8] sm:$0xff] (%p1102_p5) }
 0x10f   : > { %s808_s23 = scalar_lea.vmem (%p1102_p5), %s1333_s6, %s982_s18  ;;  %v829_v42 = vld [vmem:[%s1245_s21 + $0x20] sm:$0xff] (%p1102_p5)  ;;  %v831_v43 = vld [vmem:[%s1245_s21 + $0x28] sm:$0xff] (%p1102_p5) }
 0x110   : > { %v825_v40 = vld [vmem:[%s1245_s21 + $0x10] sm:$0xff] (%p1102_p5)  ;;  %v827_v41 = vld [vmem:[%s1245_s21 + $0x18] sm:$0xff] (%p1102_p5)  ;;  %822 = vst [vmem:[%s808_s23] sm:$0xff] (%p1102_p5), %v821_v38  ;;  %824 = vst [vmem:[%s808_s23 + $0x8] sm:$0xff] (%p1102_p5), %v823_v39 }
 0x111   : > { %826 = vst [vmem:[%s808_s23 + $0x10] sm:$0xff] (%p1102_p5), %v825_v40  ;;  %828 = vst [vmem:[%s808_s23 + $0x18] sm:$0xff] (%p1102_p5), %v827_v41 }
 0x112   : > { %830 = vst [vmem:[%s808_s23 + $0x40] sm:$0xff] (%p1102_p5), %v829_v42  ;;  %832 = vst [vmem:[%s808_s23 + $0x48] sm:$0xff] (%p1102_p5), %v831_v43 }
 0x114   : > { %v833_v44 = vld [vmem:[%s1245_s21 + $0x30] sm:$0xff]  ;;  %v835_v45 = vld [vmem:[%s1245_s21 + $0x38] sm:$0xff] }
 0x115   : > { %834 = vst [vmem:[%s808_s23 + $0x50] sm:$0xff] %v833_v44  ;;  %836 = vst [vmem:[%s808_s23 + $0x58] sm:$0xff] %v835_v45 }
 0x116 PF: > { %p14_p10 = scmp.ge.s32.totalorder %s1090_s25, 4   ;;  %s1335_s21 = smov %s1029_s22 }
 0x117   : > { %s1336_s22 = smov %s1100_s28  ;;  %s1337_s23 = smov %s1090_s25 }
 0x118   :  { %16 = sbr.rel (!%p14_p10) target bundleno = 2 (0x2), region = 156 }

// kernel: _lambda_.9
= control target key start
LH: loop header
LB: loop body
LE: loop exit
PB: predicated region body
PF: predicated region fallthrough
CT: control target
= control target key end

     0   :  { %s1436_s18 = smov 0   ;;  %s1438_s19 = smov 0   ;;  %s1840_s0 = inlined_call_operand.vmem [shape: bf16[144,2048], index: 0, kind: input, shape index: {}]   ;;  %s1841_s1 = inlined_call_operand.vmem [shape: bf16[16,144], index: 1, kind: input, shape index: {}]   ;;  %s1842_s2 = inlined_call_operand.vmem [shape: f32[16,1], index: 2, kind: input, shape index: {}]   ;;  %s1843_s3 = inlined_call_operand.vmem [shape: f32[16,1], index: 3, kind: input, shape index: {}]   ;;  %s1844_s4 = inlined_call_operand.vmem [shape: f32[16,1], index: 4, kind: input, shape index: {}]   ;;  %s1845_s5 = inlined_call_operand.vmem [shape: bf16[16,2048], index: 5, kind: output, shape index: {}]  }
   0x1   :  { %s1440_s20 = smov 0  }
   0x2 LB: > { %s1240_s21 = sadd.s32 4294967295, %s1403_s20   ;;  %s1453_s22 = sadd.s32 1, %s1403_s20   ;;  %s1403_s20 = sphi %s1440_s20, %s1849_s20   ;;  %s1399_s19 = sphi %s1438_s19, %s1848_s19   ;;  %s1395_s18 = sphi %s1436_s18, %s1847_s18  }
   0x3   : > { %s19_s23 = ssub.s32 %s1403_s20, %s1453_s22  ;;  %s22_s24 = sadd.s32 1, %s1399_s19 }
   0x4   : > { %p20_p0 = scmp.eq.s32.totalorder %s19_s23, 0  ;;  %p29_p1 = scmp.ne.s32.totalorder %s1399_s19, %s1395_s18 }
   0x5   : > { %p30_p2 = scmp.eq.s32.totalorder %s1403_s20, 0  ;;  %p143_p3 = scmp.eq.s32.totalorder %s1240_s21, 1 }
   0x6   : > { %s1464_s25 = scalar_select %p20_p0, %s1399_s19, %s22_s24  }
   0x7   : > { %p31_p4 = por %p30_p2, %p29_p1  ;;  %p1466_p5 = por %p143_p3, %p29_p1 }
   0x8   : > { %p1243_p6 = scmp.ge.s32.totalorder %s1403_s20, 2 }
   0xa   : > { %177 = sbr.rel (%p1243_p6) target bundleno = 56 (0x38), region = 32 }
   0xf   : > { %180 = sbr.rel (!%p31_p4) target bundleno = 56 (0x38), region = 36  ;;  %s182_s27 = sand.u32 (%p31_p4), 1, %s1399_s19  }
  0x10   : > { %s1339_s28 = sshll.u32 (%p31_p4), %s1403_s20, 5  ;;  %s1349_s29 = smul.u32 (%p31_p4), 576, %s182_s27 }
  0x11   : > { %s1476_s7 = scalar_lea.vmem (%p31_p4), %s1840_s0, %s1339_s28 }
  0x12   : > { %v200_v0 = vld [vmem:[%s1476_s7] sm:$0xff] (%p31_p4)  ;;  %v202_v1 = vld [vmem:[%s1476_s7 + $0x8] sm:$0xff] (%p31_p4)  ;;  %v204_v2 = vld [vmem:[%s1476_s7 + $0x10] sm:$0xff] (%p31_p4)  ;;  %s1484_s8 = scalar_lea.vmem (%p31_p4), [#allocation2], %s1349_s29 }
  0x13   : > { %v206_v3 = vld [vmem:[%s1476_s7 + $0x18] sm:$0xff] (%p31_p4)  ;;  %v208_v4 = vld [vmem:[%s1476_s7 + $0x40] sm:$0xff] (%p31_p4)  ;;  %v210_v5 = vld [vmem:[%s1476_s7 + $0x48] sm:$0xff] (%p31_p4)  ;;  %201 = vst [vmem:[%s1484_s8] sm:$0xff] (%p31_p4), %v200_v0 }
  0x14   : > { %203 = vst [vmem:[%s1484_s8 + $0x8] sm:$0xff] %v202_v1  ;;  %205 = vst [vmem:[%s1484_s8 + $0x10] sm:$0xff] %v204_v2  ;;  %v212_v6 = vld [vmem:[%s1476_s7 + $0x50] sm:$0xff]  ;;  %v214_v7 = vld [vmem:[%s1476_s7 + $0x58] sm:$0xff] }
  0x15   : > { %207 = vst [vmem:[%s1484_s8 + $0x18] sm:$0xff] %v206_v3  ;;  %209 = vst [vmem:[%s1484_s8 + $0x20] sm:$0xff] %v208_v4  ;;  %v216_v8 = vld [vmem:[%s1476_s7 + $0x80] sm:$0xff]  ;;  %v218_v9 = vld [vmem:[%s1476_s7 + $0x88] sm:$0xff] }
  0x16   : > { %211 = vst [vmem:[%s1484_s8 + $0x28] sm:$0xff] %v210_v5  ;;  %213 = vst [vmem:[%s1484_s8 + $0x30] sm:$0xff] %v212_v6  ;;  %v220_v10 = vld [vmem:[%s1476_s7 + $0x90] sm:$0xff]  ;;  %v222_v11 = vld [vmem:[%s1476_s7 + $0x98] sm:$0xff] }
  0x17   : > { %215 = vst [vmem:[%s1484_s8 + $0x38] sm:$0xff] %v214_v7  ;;  %217 = vst [vmem:[%s1484_s8 + $0x40] sm:$0xff] %v216_v8  ;;  %v224_v12 = vld [vmem:[%s1476_s7 + $0xc0] sm:$0xff]  ;;  %v226_v13 = vld [vmem:[%s1476_s7 + $0xc8] sm:$0xff] }
  0x18   : > { %219 = vst [vmem:[%s1484_s8 + $0x48] sm:$0xff] %v218_v9  ;;  %221 = vst [vmem:[%s1484_s8 + $0x50] sm:$0xff] %v220_v10  ;;  %v228_v14 = vld [vmem:[%s1476_s7 + $0xd0] sm:$0xff]  ;;  %v230_v15 = vld [vmem:[%s1476_s7 + $0xd8] sm:$0xff] }
  0x19   : > { %223 = vst [vmem:[%s1484_s8 + $0x58] sm:$0xff] %v222_v11  ;;  %225 = vst [vmem:[%s1484_s8 + $0x60] sm:$0xff] %v224_v12  ;;  %v232_v16 = vld [vmem:[%s1476_s7 + $0x100] sm:$0xff]  ;;  %v234_v17 = vld [vmem:[%s1476_s7 + $0x108] sm:$0xff] }
  0x1a   : > { %227 = vst [vmem:[%s1484_s8 + $0x68] sm:$0xff] %v226_v13  ;;  %229 = vst [vmem:[%s1484_s8 + $0x70] sm:$0xff] %v228_v14  ;;  %v236_v18 = vld [vmem:[%s1476_s7 + $0x110] sm:$0xff]  ;;  %v238_v19 = vld [vmem:[%s1476_s7 + $0x118] sm:$0xff] }
  0x1b   : > { %231 = vst [vmem:[%s1484_s8 + $0x78] sm:$0xff] %v230_v15  ;;  %233 = vst [vmem:[%s1484_s8 + $0x80] sm:$0xff] %v232_v16  ;;  %v240_v20 = vld [vmem:[%s1476_s7 + $0x140] sm:$0xff]  ;;  %v242_v21 = vld [vmem:[%s1476_s7 + $0x148] sm:$0xff] }
  0x1c   : > { %235 = vst [vmem:[%s1484_s8 + $0x88] sm:$0xff] %v234_v17  ;;  %237 = vst [vmem:[%s1484_s8 + $0x90] sm:$0xff] %v236_v18  ;;  %v244_v22 = vld [vmem:[%s1476_s7 + $0x150] sm:$0xff]  ;;  %v246_v23 = vld [vmem:[%s1476_s7 + $0x158] sm:$0xff] }
  0x1d   : > { %239 = vst [vmem:[%s1484_s8 + $0x98] sm:$0xff] %v238_v19  ;;  %241 = vst [vmem:[%s1484_s8 + $0xa0] sm:$0xff] %v240_v20  ;;  %v248_v24 = vld [vmem:[%s1476_s7 + $0x180] sm:$0xff]  ;;  %v250_v25 = vld [vmem:[%s1476_s7 + $0x188] sm:$0xff] }
  0x1e   : > { %243 = vst [vmem:[%s1484_s8 + $0xa8] sm:$0xff] %v242_v21  ;;  %245 = vst [vmem:[%s1484_s8 + $0xb0] sm:$0xff] %v244_v22  ;;  %v252_v26 = vld [vmem:[%s1476_s7 + $0x190] sm:$0xff]  ;;  %v254_v27 = vld [vmem:[%s1476_s7 + $0x198] sm:$0xff] }
  0x1f   : > { %247 = vst [vmem:[%s1484_s8 + $0xb8] sm:$0xff] %v246_v23  ;;  %249 = vst [vmem:[%s1484_s8 + $0xc0] sm:$0xff] %v248_v24  ;;  %v256_v28 = vld [vmem:[%s1476_s7 + $0x1c0] sm:$0xff]  ;;  %v258_v29 = vld [vmem:[%s1476_s7 + $0x1c8] sm:$0xff] }
  0x20   : > { %251 = vst [vmem:[%s1484_s8 + $0xc8] sm:$0xff] %v250_v25  ;;  %253 = vst [vmem:[%s1484_s8 + $0xd0] sm:$0xff] %v252_v26  ;;  %v260_v30 = vld [vmem:[%s1476_s7 + $0x1d0] sm:$0xff]  ;;  %v262_v31 = vld [vmem:[%s1476_s7 + $0x1d8] sm:$0xff] }
  0x21   : > { %255 = vst [vmem:[%s1484_s8 + $0xd8] sm:$0xff] %v254_v27  ;;  %257 = vst [vmem:[%s1484_s8 + $0xe0] sm:$0xff] %v256_v28  ;;  %v264_v32 = vld [vmem:[%s1476_s7 + $0x200] sm:$0xff]  ;;  %v266_v33 = vld [vmem:[%s1476_s7 + $0x208] sm:$0xff] }
  0x22   : > { %259 = vst [vmem:[%s1484_s8 + $0xe8] sm:$0xff] %v258_v29  ;;  %261 = vst [vmem:[%s1484_s8 + $0xf0] sm:$0xff] %v260_v30  ;;  %v268_v34 = vld [vmem:[%s1476_s7 + $0x210] sm:$0xff]  ;;  %v270_v35 = vld [vmem:[%s1476_s7 + $0x218] sm:$0xff] }
  0x23   : > { %263 = vst [vmem:[%s1484_s8 + $0xf8] sm:$0xff] %v262_v31  ;;  %265 = vst [vmem:[%s1484_s8 + $0x100] sm:$0xff] %v264_v32  ;;  %v272_v36 = vld [vmem:[%s1476_s7 + $0x240] sm:$0xff]  ;;  %v274_v37 = vld [vmem:[%s1476_s7 + $0x248] sm:$0xff] }
  0x24   : > { %267 = vst [vmem:[%s1484_s8 + $0x108] sm:$0xff] %v266_v33  ;;  %269 = vst [vmem:[%s1484_s8 + $0x110] sm:$0xff] %v268_v34  ;;  %v276_v38 = vld [vmem:[%s1476_s7 + $0x250] sm:$0xff]  ;;  %v278_v39 = vld [vmem:[%s1476_s7 + $0x258] sm:$0xff] }
  0x25   : > { %271 = vst [vmem:[%s1484_s8 + $0x118] sm:$0xff] %v270_v35  ;;  %273 = vst [vmem:[%s1484_s8 + $0x120] sm:$0xff] %v272_v36  ;;  %v280_v40 = vld [vmem:[%s1476_s7 + $0x280] sm:$0xff]  ;;  %v282_v41 = vld [vmem:[%s1476_s7 + $0x288] sm:$0xff] }
  0x26   : > { %275 = vst [vmem:[%s1484_s8 + $0x128] sm:$0xff] %v274_v37  ;;  %277 = vst [vmem:[%s1484_s8 + $0x130] sm:$0xff] %v276_v38  ;;  %v284_v42 = vld [vmem:[%s1476_s7 + $0x290] sm:$0xff]  ;;  %v286_v43 = vld [vmem:[%s1476_s7 + $0x298] sm:$0xff] }
  0x27   : > { %279 = vst [vmem:[%s1484_s8 + $0x138] sm:$0xff] %v278_v39  ;;  %281 = vst [vmem:[%s1484_s8 + $0x140] sm:$0xff] %v280_v40  ;;  %v288_v44 = vld [vmem:[%s1476_s7 + $0x2c0] sm:$0xff]  ;;  %v290_v45 = vld [vmem:[%s1476_s7 + $0x2c8] sm:$0xff] }
  0x28   : > { %283 = vst [vmem:[%s1484_s8 + $0x148] sm:$0xff] %v282_v41  ;;  %285 = vst [vmem:[%s1484_s8 + $0x150] sm:$0xff] %v284_v42  ;;  %v292_v46 = vld [vmem:[%s1476_s7 + $0x2d0] sm:$0xff]  ;;  %v294_v47 = vld [vmem:[%s1476_s7 + $0x2d8] sm:$0xff] }
  0x29   : > { %287 = vst [vmem:[%s1484_s8 + $0x158] sm:$0xff] %v286_v43  ;;  %289 = vst [vmem:[%s1484_s8 + $0x160] sm:$0xff] %v288_v44  ;;  %v296_v48 = vld [vmem:[%s1476_s7 + $0x300] sm:$0xff]  ;;  %v298_v49 = vld [vmem:[%s1476_s7 + $0x308] sm:$0xff] }
  0x2a   : > { %291 = vst [vmem:[%s1484_s8 + $0x168] sm:$0xff] %v290_v45  ;;  %293 = vst [vmem:[%s1484_s8 + $0x170] sm:$0xff] %v292_v46  ;;  %v300_v50 = vld [vmem:[%s1476_s7 + $0x310] sm:$0xff]  ;;  %v302_v51 = vld [vmem:[%s1476_s7 + $0x318] sm:$0xff] }
  0x2b   : > { %295 = vst [vmem:[%s1484_s8 + $0x178] sm:$0xff] %v294_v47  ;;  %297 = vst [vmem:[%s1484_s8 + $0x180] sm:$0xff] %v296_v48  ;;  %v304_v52 = vld [vmem:[%s1476_s7 + $0x340] sm:$0xff]  ;;  %v306_v53 = vld [vmem:[%s1476_s7 + $0x348] sm:$0xff] }
  0x2c   : > { %299 = vst [vmem:[%s1484_s8 + $0x188] sm:$0xff] %v298_v49  ;;  %301 = vst [vmem:[%s1484_s8 + $0x190] sm:$0xff] %v300_v50  ;;  %v308_v54 = vld [vmem:[%s1476_s7 + $0x350] sm:$0xff]  ;;  %v310_v55 = vld [vmem:[%s1476_s7 + $0x358] sm:$0xff] }
  0x2d   : > { %303 = vst [vmem:[%s1484_s8 + $0x198] sm:$0xff] %v302_v51  ;;  %305 = vst [vmem:[%s1484_s8 + $0x1a0] sm:$0xff] %v304_v52  ;;  %v312_v56 = vld [vmem:[%s1476_s7 + $0x380] sm:$0xff]  ;;  %v314_v57 = vld [vmem:[%s1476_s7 + $0x388] sm:$0xff] }
  0x2e   : > { %307 = vst [vmem:[%s1484_s8 + $0x1a8] sm:$0xff] %v306_v53  ;;  %309 = vst [vmem:[%s1484_s8 + $0x1b0] sm:$0xff] %v308_v54  ;;  %v316_v58 = vld [vmem:[%s1476_s7 + $0x390] sm:$0xff]  ;;  %v318_v59 = vld [vmem:[%s1476_s7 + $0x398] sm:$0xff] }
  0x2f   : > { %311 = vst [vmem:[%s1484_s8 + $0x1b8] sm:$0xff] %v310_v55  ;;  %313 = vst [vmem:[%s1484_s8 + $0x1c0] sm:$0xff] %v312_v56  ;;  %v320_v60 = vld [vmem:[%s1476_s7 + $0x3c0] sm:$0xff]  ;;  %v322_v61 = vld [vmem:[%s1476_s7 + $0x3c8] sm:$0xff] }
  0x30   : > { %315 = vst [vmem:[%s1484_s8 + $0x1c8] sm:$0xff] %v314_v57  ;;  %317 = vst [vmem:[%s1484_s8 + $0x1d0] sm:$0xff] %v316_v58  ;;  %v324_v62 = vld [vmem:[%s1476_s7 + $0x3d0] sm:$0xff]  ;;  %v326_v63 = vld [vmem:[%s1476_s7 + $0x3d8] sm:$0xff] }
  0x31   : > { %319 = vst [vmem:[%s1484_s8 + $0x1d8] sm:$0xff] %v318_v59  ;;  %321 = vst [vmem:[%s1484_s8 + $0x1e0] sm:$0xff] %v320_v60  ;;  %v328_v0 = vld [vmem:[%s1476_s7 + $0x400] sm:$0xff]  ;;  %v330_v1 = vld [vmem:[%s1476_s7 + $0x408] sm:$0xff] }
  0x32   : > { %323 = vst [vmem:[%s1484_s8 + $0x1e8] sm:$0xff] %v322_v61  ;;  %325 = vst [vmem:[%s1484_s8 + $0x1f0] sm:$0xff] %v324_v62  ;;  %v332_v2 = vld [vmem:[%s1476_s7 + $0x410] sm:$0xff]  ;;  %v334_v3 = vld [vmem:[%s1476_s7 + $0x418] sm:$0xff] }
  0x33   : > { %327 = vst [vmem:[%s1484_s8 + $0x1f8] sm:$0xff] %v326_v63  ;;  %329 = vst [vmem:[%s1484_s8 + $0x200] sm:$0xff] %v328_v0  ;;  %v336_v4 = vld [vmem:[%s1476_s7 + $0x440] sm:$0xff]  ;;  %v338_v5 = vld [vmem:[%s1476_s7 + $0x448] sm:$0xff] }
  0x34   : > { %331 = vst [vmem:[%s1484_s8 + $0x208] sm:$0xff] %v330_v1  ;;  %333 = vst [vmem:[%s1484_s8 + $0x210] sm:$0xff] %v332_v2  ;;  %v340_v6 = vld [vmem:[%s1476_s7 + $0x450] sm:$0xff]  ;;  %v342_v7 = vld [vmem:[%s1476_s7 + $0x458] sm:$0xff] }
  0x35   : > { %335 = vst [vmem:[%s1484_s8 + $0x218] sm:$0xff] %v334_v3  ;;  %337 = vst [vmem:[%s1484_s8 + $0x220] sm:$0xff] %v336_v4 }
  0x36   : > { %339 = vst [vmem:[%s1484_s8 + $0x228] sm:$0xff] %v338_v5  ;;  %341 = vst [vmem:[%s1484_s8 + $0x230] sm:$0xff] %v340_v6 }
  0x37   : > { %343 = vst [vmem:[%s1484_s8 + $0x238] sm:$0xff] %v342_v7 }
  0x38 PF: > { %p1246_p7 = scmp.ge.s32.totalorder %s1403_s20, 1  ;;  %p348_p8 = scmp.lt.s32.totalorder %s1403_s20, 3 }
  0x3a   : > { %p349_p9 = pnand %p1246_p7, %p348_p8 }
  0x3b   : > { %s355_s9 = sand.u32 (!%p349_p9), 1, %s1395_s18  }
  0x3c   : > { %352 = sbr.rel (%p349_p9) target bundleno = 362 (0x16a), region = 59  ;;  %s1247_s11 = sshll.u32 (!%p349_p9), %s355_s9, 6 }
  0x3d   : > { %s1350_s12 = smul.u32 (!%p349_p9), 576, %s355_s9  ;;  %s1781_s18 = scalar_lea.vmem (!%p349_p9), [#allocation3], %s1247_s11 }
  0x3f   : > { %s1644_s17 = scalar_lea.vmem (!%p349_p9), [#allocation2], %s1350_s12 }
  0x41   : > { %v1630_v8 = vld [vmem:[%s1841_s1 + $0x4] ss:$8 sps:$4 sm:$0xff]   ;;  %vm839_vm0 = vcmask 130048   ;;  %v1405_v11 = vmov 0   ;;  %s1348_s9 = sshll.u32 (%p1466_p5), %s1240_s21, 5 }
  0x42   : > { %v458_v9 = vld [vmem:[%s1842_s2] sm:$0xff]  ;;  %1322 = vmatprep.mubr.msk.bf16.mxu0 %vm839_vm0, %v1630_v8  ;;  %1323 = vmatprep.mubr.msk.bf16.mxu1 %vm839_vm0, %v1630_v8  ;;  %v443_v14 = vld [vmem:[%s1644_s17 + $0x1c8] sm:$0xff]  ;;  %s1152_s14 = scalar_lea.vmem (%p1466_p5), %s1845_s5, %s1348_s9 }
  0x43   : > { %v1015_v10 = vld [vmem:[%s1843_s3] sm:$0xff]  ;;  %1376 = vset.pattern.permute.xlu0 %v1405_v11  ;;  %1377 = vset.pattern.permute.xlu1 %v1405_v11  ;;  %v447_v16 = vld [vmem:[%s1644_s17 + $0x1e8] sm:$0xff] }
  0x44   : > { %v442_v12 = vld [vmem:[%s1644_s17 + $0x1c0] sm:$0xff]  ;;  %462 = vperm.xlu0 %1376, %v458_v9   ;;  %1019 = vperm.xlu1 %1377, %v1015_v10   ;;  %v1309_v20 = vcombine.high %v443_v14, %v447_v16  ;;  %v1308_v21 = vcombine.low %v443_v14, %v447_v16  ;;  %v435_v23 = vld [vmem:[%s1644_s17 + $0x188] sm:$0xff] }
  0x45   : > { %v446_v13 = vld [vmem:[%s1644_s17 + $0x1e0] sm:$0xff]  ;;  %v439_v24 = vld [vmem:[%s1644_s17 + $0x1a8] sm:$0xff] }
  0x46   : > { %v1307_v15 = vcombine.high %v442_v12, %v446_v13  ;;  %v1306_v17 = vcombine.low %v442_v12, %v446_v13  ;;  %v434_v18 = vld [vmem:[%s1644_s17 + $0x180] sm:$0xff]  ;;  %v1301_v26 = vcombine.high %v435_v23, %v439_v24  ;;  %v427_v28 = vld [vmem:[%s1644_s17 + $0x148] sm:$0xff]  ;;  %886 = vmatprep.subr.bf16.mxu1 %v1309_v20  ;;  %v1300_v33 = vcombine.low %v435_v23, %v439_v24  ;;  %v444_v23 = vld [vmem:[%s1644_s17 + $0x1d0] sm:$0xff] }
  0x47   : > { %v438_v19 = vld [vmem:[%s1644_s17 + $0x1a0] sm:$0xff]  ;;  %v431_v29 = vld [vmem:[%s1644_s17 + $0x168] sm:$0xff]  ;;  %887 = vmatpush1.bf16.msra.mxu1 %v1308_v21  ;;  %v448_v24 = vld [vmem:[%s1644_s17 + $0x1f0] sm:$0xff] }
  0x48   : > { %v1299_v22 = vcombine.high %v434_v18, %v438_v19  ;;  %v426_v25 = vld [vmem:[%s1644_s17 + $0x140] sm:$0xff]  ;;  %843 = vmatprep.subr.bf16.mxu0 %v1307_v15  ;;  %v1298_v30 = vcombine.low %v434_v18, %v438_v19  ;;  %v459_v31 = vld [vmem:[%s1842_s2 + $0x8] sm:$0xff]  ;;  %888 = vmatprep.subr.bf16.mxu1 %v1301_v26  ;;  %v1293_v35 = vcombine.high %v427_v28, %v431_v29  ;;  %v449_v26 = vld [vmem:[%s1644_s17 + $0x1f8] sm:$0xff] }
  0x49   : > { %v430_v27 = vld [vmem:[%s1644_s17 + $0x160] sm:$0xff]  ;;  %844 = vmatpush1.bf16.msra.mxu0 %v1306_v17  ;;  %v1016_v32 = vld [vmem:[%s1843_s3 + $0x8] sm:$0xff]  ;;  %467 = vperm.xlu0 %1376, %v459_v31   ;;  %v1292_v43 = vcombine.low %v427_v28, %v431_v29  ;;  %v1311_v29 = vcombine.high %v444_v23, %v448_v24  ;;  %v436_v31 = vld [vmem:[%s1644_s17 + $0x190] sm:$0xff] }
  0x4a   : > { %845 = vmatprep.subr.bf16.mxu0 %v1299_v22  ;;  %v1291_v34 = vcombine.high %v426_v25, %v430_v27  ;;  %v418_v36 = vld [vmem:[%s1644_s17 + $0x100] sm:$0xff]  ;;  %v419_v38 = vld [vmem:[%s1644_s17 + $0x108] sm:$0xff]  ;;  %1024 = vperm.xlu1 %1377, %v1016_v32   ;;  %v1290_v40 = vcombine.low %v426_v25, %v430_v27  ;;  %v445_v25 = vld [vmem:[%s1644_s17 + $0x1d8] sm:$0xff] }
  0x4b   : > { %v422_v37 = vld [vmem:[%s1644_s17 + $0x120] sm:$0xff]  ;;  %v423_v39 = vld [vmem:[%s1644_s17 + $0x128] sm:$0xff]  ;;  %889 = vmatpush1.bf16.msra.mxu1 %v1300_v33  ;;  %v440_v32 = vld [vmem:[%s1644_s17 + $0x1b0] sm:$0xff] }
  0x4c   : > { %v1043_v41 = vld [vmem:[%s1844_s4] sm:$0xff]  ;;  %v1044_v42 = vld [vmem:[%s1844_s4 + $0x8] sm:$0xff]  ;;  %v1283_v44 = vcombine.high %v418_v36, %v422_v37  ;;  %890 = vmatprep.subr.bf16.mxu1 %v1293_v35  ;;  %v1285_v45 = vcombine.high %v419_v38, %v423_v39  ;;  %v1282_v50 = vcombine.low %v418_v36, %v422_v37  ;;  %v1284_v51 = vcombine.low %v419_v38, %v423_v39  ;;  %v441_v35 = vld [vmem:[%s1644_s17 + $0x1b8] sm:$0xff] }
  0x4d   : > { %846 = vmatpush1.bf16.msra.mxu0 %v1298_v30  ;;  %v410_v46 = vld [vmem:[%s1644_s17 + $0xc0] sm:$0xff]  ;;  %v411_v48 = vld [vmem:[%s1644_s17 + $0xc8] sm:$0xff]  ;;  %1047 = vperm.xlu0 %1376, %v1043_v41   ;;  %v1313_v30 = vcombine.high %v445_v25, %v449_v26  ;;  %v1310_v36 = vcombine.low %v444_v23, %v448_v24  ;;  %v1312_v37 = vcombine.low %v445_v25, %v449_v26  ;;  %v432_v41 = vld [vmem:[%s1644_s17 + $0x170] sm:$0xff] }
  0x4e   : > { %847 = vmatprep.subr.bf16.mxu0 %v1291_v34  ;;  %v414_v47 = vld [vmem:[%s1644_s17 + $0xe0] sm:$0xff]  ;;  %v415_v49 = vld [vmem:[%s1644_s17 + $0xe8] sm:$0xff]  ;;  %1052 = vperm.xlu1 %1377, %v1044_v42   ;;  %v437_v34 = vld [vmem:[%s1644_s17 + $0x198] sm:$0xff]  ;;  %v1303_v38 = vcombine.high %v436_v31, %v440_v32 }
  0x4f   : > { %891 = vmatpush1.bf16.msra.mxu1 %v1292_v43  ;;  %v1275_v52 = vcombine.high %v410_v46, %v414_v47  ;;  %v1277_v53 = vcombine.high %v411_v48, %v415_v49  ;;  %v402_v54 = vld [vmem:[%s1644_s17 + $0x80] sm:$0xff]  ;;  %v403_v56 = vld [vmem:[%s1644_s17 + $0x88] sm:$0xff]  ;;  %v1274_v58 = vcombine.low %v410_v46, %v414_v47  ;;  %v1276_v59 = vcombine.low %v411_v48, %v415_v49  ;;  %v429_v42 = vld [vmem:[%s1644_s17 + $0x158] sm:$0xff] }
  0x50   : > { %892 = vmatprep.subr.bf16.mxu1 %v1285_v45  ;;  %v406_v55 = vld [vmem:[%s1644_s17 + $0xa0] sm:$0xff]  ;;  %v407_v57 = vld [vmem:[%s1644_s17 + $0xa8] sm:$0xff]  ;;  %v1305_v39 = vcombine.high %v437_v34, %v441_v35  ;;  %v433_v43 = vld [vmem:[%s1644_s17 + $0x178] sm:$0xff]  ;;  %v1304_v45 = vcombine.low %v437_v34, %v441_v35 }
  0x51   : > { %848 = vmatpush1.bf16.msra.mxu0 %v1290_v40  ;;  %v1267_v60 = vcombine.high %v402_v54, %v406_v55  ;;  %v1269_v61 = vcombine.high %v403_v56, %v407_v57  ;;  %v394_v62 = vld [vmem:[%s1644_s17 + $0x40] sm:$0xff]  ;;  %v395_v0 = vld [vmem:[%s1644_s17 + $0x48] sm:$0xff]  ;;  %v1266_v2 = vcombine.low %v402_v54, %v406_v55  ;;  %v1268_v3 = vcombine.low %v403_v56, %v407_v57  ;;  %v428_v40 = vld [vmem:[%s1644_s17 + $0x150] sm:$0xff] }
  0x52   : > { %849 = vmatprep.subr.bf16.mxu0 %v1283_v44  ;;  %v398_v63 = vld [vmem:[%s1644_s17 + $0x60] sm:$0xff]  ;;  %v399_v1 = vld [vmem:[%s1644_s17 + $0x68] sm:$0xff]  ;;  %v1302_v44 = vcombine.low %v436_v31, %v440_v32  ;;  %v1295_v46 = vcombine.high %v428_v40, %v432_v41  ;;  %v1297_v47 = vcombine.high %v429_v42, %v433_v43  ;;  %v420_v48 = vld [vmem:[%s1644_s17 + $0x110] sm:$0xff] }
  0x53   : > { %893 = vmatpush1.bf16.msra.mxu1 %v1284_v51  ;;  %v1259_v4 = vcombine.high %v394_v62, %v398_v63  ;;  %v1261_v5 = vcombine.high %v395_v0, %v399_v1  ;;  %v386_v6 = vld [vmem:[%s1644_s17] sm:$0xff]  ;;  %v387_v9 = vld [vmem:[%s1644_s17 + $0x8] sm:$0xff]  ;;  %v1258_v11 = vcombine.low %v394_v62, %v398_v63  ;;  %v1260_v12 = vcombine.low %v395_v0, %v399_v1  ;;  %v424_v49 = vld [vmem:[%s1644_s17 + $0x130] sm:$0xff] }
  0x54   : > { %894 = vmatprep.subr.bf16.mxu1 %v1277_v53  ;;  %v390_v7 = vld [vmem:[%s1644_s17 + $0x20] sm:$0xff]  ;;  %v391_v10 = vld [vmem:[%s1644_s17 + $0x28] sm:$0xff]  ;;  %v425_v51 = vld [vmem:[%s1644_s17 + $0x138] sm:$0xff]  ;;  %v1296_v53 = vcombine.low %v429_v42, %v433_v43  ;;  %v1287_v54 = vcombine.high %v420_v48, %v424_v49 }
  0x55   : > { %850 = vmatpush1.bf16.msra.mxu0 %v1282_v50  ;;  %v1251_v13 = vcombine.high %v386_v6, %v390_v7  ;;  %v1253_v14 = vcombine.high %v387_v9, %v391_v10  ;;  %v450_v15 = vld [vmem:[%s1644_s17 + $0x200] sm:$0xff]  ;;  %v451_v17 = vld [vmem:[%s1644_s17 + $0x208] sm:$0xff]  ;;  %v1250_v19 = vcombine.low %v386_v6, %v390_v7  ;;  %v1252_v20 = vcombine.low %v387_v9, %v391_v10  ;;  %v421_v50 = vld [vmem:[%s1644_s17 + $0x118] sm:$0xff] }
  0x56   : > { %851 = vmatprep.subr.bf16.mxu0 %v1275_v52  ;;  %v454_v16 = vld [vmem:[%s1644_s17 + $0x220] sm:$0xff]  ;;  %v455_v18 = vld [vmem:[%s1644_s17 + $0x228] sm:$0xff]  ;;  %v1294_v52 = vcombine.low %v428_v40, %v432_v41  ;;  %v1289_v55 = vcombine.high %v421_v50, %v425_v51  ;;  %v412_v56 = vld [vmem:[%s1644_s17 + $0xd0] sm:$0xff] }
  0x57   : > { %895 = vmatpush1.bf16.msra.mxu1 %v1276_v59  ;;  %v1315_v21 = vcombine.high %v450_v15, %v454_v16  ;;  %v1317_v22 = vcombine.high %v451_v17, %v455_v18  ;;  %v1314_v27 = vcombine.low %v450_v15, %v454_v16  ;;  %v1316_v28 = vcombine.low %v451_v17, %v455_v18  ;;  %v1703_v33 = vld [vmem:[%s1841_s1] ss:$8 sps:$4 sm:$0xff]   ;;  %v416_v57 = vld [vmem:[%s1644_s17 + $0xf0] sm:$0xff]  ;;  %v417_v59 = vld [vmem:[%s1644_s17 + $0xf8] sm:$0xff] }
  0x58   : > { %896 = vmatprep.subr.bf16.mxu1 %v1269_v61  ;;  %v1279_v61 = vcombine.high %v412_v56, %v416_v57  ;;  %v404_v63 = vld [vmem:[%s1644_s17 + $0x90] sm:$0xff]  ;;  %v405_v1 = vld [vmem:[%s1644_s17 + $0x98] sm:$0xff] }
  0x59   : > { %852 = vmatpush1.bf16.msra.mxu0 %v1274_v58  ;;  %v413_v58 = vld [vmem:[%s1644_s17 + $0xd8] sm:$0xff]  ;;  %v408_v0 = vld [vmem:[%s1644_s17 + $0xb0] sm:$0xff] }
  0x5a   : > { %853 = vmatprep.subr.bf16.mxu0 %v1267_v60  ;;  %v1286_v60 = vcombine.low %v420_v48, %v424_v49  ;;  %v1281_v62 = vcombine.high %v413_v58, %v417_v59  ;;  %v396_v7 = vld [vmem:[%s1644_s17 + $0x50] sm:$0xff]  ;;  %v397_v10 = vld [vmem:[%s1644_s17 + $0x58] sm:$0xff] }
  0x5b   : > { %897 = vmatpush1.bf16.msra.mxu1 %v1268_v3  ;;  %v1278_v3 = vcombine.low %v412_v56, %v416_v57  ;;  %v400_v9 = vld [vmem:[%s1644_s17 + $0x70] sm:$0xff]  ;;  %v389_v18 = vld [vmem:[%s1644_s17 + $0x18] sm:$0xff] }
  0x5c   : > { %898 = vmatprep.subr.bf16.mxu1 %v1261_v5  ;;  %v1271_v5 = vcombine.high %v404_v63, %v408_v0  ;;  %v388_v16 = vld [vmem:[%s1644_s17 + $0x10] sm:$0xff]  ;;  %v453_v26 = vld [vmem:[%s1644_s17 + $0x218] sm:$0xff] }
  0x5d   : > { %854 = vmatpush1.bf16.msra.mxu0 %v1266_v2  ;;  %v409_v2 = vld [vmem:[%s1644_s17 + $0xb8] sm:$0xff]  ;;  %v392_v17 = vld [vmem:[%s1644_s17 + $0x30] sm:$0xff] }
  0x5e   : > { %855 = vmatprep.subr.bf16.mxu0 %v1259_v4  ;;  %v1280_v4 = vcombine.low %v413_v58, %v417_v59  ;;  %v1273_v6 = vcombine.high %v405_v1, %v409_v2  ;;  %v452_v24 = vld [vmem:[%s1644_s17 + $0x210] sm:$0xff] }
  0x5f   : > { %899 = vmatpush1.bf16.msra.mxu1 %v1260_v12  ;;  %v1270_v12 = vcombine.low %v404_v63, %v408_v0  ;;  %v456_v25 = vld [vmem:[%s1644_s17 + $0x230] sm:$0xff] }
  0x60   : > { %900 = vmatprep.subr.bf16.mxu1 %v1253_v14  ;;  %v1263_v14 = vcombine.high %v396_v7, %v400_v9  ;;  %v1318_v32 = vcombine.low %v452_v24, %v456_v25 }
  0x61   : > { %856 = vmatpush1.bf16.msra.mxu0 %v1258_v11  ;;  %v401_v11 = vld [vmem:[%s1644_s17 + $0x78] sm:$0xff] }
  0x62   : > { %857 = vmatprep.subr.bf16.mxu0 %v1251_v13  ;;  %v1272_v13 = vcombine.low %v405_v1, %v409_v2  ;;  %v1265_v15 = vcombine.high %v397_v10, %v401_v11 }
  0x63   : > { %901 = vmatpush1.bf16.msra.mxu1 %v1252_v20  ;;  %v1262_v20 = vcombine.low %v396_v7, %v400_v9 }
  0x64   : > { %916 = vmatprep.subr.bf16.mxu1 %v1317_v22  ;;  %v1255_v22 = vcombine.high %v388_v16, %v392_v17 }
  0x65   : > { %858 = vmatpush1.bf16.msra.mxu0 %v1250_v19  ;;  %v393_v19 = vld [vmem:[%s1644_s17 + $0x38] sm:$0xff] }
  0x66   : > { %873 = vmatprep.subr.bf16.mxu0 %v1315_v21  ;;  %v1264_v21 = vcombine.low %v397_v10, %v401_v11  ;;  %v1257_v23 = vcombine.high %v389_v18, %v393_v19 }
  0x67   : > { %917 = vmatpush2.bf16.msra.mxu1 %v1316_v28  ;;  %v1254_v28 = vcombine.low %v388_v16, %v392_v17 }
  0x68   : > { %972 = vmatprep.subr.bf16.mxu1 %v1313_v30  ;;  %v1319_v30 = vcombine.high %v452_v24, %v456_v25 }
  0x69   : > { %874 = vmatpush2.bf16.msra.mxu0 %v1314_v27  ;;  %v457_v27 = vld [vmem:[%s1644_s17 + $0x238] sm:$0xff] }
  0x6a   : > { %929 = vmatprep.subr.bf16.mxu0 %v1311_v29  ;;  %919 = vmatmul.mubr.bf16.vlgmr.msra.gmra.mxu1 %v1703_v33  ;;  %v1256_v29 = vcombine.low %v389_v18, %v393_v19  ;;  %v1321_v31 = vcombine.high %v453_v26, %v457_v27  ;;  %v1320_v34 = vcombine.low %v453_v26, %v457_v27 }
  0x6b   : > { %973 = vmatpush1.bf16.msra.mxu1 %v1312_v37  ;;  %1325 = vmatprep.mubr.msk.bf16.mxu1 %vm839_vm0, %v1630_v8 }
  0x6c   : > { %876 = vmatmul.mubr.bf16.vlgmr.msra.gmra.mxu0 %v1703_v33  ;;  %974 = vmatprep.subr.bf16.mxu1 %v1305_v39 }
  0x6d   : > { %930 = vmatpush1.bf16.msra.mxu0 %v1310_v36  ;;  %1324 = vmatprep.mubr.msk.bf16.mxu0 %vm839_vm0, %v1630_v8  ;;  %v1288_v8 = vcombine.low %v421_v50, %v425_v51 }
  0x6e   : > { %931 = vmatprep.subr.bf16.mxu0 %v1303_v38 }
  0x6f   : > { %975 = vmatpush1.bf16.msra.mxu1 %v1304_v45 }
  0x70   : > { %976 = vmatprep.subr.bf16.mxu1 %v1297_v47 }
  0x71   : > { %932 = vmatpush1.bf16.msra.mxu0 %v1302_v44 }
  0x72   : > { %933 = vmatprep.subr.bf16.mxu0 %v1295_v46 }
  0x73   : > { %977 = vmatpush1.bf16.msra.mxu1 %v1296_v53 }
  0x74   : > { %978 = vmatprep.subr.bf16.mxu1 %v1289_v55 }
  0x75   : > { %934 = vmatpush1.bf16.msra.mxu0 %v1294_v52 }
  0x76   : > { %935 = vmatprep.subr.bf16.mxu0 %v1287_v54 }
  0x77   : > { %979 = vmatpush1.bf16.msra.mxu1 %v1288_v8 }
  0x78   : > { %980 = vmatprep.subr.bf16.mxu1 %v1281_v62 }
  0x79   : > { %936 = vmatpush1.bf16.msra.mxu0 %v1286_v60 }
  0x7a   : > { %937 = vmatprep.subr.bf16.mxu0 %v1279_v61 }
  0x7b   : > { %981 = vmatpush1.bf16.msra.mxu1 %v1280_v4 }
  0x7c   : > { %982 = vmatprep.subr.bf16.mxu1 %v1273_v6 }
  0x7d   : > { %938 = vmatpush1.bf16.msra.mxu0 %v1278_v3 }
  0x7e   : > { %939 = vmatprep.subr.bf16.mxu0 %v1271_v5 }
  0x7f   : > { %983 = vmatpush1.bf16.msra.mxu1 %v1272_v13 }
  0x80   : > { %984 = vmatprep.subr.bf16.mxu1 %v1265_v15 }
  0x81   : > { %940 = vmatpush1.bf16.msra.mxu0 %v1270_v12 }
  0x82   : > { %941 = vmatprep.subr.bf16.mxu0 %v1263_v14 }
  0x83   : > { %985 = vmatpush1.bf16.msra.mxu1 %v1264_v21 }
  0x84   : > { %986 = vmatprep.subr.bf16.mxu1 %v1257_v23 }
  0x85   : > { %942 = vmatpush1.bf16.msra.mxu0 %v1262_v20 }
  0x86   : > { %943 = vmatprep.subr.bf16.mxu0 %v1255_v22 }
  0x87   : > { %987 = vmatpush1.bf16.msra.mxu1 %v1256_v29 }
  0x88   : > { %1002 = vmatprep.subr.bf16.mxu1 %v1321_v31 }
  0x89   : > { %944 = vmatpush1.bf16.msra.mxu0 %v1254_v28 }
  0x8a   : > { %959 = vmatprep.subr.bf16.mxu0 %v1319_v30 }
  0x8b   : > { %1003 = vmatpush2.bf16.msra.mxu1 %v1320_v34 }
  0x8d   : > { %960 = vmatpush2.bf16.msra.mxu0 %v1318_v32 }
  0x8e   : > { %1005 = vmatmul.mubr.bf16.vlgmr.msra.gmra.mxu1 %v1703_v33 }
  0x90   : > { %962 = vmatmul.mubr.bf16.vlgmr.msra.gmra.mxu0 %v1703_v33 }
  0xbf   : > { %v1743_v35 = vpop.permute.xlu0 %462  ;;  %v1745_v36 = vpop.permute.xlu1 %1019 }
  0xc4   : > { %v1747_v37 = vpop.permute.xlu0 %467 }
  0xc5   : > { %v1749_v39 = vpop.permute.xlu1 %1024 }
  0xc8   : > { %v1753_v44 = vpop.permute.xlu0 %1047 }
  0xc9   : > { %v1765_v58 = vpop.permute.xlu1 %1052 }
 0x12a   : > { %v920_v41 = vpop.f32.mrf.mxu1 }
 0x12b   : > { %v921_v42 = vadd.f32 %v920_v41, %v1743_v35 }
 0x12c   : > { %v877_v38 = vpop.f32.mrf.mxu0  ;;  %v922_v46 = vpop.f32.mrf.mxu1 }
 0x12d   : > { %v878_v40 = vadd.f32 %v877_v38, %v1743_v35  ;;  %v1029_v47 = vmul.f32 %v1745_v36, %v921_v42  ;;  %v923_v48 = vadd.f32 %v922_v46, %v1743_v35 }
 0x12e   : > { %v879_v43 = vpop.f32.mrf.mxu0  ;;  %v924_v52 = vpop.f32.mrf.mxu1 }
 0x12f   : > { %v1027_v45 = vmul.f32 %v1745_v36, %v878_v40  ;;  %v880_v33 = vadd.f32 %v879_v43, %v1743_v35  ;;  %v1030_v54 = vmul.f32 %v1745_v36, %v923_v48  ;;  %v925_v55 = vadd.f32 %v924_v52, %v1747_v37 }
 0x130   : > { %v881_v49 = vpop.f32.mrf.mxu0  ;;  %v1057_v56 = vadd.f32 %v1753_v44, %v1029_v47  ;;  %v926_v62 = vpop.f32.mrf.mxu1 }
 0x131   : > { %v1028_v50 = vmul.f32 %v1745_v36, %v880_v33  ;;  %v882_v51 = vadd.f32 %v881_v49, %v1747_v37  ;;  %v1055_v53 = vadd.f32 %v1753_v44, %v1027_v45  ;;  %v1037_v63 = vmul.f32 %v1749_v39, %v925_v55 }
 0x132   : > { %v883_v57 = vpop.f32.mrf.mxu0  ;;  %v1058_v0 = vadd.f32 %v1753_v44, %v1030_v54  ;;  %v1073_v1 = vmax.f32 %v1057_v56, 0.0  ;;  %v927_v2 = vadd.f32 %v926_v62, %v1747_v37 }
 0x133   : > { %v1035_v59 = vmul.f32 %v1749_v39, %v882_v51  ;;  %v1056_v60 = vadd.f32 %v1753_v44, %v1028_v50  ;;  %v1071_v8 = vmax.f32 %v1055_v53, 0.0  ;;  %v884_v61 = vadd.f32 %v883_v57, %v1747_v37 }
 0x134   : > { %v1074_v6 = vmax.f32 %v1058_v0, 0.0  ;;  %v1038_v7 = vmul.f32 %v1749_v39, %v927_v2  ;;  %v1065_v9 = vadd.f32 %v1765_v58, %v1037_v63 }
 0x135   : > { %v1072_v3 = vmax.f32 %v1056_v60, 0.0  ;;  %v1036_v4 = vmul.f32 %v1749_v39, %v884_v61  ;;  %v1063_v5 = vadd.f32 %v1765_v58, %v1035_v59 }
 0x136   : > { %v1341_v12 = vpack.c.bf16 %v1074_v6, %v1073_v1  ;;  %v1066_v13 = vadd.f32 %v1765_v58, %v1038_v7  ;;  %v1081_v16 = vmax.f32 %v1065_v9, 0.0 }
 0x137   : > { %v1340_v10 = vpack.c.bf16 %v1072_v3, %v1071_v8  ;;  %v1064_v11 = vadd.f32 %v1765_v58, %v1036_v4  ;;  %v1079_v14 = vmax.f32 %v1063_v5, 0.0 }
 0x138   : > { %1136 = vst [vmem:[%s1781_s18 + $0x8] sm:$0xff] %v1341_v12  ;;  %v1082_v17 = vmax.f32 %v1066_v13, 0.0 }
 0x139   : > { %1135 = vst [vmem:[%s1781_s18] sm:$0xff] %v1340_v10  ;;  %v1080_v15 = vmax.f32 %v1064_v11, 0.0 }
 0x13a   : > { %v1345_v19 = vpack.c.bf16 %v1082_v17, %v1081_v16 }
 0x13b   : > { %v1344_v18 = vpack.c.bf16 %v1080_v15, %v1079_v14 }
 0x13c   : > { %1140 = vst [vmem:[%s1781_s18 + $0x28] sm:$0xff] %v1345_v19 }
 0x13d   : > { %1139 = vst [vmem:[%s1781_s18 + $0x20] sm:$0xff] %v1344_v18 }
 0x143   : > { %v1175_v4 = vld [vmem:[%s1781_s18 + $0x28] sm:$0xff] (%p1466_p5) }
 0x144   : > { %v1173_v3 = vld [vmem:[%s1781_s18 + $0x20] sm:$0xff] (%p1466_p5)  ;;  %1176 = vst [vmem:[%s1152_s14 + $0x48] sm:$0xff] (%p1466_p5), %v1175_v4 }
 0x145   : > { %1174 = vst [vmem:[%s1152_s14 + $0x40] sm:$0xff] (%p1466_p5), %v1173_v3 }
 0x14e   : > { %v1006_v22 = vpop.f32.mrf.mxu1 }
 0x14f   : > { %v1007_v23 = vadd.f32 %v1006_v22, %v1743_v35 }
 0x150   : > { %v963_v20 = vpop.f32.mrf.mxu0  ;;  %v1008_v27 = vpop.f32.mrf.mxu1 }
 0x151   : > { %v964_v21 = vadd.f32 %v963_v20, %v1743_v35  ;;  %v1033_v28 = vmul.f32 %v1745_v36, %v1007_v23  ;;  %v1009_v29 = vadd.f32 %v1008_v27, %v1743_v35 }
 0x152   : > { %v965_v24 = vpop.f32.mrf.mxu0  ;;  %v1010_v38 = vpop.f32.mrf.mxu1 }
 0x153   : > { %v1031_v25 = vmul.f32 %v1745_v36, %v964_v21  ;;  %v966_v26 = vadd.f32 %v965_v24, %v1743_v35  ;;  %v1061_v40 = vadd.f32 %v1753_v44, %v1033_v28  ;;  %v1034_v41 = vmul.f32 %v1745_v36, %v1009_v29 }
 0x154   : > { %v967_v30 = vpop.f32.mrf.mxu0  ;;  %v1011_v42 = vadd.f32 %v1010_v38, %v1747_v37  ;;  %v1012_v46 = vpop.f32.mrf.mxu1 }
 0x155   : > { %v1059_v31 = vadd.f32 %v1753_v44, %v1031_v25  ;;  %v1032_v32 = vmul.f32 %v1745_v36, %v966_v26  ;;  %v968_v34 = vadd.f32 %v967_v30, %v1747_v37  ;;  %v1062_v47 = vadd.f32 %v1753_v44, %v1034_v41 }
 0x156   : > { %v969_v43 = vpop.f32.mrf.mxu0  ;;  %v1041_v48 = vmul.f32 %v1749_v39, %v1011_v42  ;;  %v1013_v49 = vadd.f32 %v1012_v46, %v1747_v37  ;;  %v1077_v53 = vmax.f32 %v1061_v40, 0.0 }
 0x157   : > { %v1060_v45 = vadd.f32 %v1753_v44, %v1032_v32  ;;  %v1039_v33 = vmul.f32 %v1749_v39, %v968_v34  ;;  %v970_v35 = vadd.f32 %v969_v43, %v1747_v37  ;;  %v1075_v50 = vmax.f32 %v1059_v31, 0.0 }
 0x158   : > { %v1078_v54 = vmax.f32 %v1062_v47, 0.0  ;;  %v1069_v55 = vadd.f32 %v1765_v58, %v1041_v48  ;;  %v1042_v56 = vmul.f32 %v1749_v39, %v1013_v49 }
 0x159   : > { %v1076_v36 = vmax.f32 %v1060_v45, 0.0  ;;  %v1067_v51 = vadd.f32 %v1765_v58, %v1039_v33  ;;  %v1040_v52 = vmul.f32 %v1749_v39, %v970_v35  ;;  %v1165_v39 = vld [vmem:[%s1781_s18] sm:$0xff] (%p1466_p5) }
 0x15a   : > { %v1343_v59 = vpack.c.bf16 %v1078_v54, %v1077_v53  ;;  %v1070_v37 = vadd.f32 %v1765_v58, %v1042_v56  ;;  %v1085_v61 = vmax.f32 %v1069_v55, 0.0  ;;  %1166 = vst [vmem:[%s1152_s14] sm:$0xff] (%p1466_p5), %v1165_v39 }
 0x15b   : > { %v1342_v44 = vpack.c.bf16 %v1076_v36, %v1075_v50  ;;  %v1068_v57 = vadd.f32 %v1765_v58, %v1040_v52  ;;  %v1083_v60 = vmax.f32 %v1067_v51, 0.0  ;;  %v1167_v58 = vld [vmem:[%s1781_s18 + $0x8] sm:$0xff] (%p1466_p5) }
 0x15c   : > { %1138 = vst [vmem:[%s1781_s18 + $0x18] sm:$0xff] %v1343_v59  ;;  %v1086_v62 = vmax.f32 %v1070_v37, 0.0  ;;  %1168 = vst [vmem:[%s1152_s14 + $0x8] sm:$0xff] (%p1466_p5), %v1167_v58 }
 0x15d   : > { %1137 = vst [vmem:[%s1781_s18 + $0x10] sm:$0xff] %v1342_v44  ;;  %v1084_v8 = vmax.f32 %v1068_v57, 0.0  ;;  %1149 = sbr.rel (!%p1466_p5) target bundleno = 362 (0x16a), region = 67 }
 0x15e   : > { %v1347_v0 = vpack.c.bf16 %v1086_v62, %v1085_v61 }
 0x15f   : > { %v1346_v63 = vpack.c.bf16 %v1084_v8, %v1083_v60 }
 0x160   : > { %1142 = vst [vmem:[%s1781_s18 + $0x38] sm:$0xff] %v1347_v0 }
 0x161   : > { %1141 = vst [vmem:[%s1781_s18 + $0x30] sm:$0xff] %v1346_v63 }
 0x163   : > { %v1171_v2 = vld [vmem:[%s1781_s18 + $0x18] sm:$0xff] }
 0x164   : > { %v1169_v1 = vld [vmem:[%s1781_s18 + $0x10] sm:$0xff]  ;;  %1172 = vst [vmem:[%s1152_s14 + $0x18] sm:$0xff] %v1171_v2 }
 0x165   : > { %1170 = vst [vmem:[%s1152_s14 + $0x10] sm:$0xff] %v1169_v1 }
 0x167   : > { %v1179_v6 = vld [vmem:[%s1781_s18 + $0x38] sm:$0xff] }
 0x168   : > { %v1177_v5 = vld [vmem:[%s1781_s18 + $0x30] sm:$0xff]  ;;  %1180 = vst [vmem:[%s1152_s14 + $0x58] sm:$0xff] %v1179_v6 }
 0x169   : > { %1178 = vst [vmem:[%s1152_s14 + $0x50] sm:$0xff] %v1177_v5 }
 0x16a PF: > { %p12_p10 = scmp.ge.s32.totalorder %s1453_s22, 4   ;;  %s1847_s18 = smov %s1399_s19 }
 0x16b   : > { %s1848_s19 = smov %s1464_s25  ;;  %s1849_s20 = smov %s1453_s22 }
 0x16c   :  { %14 = sbr.rel (!%p12_p10) target bundleno = 2 (0x2), region = 121 }

// kernel: _lambda_.10
= control target key start
LH: loop header
LB: loop body
LE: loop exit
PB: predicated region body
PF: predicated region fallthrough
CT: control target
= control target key end

     0   :  { %s1740_s24 = smov 0   ;;  %s1742_s25 = smov 0   ;;  %s2234_s0 = inlined_call_operand.vmem [shape: bf16[144,2048], index: 0, kind: input, shape index: {}]   ;;  %s2235_s1 = inlined_call_operand.vmem [shape: bf16[16,144], index: 1, kind: input, shape index: {}]   ;;  %s2236_s2 = inlined_call_operand.vmem [shape: f32[16,1], index: 2, kind: input, shape index: {}]   ;;  %s2237_s3 = inlined_call_operand.vmem [shape: f32[16,2048], index: 3, kind: input, shape index: {}]   ;;  %s2238_s4 = inlined_call_operand.vmem [shape: f32[16,1], index: 4, kind: input, shape index: {}]   ;;  %s2239_s5 = inlined_call_operand.vmem [shape: f32[16,1], index: 5, kind: input, shape index: {}]   ;;  %s2240_s6 = inlined_call_operand.vmem [shape: f32[16,2048], index: 6, kind: output, shape index: {0}]   ;;  %s2241_s7 = inlined_call_operand.vmem [shape: bf16[16,2048], index: 7, kind: output, shape index: {1}]  }
   0x1   :  { %s1744_s26 = smov 0  }
   0x2 LB: > { %s1756_s27 = sadd.s32 4294967295, %s1697_s26   ;;  %s1759_s28 = sadd.s32 1, %s1697_s26   ;;  %s1697_s26 = sphi %s1744_s26, %s2246_s26   ;;  %s1693_s25 = sphi %s1742_s25, %s2245_s25   ;;  %s1689_s24 = sphi %s1740_s24, %s2244_s24  }
   0x3   : > { %s22_s29 = ssub.s32 %s1697_s26, %s1759_s28  ;;  %s25_s30 = sadd.s32 1, %s1693_s25 }
   0x4   : > { %p23_p0 = scmp.eq.s32.totalorder %s22_s29, 0  ;;  %p32_p1 = scmp.ne.s32.totalorder %s1693_s25, %s1689_s24 }
   0x5   : > { %p33_p2 = scmp.eq.s32.totalorder %s1697_s26, 0  ;;  %p172_p3 = scmp.eq.s32.totalorder %s1756_s27, 1 }
   0x6   : > { %s1769_s8 = scalar_select %p23_p0, %s1693_s25, %s25_s30  }
   0x7   : > { %p1771_p4 = por %p33_p2, %p32_p1  ;;  %p1775_p5 = por %p172_p3, %p32_p1 }
   0x8   : > { %p1527_p6 = scmp.ge.s32.totalorder %s1697_s26, 2 }
   0xa   : > { %232 = sbr.rel (%p1527_p6) target bundleno = 68 (0x44), region = 32 }
   0xf   : > { %235 = sbr.rel (!%p1771_p4) target bundleno = 56 (0x38), region = 36  ;;  %s237_s11 = sand.u32 (%p1771_p4), 1, %s1693_s25  }
  0x10   : > { %s1631_s12 = sshll.u32 (%p1771_p4), %s1697_s26, 5  ;;  %s1643_s13 = smul.u32 (%p1771_p4), 576, %s237_s11 }
  0x11   : > { %s1787_s16 = scalar_lea.vmem (%p1771_p4), %s2234_s0, %s1631_s12 }
  0x12   : > { %v255_v0 = vld [vmem:[%s1787_s16] sm:$0xff] (%p1771_p4)  ;;  %v257_v1 = vld [vmem:[%s1787_s16 + $0x8] sm:$0xff] (%p1771_p4)  ;;  %v259_v2 = vld [vmem:[%s1787_s16 + $0x10] sm:$0xff] (%p1771_p4)  ;;  %s1795_s17 = scalar_lea.vmem (%p1771_p4), [#allocation2], %s1643_s13 }
  0x13   : > { %v261_v3 = vld [vmem:[%s1787_s16 + $0x18] sm:$0xff] (%p1771_p4)  ;;  %v263_v4 = vld [vmem:[%s1787_s16 + $0x40] sm:$0xff] (%p1771_p4)  ;;  %v265_v5 = vld [vmem:[%s1787_s16 + $0x48] sm:$0xff] (%p1771_p4)  ;;  %256 = vst [vmem:[%s1795_s17] sm:$0xff] (%p1771_p4), %v255_v0 }
  0x14   : > { %258 = vst [vmem:[%s1795_s17 + $0x8] sm:$0xff] %v257_v1  ;;  %260 = vst [vmem:[%s1795_s17 + $0x10] sm:$0xff] %v259_v2  ;;  %v267_v6 = vld [vmem:[%s1787_s16 + $0x50] sm:$0xff]  ;;  %v269_v7 = vld [vmem:[%s1787_s16 + $0x58] sm:$0xff] }
  0x15   : > { %262 = vst [vmem:[%s1795_s17 + $0x18] sm:$0xff] %v261_v3  ;;  %264 = vst [vmem:[%s1795_s17 + $0x20] sm:$0xff] %v263_v4  ;;  %v271_v8 = vld [vmem:[%s1787_s16 + $0x80] sm:$0xff]  ;;  %v273_v9 = vld [vmem:[%s1787_s16 + $0x88] sm:$0xff] }
  0x16   : > { %266 = vst [vmem:[%s1795_s17 + $0x28] sm:$0xff] %v265_v5  ;;  %268 = vst [vmem:[%s1795_s17 + $0x30] sm:$0xff] %v267_v6  ;;  %v275_v10 = vld [vmem:[%s1787_s16 + $0x90] sm:$0xff]  ;;  %v277_v11 = vld [vmem:[%s1787_s16 + $0x98] sm:$0xff] }
  0x17   : > { %270 = vst [vmem:[%s1795_s17 + $0x38] sm:$0xff] %v269_v7  ;;  %272 = vst [vmem:[%s1795_s17 + $0x40] sm:$0xff] %v271_v8  ;;  %v279_v12 = vld [vmem:[%s1787_s16 + $0xc0] sm:$0xff]  ;;  %v281_v13 = vld [vmem:[%s1787_s16 + $0xc8] sm:$0xff] }
  0x18   : > { %274 = vst [vmem:[%s1795_s17 + $0x48] sm:$0xff] %v273_v9  ;;  %276 = vst [vmem:[%s1795_s17 + $0x50] sm:$0xff] %v275_v10  ;;  %v283_v14 = vld [vmem:[%s1787_s16 + $0xd0] sm:$0xff]  ;;  %v285_v15 = vld [vmem:[%s1787_s16 + $0xd8] sm:$0xff] }
  0x19   : > { %278 = vst [vmem:[%s1795_s17 + $0x58] sm:$0xff] %v277_v11  ;;  %280 = vst [vmem:[%s1795_s17 + $0x60] sm:$0xff] %v279_v12  ;;  %v287_v16 = vld [vmem:[%s1787_s16 + $0x100] sm:$0xff]  ;;  %v289_v17 = vld [vmem:[%s1787_s16 + $0x108] sm:$0xff] }
  0x1a   : > { %282 = vst [vmem:[%s1795_s17 + $0x68] sm:$0xff] %v281_v13  ;;  %284 = vst [vmem:[%s1795_s17 + $0x70] sm:$0xff] %v283_v14  ;;  %v291_v18 = vld [vmem:[%s1787_s16 + $0x110] sm:$0xff]  ;;  %v293_v19 = vld [vmem:[%s1787_s16 + $0x118] sm:$0xff] }
  0x1b   : > { %286 = vst [vmem:[%s1795_s17 + $0x78] sm:$0xff] %v285_v15  ;;  %288 = vst [vmem:[%s1795_s17 + $0x80] sm:$0xff] %v287_v16  ;;  %v295_v20 = vld [vmem:[%s1787_s16 + $0x140] sm:$0xff]  ;;  %v297_v21 = vld [vmem:[%s1787_s16 + $0x148] sm:$0xff] }
  0x1c   : > { %290 = vst [vmem:[%s1795_s17 + $0x88] sm:$0xff] %v289_v17  ;;  %292 = vst [vmem:[%s1795_s17 + $0x90] sm:$0xff] %v291_v18  ;;  %v299_v22 = vld [vmem:[%s1787_s16 + $0x150] sm:$0xff]  ;;  %v301_v23 = vld [vmem:[%s1787_s16 + $0x158] sm:$0xff] }
  0x1d   : > { %294 = vst [vmem:[%s1795_s17 + $0x98] sm:$0xff] %v293_v19  ;;  %296 = vst [vmem:[%s1795_s17 + $0xa0] sm:$0xff] %v295_v20  ;;  %v303_v24 = vld [vmem:[%s1787_s16 + $0x180] sm:$0xff]  ;;  %v305_v25 = vld [vmem:[%s1787_s16 + $0x188] sm:$0xff] }
  0x1e   : > { %298 = vst [vmem:[%s1795_s17 + $0xa8] sm:$0xff] %v297_v21  ;;  %300 = vst [vmem:[%s1795_s17 + $0xb0] sm:$0xff] %v299_v22  ;;  %v307_v26 = vld [vmem:[%s1787_s16 + $0x190] sm:$0xff]  ;;  %v309_v27 = vld [vmem:[%s1787_s16 + $0x198] sm:$0xff] }
  0x1f   : > { %302 = vst [vmem:[%s1795_s17 + $0xb8] sm:$0xff] %v301_v23  ;;  %304 = vst [vmem:[%s1795_s17 + $0xc0] sm:$0xff] %v303_v24  ;;  %v311_v28 = vld [vmem:[%s1787_s16 + $0x1c0] sm:$0xff]  ;;  %v313_v29 = vld [vmem:[%s1787_s16 + $0x1c8] sm:$0xff] }
  0x20   : > { %306 = vst [vmem:[%s1795_s17 + $0xc8] sm:$0xff] %v305_v25  ;;  %308 = vst [vmem:[%s1795_s17 + $0xd0] sm:$0xff] %v307_v26  ;;  %v315_v30 = vld [vmem:[%s1787_s16 + $0x1d0] sm:$0xff]  ;;  %v317_v31 = vld [vmem:[%s1787_s16 + $0x1d8] sm:$0xff] }
  0x21   : > { %310 = vst [vmem:[%s1795_s17 + $0xd8] sm:$0xff] %v309_v27  ;;  %312 = vst [vmem:[%s1795_s17 + $0xe0] sm:$0xff] %v311_v28  ;;  %v319_v32 = vld [vmem:[%s1787_s16 + $0x200] sm:$0xff]  ;;  %v321_v33 = vld [vmem:[%s1787_s16 + $0x208] sm:$0xff] }
  0x22   : > { %314 = vst [vmem:[%s1795_s17 + $0xe8] sm:$0xff] %v313_v29  ;;  %316 = vst [vmem:[%s1795_s17 + $0xf0] sm:$0xff] %v315_v30  ;;  %v323_v34 = vld [vmem:[%s1787_s16 + $0x210] sm:$0xff]  ;;  %v325_v35 = vld [vmem:[%s1787_s16 + $0x218] sm:$0xff] }
  0x23   : > { %318 = vst [vmem:[%s1795_s17 + $0xf8] sm:$0xff] %v317_v31  ;;  %320 = vst [vmem:[%s1795_s17 + $0x100] sm:$0xff] %v319_v32  ;;  %v327_v36 = vld [vmem:[%s1787_s16 + $0x240] sm:$0xff]  ;;  %v329_v37 = vld [vmem:[%s1787_s16 + $0x248] sm:$0xff] }
  0x24   : > { %322 = vst [vmem:[%s1795_s17 + $0x108] sm:$0xff] %v321_v33  ;;  %324 = vst [vmem:[%s1795_s17 + $0x110] sm:$0xff] %v323_v34  ;;  %v331_v38 = vld [vmem:[%s1787_s16 + $0x250] sm:$0xff]  ;;  %v333_v39 = vld [vmem:[%s1787_s16 + $0x258] sm:$0xff] }
  0x25   : > { %326 = vst [vmem:[%s1795_s17 + $0x118] sm:$0xff] %v325_v35  ;;  %328 = vst [vmem:[%s1795_s17 + $0x120] sm:$0xff] %v327_v36  ;;  %v335_v40 = vld [vmem:[%s1787_s16 + $0x280] sm:$0xff]  ;;  %v337_v41 = vld [vmem:[%s1787_s16 + $0x288] sm:$0xff] }
  0x26   : > { %330 = vst [vmem:[%s1795_s17 + $0x128] sm:$0xff] %v329_v37  ;;  %332 = vst [vmem:[%s1795_s17 + $0x130] sm:$0xff] %v331_v38  ;;  %v339_v42 = vld [vmem:[%s1787_s16 + $0x290] sm:$0xff]  ;;  %v341_v43 = vld [vmem:[%s1787_s16 + $0x298] sm:$0xff] }
  0x27   : > { %334 = vst [vmem:[%s1795_s17 + $0x138] sm:$0xff] %v333_v39  ;;  %336 = vst [vmem:[%s1795_s17 + $0x140] sm:$0xff] %v335_v40  ;;  %v343_v44 = vld [vmem:[%s1787_s16 + $0x2c0] sm:$0xff]  ;;  %v345_v45 = vld [vmem:[%s1787_s16 + $0x2c8] sm:$0xff] }
  0x28   : > { %338 = vst [vmem:[%s1795_s17 + $0x148] sm:$0xff] %v337_v41  ;;  %340 = vst [vmem:[%s1795_s17 + $0x150] sm:$0xff] %v339_v42  ;;  %v347_v46 = vld [vmem:[%s1787_s16 + $0x2d0] sm:$0xff]  ;;  %v349_v47 = vld [vmem:[%s1787_s16 + $0x2d8] sm:$0xff] }
  0x29   : > { %342 = vst [vmem:[%s1795_s17 + $0x158] sm:$0xff] %v341_v43  ;;  %344 = vst [vmem:[%s1795_s17 + $0x160] sm:$0xff] %v343_v44  ;;  %v351_v48 = vld [vmem:[%s1787_s16 + $0x300] sm:$0xff]  ;;  %v353_v49 = vld [vmem:[%s1787_s16 + $0x308] sm:$0xff] }
  0x2a   : > { %346 = vst [vmem:[%s1795_s17 + $0x168] sm:$0xff] %v345_v45  ;;  %348 = vst [vmem:[%s1795_s17 + $0x170] sm:$0xff] %v347_v46  ;;  %v355_v50 = vld [vmem:[%s1787_s16 + $0x310] sm:$0xff]  ;;  %v357_v51 = vld [vmem:[%s1787_s16 + $0x318] sm:$0xff] }
  0x2b   : > { %350 = vst [vmem:[%s1795_s17 + $0x178] sm:$0xff] %v349_v47  ;;  %352 = vst [vmem:[%s1795_s17 + $0x180] sm:$0xff] %v351_v48  ;;  %v359_v52 = vld [vmem:[%s1787_s16 + $0x340] sm:$0xff]  ;;  %v361_v53 = vld [vmem:[%s1787_s16 + $0x348] sm:$0xff] }
  0x2c   : > { %354 = vst [vmem:[%s1795_s17 + $0x188] sm:$0xff] %v353_v49  ;;  %356 = vst [vmem:[%s1795_s17 + $0x190] sm:$0xff] %v355_v50  ;;  %v363_v54 = vld [vmem:[%s1787_s16 + $0x350] sm:$0xff]  ;;  %v365_v55 = vld [vmem:[%s1787_s16 + $0x358] sm:$0xff] }
  0x2d   : > { %358 = vst [vmem:[%s1795_s17 + $0x198] sm:$0xff] %v357_v51  ;;  %360 = vst [vmem:[%s1795_s17 + $0x1a0] sm:$0xff] %v359_v52  ;;  %v367_v56 = vld [vmem:[%s1787_s16 + $0x380] sm:$0xff]  ;;  %v369_v57 = vld [vmem:[%s1787_s16 + $0x388] sm:$0xff] }
  0x2e   : > { %362 = vst [vmem:[%s1795_s17 + $0x1a8] sm:$0xff] %v361_v53  ;;  %364 = vst [vmem:[%s1795_s17 + $0x1b0] sm:$0xff] %v363_v54  ;;  %v371_v58 = vld [vmem:[%s1787_s16 + $0x390] sm:$0xff]  ;;  %v373_v59 = vld [vmem:[%s1787_s16 + $0x398] sm:$0xff] }
  0x2f   : > { %366 = vst [vmem:[%s1795_s17 + $0x1b8] sm:$0xff] %v365_v55  ;;  %368 = vst [vmem:[%s1795_s17 + $0x1c0] sm:$0xff] %v367_v56  ;;  %v375_v60 = vld [vmem:[%s1787_s16 + $0x3c0] sm:$0xff]  ;;  %v377_v61 = vld [vmem:[%s1787_s16 + $0x3c8] sm:$0xff] }
  0x30   : > { %370 = vst [vmem:[%s1795_s17 + $0x1c8] sm:$0xff] %v369_v57  ;;  %372 = vst [vmem:[%s1795_s17 + $0x1d0] sm:$0xff] %v371_v58  ;;  %v379_v62 = vld [vmem:[%s1787_s16 + $0x3d0] sm:$0xff]  ;;  %v381_v63 = vld [vmem:[%s1787_s16 + $0x3d8] sm:$0xff] }
  0x31   : > { %374 = vst [vmem:[%s1795_s17 + $0x1d8] sm:$0xff] %v373_v59  ;;  %376 = vst [vmem:[%s1795_s17 + $0x1e0] sm:$0xff] %v375_v60  ;;  %v383_v0 = vld [vmem:[%s1787_s16 + $0x400] sm:$0xff]  ;;  %v385_v1 = vld [vmem:[%s1787_s16 + $0x408] sm:$0xff] }
  0x32   : > { %378 = vst [vmem:[%s1795_s17 + $0x1e8] sm:$0xff] %v377_v61  ;;  %380 = vst [vmem:[%s1795_s17 + $0x1f0] sm:$0xff] %v379_v62  ;;  %v387_v2 = vld [vmem:[%s1787_s16 + $0x410] sm:$0xff]  ;;  %v389_v3 = vld [vmem:[%s1787_s16 + $0x418] sm:$0xff] }
  0x33   : > { %382 = vst [vmem:[%s1795_s17 + $0x1f8] sm:$0xff] %v381_v63  ;;  %384 = vst [vmem:[%s1795_s17 + $0x200] sm:$0xff] %v383_v0  ;;  %v391_v4 = vld [vmem:[%s1787_s16 + $0x440] sm:$0xff]  ;;  %v393_v5 = vld [vmem:[%s1787_s16 + $0x448] sm:$0xff] }
  0x34   : > { %386 = vst [vmem:[%s1795_s17 + $0x208] sm:$0xff] %v385_v1  ;;  %388 = vst [vmem:[%s1795_s17 + $0x210] sm:$0xff] %v387_v2  ;;  %v395_v6 = vld [vmem:[%s1787_s16 + $0x450] sm:$0xff]  ;;  %v397_v7 = vld [vmem:[%s1787_s16 + $0x458] sm:$0xff] }
  0x35   : > { %390 = vst [vmem:[%s1795_s17 + $0x218] sm:$0xff] %v389_v3  ;;  %392 = vst [vmem:[%s1795_s17 + $0x220] sm:$0xff] %v391_v4 }
  0x36   : > { %394 = vst [vmem:[%s1795_s17 + $0x228] sm:$0xff] %v393_v5  ;;  %396 = vst [vmem:[%s1795_s17 + $0x230] sm:$0xff] %v395_v6 }
  0x37   : > { %398 = vst [vmem:[%s1795_s17 + $0x238] sm:$0xff] %v397_v7 }
  0x38 PF: > { %404 = sbr.rel (!%p1771_p4) target bundleno = 68 (0x44), region = 59  ;;  %s406_s18 = sand.u32 (%p1771_p4), 1, %s1693_s25  }
  0x39   : > { %s1632_s19 = sshll.u32 (%p1771_p4), %s1697_s26, 6  ;;  %s1530_s20 = sshll.u32 (%p1771_p4), %s406_s18, 7 }
  0x3a   : > { %s1942_s23 = scalar_lea.vmem (%p1771_p4), %s2237_s3, %s1632_s19  ;;  %s408_s29 = scalar_lea.vmem (%p1771_p4), [#allocation3], %s1530_s20 }
  0x3b   : > { %v424_v8 = vld [vmem:[%s1942_s23] sm:$0xff] (%p1771_p4)  ;;  %v426_v9 = vld [vmem:[%s1942_s23 + $0x8] sm:$0xff] (%p1771_p4)  ;;  %v428_v10 = vld [vmem:[%s1942_s23 + $0x10] sm:$0xff] (%p1771_p4) }
  0x3c   : > { %425 = vst [vmem:[%s408_s29] sm:$0xff] (%p1771_p4), %v424_v8  ;;  %427 = vst [vmem:[%s408_s29 + $0x8] sm:$0xff] (%p1771_p4), %v426_v9  ;;  %v430_v11 = vld [vmem:[%s1942_s23 + $0x18] sm:$0xff] (%p1771_p4)  ;;  %v432_v12 = vld [vmem:[%s1942_s23 + $0x20] sm:$0xff] (%p1771_p4) }
  0x3d   : > { %429 = vst [vmem:[%s408_s29 + $0x10] sm:$0xff] %v428_v10  ;;  %v434_v13 = vld [vmem:[%s1942_s23 + $0x28] sm:$0xff]  ;;  %431 = vst [vmem:[%s408_s29 + $0x18] sm:$0xff] %v430_v11  ;;  %v436_v14 = vld [vmem:[%s1942_s23 + $0x30] sm:$0xff] }
  0x3e   : > { %433 = vst [vmem:[%s408_s29 + $0x20] sm:$0xff] %v432_v12  ;;  %435 = vst [vmem:[%s408_s29 + $0x28] sm:$0xff] %v434_v13  ;;  %v438_v15 = vld [vmem:[%s1942_s23 + $0x38] sm:$0xff]  ;;  %v440_v16 = vld [vmem:[%s1942_s23 + $0x80] sm:$0xff] }
  0x3f   : > { %437 = vst [vmem:[%s408_s29 + $0x30] sm:$0xff] %v436_v14  ;;  %439 = vst [vmem:[%s408_s29 + $0x38] sm:$0xff] %v438_v15  ;;  %v442_v17 = vld [vmem:[%s1942_s23 + $0x88] sm:$0xff]  ;;  %v444_v18 = vld [vmem:[%s1942_s23 + $0x90] sm:$0xff] }
  0x40   : > { %441 = vst [vmem:[%s408_s29 + $0x40] sm:$0xff] %v440_v16  ;;  %v446_v19 = vld [vmem:[%s1942_s23 + $0x98] sm:$0xff]  ;;  %443 = vst [vmem:[%s408_s29 + $0x48] sm:$0xff] %v442_v17  ;;  %v448_v20 = vld [vmem:[%s1942_s23 + $0xa0] sm:$0xff] }
  0x41   : > { %445 = vst [vmem:[%s408_s29 + $0x50] sm:$0xff] %v444_v18  ;;  %447 = vst [vmem:[%s408_s29 + $0x58] sm:$0xff] %v446_v19  ;;  %v450_v21 = vld [vmem:[%s1942_s23 + $0xa8] sm:$0xff]  ;;  %v452_v22 = vld [vmem:[%s1942_s23 + $0xb0] sm:$0xff] }
  0x42   : > { %449 = vst [vmem:[%s408_s29 + $0x60] sm:$0xff] %v448_v20  ;;  %451 = vst [vmem:[%s408_s29 + $0x68] sm:$0xff] %v450_v21  ;;  %v454_v23 = vld [vmem:[%s1942_s23 + $0xb8] sm:$0xff] }
  0x43   : > { %453 = vst [vmem:[%s408_s29 + $0x70] sm:$0xff] %v452_v22  ;;  %455 = vst [vmem:[%s408_s29 + $0x78] sm:$0xff] %v454_v23 }
  0x44 PF: > { %p1533_p7 = scmp.ge.s32.totalorder %s1697_s26, 1  ;;  %p460_p8 = scmp.lt.s32.totalorder %s1697_s26, 3 }
  0x46   : > { %p461_p9 = pnand %p1533_p7, %p460_p8 }
  0x47   : > { %s1963_s30 = sand.u32 (!%p461_p9), 1, %s1689_s24  }
  0x48   : > { %464 = sbr.rel (%p461_p9) target bundleno = 376 (0x178), region = 82  ;;  %s1534_s11 = sshll.u32 (!%p461_p9), %s1963_s30, 7 }
  0x49   : > { %s1644_s12 = smul.u32 (!%p461_p9), 576, %s1963_s30  ;;  %s2102_s13 = scalar_lea.vmem (!%p461_p9), [#allocation4], %s1534_s11 }
  0x4a   : > { %s1536_s14 = sshll.u32 (!%p461_p9), %s1963_s30, 6 }
  0x4b   : > { %s1981_s24 = scalar_lea.vmem (!%p461_p9), [#allocation2], %s1644_s12  ;;  %s2087_s12 = scalar_lea.vmem (!%p461_p9), [#allocation3], %s1534_s11 }
  0x4c   : > { %s2138_s30 = scalar_lea.vmem (!%p461_p9), [#allocation5], %s1536_s14 }
  0x4d   : > { %v1968_v24 = vld [vmem:[%s2235_s1 + $0x4] ss:$8 sps:$4 sm:$0xff]   ;;  %vm972_vm0 = vcmask 130048   ;;  %v1699_v27 = vmov 0   ;;  %s1641_s15 = sshll.u32 (%p1775_p5), %s1756_s27, 6 }
  0x4e   : > { %v591_v25 = vld [vmem:[%s2236_s2] sm:$0xff]  ;;  %1611 = vmatprep.mubr.msk.bf16.mxu0 %vm972_vm0, %v1968_v24  ;;  %1612 = vmatprep.mubr.msk.bf16.mxu1 %vm972_vm0, %v1968_v24  ;;  %v576_v30 = vld [vmem:[%s1981_s24 + $0x1c8] sm:$0xff]  ;;  %s1337_s26 = scalar_lea.vmem (%p1775_p5), %s2240_s6, %s1641_s15 }
  0x4f   : > { %v1180_v26 = vld [vmem:[%s2238_s4] sm:$0xff]  ;;  %1670 = vset.pattern.permute.xlu0 %v1699_v27  ;;  %1671 = vset.pattern.permute.xlu1 %v1699_v27  ;;  %v580_v32 = vld [vmem:[%s1981_s24 + $0x1e8] sm:$0xff] }
  0x50   : > { %v575_v28 = vld [vmem:[%s1981_s24 + $0x1c0] sm:$0xff]  ;;  %595 = vperm.xlu0 %1670, %v591_v25   ;;  %1184 = vperm.xlu1 %1671, %v1180_v26   ;;  %v1598_v36 = vcombine.high %v576_v30, %v580_v32  ;;  %v1597_v37 = vcombine.low %v576_v30, %v580_v32  ;;  %v568_v39 = vld [vmem:[%s1981_s24 + $0x188] sm:$0xff] }
  0x51   : > { %v579_v29 = vld [vmem:[%s1981_s24 + $0x1e0] sm:$0xff]  ;;  %v572_v40 = vld [vmem:[%s1981_s24 + $0x1a8] sm:$0xff] }
  0x52   : > { %v1596_v31 = vcombine.high %v575_v28, %v579_v29  ;;  %v1595_v33 = vcombine.low %v575_v28, %v579_v29  ;;  %v567_v34 = vld [vmem:[%s1981_s24 + $0x180] sm:$0xff]  ;;  %v1590_v42 = vcombine.high %v568_v39, %v572_v40  ;;  %v560_v44 = vld [vmem:[%s1981_s24 + $0x148] sm:$0xff]  ;;  %1019 = vmatprep.subr.bf16.mxu1 %v1598_v36  ;;  %v1589_v49 = vcombine.low %v568_v39, %v572_v40  ;;  %v577_v39 = vld [vmem:[%s1981_s24 + $0x1d0] sm:$0xff] }
  0x53   : > { %v571_v35 = vld [vmem:[%s1981_s24 + $0x1a0] sm:$0xff]  ;;  %v564_v45 = vld [vmem:[%s1981_s24 + $0x168] sm:$0xff]  ;;  %1020 = vmatpush1.bf16.msra.mxu1 %v1597_v37  ;;  %v581_v40 = vld [vmem:[%s1981_s24 + $0x1f0] sm:$0xff] }
  0x54   : > { %v1588_v38 = vcombine.high %v567_v34, %v571_v35  ;;  %v559_v41 = vld [vmem:[%s1981_s24 + $0x140] sm:$0xff]  ;;  %976 = vmatprep.subr.bf16.mxu0 %v1596_v31  ;;  %v1587_v46 = vcombine.low %v567_v34, %v571_v35  ;;  %v592_v47 = vld [vmem:[%s2236_s2 + $0x8] sm:$0xff]  ;;  %1021 = vmatprep.subr.bf16.mxu1 %v1590_v42  ;;  %v1582_v51 = vcombine.high %v560_v44, %v564_v45  ;;  %v582_v42 = vld [vmem:[%s1981_s24 + $0x1f8] sm:$0xff] }
  0x55   : > { %v563_v43 = vld [vmem:[%s1981_s24 + $0x160] sm:$0xff]  ;;  %977 = vmatpush1.bf16.msra.mxu0 %v1595_v33  ;;  %v1181_v48 = vld [vmem:[%s2238_s4 + $0x8] sm:$0xff]  ;;  %600 = vperm.xlu0 %1670, %v592_v47   ;;  %v1581_v59 = vcombine.low %v560_v44, %v564_v45  ;;  %v1600_v45 = vcombine.high %v577_v39, %v581_v40  ;;  %v569_v47 = vld [vmem:[%s1981_s24 + $0x190] sm:$0xff] }
  0x56   : > { %978 = vmatprep.subr.bf16.mxu0 %v1588_v38  ;;  %v1580_v50 = vcombine.high %v559_v41, %v563_v43  ;;  %v551_v52 = vld [vmem:[%s1981_s24 + $0x100] sm:$0xff]  ;;  %v552_v54 = vld [vmem:[%s1981_s24 + $0x108] sm:$0xff]  ;;  %1189 = vperm.xlu1 %1671, %v1181_v48   ;;  %v1579_v56 = vcombine.low %v559_v41, %v563_v43  ;;  %v578_v41 = vld [vmem:[%s1981_s24 + $0x1d8] sm:$0xff] }
  0x57   : > { %v555_v53 = vld [vmem:[%s1981_s24 + $0x120] sm:$0xff]  ;;  %v556_v55 = vld [vmem:[%s1981_s24 + $0x128] sm:$0xff]  ;;  %1022 = vmatpush1.bf16.msra.mxu1 %v1589_v49  ;;  %v573_v48 = vld [vmem:[%s1981_s24 + $0x1b0] sm:$0xff] }
  0x58   : > { %v1208_v57 = vld [vmem:[%s2239_s5] sm:$0xff]  ;;  %v1209_v58 = vld [vmem:[%s2239_s5 + $0x8] sm:$0xff]  ;;  %v1572_v60 = vcombine.high %v551_v52, %v555_v53  ;;  %1023 = vmatprep.subr.bf16.mxu1 %v1582_v51  ;;  %v1574_v61 = vcombine.high %v552_v54, %v556_v55  ;;  %v1571_v2 = vcombine.low %v551_v52, %v555_v53  ;;  %v1573_v3 = vcombine.low %v552_v54, %v556_v55  ;;  %v574_v51 = vld [vmem:[%s1981_s24 + $0x1b8] sm:$0xff] }
  0x59   : > { %979 = vmatpush1.bf16.msra.mxu0 %v1587_v46  ;;  %v543_v62 = vld [vmem:[%s1981_s24 + $0xc0] sm:$0xff]  ;;  %v544_v0 = vld [vmem:[%s1981_s24 + $0xc8] sm:$0xff]  ;;  %1212 = vperm.xlu0 %1670, %v1208_v57   ;;  %v1602_v46 = vcombine.high %v578_v41, %v582_v42  ;;  %v1599_v52 = vcombine.low %v577_v39, %v581_v40  ;;  %v1601_v53 = vcombine.low %v578_v41, %v582_v42  ;;  %v565_v57 = vld [vmem:[%s1981_s24 + $0x170] sm:$0xff] }
  0x5a   : > { %980 = vmatprep.subr.bf16.mxu0 %v1580_v50  ;;  %v547_v63 = vld [vmem:[%s1981_s24 + $0xe0] sm:$0xff]  ;;  %v548_v1 = vld [vmem:[%s1981_s24 + $0xe8] sm:$0xff]  ;;  %1217 = vperm.xlu1 %1671, %v1209_v58   ;;  %v570_v50 = vld [vmem:[%s1981_s24 + $0x198] sm:$0xff]  ;;  %v1592_v54 = vcombine.high %v569_v47, %v573_v48 }
  0x5b   : > { %1024 = vmatpush1.bf16.msra.mxu1 %v1581_v59  ;;  %v1564_v4 = vcombine.high %v543_v62, %v547_v63  ;;  %v1566_v5 = vcombine.high %v544_v0, %v548_v1  ;;  %v535_v6 = vld [vmem:[%s1981_s24 + $0x80] sm:$0xff]  ;;  %v536_v8 = vld [vmem:[%s1981_s24 + $0x88] sm:$0xff]  ;;  %v1563_v10 = vcombine.low %v543_v62, %v547_v63  ;;  %v1565_v11 = vcombine.low %v544_v0, %v548_v1  ;;  %v562_v58 = vld [vmem:[%s1981_s24 + $0x158] sm:$0xff] }
  0x5c   : > { %1025 = vmatprep.subr.bf16.mxu1 %v1574_v61  ;;  %v539_v7 = vld [vmem:[%s1981_s24 + $0xa0] sm:$0xff]  ;;  %v540_v9 = vld [vmem:[%s1981_s24 + $0xa8] sm:$0xff]  ;;  %v1594_v55 = vcombine.high %v570_v50, %v574_v51  ;;  %v566_v59 = vld [vmem:[%s1981_s24 + $0x178] sm:$0xff]  ;;  %v1593_v61 = vcombine.low %v570_v50, %v574_v51 }
  0x5d   : > { %981 = vmatpush1.bf16.msra.mxu0 %v1579_v56  ;;  %v1556_v12 = vcombine.high %v535_v6, %v539_v7  ;;  %v1558_v13 = vcombine.high %v536_v8, %v540_v9  ;;  %v527_v14 = vld [vmem:[%s1981_s24 + $0x40] sm:$0xff]  ;;  %v528_v16 = vld [vmem:[%s1981_s24 + $0x48] sm:$0xff]  ;;  %v1555_v18 = vcombine.low %v535_v6, %v539_v7  ;;  %v1557_v19 = vcombine.low %v536_v8, %v540_v9  ;;  %v561_v56 = vld [vmem:[%s1981_s24 + $0x150] sm:$0xff] }
  0x5e   : > { %982 = vmatprep.subr.bf16.mxu0 %v1572_v60  ;;  %v531_v15 = vld [vmem:[%s1981_s24 + $0x60] sm:$0xff]  ;;  %v532_v17 = vld [vmem:[%s1981_s24 + $0x68] sm:$0xff]  ;;  %v1591_v60 = vcombine.low %v569_v47, %v573_v48  ;;  %v1584_v62 = vcombine.high %v561_v56, %v565_v57  ;;  %v1586_v63 = vcombine.high %v562_v58, %v566_v59  ;;  %v553_v0 = vld [vmem:[%s1981_s24 + $0x110] sm:$0xff] }
  0x5f   : > { %1026 = vmatpush1.bf16.msra.mxu1 %v1573_v3  ;;  %v1548_v20 = vcombine.high %v527_v14, %v531_v15  ;;  %v1550_v21 = vcombine.high %v528_v16, %v532_v17  ;;  %v519_v22 = vld [vmem:[%s1981_s24] sm:$0xff]  ;;  %v520_v25 = vld [vmem:[%s1981_s24 + $0x8] sm:$0xff]  ;;  %v1547_v27 = vcombine.low %v527_v14, %v531_v15  ;;  %v1549_v28 = vcombine.low %v528_v16, %v532_v17  ;;  %v557_v1 = vld [vmem:[%s1981_s24 + $0x130] sm:$0xff] }
  0x60   : > { %1027 = vmatprep.subr.bf16.mxu1 %v1566_v5  ;;  %v523_v23 = vld [vmem:[%s1981_s24 + $0x20] sm:$0xff]  ;;  %v524_v26 = vld [vmem:[%s1981_s24 + $0x28] sm:$0xff]  ;;  %v558_v3 = vld [vmem:[%s1981_s24 + $0x138] sm:$0xff]  ;;  %v1585_v5 = vcombine.low %v562_v58, %v566_v59  ;;  %v1576_v6 = vcombine.high %v553_v0, %v557_v1 }
  0x61   : > { %983 = vmatpush1.bf16.msra.mxu0 %v1571_v2  ;;  %v1540_v29 = vcombine.high %v519_v22, %v523_v23  ;;  %v1542_v30 = vcombine.high %v520_v25, %v524_v26  ;;  %v583_v31 = vld [vmem:[%s1981_s24 + $0x200] sm:$0xff]  ;;  %v584_v33 = vld [vmem:[%s1981_s24 + $0x208] sm:$0xff]  ;;  %v1539_v35 = vcombine.low %v519_v22, %v523_v23  ;;  %v1541_v36 = vcombine.low %v520_v25, %v524_v26  ;;  %v554_v2 = vld [vmem:[%s1981_s24 + $0x118] sm:$0xff] }
  0x62   : > { %984 = vmatprep.subr.bf16.mxu0 %v1564_v4  ;;  %v587_v32 = vld [vmem:[%s1981_s24 + $0x220] sm:$0xff]  ;;  %v588_v34 = vld [vmem:[%s1981_s24 + $0x228] sm:$0xff]  ;;  %v1583_v4 = vcombine.low %v561_v56, %v565_v57  ;;  %v1578_v7 = vcombine.high %v554_v2, %v558_v3  ;;  %v545_v8 = vld [vmem:[%s1981_s24 + $0xd0] sm:$0xff] }
  0x63   : > { %1028 = vmatpush1.bf16.msra.mxu1 %v1565_v11  ;;  %v1604_v37 = vcombine.high %v583_v31, %v587_v32  ;;  %v1606_v38 = vcombine.high %v584_v33, %v588_v34  ;;  %v1603_v43 = vcombine.low %v583_v31, %v587_v32  ;;  %v1605_v44 = vcombine.low %v584_v33, %v588_v34  ;;  %v2040_v49 = vld [vmem:[%s2235_s1] ss:$8 sps:$4 sm:$0xff]   ;;  %v549_v9 = vld [vmem:[%s1981_s24 + $0xf0] sm:$0xff]  ;;  %v550_v11 = vld [vmem:[%s1981_s24 + $0xf8] sm:$0xff] }
  0x64   : > { %1029 = vmatprep.subr.bf16.mxu1 %v1558_v13  ;;  %v1568_v13 = vcombine.high %v545_v8, %v549_v9  ;;  %v537_v15 = vld [vmem:[%s1981_s24 + $0x90] sm:$0xff]  ;;  %v538_v17 = vld [vmem:[%s1981_s24 + $0x98] sm:$0xff] }
  0x65   : > { %985 = vmatpush1.bf16.msra.mxu0 %v1563_v10  ;;  %v546_v10 = vld [vmem:[%s1981_s24 + $0xd8] sm:$0xff]  ;;  %v541_v16 = vld [vmem:[%s1981_s24 + $0xb0] sm:$0xff] }
  0x66   : > { %986 = vmatprep.subr.bf16.mxu0 %v1556_v12  ;;  %v1575_v12 = vcombine.low %v553_v0, %v557_v1  ;;  %v1570_v14 = vcombine.high %v546_v10, %v550_v11  ;;  %v529_v23 = vld [vmem:[%s1981_s24 + $0x50] sm:$0xff]  ;;  %v530_v26 = vld [vmem:[%s1981_s24 + $0x58] sm:$0xff] }
  0x67   : > { %1030 = vmatpush1.bf16.msra.mxu1 %v1557_v19  ;;  %v1567_v19 = vcombine.low %v545_v8, %v549_v9  ;;  %v533_v25 = vld [vmem:[%s1981_s24 + $0x70] sm:$0xff]  ;;  %v522_v34 = vld [vmem:[%s1981_s24 + $0x18] sm:$0xff] }
  0x68   : > { %1031 = vmatprep.subr.bf16.mxu1 %v1550_v21  ;;  %v1560_v21 = vcombine.high %v537_v15, %v541_v16  ;;  %v521_v32 = vld [vmem:[%s1981_s24 + $0x10] sm:$0xff]  ;;  %v586_v42 = vld [vmem:[%s1981_s24 + $0x218] sm:$0xff] }
  0x69   : > { %987 = vmatpush1.bf16.msra.mxu0 %v1555_v18  ;;  %v542_v18 = vld [vmem:[%s1981_s24 + $0xb8] sm:$0xff]  ;;  %v525_v33 = vld [vmem:[%s1981_s24 + $0x30] sm:$0xff] }
  0x6a   : > { %988 = vmatprep.subr.bf16.mxu0 %v1548_v20  ;;  %v1569_v20 = vcombine.low %v546_v10, %v550_v11  ;;  %v1562_v22 = vcombine.high %v538_v17, %v542_v18  ;;  %v585_v40 = vld [vmem:[%s1981_s24 + $0x210] sm:$0xff]  ;;  %v1151_v1 = vld [vmem:[%s2087_s12 + $0x18] sm:$0xff] }
  0x6b   : > { %1032 = vmatpush1.bf16.msra.mxu1 %v1549_v28  ;;  %v1559_v28 = vcombine.low %v537_v15, %v541_v16  ;;  %v589_v41 = vld [vmem:[%s1981_s24 + $0x230] sm:$0xff] }
  0x6c   : > { %1033 = vmatprep.subr.bf16.mxu1 %v1542_v30  ;;  %v1552_v30 = vcombine.high %v529_v23, %v533_v25  ;;  %v1607_v48 = vcombine.low %v585_v40, %v589_v41  ;;  %v1158_v10 = vld [vmem:[%s2087_s12 + $0x50] sm:$0xff] }
  0x6d   : > { %989 = vmatpush1.bf16.msra.mxu0 %v1547_v27  ;;  %v534_v27 = vld [vmem:[%s1981_s24 + $0x78] sm:$0xff] }
  0x6e   : > { %990 = vmatprep.subr.bf16.mxu0 %v1540_v29  ;;  %v1561_v29 = vcombine.low %v538_v17, %v542_v18  ;;  %v1554_v31 = vcombine.high %v530_v26, %v534_v27 }
  0x6f   : > { %1034 = vmatpush1.bf16.msra.mxu1 %v1541_v36  ;;  %v1551_v36 = vcombine.low %v529_v23, %v533_v25 }
  0x70   : > { %1049 = vmatprep.subr.bf16.mxu1 %v1606_v38  ;;  %v1544_v38 = vcombine.high %v521_v32, %v525_v33 }
  0x71   : > { %991 = vmatpush1.bf16.msra.mxu0 %v1539_v35  ;;  %v526_v35 = vld [vmem:[%s1981_s24 + $0x38] sm:$0xff] }
  0x72   : > { %1006 = vmatprep.subr.bf16.mxu0 %v1604_v37  ;;  %v1553_v37 = vcombine.low %v530_v26, %v534_v27  ;;  %v1546_v39 = vcombine.high %v522_v34, %v526_v35 }
  0x73   : > { %1050 = vmatpush2.bf16.msra.mxu1 %v1605_v44  ;;  %v1543_v44 = vcombine.low %v521_v32, %v525_v33 }
  0x74   : > { %1105 = vmatprep.subr.bf16.mxu1 %v1602_v46  ;;  %v1608_v46 = vcombine.high %v585_v40, %v589_v41 }
  0x75   : > { %1007 = vmatpush2.bf16.msra.mxu0 %v1603_v43  ;;  %v590_v43 = vld [vmem:[%s1981_s24 + $0x238] sm:$0xff] }
  0x76   : > { %1062 = vmatprep.subr.bf16.mxu0 %v1600_v45  ;;  %1052 = vmatmul.mubr.bf16.vlgmr.msra.gmra.mxu1 %v2040_v49  ;;  %v1545_v45 = vcombine.low %v522_v34, %v526_v35  ;;  %v1610_v47 = vcombine.high %v586_v42, %v590_v43  ;;  %v1609_v50 = vcombine.low %v586_v42, %v590_v43 }
  0x77   : > { %1106 = vmatpush1.bf16.msra.mxu1 %v1601_v53  ;;  %1614 = vmatprep.mubr.msk.bf16.mxu1 %vm972_vm0, %v1968_v24 }
  0x78   : > { %1009 = vmatmul.mubr.bf16.vlgmr.msra.gmra.mxu0 %v2040_v49  ;;  %1107 = vmatprep.subr.bf16.mxu1 %v1594_v55  ;;  %v1148_v55 = vld [vmem:[%s2087_s12] sm:$0xff] }
  0x79   : > { %1063 = vmatpush1.bf16.msra.mxu0 %v1599_v52  ;;  %1613 = vmatprep.mubr.msk.bf16.mxu0 %vm972_vm0, %v1968_v24  ;;  %v1577_v24 = vcombine.low %v554_v2, %v558_v3 }
  0x7a   : > { %1064 = vmatprep.subr.bf16.mxu0 %v1592_v54 }
  0x7b   : > { %1108 = vmatpush1.bf16.msra.mxu1 %v1593_v61 }
  0x7c   : > { %1109 = vmatprep.subr.bf16.mxu1 %v1586_v63 }
  0x7d   : > { %1065 = vmatpush1.bf16.msra.mxu0 %v1591_v60  ;;  %v1149_v60 = vld [vmem:[%s2087_s12 + $0x8] sm:$0xff] }
  0x7e   : > { %1066 = vmatprep.subr.bf16.mxu0 %v1584_v62 }
  0x7f   : > { %1110 = vmatpush1.bf16.msra.mxu1 %v1585_v5  ;;  %v1156_v5 = vld [vmem:[%s2087_s12 + $0x40] sm:$0xff] }
  0x80   : > { %1111 = vmatprep.subr.bf16.mxu1 %v1578_v7 }
  0x81   : > { %1067 = vmatpush1.bf16.msra.mxu0 %v1583_v4 }
  0x82   : > { %1068 = vmatprep.subr.bf16.mxu0 %v1576_v6 }
  0x83   : > { %1112 = vmatpush1.bf16.msra.mxu1 %v1577_v24 }
  0x84   : > { %1113 = vmatprep.subr.bf16.mxu1 %v1570_v14  ;;  %v1157_v14 = vld [vmem:[%s2087_s12 + $0x48] sm:$0xff] }
  0x85   : > { %1069 = vmatpush1.bf16.msra.mxu0 %v1575_v12 }
  0x86   : > { %1070 = vmatprep.subr.bf16.mxu0 %v1568_v13 }
  0x87   : > { %1114 = vmatpush1.bf16.msra.mxu1 %v1569_v20  ;;  %v1159_v20 = vld [vmem:[%s2087_s12 + $0x58] sm:$0xff] }
  0x88   : > { %1115 = vmatprep.subr.bf16.mxu1 %v1562_v22 }
  0x89   : > { %1071 = vmatpush1.bf16.msra.mxu0 %v1567_v19 }
  0x8a   : > { %1072 = vmatprep.subr.bf16.mxu0 %v1560_v21 }
  0x8b   : > { %1116 = vmatpush1.bf16.msra.mxu1 %v1561_v29 }
  0x8c   : > { %1117 = vmatprep.subr.bf16.mxu1 %v1554_v31 }
  0x8d   : > { %1073 = vmatpush1.bf16.msra.mxu0 %v1559_v28 }
  0x8e   : > { %1074 = vmatprep.subr.bf16.mxu0 %v1552_v30 }
  0x8f   : > { %1118 = vmatpush1.bf16.msra.mxu1 %v1553_v37 }
  0x90   : > { %1119 = vmatprep.subr.bf16.mxu1 %v1546_v39 }
  0x91   : > { %1075 = vmatpush1.bf16.msra.mxu0 %v1551_v36 }
  0x92   : > { %1076 = vmatprep.subr.bf16.mxu0 %v1544_v38 }
  0x93   : > { %1120 = vmatpush1.bf16.msra.mxu1 %v1545_v45 }
  0x94   : > { %1135 = vmatprep.subr.bf16.mxu1 %v1610_v47 }
  0x95   : > { %1077 = vmatpush1.bf16.msra.mxu0 %v1543_v44 }
  0x96   : > { %1092 = vmatprep.subr.bf16.mxu0 %v1608_v46 }
  0x97   : > { %1136 = vmatpush2.bf16.msra.mxu1 %v1609_v50 }
  0x99   : > { %1093 = vmatpush2.bf16.msra.mxu0 %v1607_v48 }
  0x9a   : > { %1138 = vmatmul.mubr.bf16.vlgmr.msra.gmra.mxu1 %v2040_v49 }
  0x9c   : > { %1095 = vmatmul.mubr.bf16.vlgmr.msra.gmra.mxu0 %v2040_v49  ;;  %v1150_v49 = vld [vmem:[%s2087_s12 + $0x10] sm:$0xff] }
  0xcb   : > { %v2080_v51 = vpop.permute.xlu0 %595  ;;  %v2083_v52 = vpop.permute.xlu1 %1184 }
  0xd0   : > { %v2085_v53 = vpop.permute.xlu0 %600 }
  0xd1   : > { %v2094_v61 = vpop.permute.xlu1 %1189 }
  0xd4   : > { %v2100_v6 = vpop.permute.xlu0 %1212 }
  0xd5   : > { %v2121_v27 = vpop.permute.xlu1 %1217 }
 0x136   : > { %v1053_v57 = vpop.f32.mrf.mxu1 }
 0x137   : > { %v1054_v58 = vadd.f32 %v1053_v57, %v2080_v51  ;;  %v1152_v57 = vld [vmem:[%s2087_s12 + $0x20] sm:$0xff] }
 0x138   : > { %v1010_v54 = vpop.f32.mrf.mxu0  ;;  %v1055_v0 = vpop.f32.mrf.mxu1 }
 0x139   : > { %v1011_v56 = vadd.f32 %v1010_v54, %v2080_v51  ;;  %v1166_v2 = vadd.f32 %v1150_v49, %v1054_v58  ;;  %v1056_v3 = vadd.f32 %v1055_v0, %v2080_v51 }
 0x13a   : > { %v1012_v59 = vpop.f32.mrf.mxu0  ;;  %v1057_v9 = vpop.f32.mrf.mxu1 }
 0x13b   : > { %v1164_v62 = vadd.f32 %v1148_v55, %v1011_v56  ;;  %v1013_v63 = vadd.f32 %v1012_v59, %v2080_v51  ;;  %1254 = vst [vmem:[%s2102_s13 + $0x10] sm:$0xff] %v1166_v2  ;;  %v1167_v12 = vadd.f32 %v1151_v1, %v1056_v3  ;;  %v1058_v24 = vadd.f32 %v1057_v9, %v2085_v53  ;;  %v1154_v59 = vld [vmem:[%s2087_s12 + $0x30] sm:$0xff]  ;;  %v1155_v3 = vld [vmem:[%s2087_s12 + $0x38] sm:$0xff] }
 0x13c   : > { %v1014_v4 = vpop.f32.mrf.mxu0  ;;  %v1194_v15 = vmul.f32 %v2083_v52, %v1166_v2  ;;  %v1059_v19 = vpop.f32.mrf.mxu1 }
 0x13d   : > { %1252 = vst [vmem:[%s2102_s13] sm:$0xff] %v1164_v62  ;;  %v1165_v7 = vadd.f32 %v1149_v60, %v1013_v63  ;;  %v1015_v8 = vadd.f32 %v1014_v4, %v2085_v53  ;;  %v1192_v11 = vmul.f32 %v2083_v52, %v1164_v62  ;;  %v1195_v22 = vmul.f32 %v2083_v52, %v1167_v12  ;;  %v1153_v63 = vld [vmem:[%s2087_s12 + $0x28] sm:$0xff] }
 0x13e   : > { %v1016_v13 = vpop.f32.mrf.mxu0  ;;  %1255 = vst [vmem:[%s2102_s13 + $0x18] sm:$0xff] %v1167_v12  ;;  %v1174_v23 = vadd.f32 %v1158_v10, %v1058_v24  ;;  %v1060_v25 = vadd.f32 %v1059_v19, %v2085_v53  ;;  %v1222_v26 = vadd.f32 %v2100_v6, %v1194_v15  ;;  %v1162_v24 = vld [vmem:[%s2087_s12 + $0x70] sm:$0xff] }
 0x13f   : > { %v1193_v16 = vmul.f32 %v2083_v52, %v1165_v7  ;;  %1253 = vst [vmem:[%s2102_s13 + $0x8] sm:$0xff] %v1165_v7  ;;  %v1172_v17 = vadd.f32 %v1156_v5, %v1015_v8  ;;  %v1017_v18 = vadd.f32 %v1016_v13, %v2085_v53  ;;  %v1220_v21 = vadd.f32 %v2100_v6, %v1192_v11  ;;  %v1160_v8 = vld [vmem:[%s2087_s12 + $0x60] sm:$0xff] }
 0x140   : > { %1262 = vst [vmem:[%s2102_s13 + $0x50] sm:$0xff] %v1174_v23  ;;  %v1175_v32 = vadd.f32 %v1159_v20, %v1060_v25  ;;  %v1223_v33 = vadd.f32 %v2100_v6, %v1195_v22  ;;  %v1238_v34 = vmax.f32 %v1222_v26, 0.0  ;;  %v1202_v35 = vmul.f32 %v2094_v61, %v1174_v23  ;;  %v1163_v22 = vld [vmem:[%s2087_s12 + $0x78] sm:$0xff] }
 0x141   : > { %1260 = vst [vmem:[%s2102_s13 + $0x40] sm:$0xff] %v1172_v17  ;;  %v1173_v28 = vadd.f32 %v1157_v14, %v1017_v18  ;;  %v1221_v29 = vadd.f32 %v2100_v6, %v1193_v16  ;;  %v1236_v30 = vmax.f32 %v1220_v21, 0.0  ;;  %v1200_v31 = vmul.f32 %v2094_v61, %v1172_v17  ;;  %v1161_v16 = vld [vmem:[%s2087_s12 + $0x68] sm:$0xff] }
 0x142   : > { %v1203_v39 = vmul.f32 %v2094_v61, %v1175_v32  ;;  %1263 = vst [vmem:[%s2102_s13 + $0x58] sm:$0xff] %v1175_v32  ;;  %v1239_v40 = vmax.f32 %v1223_v33, 0.0  ;;  %v1230_v41 = vadd.f32 %v2121_v27, %v1202_v35 }
 0x143   : > { %v1201_v36 = vmul.f32 %v2094_v61, %v1173_v28  ;;  %1261 = vst [vmem:[%s2102_s13 + $0x48] sm:$0xff] %v1173_v28  ;;  %v1237_v37 = vmax.f32 %v1221_v29, 0.0  ;;  %v1228_v38 = vadd.f32 %v2121_v27, %v1200_v31 }
 0x144   : > { %v1634_v44 = vpack.c.bf16 %v1239_v40, %v1238_v34  ;;  %v1231_v45 = vadd.f32 %v2121_v27, %v1203_v39  ;;  %v1246_v48 = vmax.f32 %v1230_v41, 0.0 }
 0x145   : > { %v1633_v42 = vpack.c.bf16 %v1237_v37, %v1236_v30  ;;  %v1229_v43 = vadd.f32 %v2121_v27, %v1201_v36  ;;  %v1244_v46 = vmax.f32 %v1228_v38, 0.0 }
 0x146   : > { %1317 = vst [vmem:[%s2138_s30 + $0x8] sm:$0xff] %v1634_v44  ;;  %v1247_v50 = vmax.f32 %v1231_v45, 0.0 }
 0x147   : > { %1316 = vst [vmem:[%s2138_s30] sm:$0xff] %v1633_v42  ;;  %v1245_v47 = vmax.f32 %v1229_v43, 0.0 }
 0x148   : > { %v1638_v55 = vpack.c.bf16 %v1247_v50, %v1246_v48 }
 0x149   : > { %v1637_v54 = vpack.c.bf16 %v1245_v47, %v1244_v46 }
 0x14a   : > { %1321 = vst [vmem:[%s2138_s30 + $0x28] sm:$0xff] %v1638_v55  ;;  %v1356_v55 = vld [vmem:[%s2102_s13 + $0x18] sm:$0xff] (%p1775_p5) }
 0x14b   : > { %1320 = vst [vmem:[%s2138_s30 + $0x20] sm:$0xff] %v1637_v54  ;;  %v1354_v54 = vld [vmem:[%s2102_s13 + $0x10] sm:$0xff] (%p1775_p5)  ;;  %1357 = vst [vmem:[%s1337_s26 + $0x18] sm:$0xff] (%p1775_p5), %v1356_v55 }
 0x14c   : > { %1355 = vst [vmem:[%s1337_s26 + $0x10] sm:$0xff] (%p1775_p5), %v1354_v54 }
 0x15a   : > { %v1139_v58 = vpop.f32.mrf.mxu1 }
 0x15b   : > { %v1140_v60 = vadd.f32 %v1139_v58, %v2080_v51 }
 0x15c   : > { %v1096_v56 = vpop.f32.mrf.mxu0  ;;  %v1141_v2 = vpop.f32.mrf.mxu1 }
 0x15d   : > { %v1097_v49 = vadd.f32 %v1096_v56, %v2080_v51  ;;  %v1170_v4 = vadd.f32 %v1154_v59, %v1140_v60  ;;  %v1142_v5 = vadd.f32 %v1141_v2, %v2080_v51  ;;  %v1366_v59 = vld [vmem:[%s2102_s13 + $0x40] sm:$0xff] (%p1775_p5)  ;;  %v1368_v60 = vld [vmem:[%s2102_s13 + $0x48] sm:$0xff] (%p1775_p5) }
 0x15e   : > { %v1098_v62 = vpop.f32.mrf.mxu0  ;;  %v1143_v12 = vpop.f32.mrf.mxu1  ;;  %1367 = vst [vmem:[%s1337_s26 + $0x80] sm:$0xff] (%p1775_p5), %v1366_v59  ;;  %1369 = vst [vmem:[%s1337_s26 + $0x88] sm:$0xff] (%p1775_p5), %v1368_v60 }
 0x15f   : > { %v1168_v0 = vadd.f32 %v1152_v57, %v1097_v49  ;;  %v1099_v1 = vadd.f32 %v1098_v62, %v2080_v51  ;;  %v1198_v13 = vmul.f32 %v2083_v52, %v1170_v4  ;;  %1258 = vst [vmem:[%s2102_s13 + $0x30] sm:$0xff] %v1170_v4  ;;  %v1171_v14 = vadd.f32 %v1155_v3, %v1142_v5  ;;  %v1370_v62 = vld [vmem:[%s2102_s13 + $0x50] sm:$0xff] (%p1775_p5) }
 0x160   : > { %v1100_v7 = vpop.f32.mrf.mxu0  ;;  %v1144_v15 = vadd.f32 %v1143_v12, %v2085_v53  ;;  %v1145_v21 = vpop.f32.mrf.mxu1  ;;  %1371 = vst [vmem:[%s1337_s26 + $0x90] sm:$0xff] (%p1775_p5), %v1370_v62 }
 0x161   : > { %v1196_v9 = vmul.f32 %v2083_v52, %v1168_v0  ;;  %1256 = vst [vmem:[%s2102_s13 + $0x20] sm:$0xff] %v1168_v0  ;;  %v1169_v10 = vadd.f32 %v1153_v63, %v1099_v1  ;;  %v1101_v11 = vadd.f32 %v1100_v7, %v2085_v53  ;;  %v1226_v23 = vadd.f32 %v2100_v6, %v1198_v13  ;;  %v1372_v63 = vld [vmem:[%s2102_s13 + $0x58] sm:$0xff] (%p1775_p5) }
 0x162   : > { %v1102_v51 = vpop.f32.mrf.mxu0  ;;  %v1199_v25 = vmul.f32 %v2083_v52, %v1171_v14  ;;  %1259 = vst [vmem:[%s2102_s13 + $0x38] sm:$0xff] %v1171_v14  ;;  %v1178_v26 = vadd.f32 %v1162_v24, %v1144_v15  ;;  %v1146_v28 = vadd.f32 %v1145_v21, %v2085_v53  ;;  %1373 = vst [vmem:[%s1337_s26 + $0x98] sm:$0xff] (%p1775_p5), %v1372_v63 }
 0x163   : > { %v1224_v17 = vadd.f32 %v2100_v6, %v1196_v9  ;;  %v1197_v18 = vmul.f32 %v2083_v52, %v1169_v10  ;;  %1257 = vst [vmem:[%s2102_s13 + $0x28] sm:$0xff] %v1169_v10  ;;  %v1176_v19 = vadd.f32 %v1160_v8, %v1101_v11  ;;  %v1103_v20 = vadd.f32 %v1102_v51, %v2085_v53 }
 0x164   : > { %v1227_v32 = vadd.f32 %v2100_v6, %v1199_v25  ;;  %v1206_v33 = vmul.f32 %v2094_v61, %v1178_v26  ;;  %1266 = vst [vmem:[%s2102_s13 + $0x70] sm:$0xff] %v1178_v26  ;;  %v1179_v34 = vadd.f32 %v1163_v22, %v1146_v28  ;;  %v1242_v37 = vmax.f32 %v1226_v23, 0.0 }
 0x165   : > { %v1225_v29 = vadd.f32 %v2100_v6, %v1197_v18  ;;  %v1204_v30 = vmul.f32 %v2094_v61, %v1176_v19  ;;  %1264 = vst [vmem:[%s2102_s13 + $0x60] sm:$0xff] %v1176_v19  ;;  %v1177_v31 = vadd.f32 %v1161_v16, %v1103_v20  ;;  %v1240_v52 = vmax.f32 %v1224_v17, 0.0 }
 0x166   : > { %v1243_v38 = vmax.f32 %v1227_v32, 0.0  ;;  %v1234_v39 = vadd.f32 %v2121_v27, %v1206_v33  ;;  %v1207_v6 = vmul.f32 %v2094_v61, %v1179_v34  ;;  %1267 = vst [vmem:[%s2102_s13 + $0x78] sm:$0xff] %v1179_v34  ;;  %v1362_v49 = vld [vmem:[%s2102_s13 + $0x30] sm:$0xff] (%p1775_p5) }
 0x167   : > { %v1241_v35 = vmax.f32 %v1225_v29, 0.0  ;;  %v1232_v36 = vadd.f32 %v2121_v27, %v1204_v30  ;;  %v1205_v53 = vmul.f32 %v2094_v61, %v1177_v31  ;;  %1265 = vst [vmem:[%s2102_s13 + $0x68] sm:$0xff] %v1177_v31  ;;  %v1350_v61 = vld [vmem:[%s2102_s13] sm:$0xff] (%p1775_p5)  ;;  %1363 = vst [vmem:[%s1337_s26 + $0x30] sm:$0xff] (%p1775_p5), %v1362_v49 }
 0x168   : > { %v1636_v42 = vpack.c.bf16 %v1243_v38, %v1242_v37  ;;  %v1235_v43 = vadd.f32 %v2121_v27, %v1207_v6  ;;  %v1250_v46 = vmax.f32 %v1234_v39, 0.0  ;;  %v1358_v56 = vld [vmem:[%s2102_s13 + $0x20] sm:$0xff] (%p1775_p5)  ;;  %1351 = vst [vmem:[%s1337_s26] sm:$0xff] (%p1775_p5), %v1350_v61 }
 0x169   : > { %v1635_v40 = vpack.c.bf16 %v1241_v35, %v1240_v52  ;;  %v1233_v41 = vadd.f32 %v2121_v27, %v1205_v53  ;;  %v1248_v44 = vmax.f32 %v1232_v36, 0.0  ;;  %v1352_v27 = vld [vmem:[%s2102_s13 + $0x8] sm:$0xff] (%p1775_p5)  ;;  %1359 = vst [vmem:[%s1337_s26 + $0x20] sm:$0xff] (%p1775_p5), %v1358_v56  ;;  %v1364_v58 = vld [vmem:[%s2102_s13 + $0x38] sm:$0xff] (%p1775_p5) }
 0x16a   : > { %1319 = vst [vmem:[%s2138_s30 + $0x18] sm:$0xff] %v1636_v42  ;;  %v1251_v47 = vmax.f32 %v1235_v43, 0.0  ;;  %v1360_v57 = vld [vmem:[%s2102_s13 + $0x28] sm:$0xff] (%p1775_p5)  ;;  %1353 = vst [vmem:[%s1337_s26 + $0x8] sm:$0xff] (%p1775_p5), %v1352_v27 }
 0x16b   : > { %1318 = vst [vmem:[%s2138_s30 + $0x10] sm:$0xff] %v1635_v40  ;;  %v1249_v45 = vmax.f32 %v1233_v41, 0.0  ;;  %1334 = sbr.rel (!%p1775_p5) target bundleno = 368 (0x170), region = 94  ;;  %1361 = vst [vmem:[%s1337_s26 + $0x28] sm:$0xff] (%p1775_p5), %v1360_v57  ;;  %v1378_v2 = vld [vmem:[%s2102_s13 + $0x70] sm:$0xff] (%p1775_p5) }
 0x16c   : > { %v1640_v50 = vpack.c.bf16 %v1251_v47, %v1250_v46  ;;  %1365 = vst [vmem:[%s1337_s26 + $0x38] sm:$0xff] (%p1775_p5), %v1364_v58  ;;  %v1374_v0 = vld [vmem:[%s2102_s13 + $0x60] sm:$0xff] (%p1775_p5)  ;;  %1379 = vst [vmem:[%s1337_s26 + $0xb0] sm:$0xff] (%p1775_p5), %v1378_v2 }
 0x16d   : > { %v1639_v48 = vpack.c.bf16 %v1249_v45, %v1248_v44  ;;  %1375 = vst [vmem:[%s1337_s26 + $0xa0] sm:$0xff] (%p1775_p5), %v1374_v0  ;;  %v1380_v3 = vld [vmem:[%s2102_s13 + $0x78] sm:$0xff] (%p1775_p5) }
 0x16e   : > { %1323 = vst [vmem:[%s2138_s30 + $0x38] sm:$0xff] %v1640_v50  ;;  %v1376_v1 = vld [vmem:[%s2102_s13 + $0x68] sm:$0xff] (%p1775_p5)  ;;  %1381 = vst [vmem:[%s1337_s26 + $0xb8] sm:$0xff] (%p1775_p5), %v1380_v3 }
 0x16f   : > { %1322 = vst [vmem:[%s2138_s30 + $0x30] sm:$0xff] %v1639_v48  ;;  %1377 = vst [vmem:[%s1337_s26 + $0xa8] sm:$0xff] (%p1775_p5), %v1376_v1 }
 0x170 PF: > { %1387 = sbr.rel (!%p1775_p5) target bundleno = 376 (0x178), region = 117  ;;  %s1642_s17 = sshll.u32 (%p1775_p5), %s1756_s27, 5  ;;  %v1403_v4 = vld [vmem:[%s2138_s30] sm:$0xff] (%p1775_p5)  ;;  %v1405_v5 = vld [vmem:[%s2138_s30 + $0x8] sm:$0xff] (%p1775_p5) }
 0x171   : > { %s1390_s20 = scalar_lea.vmem (%p1775_p5), %s2241_s7, %s1642_s17  ;;  %v1409_v8 = vld [vmem:[%s2138_s30 + $0x18] sm:$0xff] (%p1775_p5)  ;;  %v1411_v9 = vld [vmem:[%s2138_s30 + $0x20] sm:$0xff] (%p1775_p5)  ;;  %v1413_v10 = vld [vmem:[%s2138_s30 + $0x28] sm:$0xff] (%p1775_p5) }
 0x172   : > { %v1407_v7 = vld [vmem:[%s2138_s30 + $0x10] sm:$0xff] (%p1775_p5)  ;;  %1404 = vst [vmem:[%s1390_s20] sm:$0xff] (%p1775_p5), %v1403_v4  ;;  %1406 = vst [vmem:[%s1390_s20 + $0x8] sm:$0xff] (%p1775_p5), %v1405_v5 }
 0x173   : > { %1408 = vst [vmem:[%s1390_s20 + $0x10] sm:$0xff] (%p1775_p5), %v1407_v7  ;;  %1410 = vst [vmem:[%s1390_s20 + $0x18] sm:$0xff] (%p1775_p5), %v1409_v8 }
 0x174   : > { %1412 = vst [vmem:[%s1390_s20 + $0x40] sm:$0xff] (%p1775_p5), %v1411_v9  ;;  %1414 = vst [vmem:[%s1390_s20 + $0x48] sm:$0xff] (%p1775_p5), %v1413_v10 }
 0x175   : > { %v1417_v12 = vld [vmem:[%s2138_s30 + $0x38] sm:$0xff] }
 0x176   : > { %v1415_v11 = vld [vmem:[%s2138_s30 + $0x30] sm:$0xff]  ;;  %1418 = vst [vmem:[%s1390_s20 + $0x58] sm:$0xff] %v1417_v12 }
 0x177   : > { %1416 = vst [vmem:[%s1390_s20 + $0x50] sm:$0xff] %v1415_v11 }
 0x178 PF: > { %p15_p10 = scmp.ge.s32.totalorder %s1759_s28, 4   ;;  %s2244_s24 = smov %s1693_s25 }
 0x179   : > { %s2245_s25 = smov %s1769_s8  ;;  %s2246_s26 = smov %s1759_s28 }
 0x17a   :  { %17 = sbr.rel (!%p15_p10) target bundleno = 2 (0x2), region = 191 }

// kernel: _lambda_.11
= control target key start
LH: loop header
LB: loop body
LE: loop exit
PB: predicated region body
PF: predicated region fallthrough
CT: control target
= control target key end

     0   :  { %s1671_s18 = smov 0   ;;  %s1673_s19 = smov 0   ;;  %s2194_s0 = inlined_call_operand.vmem [shape: bf16[144,2048], index: 0, kind: input, shape index: {}]   ;;  %s2195_s1 = inlined_call_operand.vmem [shape: bf16[32,144], index: 1, kind: input, shape index: {}]   ;;  %s2196_s2 = inlined_call_operand.vmem [shape: f32[32,1], index: 2, kind: input, shape index: {}]   ;;  %s2197_s3 = inlined_call_operand.vmem [shape: f32[32,1], index: 3, kind: input, shape index: {}]   ;;  %s2198_s4 = inlined_call_operand.vmem [shape: f32[32,1], index: 4, kind: input, shape index: {}]   ;;  %s2199_s5 = inlined_call_operand.vmem [shape: bf16[32,2048], index: 5, kind: output, shape index: {}]  }
   0x1   :  { %s1675_s20 = smov 0  }
   0x2 LB: > { %s1450_s21 = sadd.s32 4294967295, %s1638_s20   ;;  %s1688_s22 = sadd.s32 1, %s1638_s20   ;;  %s1638_s20 = sphi %s1675_s20, %s2203_s20   ;;  %s1634_s19 = sphi %s1673_s19, %s2202_s19   ;;  %s1630_s18 = sphi %s1671_s18, %s2201_s18  }
   0x3   : > { %s19_s23 = ssub.s32 %s1638_s20, %s1688_s22  ;;  %s22_s24 = sadd.s32 1, %s1634_s19 }
   0x4   : > { %p20_p0 = scmp.eq.s32.totalorder %s19_s23, 0  ;;  %p29_p1 = scmp.ne.s32.totalorder %s1634_s19, %s1630_s18 }
   0x5   : > { %p30_p2 = scmp.eq.s32.totalorder %s1638_s20, 0  ;;  %p143_p3 = scmp.eq.s32.totalorder %s1450_s21, 1 }
   0x6   : > { %s1699_s25 = scalar_select %p20_p0, %s1634_s19, %s22_s24  }
   0x7   : > { %p31_p4 = por %p30_p2, %p29_p1  ;;  %p1701_p5 = por %p143_p3, %p29_p1 }
   0x8   : > { %p1453_p6 = scmp.ge.s32.totalorder %s1638_s20, 2 }
   0xa   : > { %177 = sbr.rel (%p1453_p6) target bundleno = 56 (0x38), region = 32 }
   0xf   : > { %180 = sbr.rel (!%p31_p4) target bundleno = 56 (0x38), region = 36  ;;  %s182_s27 = sand.u32 (%p31_p4), 1, %s1634_s19  }
  0x10   : > { %s1563_s28 = sshll.u32 (%p31_p4), %s1638_s20, 5  ;;  %s1581_s29 = smul.u32 (%p31_p4), 576, %s182_s27 }
  0x11   : > { %s1711_s7 = scalar_lea.vmem (%p31_p4), %s2194_s0, %s1563_s28 }
  0x12   : > { %v200_v0 = vld [vmem:[%s1711_s7] sm:$0xff] (%p31_p4)  ;;  %v202_v1 = vld [vmem:[%s1711_s7 + $0x8] sm:$0xff] (%p31_p4)  ;;  %v204_v2 = vld [vmem:[%s1711_s7 + $0x10] sm:$0xff] (%p31_p4)  ;;  %s1719_s8 = scalar_lea.vmem (%p31_p4), [#allocation2], %s1581_s29 }
  0x13   : > { %v206_v3 = vld [vmem:[%s1711_s7 + $0x18] sm:$0xff] (%p31_p4)  ;;  %v208_v4 = vld [vmem:[%s1711_s7 + $0x40] sm:$0xff] (%p31_p4)  ;;  %v210_v5 = vld [vmem:[%s1711_s7 + $0x48] sm:$0xff] (%p31_p4)  ;;  %201 = vst [vmem:[%s1719_s8] sm:$0xff] (%p31_p4), %v200_v0 }
  0x14   : > { %203 = vst [vmem:[%s1719_s8 + $0x8] sm:$0xff] %v202_v1  ;;  %205 = vst [vmem:[%s1719_s8 + $0x10] sm:$0xff] %v204_v2  ;;  %v212_v6 = vld [vmem:[%s1711_s7 + $0x50] sm:$0xff]  ;;  %v214_v7 = vld [vmem:[%s1711_s7 + $0x58] sm:$0xff] }
  0x15   : > { %207 = vst [vmem:[%s1719_s8 + $0x18] sm:$0xff] %v206_v3  ;;  %209 = vst [vmem:[%s1719_s8 + $0x20] sm:$0xff] %v208_v4  ;;  %v216_v8 = vld [vmem:[%s1711_s7 + $0x80] sm:$0xff]  ;;  %v218_v9 = vld [vmem:[%s1711_s7 + $0x88] sm:$0xff] }
  0x16   : > { %211 = vst [vmem:[%s1719_s8 + $0x28] sm:$0xff] %v210_v5  ;;  %213 = vst [vmem:[%s1719_s8 + $0x30] sm:$0xff] %v212_v6  ;;  %v220_v10 = vld [vmem:[%s1711_s7 + $0x90] sm:$0xff]  ;;  %v222_v11 = vld [vmem:[%s1711_s7 + $0x98] sm:$0xff] }
  0x17   : > { %215 = vst [vmem:[%s1719_s8 + $0x38] sm:$0xff] %v214_v7  ;;  %217 = vst [vmem:[%s1719_s8 + $0x40] sm:$0xff] %v216_v8  ;;  %v224_v12 = vld [vmem:[%s1711_s7 + $0xc0] sm:$0xff]  ;;  %v226_v13 = vld [vmem:[%s1711_s7 + $0xc8] sm:$0xff] }
  0x18   : > { %219 = vst [vmem:[%s1719_s8 + $0x48] sm:$0xff] %v218_v9  ;;  %221 = vst [vmem:[%s1719_s8 + $0x50] sm:$0xff] %v220_v10  ;;  %v228_v14 = vld [vmem:[%s1711_s7 + $0xd0] sm:$0xff]  ;;  %v230_v15 = vld [vmem:[%s1711_s7 + $0xd8] sm:$0xff] }
  0x19   : > { %223 = vst [vmem:[%s1719_s8 + $0x58] sm:$0xff] %v222_v11  ;;  %225 = vst [vmem:[%s1719_s8 + $0x60] sm:$0xff] %v224_v12  ;;  %v232_v16 = vld [vmem:[%s1711_s7 + $0x100] sm:$0xff]  ;;  %v234_v17 = vld [vmem:[%s1711_s7 + $0x108] sm:$0xff] }
  0x1a   : > { %227 = vst [vmem:[%s1719_s8 + $0x68] sm:$0xff] %v226_v13  ;;  %229 = vst [vmem:[%s1719_s8 + $0x70] sm:$0xff] %v228_v14  ;;  %v236_v18 = vld [vmem:[%s1711_s7 + $0x110] sm:$0xff]  ;;  %v238_v19 = vld [vmem:[%s1711_s7 + $0x118] sm:$0xff] }
  0x1b   : > { %231 = vst [vmem:[%s1719_s8 + $0x78] sm:$0xff] %v230_v15  ;;  %233 = vst [vmem:[%s1719_s8 + $0x80] sm:$0xff] %v232_v16  ;;  %v240_v20 = vld [vmem:[%s1711_s7 + $0x140] sm:$0xff]  ;;  %v242_v21 = vld [vmem:[%s1711_s7 + $0x148] sm:$0xff] }
  0x1c   : > { %235 = vst [vmem:[%s1719_s8 + $0x88] sm:$0xff] %v234_v17  ;;  %237 = vst [vmem:[%s1719_s8 + $0x90] sm:$0xff] %v236_v18  ;;  %v244_v22 = vld [vmem:[%s1711_s7 + $0x150] sm:$0xff]  ;;  %v246_v23 = vld [vmem:[%s1711_s7 + $0x158] sm:$0xff] }
  0x1d   : > { %239 = vst [vmem:[%s1719_s8 + $0x98] sm:$0xff] %v238_v19  ;;  %241 = vst [vmem:[%s1719_s8 + $0xa0] sm:$0xff] %v240_v20  ;;  %v248_v24 = vld [vmem:[%s1711_s7 + $0x180] sm:$0xff]  ;;  %v250_v25 = vld [vmem:[%s1711_s7 + $0x188] sm:$0xff] }
  0x1e   : > { %243 = vst [vmem:[%s1719_s8 + $0xa8] sm:$0xff] %v242_v21  ;;  %245 = vst [vmem:[%s1719_s8 + $0xb0] sm:$0xff] %v244_v22  ;;  %v252_v26 = vld [vmem:[%s1711_s7 + $0x190] sm:$0xff]  ;;  %v254_v27 = vld [vmem:[%s1711_s7 + $0x198] sm:$0xff] }
  0x1f   : > { %247 = vst [vmem:[%s1719_s8 + $0xb8] sm:$0xff] %v246_v23  ;;  %249 = vst [vmem:[%s1719_s8 + $0xc0] sm:$0xff] %v248_v24  ;;  %v256_v28 = vld [vmem:[%s1711_s7 + $0x1c0] sm:$0xff]  ;;  %v258_v29 = vld [vmem:[%s1711_s7 + $0x1c8] sm:$0xff] }
  0x20   : > { %251 = vst [vmem:[%s1719_s8 + $0xc8] sm:$0xff] %v250_v25  ;;  %253 = vst [vmem:[%s1719_s8 + $0xd0] sm:$0xff] %v252_v26  ;;  %v260_v30 = vld [vmem:[%s1711_s7 + $0x1d0] sm:$0xff]  ;;  %v262_v31 = vld [vmem:[%s1711_s7 + $0x1d8] sm:$0xff] }
  0x21   : > { %255 = vst [vmem:[%s1719_s8 + $0xd8] sm:$0xff] %v254_v27  ;;  %257 = vst [vmem:[%s1719_s8 + $0xe0] sm:$0xff] %v256_v28  ;;  %v264_v32 = vld [vmem:[%s1711_s7 + $0x200] sm:$0xff]  ;;  %v266_v33 = vld [vmem:[%s1711_s7 + $0x208] sm:$0xff] }
  0x22   : > { %259 = vst [vmem:[%s1719_s8 + $0xe8] sm:$0xff] %v258_v29  ;;  %261 = vst [vmem:[%s1719_s8 + $0xf0] sm:$0xff] %v260_v30  ;;  %v268_v34 = vld [vmem:[%s1711_s7 + $0x210] sm:$0xff]  ;;  %v270_v35 = vld [vmem:[%s1711_s7 + $0x218] sm:$0xff] }
  0x23   : > { %263 = vst [vmem:[%s1719_s8 + $0xf8] sm:$0xff] %v262_v31  ;;  %265 = vst [vmem:[%s1719_s8 + $0x100] sm:$0xff] %v264_v32  ;;  %v272_v36 = vld [vmem:[%s1711_s7 + $0x240] sm:$0xff]  ;;  %v274_v37 = vld [vmem:[%s1711_s7 + $0x248] sm:$0xff] }
  0x24   : > { %267 = vst [vmem:[%s1719_s8 + $0x108] sm:$0xff] %v266_v33  ;;  %269 = vst [vmem:[%s1719_s8 + $0x110] sm:$0xff] %v268_v34  ;;  %v276_v38 = vld [vmem:[%s1711_s7 + $0x250] sm:$0xff]  ;;  %v278_v39 = vld [vmem:[%s1711_s7 + $0x258] sm:$0xff] }
  0x25   : > { %271 = vst [vmem:[%s1719_s8 + $0x118] sm:$0xff] %v270_v35  ;;  %273 = vst [vmem:[%s1719_s8 + $0x120] sm:$0xff] %v272_v36  ;;  %v280_v40 = vld [vmem:[%s1711_s7 + $0x280] sm:$0xff]  ;;  %v282_v41 = vld [vmem:[%s1711_s7 + $0x288] sm:$0xff] }
  0x26   : > { %275 = vst [vmem:[%s1719_s8 + $0x128] sm:$0xff] %v274_v37  ;;  %277 = vst [vmem:[%s1719_s8 + $0x130] sm:$0xff] %v276_v38  ;;  %v284_v42 = vld [vmem:[%s1711_s7 + $0x290] sm:$0xff]  ;;  %v286_v43 = vld [vmem:[%s1711_s7 + $0x298] sm:$0xff] }
  0x27   : > { %279 = vst [vmem:[%s1719_s8 + $0x138] sm:$0xff] %v278_v39  ;;  %281 = vst [vmem:[%s1719_s8 + $0x140] sm:$0xff] %v280_v40  ;;  %v288_v44 = vld [vmem:[%s1711_s7 + $0x2c0] sm:$0xff]  ;;  %v290_v45 = vld [vmem:[%s1711_s7 + $0x2c8] sm:$0xff] }
  0x28   : > { %283 = vst [vmem:[%s1719_s8 + $0x148] sm:$0xff] %v282_v41  ;;  %285 = vst [vmem:[%s1719_s8 + $0x150] sm:$0xff] %v284_v42  ;;  %v292_v46 = vld [vmem:[%s1711_s7 + $0x2d0] sm:$0xff]  ;;  %v294_v47 = vld [vmem:[%s1711_s7 + $0x2d8] sm:$0xff] }
  0x29   : > { %287 = vst [vmem:[%s1719_s8 + $0x158] sm:$0xff] %v286_v43  ;;  %289 = vst [vmem:[%s1719_s8 + $0x160] sm:$0xff] %v288_v44  ;;  %v296_v48 = vld [vmem:[%s1711_s7 + $0x300] sm:$0xff]  ;;  %v298_v49 = vld [vmem:[%s1711_s7 + $0x308] sm:$0xff] }
  0x2a   : > { %291 = vst [vmem:[%s1719_s8 + $0x168] sm:$0xff] %v290_v45  ;;  %293 = vst [vmem:[%s1719_s8 + $0x170] sm:$0xff] %v292_v46  ;;  %v300_v50 = vld [vmem:[%s1711_s7 + $0x310] sm:$0xff]  ;;  %v302_v51 = vld [vmem:[%s1711_s7 + $0x318] sm:$0xff] }
  0x2b   : > { %295 = vst [vmem:[%s1719_s8 + $0x178] sm:$0xff] %v294_v47  ;;  %297 = vst [vmem:[%s1719_s8 + $0x180] sm:$0xff] %v296_v48  ;;  %v304_v52 = vld [vmem:[%s1711_s7 + $0x340] sm:$0xff]  ;;  %v306_v53 = vld [vmem:[%s1711_s7 + $0x348] sm:$0xff] }
  0x2c   : > { %299 = vst [vmem:[%s1719_s8 + $0x188] sm:$0xff] %v298_v49  ;;  %301 = vst [vmem:[%s1719_s8 + $0x190] sm:$0xff] %v300_v50  ;;  %v308_v54 = vld [vmem:[%s1711_s7 + $0x350] sm:$0xff]  ;;  %v310_v55 = vld [vmem:[%s1711_s7 + $0x358] sm:$0xff] }
  0x2d   : > { %303 = vst [vmem:[%s1719_s8 + $0x198] sm:$0xff] %v302_v51  ;;  %305 = vst [vmem:[%s1719_s8 + $0x1a0] sm:$0xff] %v304_v52  ;;  %v312_v56 = vld [vmem:[%s1711_s7 + $0x380] sm:$0xff]  ;;  %v314_v57 = vld [vmem:[%s1711_s7 + $0x388] sm:$0xff] }
  0x2e   : > { %307 = vst [vmem:[%s1719_s8 + $0x1a8] sm:$0xff] %v306_v53  ;;  %309 = vst [vmem:[%s1719_s8 + $0x1b0] sm:$0xff] %v308_v54  ;;  %v316_v58 = vld [vmem:[%s1711_s7 + $0x390] sm:$0xff]  ;;  %v318_v59 = vld [vmem:[%s1711_s7 + $0x398] sm:$0xff] }
  0x2f   : > { %311 = vst [vmem:[%s1719_s8 + $0x1b8] sm:$0xff] %v310_v55  ;;  %313 = vst [vmem:[%s1719_s8 + $0x1c0] sm:$0xff] %v312_v56  ;;  %v320_v60 = vld [vmem:[%s1711_s7 + $0x3c0] sm:$0xff]  ;;  %v322_v61 = vld [vmem:[%s1711_s7 + $0x3c8] sm:$0xff] }
  0x30   : > { %315 = vst [vmem:[%s1719_s8 + $0x1c8] sm:$0xff] %v314_v57  ;;  %317 = vst [vmem:[%s1719_s8 + $0x1d0] sm:$0xff] %v316_v58  ;;  %v324_v62 = vld [vmem:[%s1711_s7 + $0x3d0] sm:$0xff]  ;;  %v326_v63 = vld [vmem:[%s1711_s7 + $0x3d8] sm:$0xff] }
  0x31   : > { %319 = vst [vmem:[%s1719_s8 + $0x1d8] sm:$0xff] %v318_v59  ;;  %321 = vst [vmem:[%s1719_s8 + $0x1e0] sm:$0xff] %v320_v60  ;;  %v328_v0 = vld [vmem:[%s1711_s7 + $0x400] sm:$0xff]  ;;  %v330_v1 = vld [vmem:[%s1711_s7 + $0x408] sm:$0xff] }
  0x32   : > { %323 = vst [vmem:[%s1719_s8 + $0x1e8] sm:$0xff] %v322_v61  ;;  %325 = vst [vmem:[%s1719_s8 + $0x1f0] sm:$0xff] %v324_v62  ;;  %v332_v2 = vld [vmem:[%s1711_s7 + $0x410] sm:$0xff]  ;;  %v334_v3 = vld [vmem:[%s1711_s7 + $0x418] sm:$0xff] }
  0x33   : > { %327 = vst [vmem:[%s1719_s8 + $0x1f8] sm:$0xff] %v326_v63  ;;  %329 = vst [vmem:[%s1719_s8 + $0x200] sm:$0xff] %v328_v0  ;;  %v336_v4 = vld [vmem:[%s1711_s7 + $0x440] sm:$0xff]  ;;  %v338_v5 = vld [vmem:[%s1711_s7 + $0x448] sm:$0xff] }
  0x34   : > { %331 = vst [vmem:[%s1719_s8 + $0x208] sm:$0xff] %v330_v1  ;;  %333 = vst [vmem:[%s1719_s8 + $0x210] sm:$0xff] %v332_v2  ;;  %v340_v6 = vld [vmem:[%s1711_s7 + $0x450] sm:$0xff]  ;;  %v342_v7 = vld [vmem:[%s1711_s7 + $0x458] sm:$0xff] }
  0x35   : > { %335 = vst [vmem:[%s1719_s8 + $0x218] sm:$0xff] %v334_v3  ;;  %337 = vst [vmem:[%s1719_s8 + $0x220] sm:$0xff] %v336_v4 }
  0x36   : > { %339 = vst [vmem:[%s1719_s8 + $0x228] sm:$0xff] %v338_v5  ;;  %341 = vst [vmem:[%s1719_s8 + $0x230] sm:$0xff] %v340_v6 }
  0x37   : > { %343 = vst [vmem:[%s1719_s8 + $0x238] sm:$0xff] %v342_v7 }
  0x38 PF: > { %p1456_p7 = scmp.ge.s32.totalorder %s1638_s20, 1  ;;  %p348_p8 = scmp.lt.s32.totalorder %s1638_s20, 3 }
  0x3a   : > { %p349_p9 = pnand %p1456_p7, %p348_p8 }
  0x3b   : > { %s355_s9 = sand.u32 (!%p349_p9), 1, %s1630_s18  }
  0x3c   : > { %352 = sbr.rel (%p349_p9) target bundleno = 369 (0x171), region = 59 }
  0x3d   : > { %s1582_s12 = smul.u32 (!%p349_p9), 576, %s355_s9 }
  0x3f   : > { %s1879_s17 = scalar_lea.vmem (!%p349_p9), [#allocation2], %s1582_s12 }
  0x41   : > { %v1865_v8 = vld [vmem:[%s2195_s1 + $0x4] ss:$8 sps:$4 sm:$0xff]   ;;  %vm862_vm0 = vcmask 130048   ;;  %v1640_v10 = vmov 0   ;;  %v462_v11 = vld [vmem:[%s2196_s2 + $0x10] sm:$0xff]  ;;  %v463_v32 = vld [vmem:[%s2196_s2 + $0x18] sm:$0xff] }
  0x42   : > { %1534 = vmatprep.mubr.msk.bf16.mxu0 %vm862_vm0, %v1865_v8  ;;  %1536 = vmatprep.mubr.msk.bf16.mxu1 %vm862_vm0, %v1865_v8  ;;  %v460_v9 = vld [vmem:[%s2196_s2] sm:$0xff]  ;;  %v445_v14 = vld [vmem:[%s1879_s17 + $0x1c8] sm:$0xff] }
  0x43   : > { %1608 = vset.pattern.permute.xlu0 %v1640_v10  ;;  %1609 = vset.pattern.permute.xlu1 %v1640_v10  ;;  %v444_v12 = vld [vmem:[%s1879_s17 + $0x1c0] sm:$0xff]  ;;  %v449_v16 = vld [vmem:[%s1879_s17 + $0x1e8] sm:$0xff] }
  0x44   : > { %v448_v13 = vld [vmem:[%s1879_s17 + $0x1e0] sm:$0xff]  ;;  %466 = vperm.xlu0 %1608, %v460_v9   ;;  %476 = vperm.xlu1 %1609, %v462_v11   ;;  %v1521_v20 = vcombine.high %v445_v14, %v449_v16  ;;  %v1520_v21 = vcombine.low %v445_v14, %v449_v16  ;;  %v437_v23 = vld [vmem:[%s1879_s17 + $0x188] sm:$0xff] }
  0x45   : > { %v1519_v15 = vcombine.high %v444_v12, %v448_v13  ;;  %v1518_v17 = vcombine.low %v444_v12, %v448_v13  ;;  %v436_v18 = vld [vmem:[%s1879_s17 + $0x180] sm:$0xff]  ;;  %v441_v24 = vld [vmem:[%s1879_s17 + $0x1a8] sm:$0xff] }
  0x46   : > { %v440_v19 = vld [vmem:[%s1879_s17 + $0x1a0] sm:$0xff]  ;;  %v1513_v26 = vcombine.high %v437_v23, %v441_v24  ;;  %v429_v28 = vld [vmem:[%s1879_s17 + $0x148] sm:$0xff]  ;;  %922 = vmatprep.subr.bf16.mxu1 %v1521_v20  ;;  %v1512_v33 = vcombine.low %v437_v23, %v441_v24 }
  0x47   : > { %v1511_v22 = vcombine.high %v436_v18, %v440_v19  ;;  %v428_v25 = vld [vmem:[%s1879_s17 + $0x140] sm:$0xff]  ;;  %869 = vmatprep.subr.bf16.mxu0 %v1519_v15  ;;  %v433_v29 = vld [vmem:[%s1879_s17 + $0x168] sm:$0xff]  ;;  %v1510_v30 = vcombine.low %v436_v18, %v440_v19  ;;  %923 = vmatpush1.bf16.msra.mxu1 %v1520_v21  ;;  %v1083_v19 = vld [vmem:[%s2197_s3 + $0x10] sm:$0xff] }
  0x48   : > { %v432_v27 = vld [vmem:[%s1879_s17 + $0x160] sm:$0xff]  ;;  %870 = vmatpush1.bf16.msra.mxu0 %v1518_v17  ;;  %v461_v31 = vld [vmem:[%s2196_s2 + $0x8] sm:$0xff]  ;;  %924 = vmatprep.subr.bf16.mxu1 %v1513_v26  ;;  %v1505_v35 = vcombine.high %v429_v28, %v433_v29  ;;  %v1504_v41 = vcombine.low %v429_v28, %v433_v29  ;;  %v1084_v21 = vld [vmem:[%s2197_s3 + $0x18] sm:$0xff] }
  0x49   : > { %871 = vmatprep.subr.bf16.mxu0 %v1511_v22  ;;  %v1503_v34 = vcombine.high %v428_v25, %v432_v27  ;;  %v420_v36 = vld [vmem:[%s1879_s17 + $0x100] sm:$0xff]  ;;  %v421_v38 = vld [vmem:[%s1879_s17 + $0x108] sm:$0xff]  ;;  %471 = vperm.xlu0 %1608, %v461_v31   ;;  %v1502_v40 = vcombine.low %v428_v25, %v432_v27  ;;  %v446_v25 = vld [vmem:[%s1879_s17 + $0x1d0] sm:$0xff] }
  0x4a   : > { %v424_v37 = vld [vmem:[%s1879_s17 + $0x120] sm:$0xff]  ;;  %v425_v39 = vld [vmem:[%s1879_s17 + $0x128] sm:$0xff]  ;;  %481 = vperm.xlu1 %1609, %v463_v32   ;;  %v450_v26 = vld [vmem:[%s1879_s17 + $0x1f0] sm:$0xff] }
  0x4b   : > { %925 = vmatpush1.bf16.msra.mxu1 %v1512_v33  ;;  %v1495_v42 = vcombine.high %v420_v36, %v424_v37  ;;  %v1497_v43 = vcombine.high %v421_v38, %v425_v39  ;;  %v412_v44 = vld [vmem:[%s1879_s17 + $0xc0] sm:$0xff]  ;;  %v413_v46 = vld [vmem:[%s1879_s17 + $0xc8] sm:$0xff]  ;;  %v1494_v48 = vcombine.low %v420_v36, %v424_v37  ;;  %v1496_v49 = vcombine.low %v421_v38, %v425_v39  ;;  %v447_v27 = vld [vmem:[%s1879_s17 + $0x1d8] sm:$0xff] }
  0x4c   : > { %872 = vmatpush1.bf16.msra.mxu0 %v1510_v30  ;;  %926 = vmatprep.subr.bf16.mxu1 %v1505_v35  ;;  %v416_v45 = vld [vmem:[%s1879_s17 + $0xe0] sm:$0xff]  ;;  %v417_v47 = vld [vmem:[%s1879_s17 + $0xe8] sm:$0xff]  ;;  %v451_v28 = vld [vmem:[%s1879_s17 + $0x1f8] sm:$0xff]  ;;  %v1523_v33 = vcombine.high %v446_v25, %v450_v26 }
  0x4d   : > { %873 = vmatprep.subr.bf16.mxu0 %v1503_v34  ;;  %v1487_v50 = vcombine.high %v412_v44, %v416_v45  ;;  %v1489_v51 = vcombine.high %v413_v46, %v417_v47  ;;  %v404_v52 = vld [vmem:[%s1879_s17 + $0x80] sm:$0xff]  ;;  %v405_v54 = vld [vmem:[%s1879_s17 + $0x88] sm:$0xff]  ;;  %v1486_v56 = vcombine.low %v412_v44, %v416_v45  ;;  %v1488_v57 = vcombine.low %v413_v46, %v417_v47  ;;  %v438_v36 = vld [vmem:[%s1879_s17 + $0x190] sm:$0xff] }
  0x4e   : > { %v408_v53 = vld [vmem:[%s1879_s17 + $0xa0] sm:$0xff]  ;;  %v409_v55 = vld [vmem:[%s1879_s17 + $0xa8] sm:$0xff]  ;;  %v1525_v35 = vcombine.high %v447_v27, %v451_v28  ;;  %v442_v37 = vld [vmem:[%s1879_s17 + $0x1b0] sm:$0xff] }
  0x4f   : > { %927 = vmatpush1.bf16.msra.mxu1 %v1504_v41  ;;  %v1479_v58 = vcombine.high %v404_v52, %v408_v53  ;;  %v1481_v59 = vcombine.high %v405_v54, %v409_v55  ;;  %v396_v60 = vld [vmem:[%s1879_s17 + $0x40] sm:$0xff]  ;;  %v397_v62 = vld [vmem:[%s1879_s17 + $0x48] sm:$0xff]  ;;  %v1478_v0 = vcombine.low %v404_v52, %v408_v53  ;;  %v1480_v1 = vcombine.low %v405_v54, %v409_v55  ;;  %v439_v38 = vld [vmem:[%s1879_s17 + $0x198] sm:$0xff] }
  0x50   : > { %874 = vmatpush1.bf16.msra.mxu0 %v1502_v40  ;;  %928 = vmatprep.subr.bf16.mxu1 %v1497_v43  ;;  %v400_v61 = vld [vmem:[%s1879_s17 + $0x60] sm:$0xff]  ;;  %v401_v63 = vld [vmem:[%s1879_s17 + $0x68] sm:$0xff]  ;;  %v443_v39 = vld [vmem:[%s1879_s17 + $0x1b8] sm:$0xff]  ;;  %v1522_v41 = vcombine.low %v446_v25, %v450_v26  ;;  %v1524_v43 = vcombine.low %v447_v27, %v451_v28  ;;  %v1515_v44 = vcombine.high %v438_v36, %v442_v37 }
  0x51   : > { %875 = vmatprep.subr.bf16.mxu0 %v1495_v42  ;;  %v1471_v2 = vcombine.high %v396_v60, %v400_v61  ;;  %v1473_v3 = vcombine.high %v397_v62, %v401_v63  ;;  %v388_v4 = vld [vmem:[%s1879_s17] sm:$0xff]  ;;  %v389_v6 = vld [vmem:[%s1879_s17 + $0x8] sm:$0xff]  ;;  %v1470_v9 = vcombine.low %v396_v60, %v400_v61  ;;  %v1472_v12 = vcombine.low %v397_v62, %v401_v63  ;;  %v1139_v40 = vld [vmem:[%s2198_s4 + $0x10] sm:$0xff] }
  0x52   : > { %v392_v5 = vld [vmem:[%s1879_s17 + $0x20] sm:$0xff]  ;;  %v393_v7 = vld [vmem:[%s1879_s17 + $0x28] sm:$0xff]  ;;  %v1140_v42 = vld [vmem:[%s2198_s4 + $0x18] sm:$0xff]  ;;  %v1517_v45 = vcombine.high %v439_v38, %v443_v39  ;;  %v1516_v52 = vcombine.low %v439_v38, %v443_v39 }
  0x53   : > { %929 = vmatpush1.bf16.msra.mxu1 %v1496_v49  ;;  %v1081_v10 = vld [vmem:[%s2197_s3] sm:$0xff]  ;;  %v1082_v11 = vld [vmem:[%s2197_s3 + $0x8] sm:$0xff]  ;;  %v1463_v13 = vcombine.high %v388_v4, %v392_v5  ;;  %v1465_v14 = vcombine.high %v389_v6, %v393_v7  ;;  %v1462_v20 = vcombine.low %v388_v4, %v392_v5  ;;  %v1464_v22 = vcombine.low %v389_v6, %v393_v7  ;;  %v430_v46 = vld [vmem:[%s1879_s17 + $0x150] sm:$0xff] }
  0x54   : > { %876 = vmatpush1.bf16.msra.mxu0 %v1494_v48  ;;  %930 = vmatprep.subr.bf16.mxu1 %v1489_v51  ;;  %v452_v15 = vld [vmem:[%s1879_s17 + $0x200] sm:$0xff]  ;;  %v453_v17 = vld [vmem:[%s1879_s17 + $0x208] sm:$0xff]  ;;  %v434_v47 = vld [vmem:[%s1879_s17 + $0x170] sm:$0xff]  ;;  %v1514_v51 = vcombine.low %v438_v36, %v442_v37 }
  0x55   : > { %877 = vmatprep.subr.bf16.mxu0 %v1487_v50  ;;  %v456_v16 = vld [vmem:[%s1879_s17 + $0x220] sm:$0xff]  ;;  %1087 = vperm.xlu0 %1608, %v1081_v10   ;;  %v457_v18 = vld [vmem:[%s1879_s17 + $0x228] sm:$0xff]  ;;  %v1965_v48 = vld [vmem:[%s2195_s1 + $0x14] ss:$8 sps:$4 sm:$0xff]   ;;  %v1507_v53 = vcombine.high %v430_v46, %v434_v47  ;;  %v1506_v60 = vcombine.low %v430_v46, %v434_v47 }
  0x56   : > { %1092 = vperm.xlu1 %1609, %v1082_v11   ;;  %v1527_v23 = vcombine.high %v452_v15, %v456_v16  ;;  %v1529_v24 = vcombine.high %v453_v17, %v457_v18  ;;  %v1137_v29 = vld [vmem:[%s2198_s4] sm:$0xff]  ;;  %v1526_v30 = vcombine.low %v452_v15, %v456_v16  ;;  %v1138_v31 = vld [vmem:[%s2198_s4 + $0x8] sm:$0xff]  ;;  %v1528_v32 = vcombine.low %v453_v17, %v457_v18  ;;  %v431_v49 = vld [vmem:[%s1879_s17 + $0x158] sm:$0xff] }
  0x57   : > { %931 = vmatpush1.bf16.msra.mxu1 %v1488_v57  ;;  %v1948_v34 = vld [vmem:[%s2195_s1] ss:$8 sps:$4 sm:$0xff]   ;;  %v435_v50 = vld [vmem:[%s1879_s17 + $0x178] sm:$0xff]  ;;  %v422_v55 = vld [vmem:[%s1879_s17 + $0x110] sm:$0xff] }
  0x58   : > { %878 = vmatpush1.bf16.msra.mxu0 %v1486_v56  ;;  %932 = vmatprep.subr.bf16.mxu1 %v1481_v59  ;;  %v1509_v54 = vcombine.high %v431_v49, %v435_v50  ;;  %v426_v56 = vld [vmem:[%s1879_s17 + $0x130] sm:$0xff]  ;;  %v423_v57 = vld [vmem:[%s1879_s17 + $0x118] sm:$0xff]  ;;  %v1508_v61 = vcombine.low %v431_v49, %v435_v50 }
  0x59   : > { %879 = vmatprep.subr.bf16.mxu0 %v1479_v58  ;;  %1097 = vperm.xlu0 %1608, %v1083_v19   ;;  %v427_v58 = vld [vmem:[%s1879_s17 + $0x138] sm:$0xff]  ;;  %v1499_v62 = vcombine.high %v422_v55, %v426_v56  ;;  %v1498_v4 = vcombine.low %v422_v55, %v426_v56  ;;  %v410_v10 = vld [vmem:[%s1879_s17 + $0xb0] sm:$0xff] }
  0x5a   : > { %1102 = vperm.xlu1 %1609, %v1084_v21   ;;  %v1982_v59 = vld [vmem:[%s2195_s1 + $0x10] ss:$8 sps:$4 sm:$0xff]   ;;  %v1501_v63 = vcombine.high %v423_v57, %v427_v58  ;;  %v1500_v5 = vcombine.low %v423_v57, %v427_v58 }
  0x5b   : > { %933 = vmatpush1.bf16.msra.mxu1 %v1480_v1  ;;  %v418_v1 = vld [vmem:[%s1879_s17 + $0xf0] sm:$0xff]  ;;  %v407_v11 = vld [vmem:[%s1879_s17 + $0x98] sm:$0xff] }
  0x5c   : > { %880 = vmatpush1.bf16.msra.mxu0 %v1478_v0  ;;  %934 = vmatprep.subr.bf16.mxu1 %v1473_v3  ;;  %v414_v0 = vld [vmem:[%s1879_s17 + $0xd0] sm:$0xff]  ;;  %v419_v3 = vld [vmem:[%s1879_s17 + $0xf8] sm:$0xff] }
  0x5d   : > { %881 = vmatprep.subr.bf16.mxu0 %v1471_v2  ;;  %1143 = vperm.xlu0 %1608, %v1137_v29   ;;  %v415_v2 = vld [vmem:[%s1879_s17 + $0xd8] sm:$0xff]  ;;  %v1491_v6 = vcombine.high %v414_v0, %v418_v1  ;;  %v398_v17 = vld [vmem:[%s1879_s17 + $0x50] sm:$0xff] }
  0x5e   : > { %1148 = vperm.xlu1 %1609, %v1138_v31   ;;  %v1493_v7 = vcombine.high %v415_v2, %v419_v3  ;;  %v402_v18 = vld [vmem:[%s1879_s17 + $0x70] sm:$0xff]  ;;  %v399_v19 = vld [vmem:[%s1879_s17 + $0x58] sm:$0xff] }
  0x5f   : > { %935 = vmatpush1.bf16.msra.mxu1 %v1472_v12  ;;  %v411_v12 = vld [vmem:[%s1879_s17 + $0xb8] sm:$0xff]  ;;  %v394_v25 = vld [vmem:[%s1879_s17 + $0x30] sm:$0xff]  ;;  %v1474_v28 = vcombine.low %v398_v17, %v402_v18 }
  0x60   : > { %882 = vmatpush1.bf16.msra.mxu0 %v1470_v9  ;;  %936 = vmatprep.subr.bf16.mxu1 %v1465_v14  ;;  %v406_v9 = vld [vmem:[%s1879_s17 + $0x90] sm:$0xff]  ;;  %v1492_v14 = vcombine.low %v415_v2, %v419_v3  ;;  %v1485_v16 = vcombine.high %v407_v11, %v411_v12  ;;  %v391_v26 = vld [vmem:[%s1879_s17 + $0x18] sm:$0xff] }
  0x61   : > { %883 = vmatprep.subr.bf16.mxu0 %v1463_v13  ;;  %1153 = vperm.xlu0 %1608, %v1139_v40   ;;  %v1490_v13 = vcombine.low %v414_v0, %v418_v1  ;;  %v1483_v15 = vcombine.high %v406_v9, %v410_v10  ;;  %v1482_v21 = vcombine.low %v406_v9, %v410_v10  ;;  %v395_v27 = vld [vmem:[%s1879_s17 + $0x38] sm:$0xff] }
  0x62   : > { %1158 = vperm.xlu1 %1609, %v1140_v42   ;;  %v1469_v31 = vcombine.high %v391_v26, %v395_v27  ;;  %v459_v36 = vld [vmem:[%s1879_s17 + $0x238] sm:$0xff]  ;;  %v1468_v38 = vcombine.low %v391_v26, %v395_v27 }
  0x63   : > { %937 = vmatpush1.bf16.msra.mxu1 %v1464_v22  ;;  %v1475_v22 = vcombine.high %v398_v17, %v402_v18 }
  0x64   : > { %884 = vmatpush1.bf16.msra.mxu0 %v1462_v20  ;;  %952 = vmatprep.subr.bf16.mxu1 %v1529_v24  ;;  %v403_v20 = vld [vmem:[%s1879_s17 + $0x78] sm:$0xff]  ;;  %v390_v24 = vld [vmem:[%s1879_s17 + $0x10] sm:$0xff] }
  0x65   : > { %899 = vmatprep.subr.bf16.mxu0 %v1527_v23  ;;  %v1477_v23 = vcombine.high %v399_v19, %v403_v20  ;;  %v1476_v29 = vcombine.low %v399_v19, %v403_v20  ;;  %v1466_v37 = vcombine.low %v390_v24, %v394_v25 }
  0x67   : > { %953 = vmatpush2.bf16.msra.mxu1 %v1528_v32  ;;  %v454_v32 = vld [vmem:[%s1879_s17 + $0x210] sm:$0xff] }
  0x68   : > { %900 = vmatpush2.bf16.msra.mxu0 %v1526_v30  ;;  %1028 = vmatprep.subr.bf16.mxu1 %v1525_v35  ;;  %v1467_v30 = vcombine.high %v390_v24, %v394_v25  ;;  %v455_v35 = vld [vmem:[%s1879_s17 + $0x218] sm:$0xff] }
  0x69   : > { %975 = vmatprep.subr.bf16.mxu0 %v1523_v33  ;;  %v458_v33 = vld [vmem:[%s1879_s17 + $0x230] sm:$0xff]  ;;  %v1533_v40 = vcombine.high %v455_v35, %v459_v36  ;;  %v1532_v42 = vcombine.low %v455_v35, %v459_v36  ;;  %s2053_s17 = sshll.u32 %s355_s9, 7  ;;  %s1580_s9 = sshll.u32 (%p1701_p5), %s1450_s21, 5 }
  0x6a   : > { %955 = vmatmul.mubr.bf16.vlgmr.msra.gmra.mxu1 %v1948_v34  ;;  %v1531_v39 = vcombine.high %v454_v32, %v458_v33  ;;  %s2073_s18 = scalar_lea.vmem [#allocation3], %s2053_s17  ;;  %s1346_s26 = scalar_lea.vmem (%p1701_p5), %s2199_s5, %s1580_s9 }
  0x6b   : > { %902 = vmatmul.mubr.bf16.vlgmr.msra.gmra.mxu0 %v1948_v34  ;;  %1029 = vmatpush1.bf16.msra.mxu1 %v1524_v43 }
  0x6c   : > { %976 = vmatpush1.bf16.msra.mxu0 %v1522_v41  ;;  %1030 = vmatprep.subr.bf16.mxu1 %v1517_v45  ;;  %v1530_v41 = vcombine.low %v454_v32, %v458_v33 }
  0x6d   : > { %977 = vmatprep.subr.bf16.mxu0 %v1515_v44  ;;  %1535 = vmatprep.mubr.msk.bf16.mxu0 %vm862_vm0, %v1965_v48 }
  0x6e   : > { %1537 = vmatprep.mubr.msk.bf16.mxu1 %vm862_vm0, %v1965_v48 }
  0x6f   : > { %1031 = vmatpush1.bf16.msra.mxu1 %v1516_v52 }
  0x70   : > { %978 = vmatpush1.bf16.msra.mxu0 %v1514_v51  ;;  %1032 = vmatprep.subr.bf16.mxu1 %v1509_v54 }
  0x71   : > { %979 = vmatprep.subr.bf16.mxu0 %v1507_v53 }
  0x72   : > { %965 = vmatmul.mubr.bf16.gmra.mxu1 %v1982_v59 }
  0x73   : > { %912 = vmatmul.mubr.bf16.gmra.mxu0 %v1982_v59  ;;  %1033 = vmatpush1.bf16.msra.mxu1 %v1508_v61 }
  0x74   : > { %980 = vmatpush1.bf16.msra.mxu0 %v1506_v60  ;;  %1034 = vmatprep.subr.bf16.mxu1 %v1501_v63 }
  0x75   : > { %981 = vmatprep.subr.bf16.mxu0 %v1499_v62  ;;  %1538 = vmatprep.mubr.msk.bf16.mxu0 %vm862_vm0, %v1865_v8 }
  0x76   : > { %1540 = vmatprep.mubr.msk.bf16.mxu1 %vm862_vm0, %v1865_v8  ;;  %v1484_v8 = vcombine.low %v407_v11, %v411_v12 }
  0x77   : > { %1035 = vmatpush1.bf16.msra.mxu1 %v1500_v5 }
  0x78   : > { %982 = vmatpush1.bf16.msra.mxu0 %v1498_v4  ;;  %1036 = vmatprep.subr.bf16.mxu1 %v1493_v7 }
  0x79   : > { %983 = vmatprep.subr.bf16.mxu0 %v1491_v6 }
  0x7b   : > { %1037 = vmatpush1.bf16.msra.mxu1 %v1492_v14 }
  0x7c   : > { %984 = vmatpush1.bf16.msra.mxu0 %v1490_v13  ;;  %1038 = vmatprep.subr.bf16.mxu1 %v1485_v16 }
  0x7d   : > { %985 = vmatprep.subr.bf16.mxu0 %v1483_v15 }
  0x7f   : > { %1039 = vmatpush1.bf16.msra.mxu1 %v1484_v8 }
  0x80   : > { %986 = vmatpush1.bf16.msra.mxu0 %v1482_v21  ;;  %1040 = vmatprep.subr.bf16.mxu1 %v1477_v23 }
  0x81   : > { %987 = vmatprep.subr.bf16.mxu0 %v1475_v22 }
  0x83   : > { %1041 = vmatpush1.bf16.msra.mxu1 %v1476_v29 }
  0x84   : > { %988 = vmatpush1.bf16.msra.mxu0 %v1474_v28  ;;  %1042 = vmatprep.subr.bf16.mxu1 %v1469_v31 }
  0x85   : > { %989 = vmatprep.subr.bf16.mxu0 %v1467_v30 }
  0x87   : > { %1043 = vmatpush1.bf16.msra.mxu1 %v1468_v38 }
  0x88   : > { %990 = vmatpush1.bf16.msra.mxu0 %v1466_v37  ;;  %1058 = vmatprep.subr.bf16.mxu1 %v1533_v40 }
  0x89   : > { %1005 = vmatprep.subr.bf16.mxu0 %v1531_v39 }
  0x8b   : > { %1059 = vmatpush2.bf16.msra.mxu1 %v1532_v42 }
  0x8c   : > { %1006 = vmatpush2.bf16.msra.mxu0 %v1530_v41 }
  0x8e   : > { %1061 = vmatmul.mubr.bf16.vlgmr.msra.gmra.mxu1 %v1948_v34 }
  0x8f   : > { %1008 = vmatmul.mubr.bf16.vlgmr.msra.gmra.mxu0 %v1948_v34  ;;  %1541 = vmatprep.mubr.msk.bf16.mxu1 %vm862_vm0, %v1965_v48 }
  0x90   : > { %1539 = vmatprep.mubr.msk.bf16.mxu0 %vm862_vm0, %v1965_v48 }
  0x96   : > { %1071 = vmatmul.mubr.bf16.gmra.mxu1 %v1982_v59 }
  0x97   : > { %1018 = vmatmul.mubr.bf16.gmra.mxu0 %v1982_v59 }
  0xbf   : > { %v2018_v43 = vpop.permute.xlu0 %466  ;;  %v2020_v44 = vpop.permute.xlu1 %476 }
  0xc4   : > { %v2022_v45 = vpop.permute.xlu0 %471 }
  0xc5   : > { %v2024_v46 = vpop.permute.xlu1 %481 }
  0xd0   : > { %v2026_v47 = vpop.permute.xlu0 %1087 }
  0xd1   : > { %v2028_v34 = vpop.permute.xlu1 %1092 }
  0xd4   : > { %v2030_v49 = vpop.permute.xlu0 %1097 }
  0xd5   : > { %v2032_v48 = vpop.permute.xlu1 %1102 }
  0xd8   : > { %v2036_v55 = vpop.permute.xlu0 %1143 }
  0xd9   : > { %v2048_v6 = vpop.permute.xlu1 %1148 }
  0xdc   : > { %v2068_v32 = vpop.permute.xlu0 %1153 }
 0x12a   : > { %v956_v52 = vpop.f32.mrf.mxu1 }
 0x12b   : > { %v903_v50 = vpop.f32.mrf.mxu0  ;;  %v957_v53 = vadd.f32 %v956_v52, %v2018_v43 }
 0x12c   : > { %v904_v51 = vadd.f32 %v903_v50, %v2018_v43  ;;  %v958_v58 = vpop.f32.mrf.mxu1 }
 0x12d   : > { %v905_v54 = vpop.f32.mrf.mxu0  ;;  %v1107_v59 = vmul.f32 %v2026_v47, %v957_v53  ;;  %v959_v60 = vadd.f32 %v958_v58, %v2018_v43 }
 0x12e   : > { %v1105_v56 = vmul.f32 %v2026_v47, %v904_v51  ;;  %v906_v57 = vadd.f32 %v905_v54, %v2018_v43  ;;  %v960_v0 = vpop.f32.mrf.mxu1  ;;  %v2081_v54 = vpop.permute.xlu1 %1158 }
 0x12f   : > { %v907_v61 = vpop.f32.mrf.mxu0  ;;  %v1108_v2 = vmul.f32 %v2026_v47, %v959_v60  ;;  %v961_v3 = vadd.f32 %v960_v0, %v2022_v45  ;;  %v1163_v4 = vadd.f32 %v2036_v55, %v1107_v59 }
 0x130   : > { %v1106_v62 = vmul.f32 %v2026_v47, %v906_v57  ;;  %v908_v63 = vadd.f32 %v907_v61, %v2022_v45  ;;  %v1161_v1 = vadd.f32 %v2036_v55, %v1105_v56  ;;  %v962_v12 = vpop.f32.mrf.mxu1 }
 0x131   : > { %v909_v5 = vpop.f32.mrf.mxu0  ;;  %v1115_v13 = vmul.f32 %v2028_v34, %v961_v3  ;;  %v1164_v14 = vadd.f32 %v2036_v55, %v1108_v2  ;;  %v1195_v15 = vmax.f32 %v1163_v4, 0.0  ;;  %v963_v16 = vadd.f32 %v962_v12, %v2022_v45 }
 0x132   : > { %v1113_v7 = vmul.f32 %v2028_v34, %v908_v63  ;;  %v1162_v9 = vadd.f32 %v2036_v55, %v1106_v62  ;;  %v1193_v10 = vmax.f32 %v1161_v1, 0.0  ;;  %v910_v11 = vadd.f32 %v909_v5, %v2022_v45  ;;  %v966_v8 = vpop.f32.mrf.mxu1 }
 0x133   : > { %v913_v17 = vpop.f32.mrf.mxu0  ;;  %v1196_v22 = vmax.f32 %v1164_v14, 0.0  ;;  %v1116_v23 = vmul.f32 %v2028_v34, %v963_v16  ;;  %v1171_v24 = vadd.f32 %v2048_v6, %v1115_v13  ;;  %v967_v25 = vadd.f32 %v966_v8, %v2020_v44 }
 0x134   : > { %v1194_v18 = vmax.f32 %v1162_v9, 0.0  ;;  %v1114_v19 = vmul.f32 %v2028_v34, %v910_v11  ;;  %v1169_v20 = vadd.f32 %v2048_v6, %v1113_v7  ;;  %v914_v21 = vadd.f32 %v913_v17, %v2020_v44  ;;  %v968_v31 = vpop.f32.mrf.mxu1 }
 0x135   : > { %v915_v26 = vpop.f32.mrf.mxu0  ;;  %v1565_v33 = vpack.c.bf16 %v1196_v22, %v1195_v15  ;;  %v1172_v35 = vadd.f32 %v2048_v6, %v1116_v23  ;;  %v1203_v36 = vmax.f32 %v1171_v24, 0.0  ;;  %v1123_v37 = vmul.f32 %v2030_v49, %v967_v25 }
 0x136   : > { %v1564_v27 = vpack.c.bf16 %v1194_v18, %v1193_v10  ;;  %v1170_v28 = vadd.f32 %v2048_v6, %v1114_v19  ;;  %v1201_v29 = vmax.f32 %v1169_v20, 0.0  ;;  %v1121_v30 = vmul.f32 %v2030_v49, %v914_v21  ;;  %v970_v50 = vpop.f32.mrf.mxu1 }
 0x137   : > { %v917_v38 = vpop.f32.mrf.mxu0  ;;  %v916_v40 = vadd.f32 %v915_v26, %v2020_v44  ;;  %v969_v41 = vadd.f32 %v968_v31, %v2020_v44  ;;  %1322 = vst [vmem:[%s2073_s18 + $0x8] sm:$0xff] %v1565_v33  ;;  %v1204_v51 = vmax.f32 %v1172_v35, 0.0  ;;  %v971_v52 = vadd.f32 %v970_v50, %v2024_v46 }
 0x138   : > { %1321 = vst [vmem:[%s2073_s18] sm:$0xff] %v1564_v27  ;;  %v1202_v39 = vmax.f32 %v1170_v28, 0.0  ;;  %v918_v42 = vadd.f32 %v917_v38, %v2024_v46  ;;  %v1177_v56 = vadd.f32 %v2068_v32, %v1121_v30  ;;  %v1179_v57 = vadd.f32 %v2068_v32, %v1123_v37  ;;  %v972_v62 = vpop.f32.mrf.mxu1 }
 0x139   : > { %v919_v53 = vpop.f32.mrf.mxu0  ;;  %v1122_v59 = vmul.f32 %v2030_v49, %v916_v40  ;;  %v1124_v60 = vmul.f32 %v2030_v49, %v969_v41  ;;  %v1569_v63 = vpack.c.bf16 %v1204_v51, %v1203_v36  ;;  %v1131_v0 = vmul.f32 %v2032_v48, %v971_v52 }
 0x13a   : > { %v1568_v58 = vpack.c.bf16 %v1202_v39, %v1201_v29  ;;  %v1129_v61 = vmul.f32 %v2032_v48, %v918_v42  ;;  %v920_v1 = vadd.f32 %v919_v53, %v2024_v46  ;;  %v973_v2 = vadd.f32 %v972_v62, %v2024_v46 }
 0x13b   : > { %v1178_v4 = vadd.f32 %v2068_v32, %v1122_v59  ;;  %v1180_v5 = vadd.f32 %v2068_v32, %v1124_v60  ;;  %v1209_v7 = vmax.f32 %v1177_v56, 0.0  ;;  %1326 = vst [vmem:[%s2073_s18 + $0x28] sm:$0xff] %v1569_v63  ;;  %v1187_v11 = vadd.f32 %v2081_v54, %v1131_v0 }
 0x13c   : > { %1325 = vst [vmem:[%s2073_s18 + $0x20] sm:$0xff] %v1568_v58  ;;  %v1185_v3 = vadd.f32 %v2081_v54, %v1129_v61  ;;  %v1130_v9 = vmul.f32 %v2032_v48, %v920_v1  ;;  %v1132_v10 = vmul.f32 %v2032_v48, %v973_v2  ;;  %v1211_v12 = vmax.f32 %v1179_v57, 0.0 }
 0x13d   : > { %v1210_v13 = vmax.f32 %v1178_v4, 0.0  ;;  %v1212_v14 = vmax.f32 %v1180_v5, 0.0  ;;  %v1219_v18 = vmax.f32 %v1187_v11, 0.0 }
 0x13e   : > { %v1186_v15 = vadd.f32 %v2081_v54, %v1130_v9  ;;  %v1188_v16 = vadd.f32 %v2081_v54, %v1132_v10  ;;  %v1217_v17 = vmax.f32 %v1185_v3, 0.0 }
 0x13f   : > { %v1572_v19 = vpack.c.bf16 %v1210_v13, %v1209_v7  ;;  %v1573_v20 = vpack.c.bf16 %v1212_v14, %v1211_v12 }
 0x140   : > { %v1218_v21 = vmax.f32 %v1186_v15, 0.0  ;;  %v1220_v8 = vmax.f32 %v1188_v16, 0.0 }
 0x141   : > { %1329 = vst [vmem:[%s2073_s18 + $0x40] sm:$0xff] %v1572_v19  ;;  %1330 = vst [vmem:[%s2073_s18 + $0x48] sm:$0xff] %v1573_v20 }
 0x142   : > { %v1576_v22 = vpack.c.bf16 %v1218_v21, %v1217_v17  ;;  %v1577_v23 = vpack.c.bf16 %v1220_v8, %v1219_v18 }
 0x144   : > { %1333 = vst [vmem:[%s2073_s18 + $0x60] sm:$0xff] %v1576_v22  ;;  %1334 = vst [vmem:[%s2073_s18 + $0x68] sm:$0xff] %v1577_v23 }
 0x14e   : > { %v1062_v26 = vpop.f32.mrf.mxu1 }
 0x14f   : > { %v1009_v24 = vpop.f32.mrf.mxu0  ;;  %v1063_v27 = vadd.f32 %v1062_v26, %v2018_v43 }
 0x150   : > { %v1010_v25 = vadd.f32 %v1009_v24, %v2018_v43  ;;  %v1064_v31 = vpop.f32.mrf.mxu1 }
 0x151   : > { %v1011_v28 = vpop.f32.mrf.mxu0  ;;  %v1111_v33 = vmul.f32 %v2026_v47, %v1063_v27  ;;  %v1065_v35 = vadd.f32 %v1064_v31, %v2018_v43 }
 0x152   : > { %v1109_v29 = vmul.f32 %v2026_v47, %v1010_v25  ;;  %v1012_v30 = vadd.f32 %v1011_v28, %v2018_v43  ;;  %v1066_v40 = vpop.f32.mrf.mxu1 }
 0x153   : > { %v1013_v36 = vpop.f32.mrf.mxu0  ;;  %v1167_v41 = vadd.f32 %v2036_v55, %v1111_v33  ;;  %v1112_v42 = vmul.f32 %v2026_v47, %v1065_v35  ;;  %v1067_v50 = vadd.f32 %v1066_v40, %v2022_v45 }
 0x154   : > { %v1165_v37 = vadd.f32 %v2036_v55, %v1109_v29  ;;  %v1110_v38 = vmul.f32 %v2026_v47, %v1012_v30  ;;  %v1014_v39 = vadd.f32 %v1013_v36, %v2022_v45  ;;  %v1068_v57 = vpop.f32.mrf.mxu1 }
 0x155   : > { %v1015_v51 = vpop.f32.mrf.mxu0  ;;  %v1199_v58 = vmax.f32 %v1167_v41, 0.0  ;;  %v1168_v59 = vadd.f32 %v2036_v55, %v1112_v42  ;;  %v1119_v60 = vmul.f32 %v2028_v34, %v1067_v50  ;;  %v1069_v61 = vadd.f32 %v1068_v57, %v2022_v45 }
 0x156   : > { %v1197_v52 = vmax.f32 %v1165_v37, 0.0  ;;  %v1166_v53 = vadd.f32 %v2036_v55, %v1110_v38  ;;  %v1117_v43 = vmul.f32 %v2028_v34, %v1014_v39  ;;  %v1016_v56 = vadd.f32 %v1015_v51, %v2022_v45  ;;  %v1072_v2 = vpop.f32.mrf.mxu1 }
 0x157   : > { %v1019_v62 = vpop.f32.mrf.mxu0  ;;  %v1200_v3 = vmax.f32 %v1168_v59, 0.0  ;;  %v1175_v4 = vadd.f32 %v2048_v6, %v1119_v60  ;;  %v1120_v5 = vmul.f32 %v2028_v34, %v1069_v61  ;;  %v1073_v55 = vadd.f32 %v1072_v2, %v2020_v44  ;;  %v1377_v2 = vld [vmem:[%s2073_s18 + $0x48] sm:$0xff] (%p1701_p5) }
 0x158   : > { %v1198_v47 = vmax.f32 %v1166_v53, 0.0  ;;  %v1173_v63 = vadd.f32 %v2048_v6, %v1117_v43  ;;  %v1118_v0 = vmul.f32 %v2028_v34, %v1016_v56  ;;  %v1020_v1 = vadd.f32 %v1019_v62, %v2020_v44  ;;  %v1074_v12 = vpop.f32.mrf.mxu1  ;;  %v1367_v62 = vld [vmem:[%s2073_s18 + $0x20] sm:$0xff] (%p1701_p5)  ;;  %1378 = vst [vmem:[%s1346_s26 + $0x88] sm:$0xff] (%p1701_p5), %v1377_v2 }
 0x159   : > { %v1021_v7 = vpop.f32.mrf.mxu0  ;;  %v1567_v13 = vpack.c.bf16 %v1200_v3, %v1199_v58  ;;  %v1207_v14 = vmax.f32 %v1175_v4, 0.0  ;;  %v1176_v15 = vadd.f32 %v2048_v6, %v1120_v5  ;;  %v1127_v16 = vmul.f32 %v2030_v49, %v1073_v55  ;;  %1368 = vst [vmem:[%s1346_s26 + $0x40] sm:$0xff] (%p1701_p5), %v1367_v62  ;;  %v1383_v5 = vld [vmem:[%s2073_s18 + $0x60] sm:$0xff] (%p1701_p5)  ;;  %v1385_v55 = vld [vmem:[%s2073_s18 + $0x68] sm:$0xff] (%p1701_p5) }
 0x15a   : > { %v1566_v9 = vpack.c.bf16 %v1198_v47, %v1197_v52  ;;  %v1205_v45 = vmax.f32 %v1173_v63, 0.0  ;;  %v1174_v10 = vadd.f32 %v2048_v6, %v1118_v0  ;;  %v1125_v11 = vmul.f32 %v2030_v49, %v1020_v1  ;;  %v1076_v21 = vpop.f32.mrf.mxu1  ;;  %v1369_v47 = vld [vmem:[%s2073_s18 + $0x28] sm:$0xff] (%p1701_p5)  ;;  %v1375_v1 = vld [vmem:[%s2073_s18 + $0x40] sm:$0xff] (%p1701_p5)  ;;  %1384 = vst [vmem:[%s1346_s26 + $0xc0] sm:$0xff] (%p1701_p5), %v1383_v5  ;;  %1386 = vst [vmem:[%s1346_s26 + $0xc8] sm:$0xff] (%p1701_p5), %v1385_v55 }
 0x15b   : > { %v1023_v17 = vpop.f32.mrf.mxu0  ;;  %v1022_v19 = vadd.f32 %v1021_v7, %v2020_v44  ;;  %v1075_v20 = vadd.f32 %v1074_v12, %v2020_v44  ;;  %1324 = vst [vmem:[%s2073_s18 + $0x18] sm:$0xff] %v1567_v13  ;;  %v1208_v8 = vmax.f32 %v1176_v15, 0.0  ;;  %v1183_v22 = vadd.f32 %v2068_v32, %v1127_v16  ;;  %1370 = vst [vmem:[%s1346_s26 + $0x48] sm:$0xff] (%p1701_p5), %v1369_v47 }
 0x15c   : > { %1323 = vst [vmem:[%s2073_s18 + $0x10] sm:$0xff] %v1566_v9  ;;  %v1206_v34 = vmax.f32 %v1174_v10, 0.0  ;;  %v1181_v18 = vadd.f32 %v2068_v32, %v1125_v11  ;;  %v1024_v6 = vadd.f32 %v1023_v17, %v2024_v46  ;;  %v1077_v23 = vadd.f32 %v1076_v21, %v2024_v46  ;;  %v1078_v28 = vpop.f32.mrf.mxu1  ;;  %1376 = vst [vmem:[%s1346_s26 + $0x80] sm:$0xff] (%p1701_p5), %v1375_v1 }
 0x15d   : > { %v1025_v24 = vpop.f32.mrf.mxu0  ;;  %v1126_v26 = vmul.f32 %v2030_v49, %v1022_v19  ;;  %v1128_v27 = vmul.f32 %v2030_v49, %v1075_v20  ;;  %v1571_v29 = vpack.c.bf16 %v1208_v8, %v1207_v14  ;;  %v1079_v36 = vadd.f32 %v1078_v28, %v2024_v46 }
 0x15e   : > { %v1570_v25 = vpack.c.bf16 %v1206_v34, %v1205_v45  ;;  %v1133_v44 = vmul.f32 %v2032_v48, %v1024_v6  ;;  %v1135_v30 = vmul.f32 %v2032_v48, %v1077_v23  ;;  %v1026_v35 = vadd.f32 %v1025_v24, %v2024_v46 }
 0x15f   : > { %v1182_v31 = vadd.f32 %v2068_v32, %v1126_v26  ;;  %v1184_v33 = vadd.f32 %v2068_v32, %v1128_v27  ;;  %1328 = vst [vmem:[%s2073_s18 + $0x38] sm:$0xff] %v1571_v29  ;;  %v1213_v37 = vmax.f32 %v1181_v18, 0.0  ;;  %v1215_v49 = vmax.f32 %v1183_v22, 0.0 }
 0x160   : > { %1327 = vst [vmem:[%s2073_s18 + $0x30] sm:$0xff] %v1570_v25  ;;  %v1189_v38 = vadd.f32 %v2081_v54, %v1133_v44  ;;  %v1191_v39 = vadd.f32 %v2081_v54, %v1135_v30  ;;  %v1134_v42 = vmul.f32 %v2032_v48, %v1026_v35  ;;  %v1136_v32 = vmul.f32 %v2032_v48, %v1079_v36  ;;  %v1359_v48 = vld [vmem:[%s2073_s18] sm:$0xff] (%p1701_p5) }
 0x161   : > { %v1214_v40 = vmax.f32 %v1182_v31, 0.0  ;;  %v1216_v41 = vmax.f32 %v1184_v33, 0.0  ;;  %1360 = vst [vmem:[%s1346_s26] sm:$0xff] (%p1701_p5), %v1359_v48 }
 0x162   : > { %v1190_v52 = vadd.f32 %v2081_v54, %v1134_v42  ;;  %v1192_v46 = vadd.f32 %v2081_v54, %v1136_v32  ;;  %v1221_v53 = vmax.f32 %v1189_v38, 0.0  ;;  %v1223_v43 = vmax.f32 %v1191_v39, 0.0  ;;  %v1361_v54 = vld [vmem:[%s2073_s18 + $0x8] sm:$0xff] (%p1701_p5)  ;;  %v1365_v61 = vld [vmem:[%s2073_s18 + $0x18] sm:$0xff] (%p1701_p5) }
 0x163   : > { %v1574_v50 = vpack.c.bf16 %v1214_v40, %v1213_v37  ;;  %v1575_v51 = vpack.c.bf16 %v1216_v41, %v1215_v49  ;;  %v1363_v60 = vld [vmem:[%s2073_s18 + $0x10] sm:$0xff] (%p1701_p5)  ;;  %1362 = vst [vmem:[%s1346_s26 + $0x8] sm:$0xff] (%p1701_p5), %v1361_v54  ;;  %1366 = vst [vmem:[%s1346_s26 + $0x18] sm:$0xff] (%p1701_p5), %v1365_v61 }
 0x164   : > { %v1222_v56 = vmax.f32 %v1190_v52, 0.0  ;;  %v1224_v57 = vmax.f32 %v1192_v46, 0.0  ;;  %1343 = sbr.rel (!%p1701_p5) target bundleno = 369 (0x171), region = 67  ;;  %1364 = vst [vmem:[%s1346_s26 + $0x10] sm:$0xff] (%p1701_p5), %v1363_v60 }
 0x165   : > { %1331 = vst [vmem:[%s2073_s18 + $0x50] sm:$0xff] %v1574_v50  ;;  %1332 = vst [vmem:[%s2073_s18 + $0x58] sm:$0xff] %v1575_v51 }
 0x166   : > { %v1578_v58 = vpack.c.bf16 %v1222_v56, %v1221_v53  ;;  %v1579_v59 = vpack.c.bf16 %v1224_v57, %v1223_v43  ;;  %v1373_v0 = vld [vmem:[%s2073_s18 + $0x38] sm:$0xff] (%p1701_p5) }
 0x167   : > { %v1371_v63 = vld [vmem:[%s2073_s18 + $0x30] sm:$0xff] (%p1701_p5)  ;;  %1374 = vst [vmem:[%s1346_s26 + $0x58] sm:$0xff] (%p1701_p5), %v1373_v0 }
 0x168   : > { %1335 = vst [vmem:[%s2073_s18 + $0x70] sm:$0xff] %v1578_v58  ;;  %1336 = vst [vmem:[%s2073_s18 + $0x78] sm:$0xff] %v1579_v59 }
 0x169   : > { %1372 = vst [vmem:[%s1346_s26 + $0x50] sm:$0xff] %v1371_v63 }
 0x16c   : > { %v1379_v3 = vld [vmem:[%s2073_s18 + $0x50] sm:$0xff]  ;;  %v1381_v4 = vld [vmem:[%s2073_s18 + $0x58] sm:$0xff] }
 0x16d   : > { %1380 = vst [vmem:[%s1346_s26 + $0x90] sm:$0xff] %v1379_v3  ;;  %1382 = vst [vmem:[%s1346_s26 + $0x98] sm:$0xff] %v1381_v4 }
 0x16f   : > { %v1387_v7 = vld [vmem:[%s2073_s18 + $0x70] sm:$0xff]  ;;  %v1389_v9 = vld [vmem:[%s2073_s18 + $0x78] sm:$0xff] }
 0x170   : > { %1388 = vst [vmem:[%s1346_s26 + $0xd0] sm:$0xff] %v1387_v7  ;;  %1390 = vst [vmem:[%s1346_s26 + $0xd8] sm:$0xff] %v1389_v9 }
 0x171 PF: > { %p12_p10 = scmp.ge.s32.totalorder %s1688_s22, 4   ;;  %s2201_s18 = smov %s1634_s19 }
 0x172   : > { %s2202_s19 = smov %s1699_s25  ;;  %s2203_s20 = smov %s1688_s22 }
 0x173   :  { %14 = sbr.rel (!%p12_p10) target bundleno = 2 (0x2), region = 121 }

// kernel: _lambda_.12
= control target key start
LH: loop header
LB: loop body
LE: loop exit
PB: predicated region body
PF: predicated region fallthrough
CT: control target
= control target key end

     0   :  { %s1652_s30 = smov 0   ;;  %s1654_s10 = smov 0   ;;  %s1991_s0 = inlined_call_operand.vmem [shape: bf16[288,512], index: 0, kind: input, shape index: {}]   ;;  %s1992_s1 = inlined_call_operand.vmem [shape: bf16[32,288], index: 1, kind: input, shape index: {}]   ;;  %s1993_s2 = inlined_call_operand.vmem [shape: f32[32,1], index: 2, kind: input, shape index: {}]   ;;  %s1994_s3 = inlined_call_operand.vmem [shape: bf16[32,16], index: 3, kind: input, shape index: {}]   ;;  %s1995_s4 = inlined_call_operand.vmem [shape: bf16[16,512], index: 4, kind: input, shape index: {}]   ;;  %s1996_s5 = inlined_call_operand.vmem [shape: f32[32,1], index: 5, kind: input, shape index: {}]   ;;  %s1997_s6 = inlined_call_operand.vmem [shape: f32[32,1], index: 6, kind: input, shape index: {}]   ;;  %s1998_s7 = inlined_call_operand.vmem [shape: f32[32,1], index: 7, kind: input, shape index: {}]   ;;  %s1999_s8 = inlined_call_operand.vmem [shape: f32[32,512], index: 8, kind: output, shape index: {0}]   ;;  %s2000_s9 = inlined_call_operand.vmem [shape: bf16[32,512], index: 9, kind: output, shape index: {1}]  }
   0x1   :  { %s1656_s11 = smov 0  }
   0x2 LB: > { %s1668_s12 = sadd.s32 4294967295, %s1599_s11   ;;  %s1671_s13 = sadd.s32 1, %s1599_s11   ;;  %s1599_s11 = sphi %s1656_s11, %s2005_s11   ;;  %s1595_s10 = sphi %s1654_s10, %s2004_s10   ;;  %s1591_s30 = sphi %s1652_s30, %s2003_s30  }
   0x3   : > { %s24_s14 = ssub.s32 %s1599_s11, %s1671_s13  ;;  %s27_s15 = sadd.s32 1, %s1595_s10 }
   0x4   : > { %p25_p0 = scmp.eq.s32.totalorder %s24_s14, 0  ;;  %p34_p1 = scmp.ne.s32.totalorder %s1595_s10, %s1591_s30 }
   0x5   : > { %p35_p2 = scmp.eq.s32.totalorder %s1599_s11, 0  ;;  %p216_p3 = scmp.eq.s32.totalorder %s1668_s12, 1 }
   0x6   : > { %s1681_s16 = scalar_select %p25_p0, %s1595_s10, %s27_s15  }
   0x7   : > { %p1683_p4 = por %p35_p2, %p34_p1  ;;  %p1687_p5 = por %p216_p3, %p34_p1 }
   0x8   : > { %p1401_p6 = scmp.ge.s32.totalorder %s1599_s11, 2 }
   0xa   : > { %282 = sbr.rel (%p1401_p6) target bundleno = 42 (0x2a), region = 40 }
   0xf   : > { %285 = sbr.rel (!%p1683_p4) target bundleno = 37 (0x25), region = 44  ;;  %s287_s19 = sand.u32 (%p1683_p4), 1, %s1595_s10  }
  0x10   : > { %s1473_s20 = sshll.u32 (%p1683_p4), %s1599_s11, 3  ;;  %s1481_s21 = smul.u32 (%p1683_p4), 288, %s287_s19 }
  0x11   : > { %s1699_s24 = scalar_lea.vmem (%p1683_p4), %s1991_s0, %s1473_s20 }
  0x12   : > { %v391_v0 = vld [vmem:[%s1699_s24] sm:$0xff] (%p1683_p4)  ;;  %v393_v1 = vld [vmem:[%s1699_s24 + $0x10] sm:$0xff] (%p1683_p4)  ;;  %s1707_s25 = scalar_lea.vmem (%p1683_p4), [#allocation2], %s1481_s21 }
  0x13   : > { %v395_v2 = vld [vmem:[%s1699_s24 + $0x20] sm:$0xff] (%p1683_p4)  ;;  %v397_v3 = vld [vmem:[%s1699_s24 + $0x30] sm:$0xff] (%p1683_p4)  ;;  %392 = vst [vmem:[%s1707_s25] sm:$0xff] (%p1683_p4), %v391_v0  ;;  %394 = vst [vmem:[%s1707_s25 + $0x8] sm:$0xff] (%p1683_p4), %v393_v1 }
  0x14   : > { %v399_v4 = vld [vmem:[%s1699_s24 + $0x40] sm:$0xff]  ;;  %v401_v5 = vld [vmem:[%s1699_s24 + $0x50] sm:$0xff]  ;;  %396 = vst [vmem:[%s1707_s25 + $0x10] sm:$0xff] %v395_v2  ;;  %398 = vst [vmem:[%s1707_s25 + $0x18] sm:$0xff] %v397_v3 }
  0x15   : > { %400 = vst [vmem:[%s1707_s25 + $0x20] sm:$0xff] %v399_v4  ;;  %402 = vst [vmem:[%s1707_s25 + $0x28] sm:$0xff] %v401_v5  ;;  %v403_v6 = vld [vmem:[%s1699_s24 + $0x60] sm:$0xff]  ;;  %v405_v7 = vld [vmem:[%s1699_s24 + $0x70] sm:$0xff] }
  0x16   : > { %v407_v8 = vld [vmem:[%s1699_s24 + $0x80] sm:$0xff]  ;;  %404 = vst [vmem:[%s1707_s25 + $0x30] sm:$0xff] %v403_v6  ;;  %406 = vst [vmem:[%s1707_s25 + $0x38] sm:$0xff] %v405_v7  ;;  %v409_v9 = vld [vmem:[%s1699_s24 + $0x90] sm:$0xff] }
  0x17   : > { %408 = vst [vmem:[%s1707_s25 + $0x40] sm:$0xff] %v407_v8  ;;  %v411_v10 = vld [vmem:[%s1699_s24 + $0xa0] sm:$0xff]  ;;  %v413_v11 = vld [vmem:[%s1699_s24 + $0xb0] sm:$0xff]  ;;  %410 = vst [vmem:[%s1707_s25 + $0x48] sm:$0xff] %v409_v9 }
  0x18   : > { %412 = vst [vmem:[%s1707_s25 + $0x50] sm:$0xff] %v411_v10  ;;  %414 = vst [vmem:[%s1707_s25 + $0x58] sm:$0xff] %v413_v11  ;;  %v415_v12 = vld [vmem:[%s1699_s24 + $0xc0] sm:$0xff]  ;;  %v417_v13 = vld [vmem:[%s1699_s24 + $0xd0] sm:$0xff] }
  0x19   : > { %v419_v14 = vld [vmem:[%s1699_s24 + $0xe0] sm:$0xff]  ;;  %416 = vst [vmem:[%s1707_s25 + $0x60] sm:$0xff] %v415_v12  ;;  %418 = vst [vmem:[%s1707_s25 + $0x68] sm:$0xff] %v417_v13  ;;  %v421_v15 = vld [vmem:[%s1699_s24 + $0xf0] sm:$0xff] }
  0x1a   : > { %420 = vst [vmem:[%s1707_s25 + $0x70] sm:$0xff] %v419_v14  ;;  %v423_v16 = vld [vmem:[%s1699_s24 + $0x100] sm:$0xff]  ;;  %v425_v17 = vld [vmem:[%s1699_s24 + $0x110] sm:$0xff]  ;;  %422 = vst [vmem:[%s1707_s25 + $0x78] sm:$0xff] %v421_v15 }
  0x1b   : > { %424 = vst [vmem:[%s1707_s25 + $0x80] sm:$0xff] %v423_v16  ;;  %426 = vst [vmem:[%s1707_s25 + $0x88] sm:$0xff] %v425_v17  ;;  %v427_v18 = vld [vmem:[%s1699_s24 + $0x120] sm:$0xff]  ;;  %v429_v19 = vld [vmem:[%s1699_s24 + $0x130] sm:$0xff] }
  0x1c   : > { %v431_v20 = vld [vmem:[%s1699_s24 + $0x140] sm:$0xff]  ;;  %428 = vst [vmem:[%s1707_s25 + $0x90] sm:$0xff] %v427_v18  ;;  %430 = vst [vmem:[%s1707_s25 + $0x98] sm:$0xff] %v429_v19  ;;  %v433_v21 = vld [vmem:[%s1699_s24 + $0x150] sm:$0xff] }
  0x1d   : > { %432 = vst [vmem:[%s1707_s25 + $0xa0] sm:$0xff] %v431_v20  ;;  %v435_v22 = vld [vmem:[%s1699_s24 + $0x160] sm:$0xff]  ;;  %v437_v23 = vld [vmem:[%s1699_s24 + $0x170] sm:$0xff]  ;;  %434 = vst [vmem:[%s1707_s25 + $0xa8] sm:$0xff] %v433_v21 }
  0x1e   : > { %436 = vst [vmem:[%s1707_s25 + $0xb0] sm:$0xff] %v435_v22  ;;  %438 = vst [vmem:[%s1707_s25 + $0xb8] sm:$0xff] %v437_v23  ;;  %v439_v24 = vld [vmem:[%s1699_s24 + $0x180] sm:$0xff]  ;;  %v441_v25 = vld [vmem:[%s1699_s24 + $0x190] sm:$0xff] }
  0x1f   : > { %v443_v26 = vld [vmem:[%s1699_s24 + $0x1a0] sm:$0xff]  ;;  %440 = vst [vmem:[%s1707_s25 + $0xc0] sm:$0xff] %v439_v24  ;;  %442 = vst [vmem:[%s1707_s25 + $0xc8] sm:$0xff] %v441_v25  ;;  %v445_v27 = vld [vmem:[%s1699_s24 + $0x1b0] sm:$0xff] }
  0x20   : > { %444 = vst [vmem:[%s1707_s25 + $0xd0] sm:$0xff] %v443_v26  ;;  %v447_v28 = vld [vmem:[%s1699_s24 + $0x1c0] sm:$0xff]  ;;  %v449_v29 = vld [vmem:[%s1699_s24 + $0x1d0] sm:$0xff]  ;;  %446 = vst [vmem:[%s1707_s25 + $0xd8] sm:$0xff] %v445_v27 }
  0x21   : > { %448 = vst [vmem:[%s1707_s25 + $0xe0] sm:$0xff] %v447_v28  ;;  %450 = vst [vmem:[%s1707_s25 + $0xe8] sm:$0xff] %v449_v29  ;;  %v451_v30 = vld [vmem:[%s1699_s24 + $0x1e0] sm:$0xff]  ;;  %v453_v31 = vld [vmem:[%s1699_s24 + $0x1f0] sm:$0xff] }
  0x22   : > { %v455_v32 = vld [vmem:[%s1699_s24 + $0x200] sm:$0xff]  ;;  %452 = vst [vmem:[%s1707_s25 + $0xf0] sm:$0xff] %v451_v30  ;;  %454 = vst [vmem:[%s1707_s25 + $0xf8] sm:$0xff] %v453_v31  ;;  %v457_v33 = vld [vmem:[%s1699_s24 + $0x210] sm:$0xff] }
  0x23   : > { %456 = vst [vmem:[%s1707_s25 + $0x100] sm:$0xff] %v455_v32  ;;  %v459_v34 = vld [vmem:[%s1699_s24 + $0x220] sm:$0xff]  ;;  %v461_v35 = vld [vmem:[%s1699_s24 + $0x230] sm:$0xff]  ;;  %458 = vst [vmem:[%s1707_s25 + $0x108] sm:$0xff] %v457_v33 }
  0x24   : > { %460 = vst [vmem:[%s1707_s25 + $0x110] sm:$0xff] %v459_v34  ;;  %462 = vst [vmem:[%s1707_s25 + $0x118] sm:$0xff] %v461_v35 }
  0x25 PF: > { %468 = sbr.rel (!%p1683_p4) target bundleno = 42 (0x2a), region = 82  ;;  %s470_s26 = sand.u32 (%p1683_p4), 1, %s1595_s10  }
  0x26   : > { %s1474_s27 = sshll.u32 (%p1683_p4), %s1599_s11, 3  ;;  %s1404_s28 = sshll.u32 (%p1683_p4), %s470_s26, 4 }
  0x27   : > { %s475_s15 = scalar_lea.vmem (%p1683_p4), %s1995_s4, %s1474_s27  ;;  %s472_s19 = scalar_lea.vmem (%p1683_p4), [#allocation3], %s1404_s28 }
  0x28   : > { %v506_v36 = vld [vmem:[%s475_s15] sm:$0xff] (%p1683_p4)  ;;  %v508_v37 = vld [vmem:[%s475_s15 + $0x10] sm:$0xff] (%p1683_p4) }
  0x29   : > { %507 = vst [vmem:[%s472_s19] sm:$0xff] (%p1683_p4), %v506_v36  ;;  %509 = vst [vmem:[%s472_s19 + $0x8] sm:$0xff] (%p1683_p4), %v508_v37 }
  0x2a PF: > { %p1407_p7 = scmp.ge.s32.totalorder %s1599_s11, 1  ;;  %p514_p8 = scmp.lt.s32.totalorder %s1599_s11, 3 }
  0x2c   : > { %p515_p9 = pnand %p1407_p7, %p514_p8 }
  0x2d   : > { %s1785_s17 = sand.u32 (!%p515_p9), 1, %s1591_s30  }
  0x2e   : > { %518 = sbr.rel (%p515_p9) target bundleno = 349 (0x15d), region = 120  ;;  %s1408_s21 = sshll.u32 (!%p515_p9), %s1785_s17, 4 }
  0x2f   : > { %s1482_s20 = smul.u32 (!%p515_p9), 288, %s1785_s17  ;;  %s1792_s22 = scalar_lea.vmem (!%p515_p9), [#allocation3], %s1408_s21 }
  0x30   : > { %s1410_s29 = sshll.u32 (!%p515_p9), %s1785_s17, 5 }
  0x31   : > { %s1794_s23 = scalar_lea.vmem (!%p515_p9), [#allocation2], %s1482_s20 }
  0x33   : > { %v1601_v38 = vmov 0   ;;  %v1510_v39 = vld [vmem:[%s1794_s23 + $0x74] ss:$8 sps:$4 sm:$0xff]   ;;  %v1512_v40 = vld [vmem:[%s1794_s23 + $0x70] ss:$8 sps:$4 sm:$0xff]   ;;  %vm853_vm0 = vcmask 261120  }
  0x34   : > { %945 = vmatprep.mubr.bf16.mxu1 %v1601_v38  ;;  %1509 = vset.pattern.permute.xlu1 %v1601_v38  ;;  %v1513_v41 = vld [vmem:[%s1794_s23 + $0x64] ss:$8 sps:$4 sm:$0xff]   ;;  %v1515_v42 = vld [vmem:[%s1794_s23 + $0x60] ss:$8 sps:$4 sm:$0xff]   ;;  %v1516_v43 = vld [vmem:[%s1794_s23 + $0x54] ss:$8 sps:$4 sm:$0xff]  }
  0x35   : > { %1508 = vset.pattern.permute.xlu0 %v1601_v38  ;;  %860 = vmatprep.subr.bf16.mxu0 %v1510_v39  ;;  %v1518_v44 = vld [vmem:[%s1794_s23 + $0x50] ss:$8 sps:$4 sm:$0xff]   ;;  %v1519_v45 = vld [vmem:[%s1794_s23 + $0x44] ss:$8 sps:$4 sm:$0xff]   ;;  %v1521_v46 = vld [vmem:[%s1794_s23 + $0x40] ss:$8 sps:$4 sm:$0xff]  }
  0x36   : > { %861 = vmatpush1.bf16.msra.mxu0 %v1512_v40  ;;  %v1522_v47 = vld [vmem:[%s1794_s23 + $0x34] ss:$8 sps:$4 sm:$0xff]   ;;  %v1542_v49 = vld [vmem:[%s1794_s23 + $0x110] ss:$8 sps:$4 sm:$0xff]   ;;  %v1525_v51 = vld [vmem:[%s1794_s23 + $0x24] ss:$8 sps:$4 sm:$0xff]  }
  0x37   : > { %862 = vmatprep.subr.bf16.mxu0 %v1513_v41  ;;  %v1540_v48 = vld [vmem:[%s1794_s23 + $0x114] ss:$8 sps:$4 sm:$0xff]   ;;  %v1524_v50 = vld [vmem:[%s1794_s23 + $0x30] ss:$8 sps:$4 sm:$0xff]   ;;  %v1546_v52 = vld [vmem:[%s1794_s23 + $0x104] ss:$8 sps:$4 sm:$0xff]  }
  0x38   : > { %925 = vmatprep.subr.bf16.mxu1 %v1540_v48  ;;  %v1548_v53 = vld [vmem:[%s1794_s23 + $0x100] ss:$8 sps:$4 sm:$0xff]   ;;  %v1528_v56 = vld [vmem:[%s1794_s23 + $0x14] ss:$8 sps:$4 sm:$0xff]   ;;  %v1530_v59 = vld [vmem:[%s1794_s23 + $0x10] ss:$8 sps:$4 sm:$0xff]  }
  0x39   : > { %926 = vmatpush1.bf16.msra.mxu1 %v1542_v49  ;;  %v1552_v54 = vld [vmem:[%s1992_s1 + $0x8] ss:$12 sps:$4 sm:$0xff]   ;;  %v1531_v60 = vld [vmem:[%s1794_s23 + $0x4] ss:$8 sps:$4 sm:$0xff]   ;;  %v1536_v3 = vld [vmem:[%s1794_s23 + $0xf0] ss:$8 sps:$4 sm:$0xff]  }
  0x3a   : > { %863 = vmatpush1.bf16.msra.mxu0 %v1515_v42  ;;  %927 = vmatprep.subr.bf16.mxu1 %v1546_v52  ;;  %v1527_v55 = vld [vmem:[%s1794_s23 + $0x20] ss:$8 sps:$4 sm:$0xff]   ;;  %v1558_v57 = vld [vmem:[%s1792_s22 + $0x4] ss:$8 sps:$4 sm:$0xff]   ;;  %vm992_vm1 = vcmask 130048   ;;  %s1479_s14 = sshll.u32 (%p1687_p5), %s1668_s12, 4 }
  0x3b   : > { %864 = vmatprep.subr.bf16.mxu0 %v1516_v43  ;;  %v1556_v58 = vld [vmem:[%s1792_s22] ss:$8 sps:$4 sm:$0xff]   ;;  %v1534_v63 = vld [vmem:[%s1794_s23 + $0xf4] ss:$8 sps:$4 sm:$0xff]   ;;  %v1537_v6 = vld [vmem:[%s1794_s23 + $0xe4] ss:$8 sps:$4 sm:$0xff]   ;;  %s1213_s20 = scalar_lea.vmem (%p1687_p5), %s1999_s8, %s1479_s14 }
  0x3c   : > { %v1572_v61 = vld [vmem:[%s1992_s1 + $0x4] ss:$12 sps:$4 sm:$0xff]   ;;  %v1533_v62 = vld [vmem:[%s1794_s23] ss:$8 sps:$4 sm:$0xff]   ;;  %v622_v4 = vld [vmem:[%s1993_s2 + $0x18] sm:$0xff] }
  0x3d   : > { %928 = vmatpush1.bf16.msra.mxu1 %v1548_v53  ;;  %v1562_v0 = vld [vmem:[%s1992_s1 + $0x20] ss:$12 sps:$4 sm:$0xff]   ;;  %892 = vmatprep.mubr.bf16.mxu0 %v1572_v61  ;;  %v621_v1 = vld [vmem:[%s1993_s2 + $0x10] sm:$0xff]  ;;  %v1063_v13 = vld [vmem:[%s1996_s5 + $0x18] sm:$0xff] }
  0x3e   : > { %865 = vmatpush1.bf16.msra.mxu0 %v1518_v44  ;;  %1013 = vmatprep.subr.bf16.mxu1 %v1558_v57  ;;  %v619_v2 = vld [vmem:[%s1993_s2] sm:$0xff]  ;;  %v620_v5 = vld [vmem:[%s1993_s2 + $0x8] sm:$0xff]  ;;  %v1543_v10 = vld [vmem:[%s1794_s23 + $0xd4] ss:$8 sps:$4 sm:$0xff]  }
  0x3f   : > { %866 = vmatprep.subr.bf16.mxu0 %v1519_v45  ;;  %635 = vperm.xlu1 %1509, %v621_v1   ;;  %v1539_v7 = vld [vmem:[%s1794_s23 + $0xe0] ss:$8 sps:$4 sm:$0xff]   ;;  %v1545_v12 = vld [vmem:[%s1794_s23 + $0xd0] ss:$8 sps:$4 sm:$0xff]   ;;  %v1549_v15 = vld [vmem:[%s1794_s23 + $0xc4] ss:$8 sps:$4 sm:$0xff]  }
  0x40   : > { %1453 = vmatmul.mubr.msk.bf16.vlgmr.msra.gmra.mxu1 %vm853_vm0, %v1552_v54  ;;  %625 = vperm.xlu0 %1508, %v619_v2   ;;  %v1061_v8 = vld [vmem:[%s1996_s5 + $0x8] sm:$0xff]  ;;  %v1060_v9 = vld [vmem:[%s1996_s5] sm:$0xff]  ;;  %v1062_v14 = vld [vmem:[%s1996_s5 + $0x10] sm:$0xff] }
  0x41   : > { %1014 = vmatpush1.bf16.msra.mxu1 %v1556_v58  ;;  %955 = vmatprep.mubr.bf16.mxu1 %v1601_v38  ;;  %v1569_v11 = vld [vmem:[%s1994_s3] sm:$0xff]   ;;  %v1093_v17 = vld [vmem:[%s1997_s6 + $0x8] sm:$0xff]  ;;  %v1553_v19 = vld [vmem:[%s1794_s23 + $0xb4] ss:$8 sps:$4 sm:$0xff]  }
  0x42   : > { %867 = vmatpush1.bf16.msra.mxu0 %v1521_v46  ;;  %v1551_v16 = vld [vmem:[%s1794_s23 + $0xc0] ss:$8 sps:$4 sm:$0xff]   ;;  %v1555_v21 = vld [vmem:[%s1794_s23 + $0xb0] ss:$8 sps:$4 sm:$0xff]   ;;  %v1559_v24 = vld [vmem:[%s1794_s23 + $0xa4] ss:$8 sps:$4 sm:$0xff]  }
  0x43   : > { %868 = vmatprep.subr.bf16.mxu0 %v1522_v47  ;;  %640 = vperm.xlu1 %1509, %v622_v4   ;;  %v1092_v18 = vld [vmem:[%s1997_s6] sm:$0xff]  ;;  %v1573_v20 = vld [vmem:[%s1994_s3 + $0x8] sm:$0xff]   ;;  %v1095_v22 = vld [vmem:[%s1997_s6 + $0x18] sm:$0xff] }
  0x44   : > { %630 = vperm.xlu0 %1508, %v620_v5   ;;  %v1094_v23 = vld [vmem:[%s1997_s6 + $0x10] sm:$0xff]  ;;  %v1561_v25 = vld [vmem:[%s1794_s23 + $0xa0] ss:$8 sps:$4 sm:$0xff]   ;;  %v1127_v30 = vld [vmem:[%s1998_s7 + $0x18] sm:$0xff] }
  0x45   : > { %v1125_v26 = vld [vmem:[%s1998_s7 + $0x8] sm:$0xff]  ;;  %v1124_v27 = vld [vmem:[%s1998_s7] sm:$0xff]  ;;  %v1563_v28 = vld [vmem:[%s1794_s23 + $0x94] ss:$8 sps:$4 sm:$0xff]  }
  0x46   : > { %869 = vmatpush1.bf16.msra.mxu0 %v1524_v50  ;;  %v1565_v29 = vld [vmem:[%s1794_s23 + $0x90] ss:$8 sps:$4 sm:$0xff]   ;;  %v1566_v32 = vld [vmem:[%s1794_s23 + $0x84] ss:$8 sps:$4 sm:$0xff]   ;;  %v1568_v33 = vld [vmem:[%s1794_s23 + $0x80] ss:$8 sps:$4 sm:$0xff]  }
  0x47   : > { %870 = vmatprep.subr.bf16.mxu0 %v1525_v51  ;;  %1071 = vperm.xlu1 %1509, %v1061_v8   ;;  %v1126_v31 = vld [vmem:[%s1998_s7 + $0x10] sm:$0xff]  ;;  %v1570_v34 = vld [vmem:[%s1992_s1] ss:$12 sps:$4 sm:$0xff]   ;;  %v1574_v35 = vld [vmem:[%s1992_s1 + $0x1c] ss:$12 sps:$4 sm:$0xff]   ;;  %s1409_s23 = sshll.u32 %s1785_s17, 6 }
  0x48   : > { %1454 = vmatmul.mubr.msk.bf16.gmra.mxu1 %vm853_vm0, %v1562_v0  ;;  %1066 = vperm.xlu0 %1508, %v1060_v9   ;;  %v1576_v36 = vld [vmem:[%s1992_s1 + $0x18] ss:$12 sps:$4 sm:$0xff]   ;;  %s1928_s28 = scalar_lea.vmem [#allocation4], %s1409_s23  ;;  %s1943_s17 = scalar_lea.vmem [#allocation5], %s1410_s29 }
  0x49   : > { %1031 = vmatprep.mubr.bf16.mxu1 %v1601_v38 }
  0x4a   : > { %871 = vmatpush1.bf16.msra.mxu0 %v1527_v55 }
  0x4b   : > { %872 = vmatprep.subr.bf16.mxu0 %v1528_v56  ;;  %1081 = vperm.xlu1 %1509, %v1063_v13  }
  0x4c   : > { %1076 = vperm.xlu0 %1508, %v1062_v14  }
  0x4e   : > { %873 = vmatpush1.bf16.msra.mxu0 %v1530_v59 }
  0x4f   : > { %874 = vmatprep.subr.bf16.mxu0 %v1531_v60  ;;  %1103 = vperm.xlu1 %1509, %v1093_v17  }
  0x50   : > { %1459 = vmatmul.mubr.msk.bf16.vlgmr.msra.gmra.mxu1 %vm992_vm1, %v1569_v11  ;;  %1098 = vperm.xlu0 %1508, %v1092_v18  }
  0x51   : > { %1041 = vmatprep.mubr.bf16.mxu1 %v1601_v38 }
  0x52   : > { %875 = vmatpush1.bf16.msra.mxu0 %v1533_v62 }
  0x53   : > { %876 = vmatprep.subr.bf16.mxu0 %v1534_v63  ;;  %1113 = vperm.xlu1 %1509, %v1095_v22  }
  0x54   : > { %1108 = vperm.xlu0 %1508, %v1094_v23  }
  0x56   : > { %877 = vmatpush2.bf16.msra.mxu0 %v1536_v3 }
  0x57   : > { %878 = vmatprep.subr.bf16.mxu0 %v1537_v6  ;;  %1135 = vperm.xlu1 %1509, %v1125_v26  }
  0x58   : > { %1460 = vmatmul.mubr.msk.bf16.gmra.mxu1 %vm992_vm1, %v1573_v20  ;;  %1130 = vperm.xlu0 %1508, %v1124_v27  }
  0x5a   : > { %879 = vmatpush2.bf16.msra.mxu0 %v1539_v7 }
  0x5b   : > { %880 = vmatprep.subr.bf16.mxu0 %v1543_v10  ;;  %1145 = vperm.xlu1 %1509, %v1127_v30  }
  0x5c   : > { %1140 = vperm.xlu0 %1508, %v1126_v31  }
  0x5e   : > { %881 = vmatpush2.bf16.msra.mxu0 %v1545_v12 }
  0x5f   : > { %882 = vmatprep.subr.bf16.mxu0 %v1549_v15 }
  0x62   : > { %883 = vmatpush2.bf16.msra.mxu0 %v1551_v16 }
  0x63   : > { %884 = vmatprep.subr.bf16.mxu0 %v1553_v19 }
  0x66   : > { %885 = vmatpush2.bf16.msra.mxu0 %v1555_v21 }
  0x67   : > { %886 = vmatprep.subr.bf16.mxu0 %v1559_v24 }
  0x6a   : > { %887 = vmatpush2.bf16.msra.mxu0 %v1561_v25 }
  0x6b   : > { %888 = vmatprep.subr.bf16.mxu0 %v1563_v28 }
  0x6e   : > { %889 = vmatpush2.bf16.msra.mxu0 %v1565_v29 }
  0x6f   : > { %890 = vmatprep.subr.bf16.mxu0 %v1566_v32 }
  0x72   : > { %891 = vmatpush2.bf16.msra.mxu0 %v1568_v33 }
  0x75   : > { %893 = vmatmul.mubr.bf16.vlgmr.msra.gmra.mxu0 %v1570_v34 }
  0x76   : > { %902 = vmatprep.mubr.bf16.mxu0 %v1574_v35 }
  0x7d   : > { %903 = vmatmul.mubr.bf16.gmra.mxu0 %v1576_v36 }
  0xba   : > { %v636_v43 = vpop.permute.xlu1 %635 }
  0xbb   : > { %v626_v41 = vpop.permute.xlu0 %625 }
  0xbe   : > { %v1915_v47 = vpop.permute.xlu1 %640 }
  0xbf   : > { %v631_v45 = vpop.permute.xlu0 %630 }
  0xc2   : > { %v1072_v50 = vpop.permute.xlu1 %1071 }
  0xc3   : > { %v1067_v48 = vpop.permute.xlu0 %1066 }
  0xc6   : > { %v1921_v54 = vpop.permute.xlu1 %1081 }
  0xc7   : > { %v1919_v52 = vpop.permute.xlu0 %1076 }
  0xca   : > { %v1104_v58 = vpop.permute.xlu1 %1103 }
  0xcb   : > { %v1099_v55 = vpop.permute.xlu0 %1098 }
  0xce   : > { %v1926_v7 = vpop.permute.xlu1 %1113 }
  0xcf   : > { %v1923_v62 = vpop.permute.xlu0 %1108 }
  0xd2   : > { %v1136_v28 = vpop.permute.xlu1 %1135 }
  0xd3   : > { %v1131_v13 = vpop.permute.xlu0 %1130 }
 0x100   : > { %v947_v37 = vpop.f32.mrf.mxu1 }
 0x102   : > { %v949_v38 = vpop.f32.mrf.mxu1 }
 0x104   : > { %v951_v39 = vpop.f32.mrf.mxu1 }
 0x106   : > { %v953_v40 = vpop.f32.mrf.mxu1 }
 0x108   : > { %v957_v42 = vpop.f32.mrf.mxu1 }
 0x10a   : > { %v959_v44 = vpop.f32.mrf.mxu1 }
 0x10c   : > { %v1913_v46 = vpop.f32.mrf.mxu1 }
 0x10e   : > { %v1917_v49 = vpop.f32.mrf.mxu1 }
 0x110   : > { %v1033_v51 = vpop.f32.mrf.mxu1 }
 0x112   : > { %v1035_v53 = vpop.f32.mrf.mxu1 }
 0x114   : > { %v1037_v56 = vpop.f32.mrf.mxu1 }
 0x116   : > { %v1039_v61 = vpop.f32.mrf.mxu1 }
 0x118   : > { %v1043_v6 = vpop.f32.mrf.mxu1 }
 0x11a   : > { %v1045_v19 = vpop.f32.mrf.mxu1 }
 0x11c   : > { %v1047_v35 = vpop.f32.mrf.mxu1 }
 0x135   : > { %v894_v57 = vpop.f32.mrf.mxu0 }
 0x136   : > { %v895_v59 = vadd.f32 %v894_v57, %v626_v41  ;;  %v1141_v57 = vpop.permute.xlu0 %1140 }
 0x137   : > { %v896_v60 = vpop.f32.mrf.mxu0 }
 0x138   : > { %v948_v63 = vadd.f32 %v947_v37, %v895_v59  ;;  %v897_v0 = vadd.f32 %v896_v60, %v626_v41 }
 0x139   : > { %v898_v1 = vpop.f32.mrf.mxu0 }
 0x13a   : > { %v1052_v2 = vadd.f32 %v1033_v51, %v948_v63  ;;  %v950_v3 = vadd.f32 %v949_v38, %v897_v0  ;;  %v899_v4 = vadd.f32 %v898_v1, %v631_v45  ;;  %v1146_v1 = vpop.permute.xlu1 %1145 }
 0x13b   : > { %v900_v5 = vpop.f32.mrf.mxu0 }
 0x13c   : > { %v1084_v8 = vadd.f32 %v1067_v48, %v1052_v2  ;;  %v1053_v9 = vadd.f32 %v1035_v53, %v950_v3  ;;  %v952_v10 = vadd.f32 %v951_v39, %v899_v4  ;;  %v901_v11 = vadd.f32 %v900_v5, %v631_v45 }
 0x13d   : > { %v904_v12 = vpop.f32.mrf.mxu0 }
 0x13e   : > { %v1116_v14 = vmul.f32 %v1099_v55, %v1084_v8  ;;  %1164 = vst [vmem:[%s1928_s28] sm:$0xff] %v1084_v8  ;;  %v1085_v15 = vadd.f32 %v1067_v48, %v1053_v9  ;;  %v1054_v16 = vadd.f32 %v1037_v56, %v952_v10  ;;  %v954_v17 = vadd.f32 %v953_v40, %v901_v11  ;;  %v1049_v56 = vpop.f32.mrf.mxu1 }
 0x13f   : > { %v905_v18 = vadd.f32 %v904_v12, %v636_v43  ;;  %v906_v20 = vpop.f32.mrf.mxu0 }
 0x140   : > { %v1148_v21 = vadd.f32 %v1131_v13, %v1116_v14  ;;  %v1117_v22 = vmul.f32 %v1099_v55, %v1085_v15  ;;  %1165 = vst [vmem:[%s1928_s28 + $0x8] sm:$0xff] %v1085_v15  ;;  %v1086_v23 = vadd.f32 %v1072_v50, %v1054_v16  ;;  %v1055_v24 = vadd.f32 %v1039_v61, %v954_v17 }
 0x141   : > { %v958_v25 = vadd.f32 %v957_v42, %v905_v18  ;;  %v907_v26 = vadd.f32 %v906_v20, %v636_v43  ;;  %v908_v27 = vpop.f32.mrf.mxu0 }
 0x142   : > { %v1149_v29 = vadd.f32 %v1131_v13, %v1117_v22  ;;  %v1118_v30 = vmul.f32 %v1104_v58, %v1086_v23  ;;  %1166 = vst [vmem:[%s1928_s28 + $0x10] sm:$0xff] %v1086_v23  ;;  %v1087_v31 = vadd.f32 %v1072_v50, %v1055_v24  ;;  %v1156_v32 = vmax.f32 %v1148_v21, 0.0 }
 0x143   : > { %v1056_v33 = vadd.f32 %v1043_v6, %v958_v25  ;;  %v960_v34 = vadd.f32 %v959_v44, %v907_v26  ;;  %v909_v36 = vadd.f32 %v908_v27, %v1915_v47  ;;  %v910_v37 = vpop.f32.mrf.mxu0 }
 0x144   : > { %v1157_v38 = vmax.f32 %v1149_v29, 0.0  ;;  %v1150_v39 = vadd.f32 %v1136_v28, %v1118_v30  ;;  %v1119_v40 = vmul.f32 %v1104_v58, %v1087_v31  ;;  %1167 = vst [vmem:[%s1928_s28 + $0x18] sm:$0xff] %v1087_v31  ;;  %v911_v41 = vadd.f32 %v910_v37, %v1915_v47 }
 0x145   : > { %v1088_v42 = vadd.f32 %v1919_v52, %v1056_v33  ;;  %v1057_v43 = vadd.f32 %v1045_v19, %v960_v34  ;;  %v962_v45 = vadd.f32 %v1913_v46, %v909_v36 }
 0x146   : > { %v1475_v48 = vpack.c.bf16 %v1157_v38, %v1156_v32  ;;  %v1151_v50 = vadd.f32 %v1136_v28, %v1119_v40  ;;  %v964_v44 = vadd.f32 %v1917_v49, %v911_v41  ;;  %v1158_v46 = vmax.f32 %v1150_v39, 0.0 }
 0x147   : > { %v1120_v51 = vmul.f32 %v1923_v62, %v1088_v42  ;;  %1168 = vst [vmem:[%s1928_s28 + $0x20] sm:$0xff] %v1088_v42  ;;  %v1089_v53 = vadd.f32 %v1919_v52, %v1057_v43  ;;  %v1058_v55 = vadd.f32 %v1047_v35, %v962_v45 }
 0x148   : > { %1196 = vst [vmem:[%s1943_s17] sm:$0xff] %v1475_v48  ;;  %v1159_v47 = vmax.f32 %v1151_v50, 0.0  ;;  %v1059_v58 = vadd.f32 %v1049_v56, %v964_v44 }
 0x149   : > { %v1152_v59 = vadd.f32 %v1141_v57, %v1120_v51  ;;  %v1121_v49 = vmul.f32 %v1923_v62, %v1089_v53  ;;  %1169 = vst [vmem:[%s1928_s28 + $0x28] sm:$0xff] %v1089_v53  ;;  %v1090_v60 = vadd.f32 %v1921_v54, %v1058_v55  ;;  %v1230_v11 = vld [vmem:[%s1928_s28 + $0x10] sm:$0xff] (%p1687_p5) }
 0x14a   : > { %v1476_v52 = vpack.c.bf16 %v1159_v47, %v1158_v46  ;;  %v1091_v61 = vadd.f32 %v1921_v54, %v1059_v58  ;;  %v1226_v54 = vld [vmem:[%s1928_s28] sm:$0xff] (%p1687_p5)  ;;  %1231 = vst [vmem:[%s1213_s20 + $0x20] sm:$0xff] (%p1687_p5), %v1230_v11 }
 0x14b   : > { %v1153_v63 = vadd.f32 %v1141_v57, %v1121_v49  ;;  %v1122_v0 = vmul.f32 %v1926_v7, %v1090_v60  ;;  %1170 = vst [vmem:[%s1928_s28 + $0x30] sm:$0xff] %v1090_v60  ;;  %v1160_v3 = vmax.f32 %v1152_v59, 0.0  ;;  %v1232_v12 = vld [vmem:[%s1928_s28 + $0x18] sm:$0xff] (%p1687_p5)  ;;  %1227 = vst [vmem:[%s1213_s20] sm:$0xff] (%p1687_p5), %v1226_v54 }
 0x14c   : > { %1197 = vst [vmem:[%s1943_s17 + $0x8] sm:$0xff] %v1476_v52  ;;  %v1123_v2 = vmul.f32 %v1926_v7, %v1091_v61  ;;  %1171 = vst [vmem:[%s1928_s28 + $0x38] sm:$0xff] %v1091_v61  ;;  %v1228_v7 = vld [vmem:[%s1928_s28 + $0x8] sm:$0xff] (%p1687_p5) }
 0x14d   : > { %v1161_v4 = vmax.f32 %v1153_v63, 0.0  ;;  %v1154_v62 = vadd.f32 %v1146_v1, %v1122_v0  ;;  %1229 = vst [vmem:[%s1213_s20 + $0x8] sm:$0xff] (%p1687_p5), %v1228_v7  ;;  %1233 = vst [vmem:[%s1213_s20 + $0x28] sm:$0xff] (%p1687_p5), %v1232_v12 }
 0x14e   : > { %v1155_v5 = vadd.f32 %v1146_v1, %v1123_v2  ;;  %v1234_v13 = vld [vmem:[%s1928_s28 + $0x20] sm:$0xff] (%p1687_p5) }
 0x14f   : > { %v1477_v6 = vpack.c.bf16 %v1161_v4, %v1160_v3  ;;  %v1162_v8 = vmax.f32 %v1154_v62, 0.0  ;;  %1235 = vst [vmem:[%s1213_s20 + $0x40] sm:$0xff] (%p1687_p5), %v1234_v13 }
 0x150   : > { %v1163_v9 = vmax.f32 %v1155_v5, 0.0  ;;  %1210 = sbr.rel (!%p1687_p5) target bundleno = 341 (0x155), region = 132  ;;  %v1236_v14 = vld [vmem:[%s1928_s28 + $0x28] sm:$0xff] (%p1687_p5) }
 0x151   : > { %1198 = vst [vmem:[%s1943_s17 + $0x10] sm:$0xff] %v1477_v6  ;;  %1237 = vst [vmem:[%s1213_s20 + $0x48] sm:$0xff] (%p1687_p5), %v1236_v14 }
 0x152   : > { %v1478_v10 = vpack.c.bf16 %v1163_v9, %v1162_v8  ;;  %v1238_v15 = vld [vmem:[%s1928_s28 + $0x30] sm:$0xff] (%p1687_p5) }
 0x153   : > { %v1240_v16 = vld [vmem:[%s1928_s28 + $0x38] sm:$0xff] (%p1687_p5)  ;;  %1239 = vst [vmem:[%s1213_s20 + $0x60] sm:$0xff] (%p1687_p5), %v1238_v15 }
 0x154   : > { %1199 = vst [vmem:[%s1943_s17 + $0x18] sm:$0xff] %v1478_v10  ;;  %1241 = vst [vmem:[%s1213_s20 + $0x68] sm:$0xff] (%p1687_p5), %v1240_v16 }
 0x155 PF: > { %1247 = sbr.rel (!%p1687_p5) target bundleno = 349 (0x15d), region = 155  ;;  %s1480_s21 = sshll.u32 (%p1687_p5), %s1668_s12, 3  ;;  %v1285_v17 = vld [vmem:[%s1943_s17] sm:$0xff] (%p1687_p5)  ;;  %v1287_v18 = vld [vmem:[%s1943_s17 + $0x8] sm:$0xff] (%p1687_p5) }
 0x156   : > { %s1250_s11 = scalar_lea.vmem (%p1687_p5), %s2000_s9, %s1480_s21 }
 0x157   : > { %1286 = vst [vmem:[%s1250_s11] sm:$0xff] (%p1687_p5), %v1285_v17  ;;  %1288 = vst [vmem:[%s1250_s11 + $0x10] sm:$0xff] (%p1687_p5), %v1287_v18 }
 0x158   : > { %v1289_v19 = vld [vmem:[%s1943_s17 + $0x10] sm:$0xff] (%p1687_p5) }
 0x159   : > { %1290 = vst [vmem:[%s1250_s11 + $0x20] sm:$0xff] (%p1687_p5), %v1289_v19 }
 0x15b   : > { %v1291_v20 = vld [vmem:[%s1943_s17 + $0x18] sm:$0xff] }
 0x15c   : > { %1292 = vst [vmem:[%s1250_s11 + $0x30] sm:$0xff] %v1291_v20 }
 0x15d PF: > { %p17_p10 = scmp.ge.s32.totalorder %s1671_s13, 4   ;;  %s2003_s30 = smov %s1595_s10 }
 0x15e   : > { %s2004_s10 = smov %s1681_s16  ;;  %s2005_s11 = smov %s1671_s13 }
 0x15f   :  { %19 = sbr.rel (!%p17_p10) target bundleno = 2 (0x2), region = 244 }

// kernel: _lambda_.13
= control target key start
LH: loop header
LB: loop body
LE: loop exit
PB: predicated region body
PF: predicated region fallthrough
CT: control target
= control target key end

     0   :  { %s1461_s18 = smov 0   ;;  %s1463_s19 = smov 0   ;;  %s1815_s0 = inlined_call_operand.vmem [shape: bf16[288,512], index: 0, kind: input, shape index: {}]   ;;  %s1816_s1 = inlined_call_operand.vmem [shape: bf16[64,288], index: 1, kind: input, shape index: {}]   ;;  %s1817_s2 = inlined_call_operand.vmem [shape: f32[64,1], index: 2, kind: input, shape index: {}]   ;;  %s1818_s3 = inlined_call_operand.vmem [shape: f32[64,1], index: 3, kind: input, shape index: {}]   ;;  %s1819_s4 = inlined_call_operand.vmem [shape: f32[64,1], index: 4, kind: input, shape index: {}]   ;;  %s1820_s5 = inlined_call_operand.vmem [shape: bf16[64,512], index: 5, kind: output, shape index: {}]  }
   0x1   :  { %s1465_s20 = smov 0  }
   0x2 LB: > { %s1224_s21 = sadd.s32 4294967295, %s1428_s20   ;;  %s1478_s22 = sadd.s32 1, %s1428_s20   ;;  %s1428_s20 = sphi %s1465_s20, %s1824_s20   ;;  %s1424_s19 = sphi %s1463_s19, %s1823_s19   ;;  %s1420_s18 = sphi %s1461_s18, %s1822_s18  }
   0x3   : > { %s19_s23 = ssub.s32 %s1428_s20, %s1478_s22  ;;  %s22_s24 = sadd.s32 1, %s1424_s19 }
   0x4   : > { %p20_p0 = scmp.eq.s32.totalorder %s19_s23, 0  ;;  %p29_p1 = scmp.ne.s32.totalorder %s1424_s19, %s1420_s18 }
   0x5   : > { %p30_p2 = scmp.eq.s32.totalorder %s1428_s20, 0  ;;  %p143_p3 = scmp.eq.s32.totalorder %s1224_s21, 1 }
   0x6   : > { %s1489_s25 = scalar_select %p20_p0, %s1424_s19, %s22_s24  }
   0x7   : > { %p31_p4 = por %p30_p2, %p29_p1  ;;  %p1491_p5 = por %p143_p3, %p29_p1 }
   0x8   : > { %p1227_p6 = scmp.ge.s32.totalorder %s1428_s20, 2 }
   0xa   : > { %177 = sbr.rel (%p1227_p6) target bundleno = 37 (0x25), region = 32 }
   0xf   : > { %180 = sbr.rel (!%p31_p4) target bundleno = 37 (0x25), region = 36  ;;  %s182_s27 = sand.u32 (%p31_p4), 1, %s1424_s19  }
  0x10   : > { %s1297_s28 = sshll.u32 (%p31_p4), %s1428_s20, 3  ;;  %s1307_s29 = smul.u32 (%p31_p4), 288, %s182_s27 }
  0x11   : > { %s1501_s7 = scalar_lea.vmem (%p31_p4), %s1815_s0, %s1297_s28 }
  0x12   : > { %v286_v0 = vld [vmem:[%s1501_s7] sm:$0xff] (%p31_p4)  ;;  %v288_v1 = vld [vmem:[%s1501_s7 + $0x10] sm:$0xff] (%p31_p4)  ;;  %s1509_s8 = scalar_lea.vmem (%p31_p4), [#allocation2], %s1307_s29 }
  0x13   : > { %v290_v2 = vld [vmem:[%s1501_s7 + $0x20] sm:$0xff] (%p31_p4)  ;;  %v292_v3 = vld [vmem:[%s1501_s7 + $0x30] sm:$0xff] (%p31_p4)  ;;  %287 = vst [vmem:[%s1509_s8] sm:$0xff] (%p31_p4), %v286_v0  ;;  %289 = vst [vmem:[%s1509_s8 + $0x8] sm:$0xff] (%p31_p4), %v288_v1 }
  0x14   : > { %v294_v4 = vld [vmem:[%s1501_s7 + $0x40] sm:$0xff]  ;;  %v296_v5 = vld [vmem:[%s1501_s7 + $0x50] sm:$0xff]  ;;  %291 = vst [vmem:[%s1509_s8 + $0x10] sm:$0xff] %v290_v2  ;;  %293 = vst [vmem:[%s1509_s8 + $0x18] sm:$0xff] %v292_v3 }
  0x15   : > { %295 = vst [vmem:[%s1509_s8 + $0x20] sm:$0xff] %v294_v4  ;;  %297 = vst [vmem:[%s1509_s8 + $0x28] sm:$0xff] %v296_v5  ;;  %v298_v6 = vld [vmem:[%s1501_s7 + $0x60] sm:$0xff]  ;;  %v300_v7 = vld [vmem:[%s1501_s7 + $0x70] sm:$0xff] }
  0x16   : > { %v302_v8 = vld [vmem:[%s1501_s7 + $0x80] sm:$0xff]  ;;  %299 = vst [vmem:[%s1509_s8 + $0x30] sm:$0xff] %v298_v6  ;;  %301 = vst [vmem:[%s1509_s8 + $0x38] sm:$0xff] %v300_v7  ;;  %v304_v9 = vld [vmem:[%s1501_s7 + $0x90] sm:$0xff] }
  0x17   : > { %303 = vst [vmem:[%s1509_s8 + $0x40] sm:$0xff] %v302_v8  ;;  %v306_v10 = vld [vmem:[%s1501_s7 + $0xa0] sm:$0xff]  ;;  %v308_v11 = vld [vmem:[%s1501_s7 + $0xb0] sm:$0xff]  ;;  %305 = vst [vmem:[%s1509_s8 + $0x48] sm:$0xff] %v304_v9 }
  0x18   : > { %307 = vst [vmem:[%s1509_s8 + $0x50] sm:$0xff] %v306_v10  ;;  %309 = vst [vmem:[%s1509_s8 + $0x58] sm:$0xff] %v308_v11  ;;  %v310_v12 = vld [vmem:[%s1501_s7 + $0xc0] sm:$0xff]  ;;  %v312_v13 = vld [vmem:[%s1501_s7 + $0xd0] sm:$0xff] }
  0x19   : > { %v314_v14 = vld [vmem:[%s1501_s7 + $0xe0] sm:$0xff]  ;;  %311 = vst [vmem:[%s1509_s8 + $0x60] sm:$0xff] %v310_v12  ;;  %313 = vst [vmem:[%s1509_s8 + $0x68] sm:$0xff] %v312_v13  ;;  %v316_v15 = vld [vmem:[%s1501_s7 + $0xf0] sm:$0xff] }
  0x1a   : > { %315 = vst [vmem:[%s1509_s8 + $0x70] sm:$0xff] %v314_v14  ;;  %v318_v16 = vld [vmem:[%s1501_s7 + $0x100] sm:$0xff]  ;;  %v320_v17 = vld [vmem:[%s1501_s7 + $0x110] sm:$0xff]  ;;  %317 = vst [vmem:[%s1509_s8 + $0x78] sm:$0xff] %v316_v15 }
  0x1b   : > { %319 = vst [vmem:[%s1509_s8 + $0x80] sm:$0xff] %v318_v16  ;;  %321 = vst [vmem:[%s1509_s8 + $0x88] sm:$0xff] %v320_v17  ;;  %v322_v18 = vld [vmem:[%s1501_s7 + $0x120] sm:$0xff]  ;;  %v324_v19 = vld [vmem:[%s1501_s7 + $0x130] sm:$0xff] }
  0x1c   : > { %v326_v20 = vld [vmem:[%s1501_s7 + $0x140] sm:$0xff]  ;;  %323 = vst [vmem:[%s1509_s8 + $0x90] sm:$0xff] %v322_v18  ;;  %325 = vst [vmem:[%s1509_s8 + $0x98] sm:$0xff] %v324_v19  ;;  %v328_v21 = vld [vmem:[%s1501_s7 + $0x150] sm:$0xff] }
  0x1d   : > { %327 = vst [vmem:[%s1509_s8 + $0xa0] sm:$0xff] %v326_v20  ;;  %v330_v22 = vld [vmem:[%s1501_s7 + $0x160] sm:$0xff]  ;;  %v332_v23 = vld [vmem:[%s1501_s7 + $0x170] sm:$0xff]  ;;  %329 = vst [vmem:[%s1509_s8 + $0xa8] sm:$0xff] %v328_v21 }
  0x1e   : > { %331 = vst [vmem:[%s1509_s8 + $0xb0] sm:$0xff] %v330_v22  ;;  %333 = vst [vmem:[%s1509_s8 + $0xb8] sm:$0xff] %v332_v23  ;;  %v334_v24 = vld [vmem:[%s1501_s7 + $0x180] sm:$0xff]  ;;  %v336_v25 = vld [vmem:[%s1501_s7 + $0x190] sm:$0xff] }
  0x1f   : > { %v338_v26 = vld [vmem:[%s1501_s7 + $0x1a0] sm:$0xff]  ;;  %335 = vst [vmem:[%s1509_s8 + $0xc0] sm:$0xff] %v334_v24  ;;  %337 = vst [vmem:[%s1509_s8 + $0xc8] sm:$0xff] %v336_v25  ;;  %v340_v27 = vld [vmem:[%s1501_s7 + $0x1b0] sm:$0xff] }
  0x20   : > { %339 = vst [vmem:[%s1509_s8 + $0xd0] sm:$0xff] %v338_v26  ;;  %v342_v28 = vld [vmem:[%s1501_s7 + $0x1c0] sm:$0xff]  ;;  %v344_v29 = vld [vmem:[%s1501_s7 + $0x1d0] sm:$0xff]  ;;  %341 = vst [vmem:[%s1509_s8 + $0xd8] sm:$0xff] %v340_v27 }
  0x21   : > { %343 = vst [vmem:[%s1509_s8 + $0xe0] sm:$0xff] %v342_v28  ;;  %345 = vst [vmem:[%s1509_s8 + $0xe8] sm:$0xff] %v344_v29  ;;  %v346_v30 = vld [vmem:[%s1501_s7 + $0x1e0] sm:$0xff]  ;;  %v348_v31 = vld [vmem:[%s1501_s7 + $0x1f0] sm:$0xff] }
  0x22   : > { %v350_v32 = vld [vmem:[%s1501_s7 + $0x200] sm:$0xff]  ;;  %347 = vst [vmem:[%s1509_s8 + $0xf0] sm:$0xff] %v346_v30  ;;  %349 = vst [vmem:[%s1509_s8 + $0xf8] sm:$0xff] %v348_v31  ;;  %v352_v33 = vld [vmem:[%s1501_s7 + $0x210] sm:$0xff] }
  0x23   : > { %351 = vst [vmem:[%s1509_s8 + $0x100] sm:$0xff] %v350_v32  ;;  %v354_v34 = vld [vmem:[%s1501_s7 + $0x220] sm:$0xff]  ;;  %v356_v35 = vld [vmem:[%s1501_s7 + $0x230] sm:$0xff]  ;;  %353 = vst [vmem:[%s1509_s8 + $0x108] sm:$0xff] %v352_v33 }
  0x24   : > { %355 = vst [vmem:[%s1509_s8 + $0x110] sm:$0xff] %v354_v34  ;;  %357 = vst [vmem:[%s1509_s8 + $0x118] sm:$0xff] %v356_v35 }
  0x25 PF: > { %p1230_p7 = scmp.ge.s32.totalorder %s1428_s20, 1  ;;  %p362_p8 = scmp.lt.s32.totalorder %s1428_s20, 3 }
  0x27   : > { %p363_p9 = pnand %p1230_p7, %p362_p8 }
  0x28   : > { %s369_s9 = sand.u32 (!%p363_p9), 1, %s1420_s18  }
  0x29   : > { %366 = sbr.rel (%p363_p9) target bundleno = 357 (0x165), region = 74  ;;  %s1231_s23 = sshll.u32 (!%p363_p9), %s369_s9, 6 }
  0x2a   : > { %s1308_s10 = smul.u32 (!%p363_p9), 288, %s369_s9  ;;  %s1761_s18 = scalar_lea.vmem (!%p363_p9), [#allocation3], %s1231_s23 }
  0x2c   : > { %s1588_s13 = scalar_lea.vmem (!%p363_p9), [#allocation2], %s1308_s10 }
  0x2e   : > { %v1430_v36 = vmov 0   ;;  %v1393_v37 = vld [vmem:[%s1816_s1 + $0x4] ss:$12 sps:$4 sm:$0xff]   ;;  %v1336_v38 = vld [vmem:[%s1588_s13 + $0x74] ss:$8 sps:$4 sm:$0xff]   ;;  %vm738_vm0 = vcmask 261120  }
  0x2f   : > { %856 = vmatprep.mubr.bf16.mxu1 %v1430_v36  ;;  %1335 = vset.pattern.permute.xlu1 %v1430_v36  ;;  %v1338_v39 = vld [vmem:[%s1588_s13 + $0x70] ss:$8 sps:$4 sm:$0xff]   ;;  %v1339_v40 = vld [vmem:[%s1588_s13 + $0x64] ss:$8 sps:$4 sm:$0xff]   ;;  %v1341_v41 = vld [vmem:[%s1588_s13 + $0x60] ss:$8 sps:$4 sm:$0xff]  }
  0x30   : > { %1334 = vset.pattern.permute.xlu0 %v1430_v36  ;;  %783 = vmatprep.mubr.bf16.mxu0 %v1393_v37  ;;  %v1342_v42 = vld [vmem:[%s1588_s13 + $0x54] ss:$8 sps:$4 sm:$0xff]   ;;  %v1344_v43 = vld [vmem:[%s1588_s13 + $0x50] ss:$8 sps:$4 sm:$0xff]   ;;  %v1345_v44 = vld [vmem:[%s1588_s13 + $0x44] ss:$8 sps:$4 sm:$0xff]  }
  0x31   : > { %751 = vmatprep.subr.bf16.mxu0 %v1336_v38  ;;  %v1347_v45 = vld [vmem:[%s1588_s13 + $0x40] ss:$8 sps:$4 sm:$0xff]   ;;  %v1348_v46 = vld [vmem:[%s1588_s13 + $0x34] ss:$8 sps:$4 sm:$0xff]   ;;  %v1350_v47 = vld [vmem:[%s1588_s13 + $0x30] ss:$8 sps:$4 sm:$0xff]  }
  0x32   : > { %752 = vmatpush1.bf16.msra.mxu0 %v1338_v39  ;;  %v1351_v48 = vld [vmem:[%s1588_s13 + $0x24] ss:$8 sps:$4 sm:$0xff]   ;;  %v1353_v49 = vld [vmem:[%s1588_s13 + $0x20] ss:$8 sps:$4 sm:$0xff]   ;;  %v1377_v50 = vld [vmem:[%s1588_s13 + $0x114] ss:$8 sps:$4 sm:$0xff]  }
  0x33   : > { %753 = vmatprep.subr.bf16.mxu0 %v1339_v40  ;;  %v1380_v51 = vld [vmem:[%s1588_s13 + $0x110] ss:$8 sps:$4 sm:$0xff]   ;;  %v1354_v52 = vld [vmem:[%s1588_s13 + $0x14] ss:$8 sps:$4 sm:$0xff]   ;;  %836 = vmatprep.subr.bf16.mxu1 %v1377_v50  ;;  %v1383_v53 = vld [vmem:[%s1588_s13 + $0x104] ss:$8 sps:$4 sm:$0xff]  }
  0x34   : > { %837 = vmatpush1.bf16.msra.mxu1 %v1380_v51  ;;  %v1386_v54 = vld [vmem:[%s1588_s13 + $0x100] ss:$8 sps:$4 sm:$0xff]   ;;  %v1356_v55 = vld [vmem:[%s1588_s13 + $0x10] ss:$8 sps:$4 sm:$0xff]   ;;  %v1357_v56 = vld [vmem:[%s1588_s13 + $0x4] ss:$8 sps:$4 sm:$0xff]  }
  0x35   : > { %838 = vmatprep.subr.bf16.mxu1 %v1383_v53  ;;  %v1389_v57 = vld [vmem:[%s1816_s1 + $0x8] ss:$12 sps:$4 sm:$0xff]   ;;  %v450_v60 = vld [vmem:[%s1817_s2] sm:$0xff]  ;;  %v453_v62 = vld [vmem:[%s1817_s2 + $0x18] sm:$0xff]  ;;  %s1306_s9 = sshll.u32 (%p1491_p5), %s1224_s21, 3 }
  0x36   : > { %754 = vmatpush1.bf16.msra.mxu0 %v1341_v41  ;;  %v1359_v58 = vld [vmem:[%s1588_s13] ss:$8 sps:$4 sm:$0xff]   ;;  %v452_v59 = vld [vmem:[%s1817_s2 + $0x10] sm:$0xff]  ;;  %460 = vperm.xlu0 %1334, %v450_v60   ;;  %v1363_v1 = vld [vmem:[%s1588_s13 + $0xe4] ss:$8 sps:$4 sm:$0xff]   ;;  %s1106_s28 = scalar_lea.vmem (%p1491_p5), %s1820_s5, %s1306_s9 }
  0x37   : > { %755 = vmatprep.subr.bf16.mxu0 %v1342_v42  ;;  %v1360_v61 = vld [vmem:[%s1588_s13 + $0xf4] ss:$8 sps:$4 sm:$0xff]   ;;  %470 = vperm.xlu1 %1335, %v452_v59   ;;  %v451_v63 = vld [vmem:[%s1817_s2 + $0x8] sm:$0xff]  ;;  %v1362_v0 = vld [vmem:[%s1588_s13 + $0xf0] ss:$8 sps:$4 sm:$0xff]  }
  0x38   : > { %839 = vmatpush1.bf16.msra.mxu1 %v1386_v54  ;;  %v1394_v2 = vld [vmem:[%s1816_s1 + $0x20] ss:$12 sps:$4 sm:$0xff]   ;;  %v1366_v6 = vld [vmem:[%s1588_s13 + $0xd4] ss:$8 sps:$4 sm:$0xff]   ;;  %v1368_v9 = vld [vmem:[%s1588_s13 + $0xd0] ss:$8 sps:$4 sm:$0xff]  }
  0x39   : > { %v455_v3 = vld [vmem:[%s1817_s2 + $0x28] sm:$0xff]  ;;  %v454_v4 = vld [vmem:[%s1817_s2 + $0x20] sm:$0xff]  ;;  %v457_v7 = vld [vmem:[%s1817_s2 + $0x38] sm:$0xff] }
  0x3a   : > { %756 = vmatpush1.bf16.msra.mxu0 %v1344_v43  ;;  %465 = vperm.xlu0 %1334, %v451_v63   ;;  %v1365_v5 = vld [vmem:[%s1588_s13 + $0xe0] ss:$8 sps:$4 sm:$0xff]   ;;  %v456_v8 = vld [vmem:[%s1817_s2 + $0x30] sm:$0xff]  ;;  %v1369_v10 = vld [vmem:[%s1588_s13 + $0xc4] ss:$8 sps:$4 sm:$0xff]  }
  0x3b   : > { %757 = vmatprep.subr.bf16.mxu0 %v1345_v44  ;;  %1280 = vmatmul.mubr.msk.bf16.vlgmr.msra.gmra.mxu1 %vm738_vm0, %v1389_v57  ;;  %v1398_v11 = vld [vmem:[%s1816_s1 + $0x38] ss:$12 sps:$4 sm:$0xff]   ;;  %v898_v12 = vld [vmem:[%s1818_s3 + $0x8] sm:$0xff]  ;;  %v1372_v15 = vld [vmem:[%s1588_s13 + $0xb4] ss:$8 sps:$4 sm:$0xff]  }
  0x3c   : > { %866 = vmatprep.mubr.bf16.mxu1 %v1430_v36  ;;  %475 = vperm.xlu1 %1335, %v453_v62   ;;  %v897_v13 = vld [vmem:[%s1818_s3] sm:$0xff]  ;;  %v900_v16 = vld [vmem:[%s1818_s3 + $0x18] sm:$0xff]  ;;  %v899_v17 = vld [vmem:[%s1818_s3 + $0x10] sm:$0xff] }
  0x3d   : > { %v1371_v14 = vld [vmem:[%s1588_s13 + $0xc0] ss:$8 sps:$4 sm:$0xff]   ;;  %v1374_v18 = vld [vmem:[%s1588_s13 + $0xb0] ss:$8 sps:$4 sm:$0xff]   ;;  %v1375_v19 = vld [vmem:[%s1588_s13 + $0xa4] ss:$8 sps:$4 sm:$0xff]  }
  0x3e   : > { %758 = vmatpush1.bf16.msra.mxu0 %v1347_v45  ;;  %480 = vperm.xlu0 %1334, %v454_v4   ;;  %v1402_v20 = vld [vmem:[%s1816_s1 + $0x50] ss:$12 sps:$4 sm:$0xff]   ;;  %v902_v21 = vld [vmem:[%s1818_s3 + $0x28] sm:$0xff]  ;;  %v901_v22 = vld [vmem:[%s1818_s3 + $0x20] sm:$0xff] }
  0x3f   : > { %759 = vmatprep.subr.bf16.mxu0 %v1348_v46  ;;  %v1379_v23 = vld [vmem:[%s1588_s13 + $0xa0] ss:$8 sps:$4 sm:$0xff]   ;;  %v1381_v24 = vld [vmem:[%s1588_s13 + $0x94] ss:$8 sps:$4 sm:$0xff]   ;;  %v1385_v27 = vld [vmem:[%s1588_s13 + $0x90] ss:$8 sps:$4 sm:$0xff]  }
  0x40   : > { %485 = vperm.xlu1 %1335, %v455_v3   ;;  %v904_v25 = vld [vmem:[%s1818_s3 + $0x38] sm:$0xff]  ;;  %v903_v26 = vld [vmem:[%s1818_s3 + $0x30] sm:$0xff]  ;;  %v1387_v28 = vld [vmem:[%s1588_s13 + $0x84] ss:$8 sps:$4 sm:$0xff]  }
  0x41   : > { %v962_v29 = vld [vmem:[%s1819_s4 + $0x8] sm:$0xff]  ;;  %v961_v30 = vld [vmem:[%s1819_s4] sm:$0xff]  ;;  %v964_v32 = vld [vmem:[%s1819_s4 + $0x18] sm:$0xff] }
  0x42   : > { %760 = vmatpush1.bf16.msra.mxu0 %v1350_v47  ;;  %490 = vperm.xlu0 %1334, %v456_v8   ;;  %v1390_v31 = vld [vmem:[%s1588_s13 + $0x80] ss:$8 sps:$4 sm:$0xff]   ;;  %v963_v34 = vld [vmem:[%s1819_s4 + $0x10] sm:$0xff]  ;;  %v968_v38 = vld [vmem:[%s1819_s4 + $0x38] sm:$0xff] }
  0x43   : > { %761 = vmatprep.subr.bf16.mxu0 %v1351_v48  ;;  %1281 = vmatmul.mubr.msk.bf16.gmra.mxu1 %vm738_vm0, %v1394_v2  ;;  %v1391_v33 = vld [vmem:[%s1816_s1] ss:$12 sps:$4 sm:$0xff]   ;;  %v1395_v35 = vld [vmem:[%s1816_s1 + $0x1c] ss:$12 sps:$4 sm:$0xff]   ;;  %v1397_v39 = vld [vmem:[%s1816_s1 + $0x18] ss:$12 sps:$4 sm:$0xff]  }
  0x44   : > { %876 = vmatprep.mubr.bf16.mxu1 %v1430_v36  ;;  %495 = vperm.xlu1 %1335, %v457_v7   ;;  %v965_v37 = vld [vmem:[%s1819_s4 + $0x20] sm:$0xff]  ;;  %v967_v40 = vld [vmem:[%s1819_s4 + $0x30] sm:$0xff]  ;;  %v1403_v43 = vld [vmem:[%s1816_s1 + $0x4c] ss:$12 sps:$4 sm:$0xff]  }
  0x45   : > { %v1399_v41 = vld [vmem:[%s1816_s1 + $0x34] ss:$12 sps:$4 sm:$0xff]   ;;  %v1401_v42 = vld [vmem:[%s1816_s1 + $0x30] ss:$12 sps:$4 sm:$0xff]  }
  0x46   : > { %762 = vmatpush1.bf16.msra.mxu0 %v1353_v49  ;;  %907 = vperm.xlu0 %1334, %v897_v13   ;;  %v1405_v44 = vld [vmem:[%s1816_s1 + $0x48] ss:$12 sps:$4 sm:$0xff]  }
  0x47   : > { %763 = vmatprep.subr.bf16.mxu0 %v1354_v52 }
  0x48   : > { %912 = vperm.xlu1 %1335, %v898_v12  }
  0x4a   : > { %764 = vmatpush1.bf16.msra.mxu0 %v1356_v55  ;;  %917 = vperm.xlu0 %1334, %v899_v17  }
  0x4b   : > { %765 = vmatprep.subr.bf16.mxu0 %v1357_v56  ;;  %1282 = vmatmul.mubr.msk.bf16.gmra.mxu1 %vm738_vm0, %v1398_v11 }
  0x4c   : > { %886 = vmatprep.mubr.bf16.mxu1 %v1430_v36  ;;  %922 = vperm.xlu1 %1335, %v900_v16   ;;  %v966_v36 = vld [vmem:[%s1819_s4 + $0x28] sm:$0xff] }
  0x4e   : > { %766 = vmatpush1.bf16.msra.mxu0 %v1359_v58  ;;  %927 = vperm.xlu0 %1334, %v901_v22  }
  0x4f   : > { %767 = vmatprep.subr.bf16.mxu0 %v1360_v61 }
  0x50   : > { %932 = vperm.xlu1 %1335, %v902_v21  }
  0x52   : > { %768 = vmatpush2.bf16.msra.mxu0 %v1362_v0  ;;  %937 = vperm.xlu0 %1334, %v903_v26  }
  0x53   : > { %769 = vmatprep.subr.bf16.mxu0 %v1363_v1  ;;  %1283 = vmatmul.mubr.msk.bf16.gmra.mxu1 %vm738_vm0, %v1402_v20 }
  0x54   : > { %942 = vperm.xlu1 %1335, %v904_v25  }
  0x56   : > { %770 = vmatpush2.bf16.msra.mxu0 %v1365_v5  ;;  %971 = vperm.xlu0 %1334, %v961_v30  }
  0x57   : > { %771 = vmatprep.subr.bf16.mxu0 %v1366_v6 }
  0x58   : > { %976 = vperm.xlu1 %1335, %v962_v29  }
  0x5a   : > { %772 = vmatpush2.bf16.msra.mxu0 %v1368_v9  ;;  %981 = vperm.xlu0 %1334, %v963_v34  }
  0x5b   : > { %773 = vmatprep.subr.bf16.mxu0 %v1369_v10 }
  0x5c   : > { %986 = vperm.xlu1 %1335, %v964_v32  }
  0x5e   : > { %774 = vmatpush2.bf16.msra.mxu0 %v1371_v14  ;;  %991 = vperm.xlu0 %1334, %v965_v37  }
  0x5f   : > { %775 = vmatprep.subr.bf16.mxu0 %v1372_v15 }
  0x60   : > { %996 = vperm.xlu1 %1335, %v966_v36  }
  0x62   : > { %776 = vmatpush2.bf16.msra.mxu0 %v1374_v18  ;;  %1001 = vperm.xlu0 %1334, %v967_v40  }
  0x63   : > { %777 = vmatprep.subr.bf16.mxu0 %v1375_v19 }
  0x64   : > { %1006 = vperm.xlu1 %1335, %v968_v38  }
  0x66   : > { %778 = vmatpush2.bf16.msra.mxu0 %v1379_v23 }
  0x67   : > { %779 = vmatprep.subr.bf16.mxu0 %v1381_v24 }
  0x6a   : > { %780 = vmatpush2.bf16.msra.mxu0 %v1385_v27 }
  0x6b   : > { %781 = vmatprep.subr.bf16.mxu0 %v1387_v28 }
  0x6e   : > { %782 = vmatpush2.bf16.msra.mxu0 %v1390_v31 }
  0x71   : > { %784 = vmatmul.mubr.bf16.vlgmr.msra.gmra.mxu0 %v1391_v33 }
  0x72   : > { %793 = vmatprep.mubr.bf16.mxu0 %v1395_v35 }
  0x79   : > { %794 = vmatmul.mubr.bf16.gmra.mxu0 %v1397_v39 }
  0x7a   : > { %803 = vmatprep.mubr.bf16.mxu0 %v1399_v41 }
  0x81   : > { %804 = vmatmul.mubr.bf16.gmra.mxu0 %v1401_v42 }
  0x82   : > { %813 = vmatprep.mubr.bf16.mxu0 %v1403_v43 }
  0x89   : > { %814 = vmatmul.mubr.bf16.gmra.mxu0 %v1405_v44 }
  0xb1   : > { %v461_v45 = vpop.permute.xlu0 %460 }
  0xb2   : > { %v471_v46 = vpop.permute.xlu1 %470 }
  0xb5   : > { %v466_v47 = vpop.permute.xlu0 %465 }
  0xb7   : > { %v1738_v48 = vpop.permute.xlu1 %475 }
  0xb9   : > { %v1740_v49 = vpop.permute.xlu0 %480 }
  0xbb   : > { %v1742_v51 = vpop.permute.xlu1 %485 }
  0xbd   : > { %v1744_v52 = vpop.permute.xlu0 %490 }
  0xbf   : > { %v1746_v54 = vpop.permute.xlu1 %495 }
  0xc1   : > { %v908_v56 = vpop.permute.xlu0 %907 }
  0xc3   : > { %v913_v58 = vpop.permute.xlu1 %912 }
  0xc5   : > { %v918_v59 = vpop.permute.xlu0 %917 }
  0xc7   : > { %v1748_v61 = vpop.permute.xlu1 %922 }
  0xc9   : > { %v1750_v63 = vpop.permute.xlu0 %927 }
  0xcb   : > { %v1752_v1 = vpop.permute.xlu1 %932 }
  0xcd   : > { %v1754_v2 = vpop.permute.xlu0 %937 }
  0xcf   : > { %v1756_v7 = vpop.permute.xlu1 %942 }
  0xd1   : > { %v972_v15 = vpop.permute.xlu0 %971 }
  0xd3   : > { %v977_v26 = vpop.permute.xlu1 %976 }
  0xd5   : > { %v982_v43 = vpop.permute.xlu0 %981 }
  0xfb   : > { %v858_v50 = vpop.f32.mrf.mxu1 }
  0xfd   : > { %v860_v53 = vpop.f32.mrf.mxu1 }
  0xff   : > { %v862_v55 = vpop.f32.mrf.mxu1 }
 0x101   : > { %v864_v57 = vpop.f32.mrf.mxu1 }
 0x103   : > { %v868_v60 = vpop.f32.mrf.mxu1 }
 0x105   : > { %v870_v62 = vpop.f32.mrf.mxu1 }
 0x107   : > { %v872_v0 = vpop.f32.mrf.mxu1 }
 0x109   : > { %v874_v4 = vpop.f32.mrf.mxu1 }
 0x10b   : > { %v878_v11 = vpop.f32.mrf.mxu1 }
 0x10d   : > { %v880_v22 = vpop.f32.mrf.mxu1 }
 0x10f   : > { %v882_v36 = vpop.f32.mrf.mxu1 }
 0x131   : > { %v785_v3 = vpop.f32.mrf.mxu0 }
 0x132   : > { %v786_v5 = vadd.f32 %v785_v3, %v461_v45 }
 0x133   : > { %v787_v6 = vpop.f32.mrf.mxu0 }
 0x134   : > { %v859_v8 = vadd.f32 %v858_v50, %v786_v5  ;;  %v788_v9 = vadd.f32 %v787_v6, %v461_v45 }
 0x135   : > { %v789_v10 = vpop.f32.mrf.mxu0 }
 0x136   : > { %v945_v12 = vmul.f32 %v908_v56, %v859_v8  ;;  %v861_v13 = vadd.f32 %v860_v53, %v788_v9  ;;  %v790_v14 = vadd.f32 %v789_v10, %v466_v47  ;;  %v987_v8 = vpop.permute.xlu1 %986 }
 0x137   : > { %v791_v16 = vpop.f32.mrf.mxu0 }
 0x138   : > { %v1009_v17 = vadd.f32 %v972_v15, %v945_v12  ;;  %v946_v18 = vmul.f32 %v908_v56, %v861_v13  ;;  %v863_v19 = vadd.f32 %v862_v55, %v790_v14  ;;  %v792_v20 = vadd.f32 %v791_v16, %v466_v47  ;;  %v884_v56 = vpop.f32.mrf.mxu1 }
 0x139   : > { %v795_v21 = vpop.f32.mrf.mxu0 }
 0x13a   : > { %v1010_v23 = vadd.f32 %v972_v15, %v946_v18  ;;  %v947_v24 = vmul.f32 %v913_v58, %v863_v19  ;;  %v865_v25 = vadd.f32 %v864_v57, %v792_v20  ;;  %v1025_v27 = vmax.f32 %v1009_v17, 0.0  ;;  %v888_v13 = vpop.f32.mrf.mxu1  ;;  %v992_v17 = vpop.permute.xlu0 %991 }
 0x13b   : > { %v796_v28 = vadd.f32 %v795_v21, %v471_v46  ;;  %v797_v29 = vpop.f32.mrf.mxu0 }
 0x13c   : > { %v1026_v30 = vmax.f32 %v1010_v23, 0.0  ;;  %v1011_v31 = vadd.f32 %v977_v26, %v947_v24  ;;  %v948_v32 = vmul.f32 %v913_v58, %v865_v25  ;;  %v798_v33 = vadd.f32 %v797_v29, %v471_v46  ;;  %v890_v24 = vpop.f32.mrf.mxu1 }
 0x13d   : > { %v869_v34 = vadd.f32 %v868_v60, %v796_v28  ;;  %v799_v35 = vpop.f32.mrf.mxu0 }
 0x13e   : > { %v1298_v37 = vpack.c.bf16 %v1026_v30, %v1025_v27  ;;  %v1012_v38 = vadd.f32 %v977_v26, %v948_v32  ;;  %v871_v39 = vadd.f32 %v870_v62, %v798_v33  ;;  %v800_v41 = vadd.f32 %v799_v35, %v1738_v48 }
 0x13f   : > { %v949_v40 = vmul.f32 %v918_v59, %v869_v34  ;;  %v801_v42 = vpop.f32.mrf.mxu0  ;;  %v1027_v44 = vmax.f32 %v1011_v31, 0.0  ;;  %v997_v31 = vpop.permute.xlu1 %996 }
 0x140   : > { %1089 = vst [vmem:[%s1761_s18] sm:$0xff] %v1298_v37  ;;  %v1028_v45 = vmax.f32 %v1012_v38, 0.0  ;;  %v950_v47 = vmul.f32 %v918_v59, %v871_v39  ;;  %v802_v46 = vadd.f32 %v801_v42, %v1738_v48  ;;  %v873_v53 = vadd.f32 %v872_v0, %v800_v41 }
 0x141   : > { %v1013_v50 = vadd.f32 %v982_v43, %v949_v40  ;;  %v805_v55 = vpop.f32.mrf.mxu0 }
 0x142   : > { %v1299_v57 = vpack.c.bf16 %v1028_v45, %v1027_v44  ;;  %v1014_v58 = vadd.f32 %v982_v43, %v950_v47  ;;  %v875_v60 = vadd.f32 %v874_v4, %v802_v46  ;;  %v806_v62 = vadd.f32 %v805_v55, %v1740_v49  ;;  %v1002_v45 = vpop.permute.xlu0 %1001 }
 0x143   : > { %v1029_v3 = vmax.f32 %v1013_v50, 0.0  ;;  %v951_v5 = vmul.f32 %v1748_v61, %v873_v53  ;;  %v807_v6 = vpop.f32.mrf.mxu0 }
 0x144   : > { %1090 = vst [vmem:[%s1761_s18 + $0x8] sm:$0xff] %v1299_v57  ;;  %v1030_v9 = vmax.f32 %v1014_v58, 0.0  ;;  %v952_v59 = vmul.f32 %v1748_v61, %v875_v60  ;;  %v879_v48 = vadd.f32 %v878_v11, %v806_v62  ;;  %v808_v0 = vadd.f32 %v807_v6, %v1740_v49  ;;  %v1007_v60 = vpop.permute.xlu1 %1006 }
 0x145   : > { %v1015_v10 = vadd.f32 %v987_v8, %v951_v5  ;;  %v809_v12 = vpop.f32.mrf.mxu0 }
 0x146   : > { %v1300_v14 = vpack.c.bf16 %v1030_v9, %v1029_v3  ;;  %v1016_v4 = vadd.f32 %v987_v8, %v952_v59  ;;  %v953_v15 = vmul.f32 %v1750_v63, %v879_v48  ;;  %v881_v16 = vadd.f32 %v880_v22, %v808_v0 }
 0x147   : > { %v1031_v18 = vmax.f32 %v1015_v10, 0.0  ;;  %v810_v19 = vadd.f32 %v809_v12, %v1742_v51  ;;  %v811_v20 = vpop.f32.mrf.mxu0 }
 0x148   : > { %1091 = vst [vmem:[%s1761_s18 + $0x10] sm:$0xff] %v1300_v14  ;;  %v1032_v21 = vmax.f32 %v1016_v4, 0.0  ;;  %v1017_v61 = vadd.f32 %v992_v17, %v953_v15  ;;  %v954_v11 = vmul.f32 %v1750_v63, %v881_v16  ;;  %v812_v49 = vadd.f32 %v811_v20, %v1742_v51 }
 0x149   : > { %v883_v23 = vadd.f32 %v882_v36, %v810_v19  ;;  %v815_v25 = vpop.f32.mrf.mxu0  ;;  %v892_v36 = vpop.f32.mrf.mxu1 }
 0x14a   : > { %v1301_v26 = vpack.c.bf16 %v1032_v21, %v1031_v18  ;;  %v1018_v27 = vadd.f32 %v992_v17, %v954_v11  ;;  %v885_v28 = vadd.f32 %v884_v56, %v812_v49  ;;  %v816_v29 = vadd.f32 %v815_v25, %v1744_v52 }
 0x14b   : > { %v955_v22 = vmul.f32 %v1752_v1, %v883_v23  ;;  %v817_v30 = vpop.f32.mrf.mxu0  ;;  %v1033_v32 = vmax.f32 %v1017_v61, 0.0  ;;  %v894_v53 = vpop.f32.mrf.mxu1  ;;  %v1151_v48 = vld [vmem:[%s1761_s18 + $0x8] sm:$0xff] (%p1491_p5) }
 0x14c   : > { %1092 = vst [vmem:[%s1761_s18 + $0x18] sm:$0xff] %v1301_v26  ;;  %v1034_v33 = vmax.f32 %v1018_v27, 0.0  ;;  %v956_v63 = vmul.f32 %v1752_v1, %v885_v28  ;;  %v818_v51 = vadd.f32 %v817_v30, %v1744_v52  ;;  %v889_v35 = vadd.f32 %v888_v13, %v816_v29  ;;  %1152 = vst [vmem:[%s1106_s28 + $0x10] sm:$0xff] (%p1491_p5), %v1151_v48 }
 0x14d   : > { %v1019_v34 = vadd.f32 %v997_v31, %v955_v22  ;;  %v819_v37 = vpop.f32.mrf.mxu0 }
 0x14e   : > { %v1302_v38 = vpack.c.bf16 %v1034_v33, %v1033_v32  ;;  %v1020_v39 = vadd.f32 %v997_v31, %v956_v63  ;;  %v891_v40 = vadd.f32 %v890_v24, %v818_v51  ;;  %v820_v41 = vadd.f32 %v819_v37, %v1746_v54 }
 0x14f   : > { %v1035_v42 = vmax.f32 %v1019_v34, 0.0  ;;  %v957_v43 = vmul.f32 %v1754_v2, %v889_v35  ;;  %v821_v44 = vpop.f32.mrf.mxu0  ;;  %v1153_v0 = vld [vmem:[%s1761_s18 + $0x10] sm:$0xff] (%p1491_p5) }
 0x150   : > { %1093 = vst [vmem:[%s1761_s18 + $0x20] sm:$0xff] %v1302_v38  ;;  %v1036_v47 = vmax.f32 %v1020_v39, 0.0  ;;  %v958_v1 = vmul.f32 %v1754_v2, %v891_v40  ;;  %v893_v52 = vadd.f32 %v892_v36, %v820_v41  ;;  %v822_v46 = vadd.f32 %v821_v44, %v1746_v54  ;;  %1154 = vst [vmem:[%s1106_s28 + $0x20] sm:$0xff] (%p1491_p5), %v1153_v0 }
 0x151   : > { %v1021_v50 = vadd.f32 %v1002_v45, %v957_v43 }
 0x152   : > { %v1303_v55 = vpack.c.bf16 %v1036_v47, %v1035_v42  ;;  %v1022_v56 = vadd.f32 %v1002_v45, %v958_v1  ;;  %v959_v57 = vmul.f32 %v1756_v7, %v893_v52  ;;  %v895_v58 = vadd.f32 %v894_v53, %v822_v46 }
 0x153   : > { %v1037_v62 = vmax.f32 %v1021_v50, 0.0  ;;  %v1155_v10 = vld [vmem:[%s1761_s18 + $0x18] sm:$0xff] (%p1491_p5) }
 0x154   : > { %1094 = vst [vmem:[%s1761_s18 + $0x28] sm:$0xff] %v1303_v55  ;;  %v1038_v3 = vmax.f32 %v1022_v56, 0.0  ;;  %v1023_v5 = vadd.f32 %v1007_v60, %v959_v57  ;;  %v960_v6 = vmul.f32 %v1756_v7, %v895_v58  ;;  %v1149_v7 = vld [vmem:[%s1761_s18] sm:$0xff] (%p1491_p5)  ;;  %1156 = vst [vmem:[%s1106_s28 + $0x30] sm:$0xff] (%p1491_p5), %v1155_v10 }
 0x155   : > { %1150 = vst [vmem:[%s1106_s28] sm:$0xff] (%p1491_p5), %v1149_v7 }
 0x156   : > { %v1304_v2 = vpack.c.bf16 %v1038_v3, %v1037_v62  ;;  %v1024_v8 = vadd.f32 %v1007_v60, %v960_v6  ;;  %v1039_v9 = vmax.f32 %v1023_v5, 0.0 }
 0x157   : > { %v1157_v12 = vld [vmem:[%s1761_s18 + $0x20] sm:$0xff] (%p1491_p5) }
 0x158   : > { %1095 = vst [vmem:[%s1761_s18 + $0x30] sm:$0xff] %v1304_v2  ;;  %v1040_v54 = vmax.f32 %v1024_v8, 0.0  ;;  %1103 = sbr.rel (!%p1491_p5) target bundleno = 357 (0x165), region = 82  ;;  %1158 = vst [vmem:[%s1106_s28 + $0x40] sm:$0xff] (%p1491_p5), %v1157_v12 }
 0x15a   : > { %v1305_v59 = vpack.c.bf16 %v1040_v54, %v1039_v9 }
 0x15b   : > { %v1159_v13 = vld [vmem:[%s1761_s18 + $0x28] sm:$0xff] (%p1491_p5) }
 0x15c   : > { %1096 = vst [vmem:[%s1761_s18 + $0x38] sm:$0xff] %v1305_v59  ;;  %1160 = vst [vmem:[%s1106_s28 + $0x50] sm:$0xff] (%p1491_p5), %v1159_v13 }
 0x15f   : > { %v1161_v14 = vld [vmem:[%s1761_s18 + $0x30] sm:$0xff] }
 0x160   : > { %1162 = vst [vmem:[%s1106_s28 + $0x60] sm:$0xff] %v1161_v14 }
 0x163   : > { %v1163_v4 = vld [vmem:[%s1761_s18 + $0x38] sm:$0xff] }
 0x164   : > { %1164 = vst [vmem:[%s1106_s28 + $0x70] sm:$0xff] %v1163_v4 }
 0x165 PF: > { %p12_p10 = scmp.ge.s32.totalorder %s1478_s22, 4   ;;  %s1822_s18 = smov %s1424_s19 }
 0x166   : > { %s1823_s19 = smov %s1489_s25  ;;  %s1824_s20 = smov %s1478_s22 }
 0x167   :  { %14 = sbr.rel (!%p12_p10) target bundleno = 2 (0x2), region = 151 }

// kernel: _lambda_.14
= control target key start
LH: loop header
LB: loop body
LE: loop exit
PB: predicated region body
PF: predicated region fallthrough
CT: control target
= control target key end

     0   :  { %v1352_v1 = vmov 0   ;;  %vm490_vm0 = vcmask 523264   ;;  %vm742_vm1 = vcmask 261120   ;;  %s1775_s0 = inlined_call_operand.vmem [shape: bf16[576,128], index: 0, kind: input, shape index: {}]   ;;  %s1776_s1 = inlined_call_operand.vmem [shape: bf16[64,576], index: 1, kind: input, shape index: {}]   ;;  %s1777_s4 = inlined_call_operand.vmem [shape: bf16[32,128], index: 4, kind: input, shape index: {}]   ;;  %s1778_s2 = inlined_call_operand.vmem [shape: f32[64,1], index: 2, kind: input, shape index: {}]   ;;  %s1779_s5 = inlined_call_operand.vmem [shape: f32[64,1], index: 5, kind: input, shape index: {}]   ;;  %s1780_s3 = inlined_call_operand.vmem [shape: bf16[64,32], index: 3, kind: input, shape index: {}]   ;;  %s1781_s6 = inlined_call_operand.vmem [shape: f32[64,1], index: 6, kind: input, shape index: {}]   ;;  %s1782_s7 = inlined_call_operand.vmem [shape: f32[64,1], index: 7, kind: input, shape index: {}]   ;;  %s1783_s8 = inlined_call_operand.vmem [shape: bf16[64,128], index: 8, kind: output, shape index: {}]  }
   0x1   :  { %v1282_v0 = vld [vmem:[%s1775_s0 + $0x78] sm:$0xff]   ;;  %1281 = vset.pattern.permute.xlu1 %v1352_v1  ;;  %1280 = vset.pattern.permute.xlu0 %v1352_v1  ;;  %v1286_v5 = vld [vmem:[%s1775_s0 + $0x70] sm:$0xff]   ;;  %v1290_v9 = vld [vmem:[%s1775_s0 + $0x68] sm:$0xff]  }
   0x2   :  { %v1283_v2 = vld [vmem:[%s1775_s0 + $0xf8] sm:$0xff]   ;;  %1157 = vmatprep.subr.bf16.mxu0 %v1282_v0  ;;  %v1287_v6 = vld [vmem:[%s1775_s0 + $0xf0] sm:$0xff]   ;;  %v1291_v10 = vld [vmem:[%s1775_s0 + $0xe8] sm:$0xff]  }
   0x3   :  { %v1284_v3 = vld [vmem:[%s1775_s0 + $0x38] sm:$0xff]   ;;  %1197 = vmatprep.subr.bf16.mxu1 %v1283_v2  ;;  %v1288_v7 = vld [vmem:[%s1775_s0 + $0x30] sm:$0xff]   ;;  %v1292_v11 = vld [vmem:[%s1775_s0 + $0x28] sm:$0xff]  }
   0x4   :  { %v1285_v4 = vld [vmem:[%s1775_s0 + $0xb8] sm:$0xff]   ;;  %1158 = vmatpush3.bf16.msra.mxu0 %v1284_v3  ;;  %v1289_v8 = vld [vmem:[%s1775_s0 + $0xb0] sm:$0xff]   ;;  %v1293_v12 = vld [vmem:[%s1775_s0 + $0xa8] sm:$0xff]  }
   0x5   :  { %1198 = vmatpush3.bf16.msra.mxu1 %v1285_v4  ;;  %1159 = vmatprep.subr.bf16.mxu0 %v1286_v5  ;;  %v1294_v13 = vld [vmem:[%s1775_s0 + $0x60] sm:$0xff]   ;;  %v1298_v17 = vld [vmem:[%s1775_s0 + $0x58] sm:$0xff]   ;;  %v1302_v21 = vld [vmem:[%s1775_s0 + $0x50] sm:$0xff]  }
   0x6   :  { %1199 = vmatprep.subr.bf16.mxu1 %v1287_v6  ;;  %v1295_v14 = vld [vmem:[%s1775_s0 + $0xe0] sm:$0xff]   ;;  %v1299_v18 = vld [vmem:[%s1775_s0 + $0xd8] sm:$0xff]   ;;  %v1303_v22 = vld [vmem:[%s1775_s0 + $0xd0] sm:$0xff]  }
   0x7   :  { %v1296_v15 = vld [vmem:[%s1775_s0 + $0x20] sm:$0xff]   ;;  %v1300_v19 = vld [vmem:[%s1775_s0 + $0x18] sm:$0xff]   ;;  %v1304_v23 = vld [vmem:[%s1775_s0 + $0x10] sm:$0xff]  }
   0x8   :  { %1160 = vmatpush3.bf16.msra.mxu0 %v1288_v7  ;;  %v1297_v16 = vld [vmem:[%s1775_s0 + $0xa0] sm:$0xff]   ;;  %v1301_v20 = vld [vmem:[%s1775_s0 + $0x98] sm:$0xff]   ;;  %v1305_v24 = vld [vmem:[%s1775_s0 + $0x90] sm:$0xff]  }
   0x9   :  { %1200 = vmatpush3.bf16.msra.mxu1 %v1289_v8  ;;  %1161 = vmatprep.subr.bf16.mxu0 %v1290_v9  ;;  %v1306_v25 = vld [vmem:[%s1775_s0 + $0x48] sm:$0xff]   ;;  %v1310_v29 = vld [vmem:[%s1775_s0 + $0x40] sm:$0xff]   ;;  %v1320_v37 = vld [vmem:[%s1775_s0 + $0x118] sm:$0xff]  }
   0xa   :  { %1201 = vmatprep.subr.bf16.mxu1 %v1291_v10  ;;  %v1307_v26 = vld [vmem:[%s1775_s0 + $0xc8] sm:$0xff]   ;;  %v1311_v30 = vld [vmem:[%s1775_s0 + $0xc0] sm:$0xff]   ;;  %v128_v39 = vld [vmem:[%s1778_s2 + $0x10] sm:$0xff] }
   0xb   :  { %v1308_v27 = vld [vmem:[%s1775_s0 + $0x8] sm:$0xff]   ;;  %v1312_v31 = vld [vmem:[%s1775_s0] sm:$0xff]   ;;  %146 = vperm.xlu1 %1281, %v128_v39   ;;  %v129_v43 = vld [vmem:[%s1778_s2 + $0x18] sm:$0xff] }
   0xc   :  { %1162 = vmatpush3.bf16.msra.mxu0 %v1292_v11  ;;  %v1309_v28 = vld [vmem:[%s1775_s0 + $0x88] sm:$0xff]   ;;  %v1313_v32 = vld [vmem:[%s1775_s0 + $0x80] sm:$0xff]   ;;  %v1328_v47 = vld [vmem:[%s1775_s0 + $0x110] sm:$0xff]  }
   0xd   :  { %1202 = vmatpush3.bf16.msra.mxu1 %v1293_v12  ;;  %1163 = vmatprep.subr.bf16.mxu0 %v1294_v13  ;;  %v1314_v33 = vld [vmem:[%s1776_s1] ss:$20 sps:$4 sm:$0xff]   ;;  %v1316_v34 = vld [vmem:[%s1776_s1 + $0x4] ss:$20 sps:$4 sm:$0xff]   ;;  %v1317_v35 = vld [vmem:[%s1776_s1 + $0x8] ss:$20 sps:$4 sm:$0xff]  }
   0xe   :  { %1203 = vmatprep.subr.bf16.mxu1 %v1295_v14  ;;  %v1319_v36 = vld [vmem:[%s1776_s1 + $0xc] ss:$20 sps:$4 sm:$0xff]   ;;  %535 = vmatprep.mubr.bf16.mxu0 %v1316_v34  ;;  %v1324_v42 = vld [vmem:[%s1776_s1 + $0x34] ss:$20 sps:$4 sm:$0xff]   ;;  %v1327_v46 = vld [vmem:[%s1776_s1 + $0x30] ss:$20 sps:$4 sm:$0xff]  }
   0xf   :  { %600 = vmatprep.mubr.bf16.mxu1 %v1319_v36  ;;  %v1321_v38 = vld [vmem:[%s1777_s4 + $0x8] sm:$0xff]   ;;  %v126_v40 = vld [vmem:[%s1778_s2] sm:$0xff]  ;;  %151 = vperm.xlu1 %1281, %v129_v43   ;;  %v1331_v50 = vld [vmem:[%s1776_s1 + $0x5c] ss:$20 sps:$4 sm:$0xff]  }
  0x10   :  { %1164 = vmatpush3.bf16.msra.mxu0 %v1296_v15  ;;  %v1322_v41 = vld [vmem:[%s1776_s1 + $0x2c] ss:$20 sps:$4 sm:$0xff]   ;;  %136 = vperm.xlu0 %1280, %v126_v40   ;;  %v1326_v45 = vld [vmem:[%s1776_s1 + $0x28] ss:$20 sps:$4 sm:$0xff]   ;;  %v132_v54 = vld [vmem:[%s1778_s2 + $0x30] sm:$0xff] }
  0x11   :  { %1204 = vmatpush3.bf16.msra.mxu1 %v1297_v16  ;;  %1165 = vmatprep.subr.bf16.mxu0 %v1298_v17  ;;  %v127_v44 = vld [vmem:[%s1778_s2 + $0x8] sm:$0xff]  ;;  %v130_v51 = vld [vmem:[%s1778_s2 + $0x20] sm:$0xff]  ;;  %v133_v52 = vld [vmem:[%s1778_s2 + $0x38] sm:$0xff] }
  0x12   :  { %1205 = vmatprep.subr.bf16.mxu1 %v1299_v18  ;;  %v1329_v48 = vld [vmem:[%s1776_s1 + $0x54] ss:$20 sps:$4 sm:$0xff]   ;;  %v1333_v55 = vld [vmem:[%s1776_s1 + $0x50] ss:$20 sps:$4 sm:$0xff]   ;;  %v1334_v57 = vld [vmem:[%s1776_s1 + $0x58] ss:$20 sps:$4 sm:$0xff]  }
  0x13   :  { %v131_v49 = vld [vmem:[%s1778_s2 + $0x28] sm:$0xff]  ;;  %v1336_v56 = vld [vmem:[%s1777_s4] sm:$0xff]   ;;  %v1337_v58 = vld [vmem:[%s1776_s1 + $0x7c] ss:$20 sps:$4 sm:$0xff]  }
  0x14   :  { %1166 = vmatpush3.bf16.msra.mxu0 %v1300_v19  ;;  %141 = vperm.xlu0 %1280, %v127_v44   ;;  %v1335_v53 = vld [vmem:[%s1775_s0 + $0x108] sm:$0xff]   ;;  %v1339_v59 = vld [vmem:[%s1776_s1 + $0x84] ss:$20 sps:$4 sm:$0xff]   ;;  %v830_v0 = vld [vmem:[%s1779_s5 + $0x10] sm:$0xff] }
  0x15   :  { %1206 = vmatpush3.bf16.msra.mxu1 %v1301_v20  ;;  %1167 = vmatprep.subr.bf16.mxu0 %v1302_v21  ;;  %v829_v60 = vld [vmem:[%s1779_s5 + $0x8] sm:$0xff]  ;;  %v1343_v61 = vld [vmem:[%s1775_s0 + $0x100] sm:$0xff]   ;;  %v831_v63 = vld [vmem:[%s1779_s5 + $0x18] sm:$0xff] }
  0x16   :  { %1207 = vmatprep.subr.bf16.mxu1 %v1303_v22  ;;  %161 = vperm.xlu1 %1281, %v131_v49   ;;  %v828_v62 = vld [vmem:[%s1779_s5] sm:$0xff]  ;;  %v1341_v1 = vld [vmem:[%s1776_s1 + $0x78] ss:$20 sps:$4 sm:$0xff]   ;;  %v834_v9 = vld [vmem:[%s1779_s5 + $0x30] sm:$0xff] }
  0x17   :  { %v1342_v2 = vld [vmem:[%s1776_s1 + $0x80] ss:$20 sps:$4 sm:$0xff]   ;;  %v1344_v3 = vld [vmem:[%s1776_s1 + $0x10] ss:$20 sps:$4 sm:$0xff]   ;;  %v833_v5 = vld [vmem:[%s1779_s5 + $0x28] sm:$0xff] }
  0x18   :  { %1168 = vmatpush3.bf16.msra.mxu0 %v1304_v23  ;;  %156 = vperm.xlu0 %1280, %v130_v51   ;;  %v1345_v4 = vld [vmem:[%s1780_s3] sm:$0xff]   ;;  %v835_v7 = vld [vmem:[%s1779_s5 + $0x38] sm:$0xff]  ;;  %v1347_v10 = vld [vmem:[%s1780_s3 + $0x8] sm:$0xff]  }
  0x19   :  { %1208 = vmatpush3.bf16.msra.mxu1 %v1305_v24  ;;  %1169 = vmatprep.subr.bf16.mxu0 %v1306_v25  ;;  %v832_v6 = vld [vmem:[%s1779_s5 + $0x20] sm:$0xff]  ;;  %v1346_v8 = vld [vmem:[%s1776_s1 + $0x38] ss:$20 sps:$4 sm:$0xff]   ;;  %v1349_v12 = vld [vmem:[%s1780_s3 + $0x10] sm:$0xff]  }
  0x1a   :  { %1209 = vmatprep.subr.bf16.mxu1 %v1307_v26  ;;  %171 = vperm.xlu1 %1281, %v133_v52   ;;  %v1348_v11 = vld [vmem:[%s1776_s1 + $0x60] ss:$20 sps:$4 sm:$0xff]   ;;  %v885_v13 = vld [vmem:[%s1781_s6 + $0x8] sm:$0xff]  ;;  %v887_v15 = vld [vmem:[%s1781_s6 + $0x18] sm:$0xff] }
  0x1b   :  { %v884_v14 = vld [vmem:[%s1781_s6] sm:$0xff]  ;;  %v1350_v16 = vld [vmem:[%s1776_s1 + $0x88] ss:$20 sps:$4 sm:$0xff]   ;;  %v886_v17 = vld [vmem:[%s1781_s6 + $0x10] sm:$0xff] }
  0x1c   :  { %1170 = vmatpush3.bf16.msra.mxu0 %v1308_v27  ;;  %166 = vperm.xlu0 %1280, %v132_v54   ;;  %v1351_v18 = vld [vmem:[%s1780_s3 + $0x18] sm:$0xff]   ;;  %v889_v19 = vld [vmem:[%s1781_s6 + $0x28] sm:$0xff]  ;;  %v888_v20 = vld [vmem:[%s1781_s6 + $0x20] sm:$0xff] }
  0x1d   :  { %1210 = vmatpush3.bf16.msra.mxu1 %v1309_v28  ;;  %1171 = vmatprep.subr.bf16.mxu0 %v1310_v29  ;;  %v891_v21 = vld [vmem:[%s1781_s6 + $0x38] sm:$0xff]  ;;  %v890_v22 = vld [vmem:[%s1781_s6 + $0x30] sm:$0xff]  ;;  %v941_v23 = vld [vmem:[%s1782_s7 + $0x8] sm:$0xff] }
  0x1e   :  { %1211 = vmatprep.subr.bf16.mxu1 %v1311_v30  ;;  %843 = vperm.xlu1 %1281, %v829_v60   ;;  %v940_v24 = vld [vmem:[%s1782_s7] sm:$0xff]  ;;  %v943_v25 = vld [vmem:[%s1782_s7 + $0x18] sm:$0xff]  ;;  %v942_v26 = vld [vmem:[%s1782_s7 + $0x10] sm:$0xff] }
  0x1f   :  { %v945_v27 = vld [vmem:[%s1782_s7 + $0x28] sm:$0xff]  ;;  %v944_v28 = vld [vmem:[%s1782_s7 + $0x20] sm:$0xff]  ;;  %v947_v29 = vld [vmem:[%s1782_s7 + $0x38] sm:$0xff] }
  0x20   :  { %1172 = vmatpush3.bf16.msra.mxu0 %v1312_v31  ;;  %838 = vperm.xlu0 %1280, %v828_v62   ;;  %v946_v30 = vld [vmem:[%s1782_s7 + $0x30] sm:$0xff] }
  0x21   :  { %1212 = vmatpush3.bf16.msra.mxu1 %v1313_v32  ;;  %1251 = vmatprep.subr.bf16.mxu0 %v1320_v37 }
  0x22   :  { %1267 = vmatprep.subr.bf16.mxu1 %v1321_v38  ;;  %853 = vperm.xlu1 %1281, %v831_v63  }
  0x23   :  { %536 = vmatmul.mubr.bf16.vlgmr.msra.gmra.mxu0 %v1314_v33 }
  0x24   :  { %601 = vmatmul.mubr.bf16.vlgmr.msra.gmra.mxu1 %v1317_v35  ;;  %1252 = vmatpush3.bf16.msra.mxu0 %v1320_v37 }
  0x25   :  { %1268 = vmatpush3.bf16.msra.mxu1 %v1321_v38  ;;  %543 = vmatprep.mubr.bf16.mxu0 %v1322_v41 }
  0x26   :  { %608 = vmatprep.mubr.bf16.mxu1 %v1324_v42  ;;  %1253 = vmatprep.subr.bf16.mxu0 %v1328_v47 }
  0x27   :  { %1269 = vmatprep.subr.bf16.mxu1 %v1336_v56  ;;  %848 = vperm.xlu0 %1280, %v830_v0  }
  0x28   :  { %1254 = vmatpush3.bf16.msra.mxu0 %v1328_v47  ;;  %863 = vperm.xlu1 %1281, %v833_v5  }
  0x29   :  { %1255 = vmatprep.subr.bf16.mxu0 %v1335_v53  ;;  %1270 = vmatpush3.bf16.msra.mxu1 %v1336_v56 }
  0x2b   :  { %544 = vmatmul.mubr.bf16.gmra.mxu0 %v1326_v45  ;;  %858 = vperm.xlu0 %1280, %v832_v6  }
  0x2c   :  { %609 = vmatmul.mubr.bf16.gmra.mxu1 %v1327_v46  ;;  %551 = vmatprep.mubr.bf16.mxu0 %v1329_v48 }
  0x2d   :  { %616 = vmatprep.mubr.bf16.mxu1 %v1331_v50  ;;  %1256 = vmatpush3.bf16.msra.mxu0 %v1335_v53 }
  0x2e   :  { %1257 = vmatprep.subr.bf16.mxu0 %v1343_v61  ;;  %873 = vperm.xlu1 %1281, %v835_v7  }
  0x2f   :  { %868 = vperm.xlu0 %1280, %v834_v9  }
  0x31   :  { %1258 = vmatpush3.bf16.msra.mxu0 %v1343_v61 }
  0x32   :  { %899 = vperm.xlu1 %1281, %v885_v13  }
  0x33   :  { %552 = vmatmul.mubr.bf16.gmra.mxu0 %v1333_v55  ;;  %894 = vperm.xlu0 %1280, %v884_v14  }
  0x34   :  { %617 = vmatmul.mubr.bf16.gmra.mxu1 %v1334_v57  ;;  %559 = vmatprep.mubr.bf16.mxu0 %v1337_v58 }
  0x35   :  { %624 = vmatprep.mubr.bf16.mxu1 %v1339_v59 }
  0x36   :  { %909 = vperm.xlu1 %1281, %v887_v15  }
  0x37   :  { %904 = vperm.xlu0 %1280, %v886_v17  }
  0x3a   :  { %919 = vperm.xlu1 %1281, %v889_v19  }
  0x3b   :  { %560 = vmatmul.mubr.bf16.gmra.mxu0 %v1341_v1  ;;  %914 = vperm.xlu0 %1280, %v888_v20  }
  0x3c   :  { %625 = vmatmul.mubr.bf16.gmra.mxu1 %v1342_v2  ;;  %1259 = vmatprep.mubr.msk.bf16.mxu0 %vm490_vm0, %v1344_v3 }
  0x3d   :  { %1271 = vmatprep.mubr.msk.bf16.mxu1 %vm742_vm1, %v1345_v4 }
  0x3e   :  { %929 = vperm.xlu1 %1281, %v891_v21  }
  0x3f   :  { %924 = vperm.xlu0 %1280, %v890_v22  }
  0x42   :  { %955 = vperm.xlu1 %1281, %v941_v23  }
  0x43   :  { %1260 = vmatmul.mubr.msk.bf16.vlgmr.msra.gmra.mxu0 %vm490_vm0, %v1346_v8  ;;  %950 = vperm.xlu0 %1280, %v940_v24  }
  0x44   :  { %1272 = vmatmul.mubr.msk.bf16.vlgmr.msra.gmra.mxu1 %vm742_vm1, %v1347_v10  ;;  %1263 = vmatprep.mubr.msk.bf16.mxu0 %vm490_vm0, %v1348_v11 }
  0x45   :  { %1275 = vmatprep.mubr.msk.bf16.mxu1 %vm742_vm1, %v1349_v12 }
  0x46   :  { %965 = vperm.xlu1 %1281, %v943_v25  }
  0x47   :  { %960 = vperm.xlu0 %1280, %v942_v26  }
  0x4a   :  { %975 = vperm.xlu1 %1281, %v945_v27  }
  0x4b   :  { %1264 = vmatmul.mubr.msk.bf16.gmra.mxu0 %vm490_vm0, %v1350_v16  ;;  %970 = vperm.xlu0 %1280, %v944_v28  }
  0x4c   :  { %1276 = vmatmul.mubr.msk.bf16.gmra.mxu1 %vm742_vm1, %v1351_v18 }
  0x4e   :  { %985 = vperm.xlu1 %1281, %v947_v29  }
  0x4f   :  { %980 = vperm.xlu0 %1280, %v946_v30  }
  0x86   :  { %v147_v32 = vpop.permute.xlu1 %146 }
  0x8a   :  { %v152_v34 = vpop.permute.xlu1 %151 }
  0x8b   :  { %v137_v31 = vpop.permute.xlu0 %136 }
  0x8f   :  { %v1688_v33 = vpop.permute.xlu0 %141 }
  0x91   :  { %v1692_v36 = vpop.permute.xlu1 %161 }
  0x93   :  { %v1690_v35 = vpop.permute.xlu0 %156 }
  0x95   :  { %v1696_v38 = vpop.permute.xlu1 %171 }
  0x97   :  { %v1694_v37 = vpop.permute.xlu0 %166 }
  0x99   :  { %v1700_v40 = vpop.permute.xlu1 %843 }
  0x9b   :  { %v1698_v39 = vpop.permute.xlu0 %838 }
  0x9d   :  { %v1704_v42 = vpop.permute.xlu1 %853 }
  0xa2   :  { %v1702_v41 = vpop.permute.xlu0 %848 }
  0xa3   :  { %v1708_v44 = vpop.permute.xlu1 %863 }
  0xa4   :  { %1784 = vst [vmem:[#allocation2_spill] sm:$0xff] %v1708_v44 }
  0xa6   :  { %v1706_v43 = vpop.permute.xlu0 %858 }
  0xa9   :  { %v1712_v50 = vpop.permute.xlu1 %873 }
  0xaa   :  { %v1710_v47 = vpop.permute.xlu0 %868 }
  0xad   :  { %v1716_v58 = vpop.permute.xlu1 %899 }
  0xae   :  { %v1714_v55 = vpop.permute.xlu0 %894 }
  0xb1   :  { %v1720_v2 = vpop.permute.xlu1 %909 }
  0xb2   :  { %v1718_v63 = vpop.permute.xlu0 %904 }
  0xb5   :  { %v1730_v10 = vpop.permute.xlu1 %919 }
  0xb6   :  { %v1726_v7 = vpop.permute.xlu0 %914  ;;  %1786 = vst [vmem:[#allocation4_spill] sm:$0xff] %v1730_v10 }
  0xb7   :  { %1785 = vst [vmem:[#allocation3_spill] sm:$0xff] %v1726_v7 }
  0xb9   :  { %v1736_v22 = vpop.permute.xlu1 %929 }
  0xba   :  { %v1734_v17 = vpop.permute.xlu0 %924  ;;  %1787 = vst [vmem:[#allocation5_spill] sm:$0xff] %v1736_v22 }
  0xbd   :  { %v956_v22 = vpop.permute.xlu1 %955 }
  0xe3   :  { %v1173_v45 = vpop.f32.mrf.mxu0 }
  0xe4   :  { %v1213_v46 = vpop.f32.mrf.mxu1 }
  0xe5   :  { %v1174_v48 = vpop.f32.mrf.mxu0 }
  0xe6   :  { %v1214_v49 = vpop.f32.mrf.mxu1  ;;  %v1175_v15 = vadd.f32 %v1174_v48, %v1173_v45  ;;  %v951_v45 = vpop.permute.xlu0 %950 }
  0xe7   :  { %v1176_v51 = vpop.f32.mrf.mxu0  ;;  %v1215_v29 = vadd.f32 %v1214_v49, %v1213_v46 }
  0xe8   :  { %v1216_v52 = vpop.f32.mrf.mxu1  ;;  %v538_v24 = vadd.f32 %v1175_v15, %v137_v31 }
  0xe9   :  { %v1177_v53 = vpop.f32.mrf.mxu0 }
  0xea   :  { %v1217_v54 = vpop.f32.mrf.mxu1  ;;  %v1178_v25 = vadd.f32 %v1177_v53, %v1176_v51 }
  0xeb   :  { %v1179_v56 = vpop.f32.mrf.mxu0  ;;  %v1218_v53 = vadd.f32 %v1217_v54, %v1216_v52 }
  0xec   :  { %v1219_v57 = vpop.f32.mrf.mxu1  ;;  %v541_v44 = vadd.f32 %v1178_v25, %v1688_v33 }
  0xed   :  { %v1180_v59 = vpop.f32.mrf.mxu0 }
  0xee   :  { %v1220_v60 = vpop.f32.mrf.mxu1  ;;  %v1181_v12 = vadd.f32 %v1180_v59, %v1179_v56 }
  0xef   :  { %v1182_v61 = vpop.f32.mrf.mxu0  ;;  %v1221_v26 = vadd.f32 %v1220_v60, %v1219_v57 }
  0xf0   :  { %v1222_v62 = vpop.f32.mrf.mxu1  ;;  %v546_v19 = vadd.f32 %v1181_v12, %v147_v32  ;;  %v603_v12 = vadd.f32 %v1215_v29, %v538_v24  ;;  %v966_v24 = vpop.permute.xlu1 %965 }
  0xf1   :  { %v1183_v0 = vpop.f32.mrf.mxu0 }
  0xf2   :  { %v1223_v1 = vpop.f32.mrf.mxu1  ;;  %v1184_v20 = vadd.f32 %v1183_v0, %v1182_v61  ;;  %v611_v59 = vadd.f32 %v1221_v26, %v546_v19  ;;  %v961_v19 = vpop.permute.xlu0 %960 }
  0xf3   :  { %v1185_v3 = vpop.f32.mrf.mxu0  ;;  %v1224_v32 = vadd.f32 %v1223_v1, %v1222_v62 }
  0xf4   :  { %v1722_v4 = vpop.f32.mrf.mxu1  ;;  %v549_v30 = vadd.f32 %v1184_v20, %v152_v34 }
  0xf5   :  { %v1186_v5 = vpop.f32.mrf.mxu0 }
  0xf6   :  { %v1724_v6 = vpop.f32.mrf.mxu1  ;;  %v1187_v7 = vadd.f32 %v1186_v5, %v1185_v3  ;;  %v614_v34 = vadd.f32 %v1224_v32, %v549_v30 }
  0xf7   :  { %v1188_v8 = vpop.f32.mrf.mxu0 }
  0xf8   :  { %v1728_v9 = vpop.f32.mrf.mxu1  ;;  %v554_v3 = vadd.f32 %v1187_v7, %v1690_v35 }
  0xf9   :  { %v1189_v11 = vpop.f32.mrf.mxu0 }
  0xfa   :  { %v1732_v13 = vpop.f32.mrf.mxu1  ;;  %v1190_v49 = vadd.f32 %v1189_v11, %v1188_v8 }
  0xfb   :  { %v1191_v14 = vpop.f32.mrf.mxu0  ;;  %v1230_v30 = vadd.f32 %v1732_v13, %v1728_v9 }
  0xfc   :  { %v1231_v16 = vpop.f32.mrf.mxu1 }
  0xfd   :  { %v1192_v18 = vpop.f32.mrf.mxu0 }
  0xfe   :  { %v1232_v21 = vpop.f32.mrf.mxu1  ;;  %v1193_v48 = vadd.f32 %v1192_v18, %v1191_v14 }
  0xff   :  { %v1194_v23 = vpop.f32.mrf.mxu0  ;;  %v1233_v5 = vadd.f32 %v1232_v21, %v1231_v16 }
 0x100   :  { %v1234_v27 = vpop.f32.mrf.mxu1  ;;  %v562_v15 = vadd.f32 %v1193_v48, %v1694_v37 }
 0x101   :  { %v1195_v28 = vpop.f32.mrf.mxu0 }
 0x102   :  { %v1235_v56 = vpop.f32.mrf.mxu1  ;;  %v1196_v31 = vadd.f32 %v1195_v28, %v1194_v23  ;;  %v627_v25 = vadd.f32 %v1233_v5, %v562_v15 }
 0x103   :  { %v1261_v10 = vpop.f32.mrf.mxu0  ;;  %v1236_v35 = vadd.f32 %v1235_v56, %v1234_v27  ;;  %v971_v27 = vpop.permute.xlu0 %970 }
 0x104   :  { %v676_v61 = vadd.f32 %v1261_v10, %v611_v59  ;;  %v1273_v0 = vpop.f32.mrf.mxu1  ;;  %v606_v10 = vadd.f32 %v1218_v53, %v541_v44  ;;  %v565_v52 = vadd.f32 %v1196_v31, %v1696_v38  ;;  %v557_v44 = vadd.f32 %v1190_v49, %v1692_v36 }
 0x105   :  { %v667_v51 = vpop.f32.mrf.mxu0 }
 0x106   :  { %v822_v57 = vadd.f32 %v1273_v0, %v676_v61  ;;  %v668_v60 = vadd.f32 %v667_v51, %v603_v12  ;;  %v789_v46 = vpop.f32.mrf.mxu1  ;;  %v630_v59 = vadd.f32 %v1236_v35, %v565_v52  ;;  %v622_v31 = vadd.f32 %v1230_v30, %v557_v44  ;;  %v976_v51 = vpop.permute.xlu1 %975 }
 0x107   :  { %v1262_v14 = vpop.f32.mrf.mxu0 }
 0x108   :  { %v878_v18 = vadd.f32 %v1702_v41, %v822_v57  ;;  %v820_v33 = vadd.f32 %v789_v46, %v668_v60  ;;  %v679_v62 = vadd.f32 %v1262_v14, %v614_v34  ;;  %v1274_v1 = vpop.f32.mrf.mxu1  ;;  %v1227_v41 = vadd.f32 %v1724_v6, %v1722_v4 }
 0x109   :  { %v670_v54 = vpop.f32.mrf.mxu0 }
 0x10a   :  { %v934_v20 = vmul.f32 %v1718_v63, %v878_v18  ;;  %v876_v8 = vadd.f32 %v1698_v39, %v820_v33  ;;  %v823_v11 = vadd.f32 %v1274_v1, %v679_v62  ;;  %v671_v37 = vadd.f32 %v670_v54, %v606_v10  ;;  %v792_v23 = vpop.f32.mrf.mxu1  ;;  %v981_v62 = vpop.permute.xlu0 %980  ;;  %v1788_v1 = vld [vmem:[#allocation3_spill] sm:$0xff]  ;;  %v1791_v54 = vld [vmem:[#allocation4_spill] sm:$0xff] }
 0x10b   :  { %v1265_v26 = vpop.f32.mrf.mxu0  ;;  %v619_v28 = vadd.f32 %v1227_v41, %v554_v3 }
 0x10c   :  { %v932_v7 = vmul.f32 %v1714_v55, %v876_v8  ;;  %v879_v38 = vadd.f32 %v1704_v42, %v823_v11  ;;  %v821_v16 = vadd.f32 %v792_v23, %v671_v37  ;;  %v1277_v63 = vpop.f32.mrf.mxu1  ;;  %v990_v21 = vadd.f32 %v961_v19, %v934_v20  ;;  %v1789_v19 = vld [vmem:[#allocation5_spill] sm:$0xff] }
 0x10d   :  { %v692_v39 = vadd.f32 %v1265_v26, %v627_v25  ;;  %v683_v29 = vpop.f32.mrf.mxu0 }
 0x10e   :  { %v935_v4 = vmul.f32 %v1720_v2, %v879_v38  ;;  %v877_v36 = vadd.f32 %v1700_v40, %v821_v16  ;;  %v805_v6 = vpop.f32.mrf.mxu1  ;;  %v988_v56 = vadd.f32 %v951_v45, %v932_v7  ;;  %v684_v48 = vadd.f32 %v683_v29, %v619_v28 }
 0x10f   :  { %v826_v55 = vadd.f32 %v1277_v63, %v692_v39  ;;  %v1266_v42 = vpop.f32.mrf.mxu0  ;;  %v998_v53 = vmax.f32 %v990_v21, 0.0 }
 0x110   :  { %v991_v32 = vadd.f32 %v966_v24, %v935_v4  ;;  %v933_v61 = vmul.f32 %v1716_v58, %v877_v36  ;;  %v695_v0 = vadd.f32 %v1266_v42, %v630_v59  ;;  %v1278_v12 = vpop.f32.mrf.mxu1  ;;  %v824_v2 = vadd.f32 %v805_v6, %v684_v48 }
 0x111   :  { %v882_v9 = vadd.f32 %v1710_v47, %v826_v55  ;;  %v686_v13 = vpop.f32.mrf.mxu0  ;;  %v996_v45 = vmax.f32 %v988_v56, 0.0 }
 0x112   :  { %v999_v40 = vmax.f32 %v991_v32, 0.0  ;;  %v989_v57 = vadd.f32 %v956_v22, %v933_v61  ;;  %v827_v60 = vadd.f32 %v1278_v12, %v695_v0  ;;  %v687_v46 = vadd.f32 %v686_v13, %v622_v31  ;;  %v808_v15 = vpop.f32.mrf.mxu1 }
 0x113   :  { %v938_v34 = vmul.f32 %v1734_v17, %v882_v9  ;;  %v880_v49 = vadd.f32 %v1706_v43, %v824_v2  ;;  %v1790_v17 = vld [vmem:[#allocation2_spill] sm:$0xff]  ;;  %v986_v43 = vpop.permute.xlu1 %985 }
 0x114   :  { %v1142_v58 = vpack.c.bf16 %v999_v40, %v998_v53  ;;  %v997_v14 = vmax.f32 %v989_v57, 0.0  ;;  %v883_v18 = vadd.f32 %v1712_v50, %v827_v60  ;;  %v825_v33 = vadd.f32 %v808_v15, %v687_v46 }
 0x115   :  { %v936_v47 = vmul.f32 %v1788_v1, %v880_v49  ;;  %v994_v10 = vadd.f32 %v981_v62, %v938_v34 }
 0x116   :  { %1154 = vst [vmem:[%s1783_s8 + $0x8] sm:$0xff] %v1142_v58   ;;  %v1137_v22 = vpack.c.bf16 %v997_v14, %v996_v45  ;;  %v939_v3 = vmul.f32 %v1789_v19, %v883_v18  ;;  %v881_v5 = vadd.f32 %v1790_v17, %v825_v33 }
 0x117   :  { %v992_v50 = vadd.f32 %v971_v27, %v936_v47  ;;  %v1002_v8 = vmax.f32 %v994_v10, 0.0 }
 0x118   :  { %1138 = vst [vmem:[%s1783_s8] sm:$0xff] %v1137_v22   ;;  %v995_v52 = vadd.f32 %v986_v43, %v939_v3  ;;  %v937_v20 = vmul.f32 %v1791_v54, %v881_v5 }
 0x119   :  { %v1000_v23 = vmax.f32 %v992_v50, 0.0 }
 0x11a   :  { %v1003_v11 = vmax.f32 %v995_v52, 0.0  ;;  %v993_v37 = vadd.f32 %v976_v51, %v937_v20 }
 0x11c   :  { %v1152_v24 = vpack.c.bf16 %v1003_v11, %v1002_v8  ;;  %v1001_v41 = vmax.f32 %v993_v37, 0.0 }
 0x11e   :  { %1156 = vst [vmem:[%s1783_s8 + $0x18] sm:$0xff] %v1152_v24   ;;  %v1147_v44 = vpack.c.bf16 %v1001_v41, %v1000_v23 }
 0x120   :  { %1155 = vst [vmem:[%s1783_s8 + $0x10] sm:$0xff] %v1147_v44  }

// kernel: _lambda_.15
= control target key start
LH: loop header
LB: loop body
LE: loop exit
PB: predicated region body
PF: predicated region fallthrough
CT: control target
= control target key end

     0   :  { %vm168_vm0 = vcmask 523264   ;;  %v378_v29 = vmov 0   ;;  %vm252_vm1 = vcmask 9216   ;;  %vm250_vm2 = vcmask 15360   ;;  %s484_s1 = inlined_call_operand.vmem [shape: f32[128,2], index: 1, kind: input, shape index: {}]   ;;  %s485_s0 = inlined_call_operand.vmem [shape: bf16[64,128], index: 0, kind: input, shape index: {}]   ;;  %s486_s2 = inlined_call_operand.vmem [shape: f32[10,64], index: 2, kind: input, shape index: {}]   ;;  %s487_s3 = inlined_call_operand.vmem [shape: f32[10,1], index: 3, kind: input, shape index: {}]   ;;  %s488_s4 = inlined_call_operand.vmem [shape: f32[10,2], index: 4, kind: output, shape index: {}]  }
   0x1   :  { %v48_v0 = vld [vmem:[%s484_s1 + $0x78] sm:$0xff]  ;;  %v47_v1 = vld [vmem:[%s484_s1 + $0x70] sm:$0xff]  ;;  %v46_v2 = vld [vmem:[%s484_s1 + $0x68] sm:$0xff]  ;;  %377 = vset.pattern.permute.xlu0 %v378_v29 }
   0x2   :  { %313 = vmatprep.subr.mxu0 %v48_v0  ;;  %v45_v3 = vld [vmem:[%s484_s1 + $0x60] sm:$0xff]  ;;  %v44_v5 = vld [vmem:[%s484_s1 + $0x58] sm:$0xff]  ;;  %v43_v7 = vld [vmem:[%s484_s1 + $0x50] sm:$0xff] }
   0x3   :  { %314 = vmatpush3.msra.mxu0 %v48_v0  ;;  %v261_v4 = vld [vmem:[%s485_s0] sm:$0xff]   ;;  %v42_v8 = vld [vmem:[%s484_s1 + $0x48] sm:$0xff]  ;;  %v40_v10 = vld [vmem:[%s484_s1 + $0x38] sm:$0xff] }
   0x4   :  { %315 = vmatprep.subr.mxu0 %v47_v1  ;;  %v262_v6 = vunpack.c.l.bf16 %v261_v4  ;;  %v41_v9 = vld [vmem:[%s484_s1 + $0x40] sm:$0xff]  ;;  %v39_v11 = vld [vmem:[%s484_s1 + $0x30] sm:$0xff]  ;;  %v38_v12 = vld [vmem:[%s484_s1 + $0x28] sm:$0xff]  ;;  %v263_v19 = vunpack.c.h.bf16 %v261_v4 }
   0x5   :  { %316 = vmatpush3.msra.mxu0 %v47_v1  ;;  %v37_v13 = vld [vmem:[%s484_s1 + $0x20] sm:$0xff]  ;;  %v36_v14 = vld [vmem:[%s484_s1 + $0x18] sm:$0xff]  ;;  %v35_v15 = vld [vmem:[%s484_s1 + $0x10] sm:$0xff] }
   0x6   :  { %317 = vmatprep.subr.mxu0 %v46_v2  ;;  %345 = vmatprep.mubr.f32.mxu0 %v262_v6  ;;  %v34_v16 = vld [vmem:[%s484_s1 + $0x8] sm:$0xff]  ;;  %v33_v18 = vld [vmem:[%s484_s1] sm:$0xff]  ;;  %v277_v21 = vld [vmem:[%s485_s0 + $0x10] sm:$0xff]  }
   0x7   :  { %318 = vmatpush3.msra.mxu0 %v46_v2  ;;  %v276_v17 = vld [vmem:[%s485_s0 + $0x8] sm:$0xff]   ;;  %v270_v23 = vunpack.c.l.bf16 %v277_v21  ;;  %v278_v24 = vld [vmem:[%s485_s0 + $0x18] sm:$0xff]   ;;  %v271_v25 = vunpack.c.h.bf16 %v277_v21  ;;  %v154_v28 = vld [vmem:[%s486_s2] sm:$0xff] }
   0x8   :  { %319 = vmatprep.subr.mxu0 %v45_v3  ;;  %v266_v20 = vunpack.c.l.bf16 %v276_v17  ;;  %v267_v22 = vunpack.c.h.bf16 %v276_v17  ;;  %v274_v26 = vunpack.c.l.bf16 %v278_v24  ;;  %v275_v27 = vunpack.c.h.bf16 %v278_v24  ;;  %373 = vmatprep.mubr.msk.f32.mxu1 %vm168_vm0, %v154_v28  ;;  %v156_v30 = vld [vmem:[%s487_s3] sm:$0xff]  ;;  %v157_v31 = vld [vmem:[%s487_s3 + $0x8] sm:$0x3] }
   0x9   :  { %320 = vmatpush3.msra.mxu0 %v45_v3  ;;  %160 = vperm.xlu0 %377, %v156_v30   ;;  %v155_v40 = vld [vmem:[%s486_s2 + $0x8] sm:$0x3] }
   0xa   :  { %321 = vmatprep.subr.mxu0 %v44_v5 }
   0xb   :  { %322 = vmatpush3.msra.mxu0 %v44_v5 }
   0xc   :  { %323 = vmatprep.subr.mxu0 %v43_v7 }
   0xd   :  { %324 = vmatpush3.msra.mxu0 %v43_v7  ;;  %165 = vperm.xlu0 %377, %v157_v31  }
   0xe   :  { %325 = vmatprep.subr.mxu0 %v42_v8 }
   0xf   :  { %326 = vmatpush3.msra.mxu0 %v42_v8 }
  0x10   :  { %327 = vmatprep.subr.mxu0 %v41_v9 }
  0x11   :  { %328 = vmatpush3.msra.mxu0 %v41_v9 }
  0x12   :  { %329 = vmatprep.subr.mxu0 %v40_v10 }
  0x13   :  { %330 = vmatpush3.msra.mxu0 %v40_v10 }
  0x14   :  { %331 = vmatprep.subr.mxu0 %v39_v11 }
  0x15   :  { %332 = vmatpush3.msra.mxu0 %v39_v11 }
  0x16   :  { %333 = vmatprep.subr.mxu0 %v38_v12 }
  0x17   :  { %334 = vmatpush3.msra.mxu0 %v38_v12 }
  0x18   :  { %335 = vmatprep.subr.mxu0 %v37_v13 }
  0x19   :  { %336 = vmatpush3.msra.mxu0 %v37_v13 }
  0x1a   :  { %337 = vmatprep.subr.mxu0 %v36_v14 }
  0x1b   :  { %338 = vmatpush3.msra.mxu0 %v36_v14 }
  0x1c   :  { %339 = vmatprep.subr.mxu0 %v35_v15 }
  0x1d   :  { %340 = vmatpush3.msra.mxu0 %v35_v15 }
  0x1e   :  { %341 = vmatprep.subr.mxu0 %v34_v16 }
  0x1f   :  { %342 = vmatpush3.msra.mxu0 %v34_v16 }
  0x20   :  { %343 = vmatprep.subr.mxu0 %v33_v18 }
  0x21   :  { %344 = vmatpush3.msra.mxu0 %v33_v18 }
  0x22   :  { %346 = vmatmul.mubr.f32.vlgmr.msra.gmra.mxu0 %v263_v19 }
  0x23   :  { %348 = vmatprep.mubr.f32.mxu0 %v266_v20 }
  0x26   :  { %349 = vmatmul.mubr.f32.gmra.mxu0 %v267_v22 }
  0x27   :  { %351 = vmatprep.mubr.f32.mxu0 %v270_v23 }
  0x2a   :  { %352 = vmatmul.mubr.f32.gmra.mxu0 %v271_v25 }
  0x2b   :  { %354 = vmatprep.mubr.f32.mxu0 %v274_v26 }
  0x2e   :  { %355 = vmatmul.mubr.f32.gmra.mxu0 %v275_v27 }
  0x84   :  { %v161_v41 = vpop.permute.xlu0 %160 }
  0x88   :  { %v166_v42 = vpop.permute.xlu0 %165 }
  0xe2   :  { %v347_v32 = vpop.f32.mrf.mxu0 }
  0xe4   :  { %v115_v33 = vpop.f32.mrf.mxu0 }
  0xe6   :  { %v350_v34 = vpop.f32.mrf.mxu0 }
  0xe8   :  { %v125_v35 = vpop.f32.mrf.mxu0 }
  0xea   :  { %v353_v36 = vpop.f32.mrf.mxu0 }
  0xec   :  { %v135_v37 = vpop.f32.mrf.mxu0 }
  0xee   :  { %v356_v38 = vpop.f32.mrf.mxu0 }
  0xef   :  { %357 = vmatprep.subr.mxu1 %v356_v38 }
  0xf0   :  { %v145_v39 = vpop.f32.mrf.mxu0  ;;  %358 = vmatpush3.msra.mxu1 %v356_v38 }
  0xf1   :  { %359 = vmatprep.subr.mxu1 %v145_v39 }
  0xf2   :  { %360 = vmatpush3.msra.mxu1 %v145_v39 }
  0xf3   :  { %361 = vmatprep.subr.mxu1 %v353_v36 }
  0xf4   :  { %362 = vmatpush3.msra.mxu1 %v353_v36 }
  0xf5   :  { %363 = vmatprep.subr.mxu1 %v135_v37 }
  0xf6   :  { %364 = vmatpush3.msra.mxu1 %v135_v37 }
  0xf7   :  { %365 = vmatprep.subr.mxu1 %v350_v34 }
  0xf8   :  { %366 = vmatpush3.msra.mxu1 %v350_v34 }
  0xf9   :  { %367 = vmatprep.subr.mxu1 %v125_v35 }
  0xfa   :  { %368 = vmatpush3.msra.mxu1 %v125_v35 }
  0xfb   :  { %369 = vmatprep.subr.mxu1 %v347_v32 }
  0xfc   :  { %370 = vmatpush3.msra.mxu1 %v347_v32 }
  0xfd   :  { %371 = vmatprep.subr.mxu1 %v115_v33 }
  0xfe   :  { %372 = vmatpush3.msra.mxu1 %v115_v33 }
  0xff   :  { %374 = vmatmul.mubr.msk.f32.vlgmr.msra.gmra.mxu1 %vm168_vm0, %v155_v40 }
 0x1bf   :  { %v375_v43 = vpop.f32.mrf.mxu1 }
 0x1c0   :  { %v247_v44 = vadd.f32 %v375_v43, %v166_v42 }
 0x1c1   :  { %v241_v45 = vpop.f32.mrf.mxu1 }
 0x1c2   :  { %253 = vst.msk [vmem:[%s488_s4 + $0x8] sm:$0x3] %vm252_vm1, %v247_v44  ;;  %v242_v46 = vadd.f32 %v241_v45, %v161_v41 }
 0x1c4   :  { %251 = vst.msk [vmem:[%s488_s4] sm:$0xff] %vm250_vm2, %v242_v46 }

</bundles_post_ra>
